<compile_context>
chip_gen: v7x
topology: tpu7x:2x2x1
jax: 0.10.0
libtpu: 0.0.40
codegen_flags: <defaults>
</compile_context>

<pallas_src>
import functools

import jax
import jax.numpy as jnp
from jax.experimental import pallas as pl
from jax.experimental.pallas import tpu as pltpu


# ---------------------------------------------------------------------------
# Pallas kernel: fused KANLinear forward on a (tile_n, in_dim) row tile.
# ---------------------------------------------------------------------------
def _kan_linear_kernel(x_ref, knots_ref, w_ref, o_ref, *,
                       spline_order: int, n_basis: int):
    # x_ref:     (tile_n, in_dim)
    # knots_ref: (n_knots, 1, in_dim), n_knots = grid_size + 2*spline_order + 1
    # w_ref:     ((n_basis + 1) * in_dim, out_pad)  -- f32, prepared in wrapper
    # o_ref:     (tile_n, out_pad)
    x = x_ref[...].astype(jnp.float32)

    n_knots = knots_ref.shape[0]
    g = [knots_ref[t] for t in range(n_knots)]          # each (1, in_dim) f32

    # Base path: SiLU(x) = x * sigmoid(x).
    base_chunk = x * (1.0 / (1.0 + jnp.exp(-x)))

    # B-spline bases (Cox-de Boor recurrence), fully unrolled (tiny trip counts).
    bases = []
    for t in range(n_knots - 1):
        bases.append(((x >= g[t]) & (x < g[t + 1])).astype(jnp.float32))
    for k in range(1, spline_order + 1):
        nxt = []
        for t in range(len(bases) - 1):
            left = (x - g[t]) / (g[t + k] - g[t]) * bases[t]
            right = (g[t + k + 1] - x) / (g[t + k + 1] - g[t + 1]) * bases[t + 1]
            nxt.append(left + right)
        bases = nxt
    assert len(bases) == n_basis

    # Fuse [SiLU(x), basis_0, ..., basis_{nb-1}] along K -> ONE MXU matmul:
    #   (tile_n, (nb+1)*in_dim) @ ((nb+1)*in_dim, out_pad)
    fused = jnp.concatenate([base_chunk] + bases, axis=1)
    o_ref[...] = jnp.dot(fused, w_ref[...],
                         preferred_element_type=jnp.float32).astype(o_ref.dtype)


# ---------------------------------------------------------------------------
# Wrappers (plain JAX layout work + pallas_call plumbing)
# ---------------------------------------------------------------------------
def _fuse_kan_weights(base_weight, spline_weight, spline_scaler, grid, lane_pad=128):
    """Build the fused matmul weight and the per-knot grid rows (f32, once)."""
    out_features, in_dim = base_weight.shape
    n_basis = spline_weight.shape[-1]
    ssw = spline_weight * spline_scaler[..., None]                      # (O, I, nb)
    ws = jnp.transpose(ssw, (2, 1, 0)).reshape(n_basis * in_dim, out_features)
    w_fused = jnp.concatenate([jnp.transpose(base_weight), ws], axis=0)  # ((nb+1)*I, O)
    out_pad = ((out_features + lane_pad - 1) // lane_pad) * lane_pad
    w_fused = jnp.pad(w_fused, ((0, 0), (0, out_pad - out_features)))
    w_fused = w_fused.astype(jnp.float32)
    n_knots = grid.shape[-1]
    knots3 = jnp.transpose(grid.astype(jnp.float32)).reshape(n_knots, 1, in_dim)
    return knots3, w_fused


def _kan_linear_pallas(x2d, knots3, w_fused, out_features, *,
                       n_basis, spline_order, tile_n=512):
    n_rows, in_dim = x2d.shape
    out_pad = w_fused.shape[1]

    # Remainder handling: pad rows up to a multiple of tile_n, slice afterwards.
    n_pad = ((n_rows + tile_n - 1) // tile_n) * tile_n
    if n_pad != n_rows:
        x2d = jnp.pad(x2d, ((0, n_pad - n_rows), (0, 0)))

    kernel = functools.partial(_kan_linear_kernel,
                               spline_order=spline_order, n_basis=n_basis)

    out = pl.pallas_call(
        kernel,
        out_shape=jax.ShapeDtypeStruct((n_pad, out_pad), x2d.dtype),
        grid_spec=pltpu.PrefetchScalarGridSpec(
            num_scalar_prefetch=0,
            grid=(n_pad // tile_n,),
            in_specs=[
                pl.BlockSpec((tile_n, in_dim), lambda i: (i, 0)),
                # grid-invariant inputs: constant index_map -> DMA'd only once
                pl.BlockSpec(knots3.shape, lambda i: (0, 0, 0)),
                pl.BlockSpec(w_fused.shape, lambda i: (0, 0)),
            ],
            out_specs=pl.BlockSpec((tile_n, out_pad), lambda i: (i, 0)),
        ),
        compiler_params=pltpu.CompilerParams(
            dimension_semantics=("parallel",)),
    )(x2d, knots3, w_fused)
    return out[:n_rows, :out_features]


def _unfold(x, kernel_size, stride, padding, dilation):
    """Equivalent of F.unfold: (B,C,H,W) -> (B, C*kh*kw, out_h*out_w)."""
    B, C, H, W = x.shape
    kh, kw = kernel_size
    sh, sw = stride
    ph, pw = padding
    dh, dw = dilation
    out_h = (H + 2 * ph - dh * (kh - 1) - 1) // sh + 1
    out_w = (W + 2 * pw - dw * (kw - 1) - 1) // sw + 1
    xp = jnp.pad(x, ((0, 0), (0, 0), (ph, ph), (pw, pw)))
    patches = []
    for i in range(kh):
        for j in range(kw):
            patches.append(
                xp[:, :,
                   i * dh:i * dh + sh * (out_h - 1) + 1:sh,
                   j * dw:j * dw + sw * (out_w - 1) + 1:sw])
    cols = jnp.stack(patches, axis=2).reshape(B, C * kh * kw, out_h * out_w)
    return cols, out_h, out_w


def conv_kan_forward(x, base_weight, spline_weight, spline_scaler, grid, *,
                     kernel_size=(3, 3), stride=(1, 1), padding=(1, 1),
                     dilation=(1, 1), spline_order=3, tile_n=512):
    # TODO(synk): groups > 1 not implemented (the reference ConvKAN forward is only
    # well-defined for groups == 1 as written).
    batch = x.shape[0]
    out_features = base_weight.shape[0]
    cols, out_h, out_w = _unfold(x, kernel_size, stride, padding, dilation)
    in_dim = cols.shape[1]
    x2d = jnp.transpose(cols, (0, 2, 1)).reshape(-1, in_dim)          # (B*L, in_dim)

    knots3, w_fused = _fuse_kan_weights(base_weight, spline_weight, spline_scaler, grid)
    n_basis = spline_weight.shape[-1]
    y2d = _kan_linear_pallas(x2d, knots3, w_fused, out_features,
                             n_basis=n_basis, spline_order=spline_order, tile_n=tile_n)

    y = y2d.reshape(batch, out_h * out_w, out_features)
    return jnp.transpose(y, (0, 2, 1)).reshape(batch, out_features, out_h, out_w)


# ---------------------------------------------------------------------------
# Pure-JAX reference mirroring the PyTorch ConvKAN / KANLinear forward.
# ---------------------------------------------------------------------------
def conv_kan_reference(x, base_weight, spline_weight, spline_scaler, grid, *,
                       kernel_size, stride, padding, dilation, spline_order):
    batch = x.shape[0]
    out_features = base_weight.shape[0]
    cols, out_h, out_w = _unfold(x, kernel_size, stride, padding, dilation)
    x2d = jnp.transpose(cols, (0, 2, 1)).reshape(-1, cols.shape[1]).astype(jnp.float32)

    silu = x2d * (1.0 / (1.0 + jnp.exp(-x2d)))
    base = jnp.dot(silu, base_weight.T, precision=jax.lax.Precision.HIGHEST)

    g = grid.astype(jnp.float32)                       # (in_dim, n_knots)
    xu = x2d[:, :, None]
    bases = ((xu >= g[:, :-1]) & (xu < g[:, 1:])).astype(jnp.float32)
    for k in range(1, spline_order + 1):
        bases = ((xu - g[:, :-(k + 1)]) / (g[:, k:-1] - g[:, :-(k + 1)]) * bases[:, :, :-1]
                 + (g[:, k + 1:] - xu) / (g[:, k + 1:] - g[:, 1:-k]) * bases[:, :, 1:])
    ssw = spline_weight * spline_scaler[..., None]
    spline = jnp.einsum('nik,oik->no', bases, ssw, precision=jax.lax.Precision.HIGHEST)

    y2d = base + spline
    y = y2d.reshape(batch, out_h * out_w, out_features)
    return jnp.transpose(y, (0, 2, 1)).reshape(batch, out_features, out_h, out_w)


# ---------------------------------------------------------------------------
if __name__ == "__main__":
    # ConvKAN config: in=4, out=8, 3x3 kernel, stride 1, padding 1, groups=1,
    # grid_size=5, spline_order=3, SiLU base activation, grid_range=(-1, 1).
    in_channels, out_channels = 4, 8
    kernel_size, stride, padding, dilation = (3, 3), (1, 1), (1, 1), (1, 1)
    grid_size, spline_order = 5, 3
    in_dim = in_channels * kernel_size[0] * kernel_size[1]     # 36
    n_basis = grid_size + spline_order                         # 8

    key = jax.random.PRNGKey(0)
    kx, kb, ks, kc = jax.random.split(key, 4)

    bound = 1.0 / (in_dim ** 0.5)
    base_weight = jax.random.uniform(kb, (out_channels, in_dim), jnp.float32, -bound, bound)
    spline_weight = 0.1 * jax.random.normal(ks, (out_channels, in_dim, n_basis), jnp.float32)
    spline_scaler = jax.random.uniform(kc, (out_channels, in_dim), jnp.float32, -bound, bound)

    h = (1.0 - (-1.0)) / grid_size
    knots = jnp.arange(-spline_order, grid_size + spline_order + 1, dtype=jnp.float32) * h - 1.0
    grid_buf = jnp.broadcast_to(knots, (in_dim, knots.shape[0]))   # KANLinear grid buffer

    x = jax.random.normal(kx, (2, in_channels, 16, 16), jnp.float32)

    # Small demo: tile_n=128 keeps 4 grid steps (N = 2*16*16 = 512 rows) so both
    # v7x TensorCores get work; real workloads should sweep tile_n in 512..4096.
    y = conv_kan_forward(x, base_weight, spline_weight, spline_scaler, grid_buf,
                         kernel_size=kernel_size, stride=stride, padding=padding,
                         dilation=dilation, spline_order=spline_order, tile_n=128)
    y = jax.block_until_ready(y)

    y_ref = conv_kan_reference(x, base_weight, spline_weight, spline_scaler, grid_buf,
                               kernel_size=kernel_size, stride=stride, padding=padding,
                               dilation=dilation, spline_order=spline_order)

    assert y.shape == (2, out_channels, 16, 16), y.shape
    err = float(jnp.max(jnp.abs(y - y_ref)))
    scale = float(jnp.max(jnp.abs(y_ref))) + 1e-12
    assert err / scale < 5e-3, f"mismatch vs reference: rel_err={err / scale:.3e}"

    print("KERNEL_OK")
</pallas_src>

<mosaic_0001>
module attributes {stable_mosaic.version = 11 : i64} {
  func.func @_kan_linear_kernel(%arg0: i32, %arg1: memref<128x36xf32, #tpu.memory_space<vmem>>, %arg2: memref<12x1x36xf32, #tpu.memory_space<vmem>>, %arg3: memref<324x128xf32, #tpu.memory_space<vmem>>, %arg4: memref<128x128xf32, #tpu.memory_space<vmem>>) attributes {dimension_semantics = [#tpu.dimension_semantics<parallel>], iteration_bounds = array<i64: 4>, scalar_prefetch = 0 : i64, scratch_operands = 0 : i64, tpu.core_type = #tpu.core_type<tc>, window_params = [{transform_indices = @transform_0, window_bounds = array<i64: 128, 36>}, {pipeline_mode = #tpu.pipeline_mode<synchronous>, transform_indices = @transform_1, window_bounds = array<i64: 12, 1, 36>}, {pipeline_mode = #tpu.pipeline_mode<synchronous>, transform_indices = @transform_2, window_bounds = array<i64: 324, 128>}, {transform_indices = @transform_3, window_bounds = array<i64: 128, 128>}]} {
    %c0 = arith.constant 0 : index
    %c0_0 = arith.constant 0 : index
    %0 = vector.load %arg1[%c0, %c0_0] : memref<128x36xf32, #tpu.memory_space<vmem>>, vector<128x36xf32>
    %c0_1 = arith.constant 0 : index
    %c0_2 = arith.constant 0 : index
    %c0_3 = arith.constant 0 : index
    %1 = vector.load %arg2[%c0_1, %c0_2, %c0_3] : memref<12x1x36xf32, #tpu.memory_space<vmem>>, vector<1x1x36xf32>
    %2 = vector.shape_cast %1 : vector<1x1x36xf32> to vector<1x36xf32>
    %c1 = arith.constant 1 : index
    %c0_4 = arith.constant 0 : index
    %c0_5 = arith.constant 0 : index
    %3 = vector.load %arg2[%c1, %c0_4, %c0_5] : memref<12x1x36xf32, #tpu.memory_space<vmem>>, vector<1x1x36xf32>
    %4 = vector.shape_cast %3 : vector<1x1x36xf32> to vector<1x36xf32>
    %c2 = arith.constant 2 : index
    %c0_6 = arith.constant 0 : index
    %c0_7 = arith.constant 0 : index
    %5 = vector.load %arg2[%c2, %c0_6, %c0_7] : memref<12x1x36xf32, #tpu.memory_space<vmem>>, vector<1x1x36xf32>
    %6 = vector.shape_cast %5 : vector<1x1x36xf32> to vector<1x36xf32>
    %c3 = arith.constant 3 : index
    %c0_8 = arith.constant 0 : index
    %c0_9 = arith.constant 0 : index
    %7 = vector.load %arg2[%c3, %c0_8, %c0_9] : memref<12x1x36xf32, #tpu.memory_space<vmem>>, vector<1x1x36xf32>
    %8 = vector.shape_cast %7 : vector<1x1x36xf32> to vector<1x36xf32>
    %c4 = arith.constant 4 : index
    %c0_10 = arith.constant 0 : index
    %c0_11 = arith.constant 0 : index
    %9 = vector.load %arg2[%c4, %c0_10, %c0_11] : memref<12x1x36xf32, #tpu.memory_space<vmem>>, vector<1x1x36xf32>
    %10 = vector.shape_cast %9 : vector<1x1x36xf32> to vector<1x36xf32>
    %c5 = arith.constant 5 : index
    %c0_12 = arith.constant 0 : index
    %c0_13 = arith.constant 0 : index
    %11 = vector.load %arg2[%c5, %c0_12, %c0_13] : memref<12x1x36xf32, #tpu.memory_space<vmem>>, vector<1x1x36xf32>
    %12 = vector.shape_cast %11 : vector<1x1x36xf32> to vector<1x36xf32>
    %c6 = arith.constant 6 : index
    %c0_14 = arith.constant 0 : index
    %c0_15 = arith.constant 0 : index
    %13 = vector.load %arg2[%c6, %c0_14, %c0_15] : memref<12x1x36xf32, #tpu.memory_space<vmem>>, vector<1x1x36xf32>
    %14 = vector.shape_cast %13 : vector<1x1x36xf32> to vector<1x36xf32>
    %c7 = arith.constant 7 : index
    %c0_16 = arith.constant 0 : index
    %c0_17 = arith.constant 0 : index
    %15 = vector.load %arg2[%c7, %c0_16, %c0_17] : memref<12x1x36xf32, #tpu.memory_space<vmem>>, vector<1x1x36xf32>
    %16 = vector.shape_cast %15 : vector<1x1x36xf32> to vector<1x36xf32>
    %c8 = arith.constant 8 : index
    %c0_18 = arith.constant 0 : index
    %c0_19 = arith.constant 0 : index
    %17 = vector.load %arg2[%c8, %c0_18, %c0_19] : memref<12x1x36xf32, #tpu.memory_space<vmem>>, vector<1x1x36xf32>
    %18 = vector.shape_cast %17 : vector<1x1x36xf32> to vector<1x36xf32>
    %c9 = arith.constant 9 : index
    %c0_20 = arith.constant 0 : index
    %c0_21 = arith.constant 0 : index
    %19 = vector.load %arg2[%c9, %c0_20, %c0_21] : memref<12x1x36xf32, #tpu.memory_space<vmem>>, vector<1x1x36xf32>
    %20 = vector.shape_cast %19 : vector<1x1x36xf32> to vector<1x36xf32>
    %c10 = arith.constant 10 : index
    %c0_22 = arith.constant 0 : index
    %c0_23 = arith.constant 0 : index
    %21 = vector.load %arg2[%c10, %c0_22, %c0_23] : memref<12x1x36xf32, #tpu.memory_space<vmem>>, vector<1x1x36xf32>
    %22 = vector.shape_cast %21 : vector<1x1x36xf32> to vector<1x36xf32>
    %c11 = arith.constant 11 : index
    %c0_24 = arith.constant 0 : index
    %c0_25 = arith.constant 0 : index
    %23 = vector.load %arg2[%c11, %c0_24, %c0_25] : memref<12x1x36xf32, #tpu.memory_space<vmem>>, vector<1x1x36xf32>
    %24 = vector.shape_cast %23 : vector<1x1x36xf32> to vector<1x36xf32>
    %cst = arith.constant 0.000000e+00 : f32
    %25 = vector.broadcast %cst : f32 to vector<128x36xf32>
    %26 = arith.subf %25, %0 : vector<128x36xf32>
    %27 = math.exp %26 : vector<128x36xf32>
    %cst_26 = arith.constant 1.000000e+00 : f32
    %28 = vector.broadcast %cst_26 : f32 to vector<128x36xf32>
    %29 = arith.addf %28, %27 : vector<128x36xf32>
    %cst_27 = arith.constant 1.000000e+00 : f32
    %30 = vector.broadcast %cst_27 : f32 to vector<128x36xf32>
    %31 = arith.divf %30, %29 : vector<128x36xf32>
    %32 = arith.mulf %0, %31 : vector<128x36xf32>
    %33 = vector.broadcast %2 : vector<1x36xf32> to vector<128x36xf32>
    %34 = arith.cmpf oge, %0, %33 : vector<128x36xf32>
    %35 = vector.broadcast %4 : vector<1x36xf32> to vector<128x36xf32>
    %36 = arith.cmpf olt, %0, %35 : vector<128x36xf32>
    %37 = arith.andi %34, %36 : vector<128x36xi1>
    %38 = arith.extui %37 : vector<128x36xi1> to vector<128x36xi32>
    %39 = arith.sitofp %38 : vector<128x36xi32> to vector<128x36xf32>
    %40 = vector.broadcast %4 : vector<1x36xf32> to vector<128x36xf32>
    %41 = arith.cmpf oge, %0, %40 : vector<128x36xf32>
    %42 = vector.broadcast %6 : vector<1x36xf32> to vector<128x36xf32>
    %43 = arith.cmpf olt, %0, %42 : vector<128x36xf32>
    %44 = arith.andi %41, %43 : vector<128x36xi1>
    %45 = arith.extui %44 : vector<128x36xi1> to vector<128x36xi32>
    %46 = arith.sitofp %45 : vector<128x36xi32> to vector<128x36xf32>
    %47 = vector.broadcast %6 : vector<1x36xf32> to vector<128x36xf32>
    %48 = arith.cmpf oge, %0, %47 : vector<128x36xf32>
    %49 = vector.broadcast %8 : vector<1x36xf32> to vector<128x36xf32>
    %50 = arith.cmpf olt, %0, %49 : vector<128x36xf32>
    %51 = arith.andi %48, %50 : vector<128x36xi1>
    %52 = arith.extui %51 : vector<128x36xi1> to vector<128x36xi32>
    %53 = arith.sitofp %52 : vector<128x36xi32> to vector<128x36xf32>
    %54 = vector.broadcast %8 : vector<1x36xf32> to vector<128x36xf32>
    %55 = arith.cmpf oge, %0, %54 : vector<128x36xf32>
    %56 = vector.broadcast %10 : vector<1x36xf32> to vector<128x36xf32>
    %57 = arith.cmpf olt, %0, %56 : vector<128x36xf32>
    %58 = arith.andi %55, %57 : vector<128x36xi1>
    %59 = arith.extui %58 : vector<128x36xi1> to vector<128x36xi32>
    %60 = arith.sitofp %59 : vector<128x36xi32> to vector<128x36xf32>
    %61 = vector.broadcast %10 : vector<1x36xf32> to vector<128x36xf32>
    %62 = arith.cmpf oge, %0, %61 : vector<128x36xf32>
    %63 = vector.broadcast %12 : vector<1x36xf32> to vector<128x36xf32>
    %64 = arith.cmpf olt, %0, %63 : vector<128x36xf32>
    %65 = arith.andi %62, %64 : vector<128x36xi1>
    %66 = arith.extui %65 : vector<128x36xi1> to vector<128x36xi32>
    %67 = arith.sitofp %66 : vector<128x36xi32> to vector<128x36xf32>
    %68 = vector.broadcast %12 : vector<1x36xf32> to vector<128x36xf32>
    %69 = arith.cmpf oge, %0, %68 : vector<128x36xf32>
    %70 = vector.broadcast %14 : vector<1x36xf32> to vector<128x36xf32>
    %71 = arith.cmpf olt, %0, %70 : vector<128x36xf32>
    %72 = arith.andi %69, %71 : vector<128x36xi1>
    %73 = arith.extui %72 : vector<128x36xi1> to vector<128x36xi32>
    %74 = arith.sitofp %73 : vector<128x36xi32> to vector<128x36xf32>
    %75 = vector.broadcast %14 : vector<1x36xf32> to vector<128x36xf32>
    %76 = arith.cmpf oge, %0, %75 : vector<128x36xf32>
    %77 = vector.broadcast %16 : vector<1x36xf32> to vector<128x36xf32>
    %78 = arith.cmpf olt, %0, %77 : vector<128x36xf32>
    %79 = arith.andi %76, %78 : vector<128x36xi1>
    %80 = arith.extui %79 : vector<128x36xi1> to vector<128x36xi32>
    %81 = arith.sitofp %80 : vector<128x36xi32> to vector<128x36xf32>
    %82 = vector.broadcast %16 : vector<1x36xf32> to vector<128x36xf32>
    %83 = arith.cmpf oge, %0, %82 : vector<128x36xf32>
    %84 = vector.broadcast %18 : vector<1x36xf32> to vector<128x36xf32>
    %85 = arith.cmpf olt, %0, %84 : vector<128x36xf32>
    %86 = arith.andi %83, %85 : vector<128x36xi1>
    %87 = arith.extui %86 : vector<128x36xi1> to vector<128x36xi32>
    %88 = arith.sitofp %87 : vector<128x36xi32> to vector<128x36xf32>
    %89 = vector.broadcast %18 : vector<1x36xf32> to vector<128x36xf32>
    %90 = arith.cmpf oge, %0, %89 : vector<128x36xf32>
    %91 = vector.broadcast %20 : vector<1x36xf32> to vector<128x36xf32>
    %92 = arith.cmpf olt, %0, %91 : vector<128x36xf32>
    %93 = arith.andi %90, %92 : vector<128x36xi1>
    %94 = arith.extui %93 : vector<128x36xi1> to vector<128x36xi32>
    %95 = arith.sitofp %94 : vector<128x36xi32> to vector<128x36xf32>
    %96 = vector.broadcast %20 : vector<1x36xf32> to vector<128x36xf32>
    %97 = arith.cmpf oge, %0, %96 : vector<128x36xf32>
    %98 = vector.broadcast %22 : vector<1x36xf32> to vector<128x36xf32>
    %99 = arith.cmpf olt, %0, %98 : vector<128x36xf32>
    %100 = arith.andi %97, %99 : vector<128x36xi1>
    %101 = arith.extui %100 : vector<128x36xi1> to vector<128x36xi32>
    %102 = arith.sitofp %101 : vector<128x36xi32> to vector<128x36xf32>
    %103 = vector.broadcast %22 : vector<1x36xf32> to vector<128x36xf32>
    %104 = arith.cmpf oge, %0, %103 : vector<128x36xf32>
    %105 = vector.broadcast %24 : vector<1x36xf32> to vector<128x36xf32>
    %106 = arith.cmpf olt, %0, %105 : vector<128x36xf32>
    %107 = arith.andi %104, %106 : vector<128x36xi1>
    %108 = arith.extui %107 : vector<128x36xi1> to vector<128x36xi32>
    %109 = arith.sitofp %108 : vector<128x36xi32> to vector<128x36xf32>
    %110 = vector.broadcast %2 : vector<1x36xf32> to vector<128x36xf32>
    %111 = arith.subf %0, %110 : vector<128x36xf32>
    %112 = arith.subf %4, %2 : vector<1x36xf32>
    %113 = vector.broadcast %112 : vector<1x36xf32> to vector<128x36xf32>
    %114 = arith.divf %111, %113 : vector<128x36xf32>
    %115 = arith.mulf %114, %39 : vector<128x36xf32>
    %116 = vector.broadcast %6 : vector<1x36xf32> to vector<128x36xf32>
    %117 = arith.subf %116, %0 : vector<128x36xf32>
    %118 = arith.subf %6, %4 : vector<1x36xf32>
    %119 = vector.broadcast %118 : vector<1x36xf32> to vector<128x36xf32>
    %120 = arith.divf %117, %119 : vector<128x36xf32>
    %121 = arith.mulf %120, %46 : vector<128x36xf32>
    %122 = arith.addf %115, %121 : vector<128x36xf32>
    %123 = vector.broadcast %4 : vector<1x36xf32> to vector<128x36xf32>
    %124 = arith.subf %0, %123 : vector<128x36xf32>
    %125 = arith.subf %6, %4 : vector<1x36xf32>
    %126 = vector.broadcast %125 : vector<1x36xf32> to vector<128x36xf32>
    %127 = arith.divf %124, %126 : vector<128x36xf32>
    %128 = arith.mulf %127, %46 : vector<128x36xf32>
    %129 = vector.broadcast %8 : vector<1x36xf32> to vector<128x36xf32>
    %130 = arith.subf %129, %0 : vector<128x36xf32>
    %131 = arith.subf %8, %6 : vector<1x36xf32>
    %132 = vector.broadcast %131 : vector<1x36xf32> to vector<128x36xf32>
    %133 = arith.divf %130, %132 : vector<128x36xf32>
    %134 = arith.mulf %133, %53 : vector<128x36xf32>
    %135 = arith.addf %128, %134 : vector<128x36xf32>
    %136 = vector.broadcast %6 : vector<1x36xf32> to vector<128x36xf32>
    %137 = arith.subf %0, %136 : vector<128x36xf32>
    %138 = arith.subf %8, %6 : vector<1x36xf32>
    %139 = vector.broadcast %138 : vector<1x36xf32> to vector<128x36xf32>
    %140 = arith.divf %137, %139 : vector<128x36xf32>
    %141 = arith.mulf %140, %53 : vector<128x36xf32>
    %142 = vector.broadcast %10 : vector<1x36xf32> to vector<128x36xf32>
    %143 = arith.subf %142, %0 : vector<128x36xf32>
    %144 = arith.subf %10, %8 : vector<1x36xf32>
    %145 = vector.broadcast %144 : vector<1x36xf32> to vector<128x36xf32>
    %146 = arith.divf %143, %145 : vector<128x36xf32>
    %147 = arith.mulf %146, %60 : vector<128x36xf32>
    %148 = arith.addf %141, %147 : vector<128x36xf32>
    %149 = vector.broadcast %8 : vector<1x36xf32> to vector<128x36xf32>
    %150 = arith.subf %0, %149 : vector<128x36xf32>
    %151 = arith.subf %10, %8 : vector<1x36xf32>
    %152 = vector.broadcast %151 : vector<1x36xf32> to vector<128x36xf32>
    %153 = arith.divf %150, %152 : vector<128x36xf32>
    %154 = arith.mulf %153, %60 : vector<128x36xf32>
    %155 = vector.broadcast %12 : vector<1x36xf32> to vector<128x36xf32>
    %156 = arith.subf %155, %0 : vector<128x36xf32>
    %157 = arith.subf %12, %10 : vector<1x36xf32>
    %158 = vector.broadcast %157 : vector<1x36xf32> to vector<128x36xf32>
    %159 = arith.divf %156, %158 : vector<128x36xf32>
    %160 = arith.mulf %159, %67 : vector<128x36xf32>
    %161 = arith.addf %154, %160 : vector<128x36xf32>
    %162 = vector.broadcast %10 : vector<1x36xf32> to vector<128x36xf32>
    %163 = arith.subf %0, %162 : vector<128x36xf32>
    %164 = arith.subf %12, %10 : vector<1x36xf32>
    %165 = vector.broadcast %164 : vector<1x36xf32> to vector<128x36xf32>
    %166 = arith.divf %163, %165 : vector<128x36xf32>
    %167 = arith.mulf %166, %67 : vector<128x36xf32>
    %168 = vector.broadcast %14 : vector<1x36xf32> to vector<128x36xf32>
    %169 = arith.subf %168, %0 : vector<128x36xf32>
    %170 = arith.subf %14, %12 : vector<1x36xf32>
    %171 = vector.broadcast %170 : vector<1x36xf32> to vector<128x36xf32>
    %172 = arith.divf %169, %171 : vector<128x36xf32>
    %173 = arith.mulf %172, %74 : vector<128x36xf32>
    %174 = arith.addf %167, %173 : vector<128x36xf32>
    %175 = vector.broadcast %12 : vector<1x36xf32> to vector<128x36xf32>
    %176 = arith.subf %0, %175 : vector<128x36xf32>
    %177 = arith.subf %14, %12 : vector<1x36xf32>
    %178 = vector.broadcast %177 : vector<1x36xf32> to vector<128x36xf32>
    %179 = arith.divf %176, %178 : vector<128x36xf32>
    %180 = arith.mulf %179, %74 : vector<128x36xf32>
    %181 = vector.broadcast %16 : vector<1x36xf32> to vector<128x36xf32>
    %182 = arith.subf %181, %0 : vector<128x36xf32>
    %183 = arith.subf %16, %14 : vector<1x36xf32>
    %184 = vector.broadcast %183 : vector<1x36xf32> to vector<128x36xf32>
    %185 = arith.divf %182, %184 : vector<128x36xf32>
    %186 = arith.mulf %185, %81 : vector<128x36xf32>
    %187 = arith.addf %180, %186 : vector<128x36xf32>
    %188 = vector.broadcast %14 : vector<1x36xf32> to vector<128x36xf32>
    %189 = arith.subf %0, %188 : vector<128x36xf32>
    %190 = arith.subf %16, %14 : vector<1x36xf32>
    %191 = vector.broadcast %190 : vector<1x36xf32> to vector<128x36xf32>
    %192 = arith.divf %189, %191 : vector<128x36xf32>
    %193 = arith.mulf %192, %81 : vector<128x36xf32>
    %194 = vector.broadcast %18 : vector<1x36xf32> to vector<128x36xf32>
    %195 = arith.subf %194, %0 : vector<128x36xf32>
    %196 = arith.subf %18, %16 : vector<1x36xf32>
    %197 = vector.broadcast %196 : vector<1x36xf32> to vector<128x36xf32>
    %198 = arith.divf %195, %197 : vector<128x36xf32>
    %199 = arith.mulf %198, %88 : vector<128x36xf32>
    %200 = arith.addf %193, %199 : vector<128x36xf32>
    %201 = vector.broadcast %16 : vector<1x36xf32> to vector<128x36xf32>
    %202 = arith.subf %0, %201 : vector<128x36xf32>
    %203 = arith.subf %18, %16 : vector<1x36xf32>
    %204 = vector.broadcast %203 : vector<1x36xf32> to vector<128x36xf32>
    %205 = arith.divf %202, %204 : vector<128x36xf32>
    %206 = arith.mulf %205, %88 : vector<128x36xf32>
    %207 = vector.broadcast %20 : vector<1x36xf32> to vector<128x36xf32>
    %208 = arith.subf %207, %0 : vector<128x36xf32>
    %209 = arith.subf %20, %18 : vector<1x36xf32>
    %210 = vector.broadcast %209 : vector<1x36xf32> to vector<128x36xf32>
    %211 = arith.divf %208, %210 : vector<128x36xf32>
    %212 = arith.mulf %211, %95 : vector<128x36xf32>
    %213 = arith.addf %206, %212 : vector<128x36xf32>
    %214 = vector.broadcast %18 : vector<1x36xf32> to vector<128x36xf32>
    %215 = arith.subf %0, %214 : vector<128x36xf32>
    %216 = arith.subf %20, %18 : vector<1x36xf32>
    %217 = vector.broadcast %216 : vector<1x36xf32> to vector<128x36xf32>
    %218 = arith.divf %215, %217 : vector<128x36xf32>
    %219 = arith.mulf %218, %95 : vector<128x36xf32>
    %220 = vector.broadcast %22 : vector<1x36xf32> to vector<128x36xf32>
    %221 = arith.subf %220, %0 : vector<128x36xf32>
    %222 = arith.subf %22, %20 : vector<1x36xf32>
    %223 = vector.broadcast %222 : vector<1x36xf32> to vector<128x36xf32>
    %224 = arith.divf %221, %223 : vector<128x36xf32>
    %225 = arith.mulf %224, %102 : vector<128x36xf32>
    %226 = arith.addf %219, %225 : vector<128x36xf32>
    %227 = vector.broadcast %20 : vector<1x36xf32> to vector<128x36xf32>
    %228 = arith.subf %0, %227 : vector<128x36xf32>
    %229 = arith.subf %22, %20 : vector<1x36xf32>
    %230 = vector.broadcast %229 : vector<1x36xf32> to vector<128x36xf32>
    %231 = arith.divf %228, %230 : vector<128x36xf32>
    %232 = arith.mulf %231, %102 : vector<128x36xf32>
    %233 = vector.broadcast %24 : vector<1x36xf32> to vector<128x36xf32>
    %234 = arith.subf %233, %0 : vector<128x36xf32>
    %235 = arith.subf %24, %22 : vector<1x36xf32>
    %236 = vector.broadcast %235 : vector<1x36xf32> to vector<128x36xf32>
    %237 = arith.divf %234, %236 : vector<128x36xf32>
    %238 = arith.mulf %237, %109 : vector<128x36xf32>
    %239 = arith.addf %232, %238 : vector<128x36xf32>
    %240 = vector.broadcast %2 : vector<1x36xf32> to vector<128x36xf32>
    %241 = arith.subf %0, %240 : vector<128x36xf32>
    %242 = arith.subf %6, %2 : vector<1x36xf32>
    %243 = vector.broadcast %242 : vector<1x36xf32> to vector<128x36xf32>
    %244 = arith.divf %241, %243 : vector<128x36xf32>
    %245 = arith.mulf %244, %122 : vector<128x36xf32>
    %246 = vector.broadcast %8 : vector<1x36xf32> to vector<128x36xf32>
    %247 = arith.subf %246, %0 : vector<128x36xf32>
    %248 = arith.subf %8, %4 : vector<1x36xf32>
    %249 = vector.broadcast %248 : vector<1x36xf32> to vector<128x36xf32>
    %250 = arith.divf %247, %249 : vector<128x36xf32>
    %251 = arith.mulf %250, %135 : vector<128x36xf32>
    %252 = arith.addf %245, %251 : vector<128x36xf32>
    %253 = vector.broadcast %4 : vector<1x36xf32> to vector<128x36xf32>
    %254 = arith.subf %0, %253 : vector<128x36xf32>
    %255 = arith.subf %8, %4 : vector<1x36xf32>
    %256 = vector.broadcast %255 : vector<1x36xf32> to vector<128x36xf32>
    %257 = arith.divf %254, %256 : vector<128x36xf32>
    %258 = arith.mulf %257, %135 : vector<128x36xf32>
    %259 = vector.broadcast %10 : vector<1x36xf32> to vector<128x36xf32>
    %260 = arith.subf %259, %0 : vector<128x36xf32>
    %261 = arith.subf %10, %6 : vector<1x36xf32>
    %262 = vector.broadcast %261 : vector<1x36xf32> to vector<128x36xf32>
    %263 = arith.divf %260, %262 : vector<128x36xf32>
    %264 = arith.mulf %263, %148 : vector<128x36xf32>
    %265 = arith.addf %258, %264 : vector<128x36xf32>
    %266 = vector.broadcast %6 : vector<1x36xf32> to vector<128x36xf32>
    %267 = arith.subf %0, %266 : vector<128x36xf32>
    %268 = arith.subf %10, %6 : vector<1x36xf32>
    %269 = vector.broadcast %268 : vector<1x36xf32> to vector<128x36xf32>
    %270 = arith.divf %267, %269 : vector<128x36xf32>
    %271 = arith.mulf %270, %148 : vector<128x36xf32>
    %272 = vector.broadcast %12 : vector<1x36xf32> to vector<128x36xf32>
    %273 = arith.subf %272, %0 : vector<128x36xf32>
    %274 = arith.subf %12, %8 : vector<1x36xf32>
    %275 = vector.broadcast %274 : vector<1x36xf32> to vector<128x36xf32>
    %276 = arith.divf %273, %275 : vector<128x36xf32>
    %277 = arith.mulf %276, %161 : vector<128x36xf32>
    %278 = arith.addf %271, %277 : vector<128x36xf32>
    %279 = vector.broadcast %8 : vector<1x36xf32> to vector<128x36xf32>
    %280 = arith.subf %0, %279 : vector<128x36xf32>
    %281 = arith.subf %12, %8 : vector<1x36xf32>
    %282 = vector.broadcast %281 : vector<1x36xf32> to vector<128x36xf32>
    %283 = arith.divf %280, %282 : vector<128x36xf32>
    %284 = arith.mulf %283, %161 : vector<128x36xf32>
    %285 = vector.broadcast %14 : vector<1x36xf32> to vector<128x36xf32>
    %286 = arith.subf %285, %0 : vector<128x36xf32>
    %287 = arith.subf %14, %10 : vector<1x36xf32>
    %288 = vector.broadcast %287 : vector<1x36xf32> to vector<128x36xf32>
    %289 = arith.divf %286, %288 : vector<128x36xf32>
    %290 = arith.mulf %289, %174 : vector<128x36xf32>
    %291 = arith.addf %284, %290 : vector<128x36xf32>
    %292 = vector.broadcast %10 : vector<1x36xf32> to vector<128x36xf32>
    %293 = arith.subf %0, %292 : vector<128x36xf32>
    %294 = arith.subf %14, %10 : vector<1x36xf32>
    %295 = vector.broadcast %294 : vector<1x36xf32> to vector<128x36xf32>
    %296 = arith.divf %293, %295 : vector<128x36xf32>
    %297 = arith.mulf %296, %174 : vector<128x36xf32>
    %298 = vector.broadcast %16 : vector<1x36xf32> to vector<128x36xf32>
    %299 = arith.subf %298, %0 : vector<128x36xf32>
    %300 = arith.subf %16, %12 : vector<1x36xf32>
    %301 = vector.broadcast %300 : vector<1x36xf32> to vector<128x36xf32>
    %302 = arith.divf %299, %301 : vector<128x36xf32>
    %303 = arith.mulf %302, %187 : vector<128x36xf32>
    %304 = arith.addf %297, %303 : vector<128x36xf32>
    %305 = vector.broadcast %12 : vector<1x36xf32> to vector<128x36xf32>
    %306 = arith.subf %0, %305 : vector<128x36xf32>
    %307 = arith.subf %16, %12 : vector<1x36xf32>
    %308 = vector.broadcast %307 : vector<1x36xf32> to vector<128x36xf32>
    %309 = arith.divf %306, %308 : vector<128x36xf32>
    %310 = arith.mulf %309, %187 : vector<128x36xf32>
    %311 = vector.broadcast %18 : vector<1x36xf32> to vector<128x36xf32>
    %312 = arith.subf %311, %0 : vector<128x36xf32>
    %313 = arith.subf %18, %14 : vector<1x36xf32>
    %314 = vector.broadcast %313 : vector<1x36xf32> to vector<128x36xf32>
    %315 = arith.divf %312, %314 : vector<128x36xf32>
    %316 = arith.mulf %315, %200 : vector<128x36xf32>
    %317 = arith.addf %310, %316 : vector<128x36xf32>
    %318 = vector.broadcast %14 : vector<1x36xf32> to vector<128x36xf32>
    %319 = arith.subf %0, %318 : vector<128x36xf32>
    %320 = arith.subf %18, %14 : vector<1x36xf32>
    %321 = vector.broadcast %320 : vector<1x36xf32> to vector<128x36xf32>
    %322 = arith.divf %319, %321 : vector<128x36xf32>
    %323 = arith.mulf %322, %200 : vector<128x36xf32>
    %324 = vector.broadcast %20 : vector<1x36xf32> to vector<128x36xf32>
    %325 = arith.subf %324, %0 : vector<128x36xf32>
    %326 = arith.subf %20, %16 : vector<1x36xf32>
    %327 = vector.broadcast %326 : vector<1x36xf32> to vector<128x36xf32>
    %328 = arith.divf %325, %327 : vector<128x36xf32>
    %329 = arith.mulf %328, %213 : vector<128x36xf32>
    %330 = arith.addf %323, %329 : vector<128x36xf32>
    %331 = vector.broadcast %16 : vector<1x36xf32> to vector<128x36xf32>
    %332 = arith.subf %0, %331 : vector<128x36xf32>
    %333 = arith.subf %20, %16 : vector<1x36xf32>
    %334 = vector.broadcast %333 : vector<1x36xf32> to vector<128x36xf32>
    %335 = arith.divf %332, %334 : vector<128x36xf32>
    %336 = arith.mulf %335, %213 : vector<128x36xf32>
    %337 = vector.broadcast %22 : vector<1x36xf32> to vector<128x36xf32>
    %338 = arith.subf %337, %0 : vector<128x36xf32>
    %339 = arith.subf %22, %18 : vector<1x36xf32>
    %340 = vector.broadcast %339 : vector<1x36xf32> to vector<128x36xf32>
    %341 = arith.divf %338, %340 : vector<128x36xf32>
    %342 = arith.mulf %341, %226 : vector<128x36xf32>
    %343 = arith.addf %336, %342 : vector<128x36xf32>
    %344 = vector.broadcast %18 : vector<1x36xf32> to vector<128x36xf32>
    %345 = arith.subf %0, %344 : vector<128x36xf32>
    %346 = arith.subf %22, %18 : vector<1x36xf32>
    %347 = vector.broadcast %346 : vector<1x36xf32> to vector<128x36xf32>
    %348 = arith.divf %345, %347 : vector<128x36xf32>
    %349 = arith.mulf %348, %226 : vector<128x36xf32>
    %350 = vector.broadcast %24 : vector<1x36xf32> to vector<128x36xf32>
    %351 = arith.subf %350, %0 : vector<128x36xf32>
    %352 = arith.subf %24, %20 : vector<1x36xf32>
    %353 = vector.broadcast %352 : vector<1x36xf32> to vector<128x36xf32>
    %354 = arith.divf %351, %353 : vector<128x36xf32>
    %355 = arith.mulf %354, %239 : vector<128x36xf32>
    %356 = arith.addf %349, %355 : vector<128x36xf32>
    %357 = vector.broadcast %2 : vector<1x36xf32> to vector<128x36xf32>
    %358 = arith.subf %0, %357 : vector<128x36xf32>
    %359 = arith.subf %8, %2 : vector<1x36xf32>
    %360 = vector.broadcast %359 : vector<1x36xf32> to vector<128x36xf32>
    %361 = arith.divf %358, %360 : vector<128x36xf32>
    %362 = arith.mulf %361, %252 : vector<128x36xf32>
    %363 = vector.broadcast %10 : vector<1x36xf32> to vector<128x36xf32>
    %364 = arith.subf %363, %0 : vector<128x36xf32>
    %365 = arith.subf %10, %4 : vector<1x36xf32>
    %366 = vector.broadcast %365 : vector<1x36xf32> to vector<128x36xf32>
    %367 = arith.divf %364, %366 : vector<128x36xf32>
    %368 = arith.mulf %367, %265 : vector<128x36xf32>
    %369 = arith.addf %362, %368 : vector<128x36xf32>
    %370 = vector.broadcast %4 : vector<1x36xf32> to vector<128x36xf32>
    %371 = arith.subf %0, %370 : vector<128x36xf32>
    %372 = arith.subf %10, %4 : vector<1x36xf32>
    %373 = vector.broadcast %372 : vector<1x36xf32> to vector<128x36xf32>
    %374 = arith.divf %371, %373 : vector<128x36xf32>
    %375 = arith.mulf %374, %265 : vector<128x36xf32>
    %376 = vector.broadcast %12 : vector<1x36xf32> to vector<128x36xf32>
    %377 = arith.subf %376, %0 : vector<128x36xf32>
    %378 = arith.subf %12, %6 : vector<1x36xf32>
    %379 = vector.broadcast %378 : vector<1x36xf32> to vector<128x36xf32>
    %380 = arith.divf %377, %379 : vector<128x36xf32>
    %381 = arith.mulf %380, %278 : vector<128x36xf32>
    %382 = arith.addf %375, %381 : vector<128x36xf32>
    %383 = vector.broadcast %6 : vector<1x36xf32> to vector<128x36xf32>
    %384 = arith.subf %0, %383 : vector<128x36xf32>
    %385 = arith.subf %12, %6 : vector<1x36xf32>
    %386 = vector.broadcast %385 : vector<1x36xf32> to vector<128x36xf32>
    %387 = arith.divf %384, %386 : vector<128x36xf32>
    %388 = arith.mulf %387, %278 : vector<128x36xf32>
    %389 = vector.broadcast %14 : vector<1x36xf32> to vector<128x36xf32>
    %390 = arith.subf %389, %0 : vector<128x36xf32>
    %391 = arith.subf %14, %8 : vector<1x36xf32>
    %392 = vector.broadcast %391 : vector<1x36xf32> to vector<128x36xf32>
    %393 = arith.divf %390, %392 : vector<128x36xf32>
    %394 = arith.mulf %393, %291 : vector<128x36xf32>
    %395 = arith.addf %388, %394 : vector<128x36xf32>
    %396 = vector.broadcast %8 : vector<1x36xf32> to vector<128x36xf32>
    %397 = arith.subf %0, %396 : vector<128x36xf32>
    %398 = arith.subf %14, %8 : vector<1x36xf32>
    %399 = vector.broadcast %398 : vector<1x36xf32> to vector<128x36xf32>
    %400 = arith.divf %397, %399 : vector<128x36xf32>
    %401 = arith.mulf %400, %291 : vector<128x36xf32>
    %402 = vector.broadcast %16 : vector<1x36xf32> to vector<128x36xf32>
    %403 = arith.subf %402, %0 : vector<128x36xf32>
    %404 = arith.subf %16, %10 : vector<1x36xf32>
    %405 = vector.broadcast %404 : vector<1x36xf32> to vector<128x36xf32>
    %406 = arith.divf %403, %405 : vector<128x36xf32>
    %407 = arith.mulf %406, %304 : vector<128x36xf32>
    %408 = arith.addf %401, %407 : vector<128x36xf32>
    %409 = vector.broadcast %10 : vector<1x36xf32> to vector<128x36xf32>
    %410 = arith.subf %0, %409 : vector<128x36xf32>
    %411 = arith.subf %16, %10 : vector<1x36xf32>
    %412 = vector.broadcast %411 : vector<1x36xf32> to vector<128x36xf32>
    %413 = arith.divf %410, %412 : vector<128x36xf32>
    %414 = arith.mulf %413, %304 : vector<128x36xf32>
    %415 = vector.broadcast %18 : vector<1x36xf32> to vector<128x36xf32>
    %416 = arith.subf %415, %0 : vector<128x36xf32>
    %417 = arith.subf %18, %12 : vector<1x36xf32>
    %418 = vector.broadcast %417 : vector<1x36xf32> to vector<128x36xf32>
    %419 = arith.divf %416, %418 : vector<128x36xf32>
    %420 = arith.mulf %419, %317 : vector<128x36xf32>
    %421 = arith.addf %414, %420 : vector<128x36xf32>
    %422 = vector.broadcast %12 : vector<1x36xf32> to vector<128x36xf32>
    %423 = arith.subf %0, %422 : vector<128x36xf32>
    %424 = arith.subf %18, %12 : vector<1x36xf32>
    %425 = vector.broadcast %424 : vector<1x36xf32> to vector<128x36xf32>
    %426 = arith.divf %423, %425 : vector<128x36xf32>
    %427 = arith.mulf %426, %317 : vector<128x36xf32>
    %428 = vector.broadcast %20 : vector<1x36xf32> to vector<128x36xf32>
    %429 = arith.subf %428, %0 : vector<128x36xf32>
    %430 = arith.subf %20, %14 : vector<1x36xf32>
    %431 = vector.broadcast %430 : vector<1x36xf32> to vector<128x36xf32>
    %432 = arith.divf %429, %431 : vector<128x36xf32>
    %433 = arith.mulf %432, %330 : vector<128x36xf32>
    %434 = arith.addf %427, %433 : vector<128x36xf32>
    %435 = vector.broadcast %14 : vector<1x36xf32> to vector<128x36xf32>
    %436 = arith.subf %0, %435 : vector<128x36xf32>
    %437 = arith.subf %20, %14 : vector<1x36xf32>
    %438 = vector.broadcast %437 : vector<1x36xf32> to vector<128x36xf32>
    %439 = arith.divf %436, %438 : vector<128x36xf32>
    %440 = arith.mulf %439, %330 : vector<128x36xf32>
    %441 = vector.broadcast %22 : vector<1x36xf32> to vector<128x36xf32>
    %442 = arith.subf %441, %0 : vector<128x36xf32>
    %443 = arith.subf %22, %16 : vector<1x36xf32>
    %444 = vector.broadcast %443 : vector<1x36xf32> to vector<128x36xf32>
    %445 = arith.divf %442, %444 : vector<128x36xf32>
    %446 = arith.mulf %445, %343 : vector<128x36xf32>
    %447 = arith.addf %440, %446 : vector<128x36xf32>
    %448 = vector.broadcast %16 : vector<1x36xf32> to vector<128x36xf32>
    %449 = arith.subf %0, %448 : vector<128x36xf32>
    %450 = arith.subf %22, %16 : vector<1x36xf32>
    %451 = vector.broadcast %450 : vector<1x36xf32> to vector<128x36xf32>
    %452 = arith.divf %449, %451 : vector<128x36xf32>
    %453 = arith.mulf %452, %343 : vector<128x36xf32>
    %454 = vector.broadcast %24 : vector<1x36xf32> to vector<128x36xf32>
    %455 = arith.subf %454, %0 : vector<128x36xf32>
    %456 = arith.subf %24, %18 : vector<1x36xf32>
    %457 = vector.broadcast %456 : vector<1x36xf32> to vector<128x36xf32>
    %458 = arith.divf %455, %457 : vector<128x36xf32>
    %459 = arith.mulf %458, %356 : vector<128x36xf32>
    %460 = arith.addf %453, %459 : vector<128x36xf32>
    %461 = tpu.concatenate %32, %369, %382, %395, %408, %421, %434, %447, %460 in 1 : vector<128x36xf32>, vector<128x36xf32>, vector<128x36xf32>, vector<128x36xf32>, vector<128x36xf32>, vector<128x36xf32>, vector<128x36xf32>, vector<128x36xf32>, vector<128x36xf32> -> vector<128x324xf32>
    %c0_28 = arith.constant 0 : index
    %c0_29 = arith.constant 0 : index
    %462 = vector.load %arg3[%c0_28, %c0_29] : memref<324x128xf32, #tpu.memory_space<vmem>>, vector<324x128xf32>
    %cst_30 = arith.constant dense<0.000000e+00> : vector<128x128xf32>
    %463 = tpu.matmul %461, %462, %cst_30 {dimension_numbers = #tpu.dot_dimension_numbers<[1], [0], [0], [1], [0, 0, 1, 1], [], []>} : vector<128x324xf32>, vector<324x128xf32>, vector<128x128xf32> -> vector<128x128xf32>
    %c0_31 = arith.constant 0 : index
    %c0_32 = arith.constant 0 : index
    %464 = vector.load %arg4[%c0_31, %c0_32] : memref<128x128xf32, #tpu.memory_space<vmem>>, vector<128x128xf32>
    tpu.vector_store %arg4[%c0_31, %c0_32], %463 {strides = array<i32>} : memref<128x128xf32, #tpu.memory_space<vmem>>, vector<128x128xf32>,
    return
  }
  func.func @transform_0(%arg0: i32) -> (i32, i32) {
    %c0_i32 = arith.constant 0 : i32
    %c0_i32_0 = arith.constant 0 : i32
    return %arg0, %c0_i32 : i32, i32
  }
  func.func @transform_1(%arg0: i32) -> (i32, i32, i32) {
    %c0_i32 = arith.constant 0 : i32
    %c0_i32_0 = arith.constant 0 : i32
    %c0_i32_1 = arith.constant 0 : i32
    %c0_i32_2 = arith.constant 0 : i32
    return %c0_i32, %c0_i32_0, %c0_i32_1 : i32, i32, i32
  }
  func.func @transform_2(%arg0: i32) -> (i32, i32) {
    %c0_i32 = arith.constant 0 : i32
    %c0_i32_0 = arith.constant 0 : i32
    %c0_i32_1 = arith.constant 0 : i32
    return %c0_i32, %c0_i32_0 : i32, i32
  }
  func.func @transform_3(%arg0: i32) -> (i32, i32) {
    %c0_i32 = arith.constant 0 : i32
    %c0_i32_0 = arith.constant 0 : i32
    return %arg0, %c0_i32 : i32, i32
  }
}

</mosaic_0001>

<bundles_post_ra>
// kernel: tpu_custom_call.1
= control target key start
LH: loop header
LB: loop body
LE: loop exit
PB: predicated region body
PF: predicated region fallthrough
CT: control target
= control target key end

     0   :  { %8 = vsyncpa [#allocation3], 0  ;;  %s11553_s0 = inlined_call_operand.vmem [shape: f32[512,36], index: 0, kind: input, shape index: {}]   ;;  %s11554_s1 = inlined_call_operand.vmem [shape: f32[12,1,36], index: 1, kind: input, shape index: {}]   ;;  %s11555_s2 = inlined_call_operand.vmem [shape: f32[324,128], index: 2, kind: input, shape index: {}]   ;;  %s11556_s3 = inlined_call_operand.hbm [shape: f32[512,128], index: 3, kind: output, shape index: {}]  }
   0x1   :  { %10 = vsyncpa [#allocation3 + $0x1], 0  ;;  %s6072_s12 = smov 0   ;;  %s6074_s13 = smov 0  }
   0x2   :  { %s6076_s14 = smov 0   ;;  %s6078_s15 = smov 0  }
   0x3 LB: > { %s6093_s16 = sadd.s32 4294967295, %s6038_s15   ;;  %s5119_s17 = sadd.s32 4294967294, %s6038_s15   ;;  %s6038_s15 = sphi %s6078_s15, %s12511_s15   ;;  %s6034_s14 = sphi %s6076_s14, %s12510_s14   ;;  %s6030_s13 = sphi %s6074_s13, %s12509_s13   ;;  %s6026_s12 = sphi %s6072_s12, %s12508_s12  }
   0x4   : > { %s6097_s18 = sadd.s32 1, %s6038_s15   ;;  %s91_s19 = sadd.s32 1, %s6034_s14 }
   0x5   : > { %s88_s20 = ssub.s32 %s6038_s15, %s6097_s18  ;;  %p101_p0 = scmp.ne.s32.totalorder %s6034_s14, %s6030_s13 }
   0x6   : > { %p89_p1 = scmp.eq.s32.totalorder %s88_s20, 0  ;;  %p102_p2 = scmp.eq.s32.totalorder %s6093_s16, 3 }
   0x7   : > { %p107_p3 = scmp.ne.s32.totalorder %s6030_s13, %s6026_s12  ;;  %p108_p4 = scmp.eq.s32.totalorder %s5119_s17, 3 }
   0x8   : > { %s6108_s21 = scalar_select %p89_p1, %s6034_s14, %s91_s19  }
   0x9   : > { %p6110_p5 = por %p102_p2, %p101_p0  ;;  %p6114_p6 = por %p108_p4, %p107_p3 }
   0xa   : > { %p5122_p7 = scmp.ge.s32.totalorder %s6038_s15, 1  ;;  %p141_p8 = scmp.lt.s32.totalorder %s6038_s15, 5 }
   0xc   : > { %p142_p9 = pnand %p5122_p7, %p141_p8 }
   0xe   : > { %145 = sbr.rel (%p142_p9) target bundleno = 1202 (0x4b2), region = 32 }
  0x15   : > { %s5124_s24 = sshll.u32 %s6093_s16, 4  ;;  %v6124_v0 = vld [vmem:[%s11554_s1 + $0x4] sm:$0x1]  ;;  %v6129_v1 = vld [vmem:[%s11554_s1 + $0x5] sm:$0x1]  ;;  %v324_v2 = vlaneseq  ;;  %v11557_v35 = vmov 0.0  }
  0x16   : > { %p166_p10 = scmp.lt.s32.totalorder %s5124_s24, 63  ;;  %v6134_v3 = vld [vmem:[%s11554_s1 + $0x6] sm:$0x1]  ;;  %v6139_v4 = vld [vmem:[%s11554_s1 + $0x7] sm:$0x1]  ;;  %v1707_v7 = vsub.f32 %v6129_v1, %v6124_v0  ;;  %s6041_s27 = smov 52  }
  0x17   : > { %v6144_v5 = vld [vmem:[%s11554_s1 + $0x8] sm:$0x1]  ;;  %v325_v6 = vshrl.u32 %v324_v2, 7  ;;  %v1827_v8 = vsub.f32 %v6134_v3, %v6129_v1  ;;  %v6153_v9 = vld [vmem:[%s11554_s1 + $0x2] sm:$0x1]  ;;  %v1947_v10 = vsub.f32 %v6139_v4, %v6134_v3  ;;  %v2787_v12 = vsub.f32 %v6134_v3, %v6124_v0  ;;  %s6042_s5 = smov 108  }
  0x18   : > { %s12513_s24 = smov (!%p166_p10, %s5124_s24), 63  ;;  %v2067_v11 = vsub.f32 %v6144_v5, %v6139_v4  ;;  %v2875_v13 = vsub.f32 %v6139_v4, %v6129_v1  ;;  %v6166_v14 = vld [vmem:[%s11554_s1 + $0x3] sm:$0x1]  ;;  %v2963_v16 = vsub.f32 %v6144_v5, %v6134_v3  ;;  %v3587_v17 = vsub.f32 %v6139_v4, %v6124_v0  ;;  %s6043_s6 = smov 16  }
  0x19   : > { %v6168_v15 = vsub.s32 0, %v325_v6  ;;  %v3675_v18 = vsub.f32 %v6144_v5, %v6129_v1  ;;  %s5125_s17 = sshll.u32 %s12513_s24, 3  ;;  %v1467_v19 = vsub.f32 %v6166_v14, %v6153_v9  ;;  %s6044_s9 = smov 36  }
  0x1a   : > { %s6187_s25 = scalar_lea.vmem %s11553_s0, %s5125_s17  ;;  %s6045_s10 = smov 72  }
  0x1b   : > { %11937 = vst [vmem:[#allocation5_spill] sm:$0xff] %v6168_v15  ;;  %v6191_v23 = vrot.slane %v6124_v0, %v6168_v15  ;;  %v6195_v24 = vrot.slane %v6129_v1, %v6168_v15  ;;  %v6199_v25 = vrot.slane %v6134_v3, %v6168_v15  ;;  %v6203_v26 = vrot.slane %v6139_v4, %v6168_v15  ;;  %v6206_v27 = vld [vmem:[%s6187_s25] sm:$0xff]  ;;  %v6209_v28 = vld [vmem:[%s6187_s25 + $0x8] sm:$0xff]  ;;  %s6046_s11 = smov 88   ;;  %s6047_s17 = smov 124  }
  0x1c   : > { %v6213_v29 = vrot.slane %v6144_v5, %v6168_v15  ;;  %v1712_v30 = vrot.slane %v1707_v7, %v6168_v15  ;;  %v1832_v33 = vrot.slane %v1827_v8, %v6168_v15  ;;  %v1952_v34 = vrot.slane %v1947_v10, %v6168_v15  ;;  %s6048_s7 = smov 32   ;;  %s6049_s24 = smov [#allocation2]  }
  0x1d   : > { %11938 = vst [vmem:[#allocation6_spill] sm:$0xff] %v6191_v23  ;;  %11939 = vst [vmem:[#allocation7_spill] sm:$0xff] %v6195_v24  ;;  %vm673_vm0 = vcmp.ge.f32.partialorder %v6206_v27, %v6191_v23  ;;  %vm674_vm1 = vcmp.ge.f32.partialorder %v6209_v28, %v6191_v23  ;;  %vm695_vm2 = vcmp.lt.f32.partialorder %v6206_v27, %v6195_v24  ;;  %s5980_s26 = sshll.u32 %s6049_s24, 4  ;;  %s5981_s26 = int_to_ptr.vmem [resolvable:$false] %s5980_s26 }
  0x1e   : > { %11940 = vst [vmem:[#allocation8_spill] sm:$0xff] %v6199_v25  ;;  %11941 = vst [vmem:[#allocation9_spill] sm:$0xff] %v6203_v26  ;;  %vm696_vm3 = vcmp.lt.f32.partialorder %v6209_v28, %v6195_v24  ;;  %vm759_vm5 = vcmp.ge.f32.partialorder %v6206_v27, %v6195_v24  ;;  %vm760_vm6 = vcmp.ge.f32.partialorder %v6209_v28, %v6195_v24  ;;  %5821 = vrcp.f32 %v1712_v30  ;;  %s5982_s28 = scalar_lea.vmem %s5981_s26, 4096 }
  0x1f   : > { %vm711_vm4 = vmand %vm673_vm0, %vm695_vm2  ;;  %vm781_vm7 = vcmp.lt.f32.partialorder %v6206_v27, %v6199_v25  ;;  %vm782_vm8 = vcmp.lt.f32.partialorder %v6209_v28, %v6199_v25  ;;  %vm845_vm10 = vcmp.ge.f32.partialorder %v6206_v27, %v6199_v25  ;;  %vm867_vm11 = vcmp.lt.f32.partialorder %v6206_v27, %v6203_v26 }
  0x20   : > { %vm712_vm9 = vmand %vm674_vm1, %vm696_vm3  ;;  %v6243_v36 = vsel %vm711_vm4, 1.0, %v11557_v35  ;;  %vm846_vm13 = vcmp.ge.f32.partialorder %v6209_v28, %v6199_v25  ;;  %vm868_vm14 = vcmp.lt.f32.partialorder %v6209_v28, %v6203_v26  ;;  %vm931_vm0 = vcmp.ge.f32.partialorder %v6206_v27, %v6203_v26 }
  0x21   : > { %v6246_v37 = vsel %vm712_vm9, 1.0, %v11557_v35  ;;  %vm797_vm12 = vmand %vm759_vm5, %vm781_vm7  ;;  %vm932_vm1 = vcmp.ge.f32.partialorder %v6209_v28, %v6203_v26  ;;  %vm953_vm2 = vcmp.lt.f32.partialorder %v6206_v27, %v6213_v29  ;;  %vm954_vm4 = vcmp.lt.f32.partialorder %v6209_v28, %v6213_v29 }
  0x22   : > { %vm798_vm15 = vmand %vm760_vm6, %vm782_vm8  ;;  %v6259_v38 = vsel %vm797_vm12, 1.0, %v11557_v35  ;;  %v6274_v40 = vsub.f32 %v6206_v27, %v6191_v23  ;;  %v6281_v42 = vsub.f32 %v6209_v28, %v6191_v23  ;;  %v6285_v43 = vsub.f32 %v6199_v25, %v6206_v27 }
  0x23   : > { %v6262_v39 = vsel %vm798_vm15, 1.0, %v11557_v35  ;;  %vm883_vm3 = vmand %vm845_vm10, %vm867_vm11  ;;  %5823 = vrcp.f32 %v1832_v33  ;;  %v6295_v45 = vsub.f32 %v6199_v25, %v6209_v28  ;;  %v6299_v46 = vsub.f32 %v6206_v27, %v6195_v24 }
  0x24   : > { %vm884_vm5 = vmand %vm846_vm13, %vm868_vm14  ;;  %v6277_v41 = vsel %vm883_vm3, 1.0, %v11557_v35  ;;  %v6303_v47 = vsub.f32 %v6209_v28, %v6195_v24  ;;  %v6313_v49 = vsub.f32 %v6203_v26, %v6206_v27  ;;  %v6317_v50 = vsub.f32 %v6203_v26, %v6209_v28 }
  0x25   : > { %v6288_v44 = vsel %vm884_vm5, 1.0, %v11557_v35  ;;  %vm969_vm6 = vmand %vm931_vm0, %vm953_vm2  ;;  %5825 = vrcp.f32 %v1952_v34  ;;  %v6324_v52 = vsub.f32 %v6206_v27, %v6199_v25  ;;  %v6328_v53 = vsub.f32 %v6209_v28, %v6199_v25 }
  0x26   : > { %11942 = vst [vmem:[#allocation10_spill] sm:$0xff] %v6303_v47  ;;  %vm970_vm7 = vmand %vm932_vm1, %vm954_vm4  ;;  %v6309_v48 = vsel %vm969_vm6, 1.0, %v11557_v35  ;;  %v2072_v54 = vrot.slane %v2067_v11, %v6168_v15  ;;  %v6336_v55 = vsub.f32 %v6213_v29, %v6206_v27  ;;  %v6340_v56 = vsub.f32 %v6213_v29, %v6209_v28 }
  0x27   : > { %v6320_v51 = vsel %vm970_vm7, 1.0, %v11557_v35  ;;  %v2792_v57 = vrot.slane %v2787_v12, %v6168_v15  ;;  %v2880_v58 = vrot.slane %v2875_v13, %v6168_v15  ;;  %v6352_v59 = vsub.f32 %v6206_v27, %v6203_v26 }
  0x28   : > { %5827 = vrcp.f32 %v2072_v54  ;;  %v2968_v60 = vrot.slane %v2963_v16, %v6168_v15  ;;  %v3592_v61 = vrot.slane %v3587_v17, %v6168_v15  ;;  %v3680_v62 = vrot.slane %v3675_v18, %v6168_v15  ;;  %v6386_v8 = vpop.eup %5821 }
  0x29   : > { %11943 = vst [vmem:[#allocation11_spill] sm:$0xff] %v6352_v59  ;;  %5829 = vrcp.f32 %v2792_v57  ;;  %v6368_v63 = vrot.slane %v6153_v9, %v6168_v15  ;;  %v6372_v2 = vrot.slane %v6166_v14, %v6168_v15  ;;  %v6376_v6 = vsub.f32 %v6209_v28, %v6203_v26  ;;  %11947 = vst [vmem:[#allocation15_spill] sm:$0xff] %v6386_v8 }
  0x2a   : > { %5831 = vrcp.f32 %v2880_v58  ;;  %vm609_vm8 = vcmp.lt.f32.partialorder %v6206_v27, %v6191_v23  ;;  %v6384_v7 = vrot.slane %v1467_v19, %v6168_v15  ;;  %v1779_v10 = vmul.f32 %v6386_v8, %v6274_v40 }
  0x2b   : > { %11944 = vst [vmem:[#allocation12_spill] sm:$0xff] %v6368_v63  ;;  %11945 = vst [vmem:[#allocation13_spill] sm:$0xff] %v6372_v2  ;;  %5833 = vrcp.f32 %v2968_v60  ;;  %vm501_vm9 = vcmp.ge.f32.partialorder %v6206_v27, %v6368_v63  ;;  %vm502_vm10 = vcmp.ge.f32.partialorder %v6209_v28, %v6368_v63  ;;  %vm523_vm11 = vcmp.lt.f32.partialorder %v6206_v27, %v6372_v2 }
  0x2c   : > { %11946 = vst [vmem:[#allocation14_spill] sm:$0xff] %v6376_v6  ;;  %v1780_v11 = vmul.f32 %v6386_v8, %v6281_v42  ;;  %5835 = vrcp.f32 %v3592_v61  ;;  %vm524_vm12 = vcmp.lt.f32.partialorder %v6209_v28, %v6372_v2  ;;  %vm539_vm13 = vmand %vm501_vm9, %vm523_vm11  ;;  %vm587_vm15 = vcmp.ge.f32.partialorder %v6206_v27, %v6372_v2 }
  0x2d   : > { %v6400_v12 = vpop.eup %5823  ;;  %5837 = vrcp.f32 %v3680_v62  ;;  %vm540_vm14 = vmand %vm502_vm10, %vm524_vm12  ;;  %v6403_v13 = vsel %vm539_vm13, 1.0, %v11557_v35  ;;  %v6409_v16 = vsub.f32 %v6191_v23, %v6206_v27  ;;  %v1795_v17 = vmul.f32 %v6243_v36, %v1779_v10 }
  0x2e   : > { %11948 = vst [vmem:[#allocation16_spill] sm:$0xff] %v6400_v12  ;;  %v1796_v18 = vmul.f32 %v6246_v37, %v1780_v11  ;;  %v1835_v19 = vmul.f32 %v6400_v12, %v6285_v43  ;;  %v1836_v30 = vmul.f32 %v6400_v12, %v6295_v45  ;;  %vm588_vm0 = vcmp.ge.f32.partialorder %v6209_v28, %v6372_v2  ;;  %vm625_vm2 = vmand %vm587_vm15, %vm609_vm8 }
  0x2f   : > { %vm610_vm1 = vcmp.lt.f32.partialorder %v6209_v28, %v6191_v23  ;;  %v6424_v33 = vpop.eup %5825  ;;  %v1899_v34 = vmul.f32 %v6400_v12, %v6299_v46  ;;  %v1900_v54 = vmul.f32 %v6400_v12, %v6303_v47  ;;  %v6431_v57 = vsel %vm540_vm14, 1.0, %v11557_v35 }
  0x30   : > { %11949 = vst [vmem:[#allocation17_spill] sm:$0xff] %v6424_v33  ;;  %v6434_v58 = vsel %vm625_vm2, 1.0, %v11557_v35  ;;  %v1851_v60 = vmul.f32 %v6259_v38, %v1835_v19  ;;  %v1852_v61 = vmul.f32 %v6262_v39, %v1836_v30  ;;  %v1955_v62 = vmul.f32 %v6424_v33, %v6313_v49  ;;  %vm626_vm3 = vmand %vm588_vm0, %vm610_vm1 }
  0x31   : > { %v1956_v10 = vmul.f32 %v6424_v33, %v6317_v50  ;;  %v1915_v11 = vmul.f32 %v6259_v38, %v1899_v34  ;;  %v1916_v32 = vmul.f32 %v6262_v39, %v1900_v54  ;;  %v2019_v31 = vmul.f32 %v6424_v33, %v6324_v52 }
  0x32   : > { %v2020_v22 = vmul.f32 %v6424_v33, %v6328_v53  ;;  %v6448_v21 = vpop.eup %5827  ;;  %v6450_v19 = vadd.f32 %v1851_v60, %v1795_v17  ;;  %v6452_v30 = vadd.f32 %v1852_v61, %v1796_v18  ;;  %v1971_v20 = vmul.f32 %v6277_v41, %v1955_v62 }
  0x33   : > { %11950 = vst [vmem:[#allocation18_spill] sm:$0xff] %v6448_v21  ;;  %v1972_v35 = vmul.f32 %v6288_v44, %v1956_v10  ;;  %v6456_v26 = vpop.eup %5829  ;;  %v2035_v38 = vmul.f32 %v6277_v41, %v2019_v31  ;;  %v2075_v34 = vmul.f32 %v6448_v21, %v6336_v55  ;;  %v2076_v54 = vmul.f32 %v6448_v21, %v6340_v56 }
  0x34   : > { %11951 = vst [vmem:[#allocation19_spill] sm:$0xff] %v6456_v26  ;;  %v2036_v39 = vmul.f32 %v6288_v44, %v2020_v22  ;;  %v6464_v17 = vpop.eup %5831  ;;  %v1987_v18 = vadd.f32 %v1971_v20, %v1915_v11  ;;  %v2139_v61 = vmul.f32 %v6448_v21, %v6352_v59  ;;  %v2140_v62 = vmul.f32 %v6448_v21, %v6376_v6 }
  0x35   : > { %11952 = vst [vmem:[#allocation20_spill] sm:$0xff] %v6464_v17  ;;  %v1988_v60 = vadd.f32 %v1972_v35, %v1916_v32  ;;  %v6470_v10 = vpop.eup %5833  ;;  %v2091_v22 = vmul.f32 %v6309_v48, %v2075_v34  ;;  %v2092_v31 = vmul.f32 %v6320_v51, %v2076_v54  ;;  %v2843_v41 = vmul.f32 %v6456_v26, %v6274_v40 }
  0x36   : > { %11953 = vst [vmem:[#allocation21_spill] sm:$0xff] %v6470_v10  ;;  %v2844_v44 = vmul.f32 %v6456_v26, %v6281_v42  ;;  %v6478_v20 = vpop.eup %5835  ;;  %v6481_v32 = vmul.f32 %v6309_v48, %v2139_v61  ;;  %v6484_v35 = vmul.f32 %v6320_v51, %v2140_v62  ;;  %v2883_v11 = vmul.f32 %v6464_v17, %v6313_v49 }
  0x37   : > { %11954 = vst [vmem:[#allocation22_spill] sm:$0xff] %v6478_v20  ;;  %v2884_v34 = vmul.f32 %v6464_v17, %v6317_v50  ;;  %v6490_v54 = vpop.eup %5837  ;;  %v6492_v21 = vadd.f32 %v2091_v22, %v2035_v38  ;;  %v6494_v33 = vadd.f32 %v2092_v31, %v2036_v39  ;;  %v2859_v12 = vmul.f32 %v2843_v41, %v6450_v19 }
  0x38   : > { %11955 = vst [vmem:[#allocation23_spill] sm:$0xff] %v6481_v32  ;;  %11956 = vst [vmem:[#allocation24_spill] sm:$0xff] %v6484_v35  ;;  %v2860_v48 = vmul.f32 %v2844_v44, %v6452_v30  ;;  %v2899_v61 = vmul.f32 %v2883_v11, %v1987_v18  ;;  %v2931_v51 = vmul.f32 %v6464_v17, %v6299_v46  ;;  %v11958_v32 = vmov 0.0  }
  0x39   : > { %11957 = vst [vmem:[#allocation25_spill] sm:$0xff] %v6490_v54  ;;  %v2900_v25 = vmul.f32 %v2884_v34, %v1988_v60  ;;  %v2932_v62 = vmul.f32 %v6464_v17, %v6303_v47  ;;  %v2971_v6 = vmul.f32 %v6470_v10, %v6336_v55  ;;  %v2972_v38 = vmul.f32 %v6470_v10, %v6340_v56 }
  0x3a   : > { %v3643_v39 = vmul.f32 %v6478_v20, %v6274_v40  ;;  %v3644_v22 = vmul.f32 %v6478_v20, %v6281_v42  ;;  %v2915_v31 = vadd.f32 %v2899_v61, %v2859_v12  ;;  %v2947_v44 = vmul.f32 %v2931_v51, %v1987_v18 }
  0x3b   : > { %v2916_v41 = vadd.f32 %v2900_v25, %v2860_v48  ;;  %v2948_v11 = vmul.f32 %v2932_v62, %v1988_v60  ;;  %v2987_v34 = vmul.f32 %v2971_v6, %v6492_v21  ;;  %v2988_v17 = vmul.f32 %v2972_v38, %v6494_v33 }
  0x3c   : > { %v3683_v40 = vmul.f32 %v6490_v54, %v6336_v55  ;;  %v3684_v42 = vmul.f32 %v6490_v54, %v6340_v56  ;;  %v3659_v59 = vmul.f32 %v3643_v39, %v2915_v31  ;;  %v6523_v47 = vsel %vm626_vm3, 1.0, %v11958_v32 }
  0x3d   : > { %v3660_v35 = vmul.f32 %v3644_v22, %v2916_v41  ;;  %v6527_v25 = vsub.f32 %v6372_v2, %v6206_v27  ;;  %v6529_v12 = vadd.f32 %v2987_v34, %v2947_v44  ;;  %v6531_v6 = vadd.f32 %v2988_v17, %v2948_v11 }
  0x3e   : > { %v6535_v18 = vsub.f32 %v6372_v2, %v6209_v28  ;;  %5839 = vrcp.f32 %v6384_v7  ;;  %v6540_v55 = vsub.f32 %v6206_v27, %v6368_v63  ;;  %v6544_v56 = vsub.f32 %v6209_v28, %v6368_v63 }
  0x3f   : > { %11959 = vst [vmem:[#allocation26_spill] sm:$0xff] %v6527_v25  ;;  %v6548_v60 = vsub.f32 %v6191_v23, %v6209_v28  ;;  %v11961_v17 = vsub.f32 %v6124_v0, %v6166_v14  ;;  %v3699_v61 = vmul.f32 %v3683_v40, %v6529_v12  ;;  %v3700_v7 = vmul.f32 %v3684_v42, %v6531_v6 }
  0x40   : > { %11960 = vst [vmem:[#allocation27_spill] sm:$0xff] %v6535_v18  ;;  %v6558_v51 = vsub.f32 %v6206_v27, %v6372_v2  ;;  %v6562_v62 = vsub.f32 %v6209_v28, %v6372_v2  ;;  %v6566_v38 = vsub.f32 %v6195_v24, %v6206_v27  ;;  %v6570_v39 = vsub.f32 %v6195_v24, %v6209_v28 }
  0x41   : > { %v1592_v48 = vrot.slane %v11961_v17, %v6168_v15  ;;  %v11962_v22 = vsub.f32 %v6124_v0, %v6153_v9  ;;  %v3715_v11 = vadd.f32 %v3699_v61, %v3659_v59  ;;  %v3716_v34 = vadd.f32 %v3700_v7, %v3660_v35 }
  0x42   : > { %v11963_v40 = vsub.f32 %v6129_v1, %v6166_v14  ;;  %v2795_v17 = vmul.f32 %v6456_v26, %v6285_v43  ;;  %v1716_v24 = vmul.f32 %v6386_v8, %v6570_v39  ;;  %v11964_v61 = vsub.f32 %v6129_v1, %v6153_v9 }
  0x43   : > { %5841 = vrcp.f32 %v1592_v48  ;;  %v2616_v44 = vrot.slane %v11962_v22, %v6168_v15  ;;  %v1715_v48 = vmul.f32 %v6386_v8, %v6566_v38  ;;  %v2796_v22 = vmul.f32 %v6456_v26, %v6295_v45 }
  0x44   : > { %v2704_v42 = vrot.slane %v11963_v40, %v6168_v15  ;;  %v5591_v59 = vpack.i.bf16 %v3716_v34, %v3715_v11  ;;  %v6589_v35 = vmul.f32 %v2795_v17, %v6450_v19  ;;  %v3416_v7 = vrot.slane %v11964_v61, %v6168_v15  ;;  %v6607_v19 = vld [vmem:[%s11554_s1] sm:$0x1] }
  0x45   : > { %5843 = vrcp.f32 %v2616_v44  ;;  %v1731_v40 = vmul.f32 %v6243_v36, %v1715_v48  ;;  %v1732_v23 = vmul.f32 %v6246_v37, %v1716_v24  ;;  %v6598_v8 = vmul.f32 %v2796_v22, %v6452_v30  ;;  %v6617_v36 = vld [vmem:[%s11554_s1 + $0x1] sm:$0x1] }
  0x46   : > { %5845 = vrcp.f32 %v2704_v42  ;;  %v11965_v44 = vsub.f32 %v6134_v3, %v6166_v14  ;;  %5592 = vrot.lane.b32.xlu1 %v5591_v59, %s6041_s27  ;;  %v3595_v1 = vmul.f32 %v6478_v20, %v6313_v49  ;;  %v3596_v24 = vmul.f32 %v6478_v20, %v6317_v50 }
  0x47   : > { %5847 = vrcp.f32 %v3416_v7  ;;  %v6621_v37 = vrot.slane %v6607_v19, %v6168_v15  ;;  %v6625_v30 = vrot.slane %v6617_v36, %v6168_v15  ;;  %vm437_vm4 = vcmp.lt.f32.partialorder %v6206_v27, %v6368_v63 }
  0x48   : > { %v3504_v11 = vrot.slane %v11965_v44, %v6168_v15  ;;  %vm438_vm5 = vcmp.lt.f32.partialorder %v6209_v28, %v6368_v63  ;;  %v6631_v49 = vpop.eup %5839  ;;  %v6633_v50 = vmul.f32 %v3595_v1, %v2915_v31  ;;  %v6635_v34 = vmul.f32 %v3596_v24, %v2916_v41 }
  0x49   : > { %11966 = vst [vmem:[#allocation28_spill] sm:$0xff] %v6621_v37  ;;  %11967 = vst [vmem:[#allocation29_spill] sm:$0xff] %v6625_v30  ;;  %vm329_vm6 = vcmp.ge.f32.partialorder %v6206_v27, %v6621_v37  ;;  %vm330_vm7 = vcmp.ge.f32.partialorder %v6209_v28, %v6621_v37  ;;  %v1475_v42 = vmul.f32 %v6631_v49, %v6527_v25 }
  0x4a   : > { %5849 = vrcp.f32 %v3504_v11  ;;  %11968 = vst [vmem:[#allocation30_spill] sm:$0xff] %v6631_v49  ;;  %v1476_v17 = vmul.f32 %v6631_v49, %v6535_v18  ;;  %v1539_v48 = vmul.f32 %v6631_v49, %v6540_v55  ;;  %v1540_v31 = vmul.f32 %v6631_v49, %v6544_v56 }
  0x4b   : > { %vm351_vm8 = vcmp.lt.f32.partialorder %v6206_v27, %v6625_v30  ;;  %vm352_vm9 = vcmp.lt.f32.partialorder %v6209_v28, %v6625_v30  ;;  %vm415_vm10 = vcmp.ge.f32.partialorder %v6206_v27, %v6625_v30  ;;  %vm416_vm11 = vcmp.ge.f32.partialorder %v6209_v28, %v6625_v30 }
  0x4c   : > { %v6660_v22 = vmul.f32 %v6431_v57, %v1476_v17  ;;  %v1555_v59 = vmul.f32 %v6403_v13, %v1539_v48  ;;  %v1556_v61 = vmul.f32 %v6431_v57, %v1540_v31  ;;  %v6665_v7 = vmul.f32 %v6403_v13, %v1475_v42  ;;  %vm367_vm12 = vmand %vm329_vm6, %vm351_vm8 }
  0x4d   : > { %v6657_v41 = vpop.eup %5841  ;;  %vm368_vm13 = vmand %vm330_vm7, %vm352_vm9  ;;  %v6684_v57 = vsel %vm367_vm12, 1.0, %v11958_v32  ;;  %v6691_v17 = vsub.f32 %v6206_v27, %v6621_v37  ;;  %v6695_v48 = vsub.f32 %v6209_v28, %v6621_v37  ;;  %vm1017_vm0 = vcmp.ge.f32.partialorder %v6206_v27, %v6213_v29 }
  0x4e   : > { %11969 = vst [vmem:[#allocation31_spill] sm:$0xff] %v6657_v41  ;;  %11970 = vst [vmem:[#allocation32_spill] sm:$0xff] %v6660_v22  ;;  %v1595_v44 = vmul.f32 %v6657_v41, %v6409_v16  ;;  %v1596_v11 = vmul.f32 %v6657_v41, %v6548_v60  ;;  %v1659_v1 = vmul.f32 %v6657_v41, %v6558_v51  ;;  %v6687_v42 = vsel %vm368_vm13, 1.0, %v11958_v32 }
  0x4f   : > { %11971 = vst [vmem:[#allocation33_spill] sm:$0xff] %v6665_v7  ;;  %v1660_v24 = vmul.f32 %v6657_v41, %v6562_v62  ;;  %v6681_v13 = vpop.eup %5843  ;;  %11973 = vst [vmem:[#allocation35_spill] sm:$0xff] %v6684_v57  ;;  %vm1018_vm1 = vcmp.ge.f32.partialorder %v6209_v28, %v6213_v29 }
  0x50   : > { %11972 = vst [vmem:[#allocation34_spill] sm:$0xff] %v6681_v13  ;;  %11974 = vst [vmem:[#allocation36_spill] sm:$0xff] %v6687_v42  ;;  %v6697_v31 = vpop.eup %5845  ;;  %v1611_v20 = vmul.f32 %v6434_v58, %v1595_v44  ;;  %v1612_v26 = vmul.f32 %v6523_v47, %v1596_v11  ;;  %v1675_v41 = vmul.f32 %v6434_v58, %v1659_v1 }
  0x51   : > { %11975 = vst [vmem:[#allocation37_spill] sm:$0xff] %v6697_v31  ;;  %v1676_v49 = vmul.f32 %v6523_v47, %v1660_v24  ;;  %v2667_v2 = vmul.f32 %v6681_v13, %v6540_v55  ;;  %v2668_v22 = vmul.f32 %v6681_v13, %v6544_v56  ;;  %v2707_v37 = vmul.f32 %v6697_v31, %v6566_v38  ;;  %v6711_v18 = vpop.eup %5847  ;;  %vm6729_vm14 = vmand %vm415_vm10, %vm437_vm4 }
  0x52   : > { %v2708_v7 = vmul.f32 %v6697_v31, %v6570_v39  ;;  %11976 = vst [vmem:[#allocation38_spill] sm:$0xff] %v6711_v18  ;;  %v1627_v44 = vadd.f32 %v1611_v20, %v1555_v59  ;;  %v1628_v11 = vadd.f32 %v1612_v26, %v1556_v61  ;;  %v1747_v25 = vadd.f32 %v1731_v40, %v1675_v41  ;;  %vm454_vm15 = vmand %vm416_vm11, %vm438_vm5 }
  0x53   : > { %v1748_v58 = vadd.f32 %v1732_v23, %v1676_v49  ;;  %v2755_v47 = vmul.f32 %v6697_v31, %v6558_v51  ;;  %v2756_v24 = vmul.f32 %v6697_v31, %v6562_v62  ;;  %v3467_v42 = vmul.f32 %v6711_v18, %v6540_v55 }
  0x54   : > { %v6713_v1 = vpop.eup %5849  ;;  %v3468_v57 = vmul.f32 %v6711_v18, %v6544_v56  ;;  %v2683_v26 = vmul.f32 %v2667_v2, %v1627_v44  ;;  %v2684_v20 = vmul.f32 %v2668_v22, %v1628_v11  ;;  %v2723_v40 = vmul.f32 %v2707_v37, %v1747_v25 }
  0x55   : > { %11977 = vst [vmem:[#allocation39_spill] sm:$0xff] %v6713_v1  ;;  %v2724_v49 = vmul.f32 %v2708_v7, %v1748_v58  ;;  %v2771_v55 = vmul.f32 %v2755_v47, %v1747_v25  ;;  %v2772_v56 = vmul.f32 %v2756_v24, %v1748_v58  ;;  %v3507_v41 = vmul.f32 %v6713_v1, %v6285_v43 }
  0x56   : > { %v3508_v59 = vmul.f32 %v6713_v1, %v6295_v45  ;;  %v6743_v61 = vadd.f32 %v2723_v40, %v2683_v26  ;;  %v3555_v37 = vmul.f32 %v6713_v1, %v6558_v51  ;;  %v3556_v22 = vmul.f32 %v6713_v1, %v6562_v62 }
  0x57   : > { %v6745_v2 = vadd.f32 %v2724_v49, %v2684_v20  ;;  %v2827_v7 = vadd.f32 %v6589_v35, %v2771_v55  ;;  %v2828_v25 = vadd.f32 %v6598_v8, %v2772_v56  ;;  %v6756_v43 = vsel %vm6729_vm14, 1.0, %v11958_v32 }
  0x58   : > { %v6759_v45 = vsel %vm454_vm15, 1.0, %v11958_v32  ;;  %v3483_v58 = vmul.f32 %v3467_v42, %v6743_v61  ;;  %v1291_v51 = vsub.f32 %v6617_v36, %v6607_v19  ;;  %v1331_v62 = vsub.f32 %v6368_v63, %v6206_v27 }
  0x59   : > { %v3484_v47 = vmul.f32 %v3468_v57, %v6745_v2  ;;  %v3523_v35 = vmul.f32 %v3507_v41, %v2827_v7  ;;  %v3524_v8 = vmul.f32 %v3508_v59, %v2828_v25  ;;  %v3571_v24 = vmul.f32 %v3555_v37, %v2827_v7 }
  0x5a   : > { %v3572_v26 = vmul.f32 %v3556_v22, %v2828_v25  ;;  %v1296_v23 = vrot.slane %v1291_v51, %v6168_v15  ;;  %v1332_v20 = vsub.f32 %v6368_v63, %v6209_v28  ;;  %v1347_v42 = vsub.f32 %v6153_v9, %v6617_v36 }
  0x5b   : > { %v6774_v57 = vsub.f32 %v6206_v27, %v6625_v30  ;;  %v3539_v40 = vadd.f32 %v3523_v35, %v3483_v58  ;;  %v3540_v49 = vadd.f32 %v3524_v8, %v3484_v47  ;;  %v3627_v55 = vadd.f32 %v6633_v50, %v3571_v24 }
  0x5c   : > { %v3628_v56 = vadd.f32 %v6635_v34, %v3572_v26  ;;  %5851 = vrcp.f32 %v1296_v23  ;;  %v1352_v41 = vrot.slane %v1347_v42, %v6168_v15  ;;  %v6781_v59 = vsub.f32 %v6209_v28, %v6625_v30 }
  0x5d   : > { %v2483_v37 = vsub.f32 %v6153_v9, %v6607_v19  ;;  %v5581_v22 = vpack.i.bf16 %v3540_v49, %v3539_v40  ;;  %v2523_v25 = vsub.f32 %v6166_v14, %v6617_v36  ;;  %v2619_v50 = vmul.f32 %v6681_v13, %v6409_v16  ;;  %v6797_v9 = vld [vmem:[%s11554_s1 + $0x9] sm:$0x1] }
  0x5e   : > { %v5586_v7 = vpack.i.bf16 %v3628_v56, %v3627_v55  ;;  %5853 = vrcp.f32 %v1352_v41  ;;  %v2620_v58 = vmul.f32 %v6681_v13, %v6548_v60  ;;  %v3283_v47 = vsub.f32 %v6166_v14, %v6607_v19 }
  0x5f   : > { %v2488_v34 = vrot.slane %v2483_v37, %v6168_v15  ;;  %5582 = vrot.lane.b32.xlu0 %v5581_v22, %s6042_s5  ;;  %v2528_v51 = vrot.slane %v2523_v25, %v6168_v15  ;;  %v6801_v35 = vmul.f32 %v2619_v50, %v1627_v44  ;;  %v3323_v8 = vsub.f32 %v6124_v0, %v6617_v36  ;;  %v11981_v22 = vld [vmem:[#allocation10_spill] sm:$0xff] }
  0x60   : > { %v6807_v14 = vmul.f32 %v2620_v58, %v1628_v11  ;;  %v3288_v19 = vrot.slane %v3283_v47, %v6168_v15  ;;  %v6815_v44 = vrot.slane %v6797_v9, %v6168_v15  ;;  %v2187_v0 = vsub.f32 %v6797_v9, %v6144_v5 }
  0x61   : > { %5855 = vrcp.f32 %v2488_v34  ;;  %v3328_v24 = vrot.slane %v3323_v8, %v6168_v15  ;;  %v3019_v36 = vmul.f32 %v6470_v10, %v6324_v52  ;;  %v3020_v11 = vmul.f32 %v6470_v10, %v6328_v53 }
  0x62   : > { %5857 = vrcp.f32 %v2528_v51  ;;  %11980 = vst [vmem:[#allocation40_spill] sm:$0xff] %v6815_v44  ;;  %v3051_v26 = vsub.f32 %v6797_v9, %v6139_v4  ;;  %vm1039_vm2 = vcmp.lt.f32.partialorder %v6206_v27, %v6815_v44  ;;  %vm1040_vm3 = vcmp.lt.f32.partialorder %v6209_v28, %v6815_v44 }
  0x63   : > { %5859 = vrcp.f32 %v3288_v19  ;;  %5587 = vrot.lane.b32.xlu0 %v5586_v7, %s6043_s6  ;;  %v6832_v23 = vsub.f32 %v6815_v44, %v6206_v27  ;;  %vm1055_vm4 = vmand %vm1017_vm0, %vm1039_vm2  ;;  %v6839_v42 = vsub.f32 %v6815_v44, %v6209_v28  ;;  %v2192_v40 = vrot.slane %v2187_v0, %v6168_v15  ;;  %v11984_v19 = vld [vmem:[#allocation35_spill] sm:$0xff]  ;;  %v11985_v0 = vld [vmem:[#allocation36_spill] sm:$0xff] }
  0x64   : > { %5861 = vrcp.f32 %v3328_v24  ;;  %v6843_v49 = vmul.f32 %v3019_v36, %v6492_v21  ;;  %v6846_v55 = vmul.f32 %v3020_v11, %v6494_v33  ;;  %vm1056_vm5 = vmand %vm1018_vm1, %vm1040_vm3  ;;  %v6852_v56 = vsel %vm1055_vm4, 1.0, %v11958_v32 }
  0x65   : > { %v3056_v41 = vrot.slane %v3051_v26, %v6168_v15  ;;  %v3731_v37 = vmul.f32 %v6490_v54, %v6299_v46  ;;  %v3732_v7 = vmul.f32 %v6490_v54, %v11981_v22  ;;  %v6862_v33 = vsel %vm1056_vm5, 1.0, %v11958_v32 }
  0x66   : > { %v6859_v21 = vpop.eup %5851  ;;  %5863 = vrcp.f32 %v2192_v40  ;;  %v3763_v25 = vsub.f32 %v6797_v9, %v6134_v3  ;;  %v3419_v50 = vmul.f32 %v6711_v18, %v6566_v38  ;;  %v3420_v38 = vmul.f32 %v6711_v18, %v6570_v39 }
  0x67   : > { %11982 = vst [vmem:[#allocation10_spill] sm:$0xff] %v6859_v21  ;;  %v1299_v34 = vmul.f32 %v6859_v21, %v6691_v17  ;;  %v1300_v46 = vmul.f32 %v6859_v21, %v6695_v48  ;;  %5865 = vrcp.f32 %v3056_v41  ;;  %v6873_v58 = vmul.f32 %v3731_v37, %v6529_v12 }
  0x68   : > { %v6875_v47 = vpop.eup %5853  ;;  %v6878_v51 = vmul.f32 %v3732_v7, %v6531_v6  ;;  %v3768_v3 = vrot.slane %v3763_v25, %v6168_v15  ;;  %v6884_v8 = vmul.f32 %v3419_v50, %v6743_v61  ;;  %v3436_v26 = vmul.f32 %v3420_v38, %v6745_v2  ;;  %v11989_v50 = vld [vmem:[#allocation26_spill] sm:$0xff] }
  0x69   : > { %11983 = vst [vmem:[#allocation41_spill] sm:$0xff] %v6875_v47  ;;  %v1315_v24 = vmul.f32 %v11984_v19, %v1299_v34  ;;  %v1316_v36 = vmul.f32 %v11985_v0, %v1300_v46  ;;  %v1355_v12 = vmul.f32 %v6875_v47, %v1331_v62  ;;  %v1356_v6 = vmul.f32 %v6875_v47, %v1332_v20  ;;  %v11990_v34 = vld [vmem:[#allocation27_spill] sm:$0xff] }
  0x6a   : > { %v1419_v39 = vmul.f32 %v6875_v47, %v6774_v57  ;;  %v1420_v61 = vmul.f32 %v6875_v47, %v6781_v59  ;;  %5867 = vrcp.f32 %v3768_v3  ;;  %vm1103_vm6 = vcmp.ge.f32.partialorder %v6206_v27, %v6815_v44 }
  0x6b   : > { %v6896_v11 = vpop.eup %5855  ;;  %v1371_v62 = vmul.f32 %v6756_v43, %v1355_v12  ;;  %v1372_v41 = vmul.f32 %v6759_v45, %v1356_v6  ;;  %v11992_v6 = vld [vmem:[#allocation33_spill] sm:$0xff]  ;;  %vm1104_vm9 = vcmp.ge.f32.partialorder %v6209_v28, %v6815_v44 }
  0x6c   : > { %11986 = vst [vmem:[#allocation35_spill] sm:$0xff] %v6896_v11  ;;  %v6903_v40 = vpop.eup %5857  ;;  %v2491_v20 = vmul.f32 %v6896_v11, %v6691_v17  ;;  %v2492_v37 = vmul.f32 %v6896_v11, %v6695_v48  ;;  %v1435_v7 = vmul.f32 %v6756_v43, %v1419_v39  ;;  %v1436_v25 = vmul.f32 %v6759_v45, %v1420_v61  ;;  %v11993_v39 = vld [vmem:[#allocation32_spill] sm:$0xff] }
  0x6d   : > { %11987 = vst [vmem:[#allocation36_spill] sm:$0xff] %v6903_v40  ;;  %v6911_v22 = vpop.eup %5859  ;;  %v2531_v2 = vmul.f32 %v6903_v40, %v11989_v50  ;;  %v2532_v46 = vmul.f32 %v6903_v40, %v11990_v34  ;;  %v1387_v38 = vadd.f32 %v1371_v62, %v1315_v24  ;;  %v1388_v19 = vadd.f32 %v1372_v41, %v1316_v36 }
  0x6e   : > { %11988 = vst [vmem:[#allocation42_spill] sm:$0xff] %v6911_v22  ;;  %v6919_v3 = vpop.eup %5861  ;;  %v2579_v0 = vmul.f32 %v6903_v40, %v6774_v57  ;;  %v2580_v12 = vmul.f32 %v6903_v40, %v6781_v59  ;;  %v1507_v43 = vadd.f32 %v11992_v6, %v1435_v7  ;;  %v1508_v45 = vadd.f32 %v11993_v39, %v1436_v25 }
  0x6f   : > { %11991 = vst [vmem:[#allocation26_spill] sm:$0xff] %v6919_v3  ;;  %v3291_v61 = vmul.f32 %v6911_v22, %v6691_v17  ;;  %v3292_v50 = vmul.f32 %v6911_v22, %v6695_v48  ;;  %v2507_v34 = vmul.f32 %v2491_v20, %v1387_v38  ;;  %v2508_v11 = vmul.f32 %v2492_v37, %v1388_v19 }
  0x70   : > { %v3331_v24 = vmul.f32 %v6919_v3, %v6409_v16  ;;  %v3332_v36 = vmul.f32 %v6919_v3, %v6548_v60  ;;  %v6935_v62 = vpop.eup %5863  ;;  %v2547_v41 = vmul.f32 %v2531_v2, %v1507_v43  ;;  %v2548_v7 = vmul.f32 %v2532_v46, %v1508_v45 }
  0x71   : > { %11994 = vst [vmem:[#allocation27_spill] sm:$0xff] %v6935_v62  ;;  %v2595_v6 = vmul.f32 %v2579_v0, %v1507_v43  ;;  %v2596_v25 = vmul.f32 %v2580_v12, %v1508_v45  ;;  %v6937_v39 = vpop.eup %5865  ;;  %v2195_v17 = vmul.f32 %v6935_v62, %v6832_v23  ;;  %v2196_v48 = vmul.f32 %v6935_v62, %v6839_v42 }
  0x72   : > { %11995 = vst [vmem:[#allocation33_spill] sm:$0xff] %v6937_v39  ;;  %v3379_v16 = vmul.f32 %v6919_v3, %v6774_v57  ;;  %v3380_v60 = vmul.f32 %v6919_v3, %v6781_v59  ;;  %v2563_v20 = vadd.f32 %v2547_v41, %v2507_v34  ;;  %v2564_v37 = vadd.f32 %v2548_v7, %v2508_v11  ;;  %v11997_v34 = vld [vmem:[#allocation23_spill] sm:$0xff]  ;;  %v11998_v41 = vld [vmem:[#allocation24_spill] sm:$0xff] }
  0x73   : > { %v2651_v2 = vadd.f32 %v6801_v35, %v2595_v6  ;;  %v2652_v46 = vadd.f32 %v6807_v14, %v2596_v25  ;;  %v2211_v38 = vmul.f32 %v6852_v56, %v2195_v17  ;;  %v2212_v19 = vmul.f32 %v6862_v33, %v2196_v48 }
  0x74   : > { %v3059_v0 = vmul.f32 %v6937_v39, %v6832_v23  ;;  %v3060_v12 = vmul.f32 %v6937_v39, %v6839_v42  ;;  %v6955_v57 = vpop.eup %5867  ;;  %v3307_v43 = vmul.f32 %v3291_v61, %v2563_v20  ;;  %v3308_v59 = vmul.f32 %v3292_v50, %v2564_v37  ;;  %v5135_v61 = vld [vmem:[%s11554_s1 + $0xa] sm:$0x1] }
  0x75   : > { %11996 = vst [vmem:[#allocation32_spill] sm:$0xff] %v6955_v57  ;;  %v3347_v45 = vmul.f32 %v3331_v24, %v2651_v2  ;;  %v3348_v11 = vmul.f32 %v3332_v36, %v2652_v46  ;;  %v2227_v35 = vadd.f32 %v2211_v38, %v11997_v34  ;;  %v2228_v14 = vadd.f32 %v2212_v19, %v11998_v41 }
  0x76   : > { %v3771_v7 = vmul.f32 %v6955_v57, %v6832_v23  ;;  %v3772_v6 = vmul.f32 %v6955_v57, %v6839_v42  ;;  %v3395_v48 = vmul.f32 %v3379_v16, %v2651_v2  ;;  %v3396_v3 = vmul.f32 %v3380_v60, %v2652_v46 }
  0x77   : > { %v3363_v25 = vadd.f32 %v3347_v45, %v3307_v43  ;;  %v3364_v17 = vadd.f32 %v3348_v11, %v3308_v59  ;;  %v3075_v50 = vmul.f32 %v3059_v0, %v2227_v35  ;;  %v3076_v24 = vmul.f32 %v3060_v12, %v2228_v14 }
  0x78   : > { %v6969_v36 = vrot.slane %v5135_v61, %v6168_v15  ;;  %v3451_v20 = vadd.f32 %v6884_v8, %v3395_v48  ;;  %v3452_v42 = vadd.f32 %v3436_v26, %v3396_v3  ;;  %v6974_v16 = vsub.f32 %v6206_v27, %v6213_v29 }
  0x79   : > { %v5596_v23 = vpack.i.bf16 %v3364_v17, %v3363_v25  ;;  %v3091_v60 = vadd.f32 %v3075_v50, %v6843_v49  ;;  %v3092_v37 = vadd.f32 %v3076_v24, %v6846_v55  ;;  %v2307_v3 = vsub.f32 %v5135_v61, %v6797_v9  ;;  %v12001_v49 = vld [vmem:[#allocation11_spill] sm:$0xff]  ;;  %v12007_v50 = vld [vmem:[#allocation6_spill] sm:$0xff] }
  0x7a   : > { %11999 = vst [vmem:[#allocation23_spill] sm:$0xff] %v6969_v36  ;;  %12000 = vst [vmem:[#allocation24_spill] sm:$0xff] %v6974_v16  ;;  %vm1125_vm7 = vcmp.lt.f32.partialorder %v6206_v27, %v6969_v36  ;;  %v6982_v2 = vsub.f32 %v6969_v36, %v6206_v27  ;;  %v5606_v8 = vpack.i.bf16 %v3452_v42, %v3451_v20  ;;  %v12008_v24 = vld [vmem:[#allocation7_spill] sm:$0xff]  ;;  %v12009_v20 = vld [vmem:[#allocation8_spill] sm:$0xff] }
  0x7b   : > { %5597 = vrot.lane.b32.xlu1 %v5596_v23, %s6044_s9  ;;  %vm1141_vm8 = vmand %vm1103_vm6, %vm1125_vm7  ;;  %v2259_v26 = vmul.f32 %v6935_v62, %v6974_v16  ;;  %v3107_v55 = vmul.f32 %v6937_v39, %v12001_v49  ;;  %v3787_v46 = vmul.f32 %v3771_v7, %v3091_v60  ;;  %v3788_v38 = vmul.f32 %v3772_v6, %v3092_v37  ;;  %v12005_v7 = vld [vmem:[#allocation14_spill] sm:$0xff] }
  0x7c   : > { %v6991_v19 = vsel %vm1141_vm8, 1.0, %v11958_v32  ;;  %v3139_v27 = vsub.f32 %v5135_v61, %v6144_v5  ;;  %v2312_v12 = vrot.slane %v2307_v3, %v6168_v15  ;;  %v3819_v9 = vmul.f32 %v6955_v57, %v6324_v52  ;;  %v7014_v52 = vld [vmem:[%s6187_s25 + $0x10] sm:$0xff] }
  0x7d   : > { %12002 = vst [vmem:[#allocation43_spill] sm:$0xff] %v6991_v19  ;;  %v6995_v0 = vmul.f32 %v6852_v56, %v2259_v26  ;;  %v6998_v43 = vmul.f32 %v3107_v55, %v2227_v35  ;;  %v3803_v59 = vadd.f32 %v3787_v46, %v6873_v58  ;;  %v3804_v45 = vadd.f32 %v3788_v38, %v6878_v51  ;;  %v7017_v56 = vld [vmem:[%s6187_s25 + $0x18] sm:$0xff] }
  0x7e   : > { %v3144_v11 = vrot.slane %v3139_v27, %v6168_v15  ;;  %v3851_v34 = vsub.f32 %v5135_v61, %v6139_v4  ;;  %5869 = vrcp.f32 %v2312_v12  ;;  %v7007_v5 = vmul.f32 %v3819_v9, %v3091_v60  ;;  %v12006_v61 = vld [vmem:[#allocation13_spill] sm:$0xff] }
  0x7f   : > { %5607 = vrot.lane.b32.xlu1 %v5606_v8, %s6045_s10  ;;  %vm1126_vm10 = vcmp.lt.f32.partialorder %v6209_v28, %v6969_v36  ;;  %v5601_v58 = vpack.i.bf16 %v3804_v45, %v3803_v59  ;;  %v7022_v51 = vsub.f32 %v6209_v28, %v6213_v29  ;;  %v2292_v41 = vsub.f32 %v6969_v36, %v6209_v28  ;;  %v12012_v45 = vld [vmem:[#allocation30_spill] sm:$0xff] }
  0x80   : > { %5871 = vrcp.f32 %v3144_v11  ;;  %v3856_v4 = vrot.slane %v3851_v34, %v6168_v15  ;;  %vm1142_vm11 = vmand %vm1104_vm9, %vm1126_vm10  ;;  %v3108_v6 = vmul.f32 %v6937_v39, %v12005_v7  ;;  %v3820_v25 = vmul.f32 %v6955_v57, %v6328_v53 }
  0x81   : > { %12003 = vst [vmem:[#allocation44_spill] sm:$0xff] %v7022_v51  ;;  %v7025_v35 = vsel %vm1142_vm11, 1.0, %v11958_v32  ;;  %5602 = vrot.lane.b32.xlu0 %v5601_v58, %s6046_s11  ;;  %v2260_v17 = vmul.f32 %v6935_v62, %v7022_v51  ;;  %vm503_vm12 = vcmp.ge.f32.partialorder %v7014_v52, %v6368_v63  ;;  %vm504_vm13 = vcmp.ge.f32.partialorder %v7017_v56, %v6368_v63 }
  0x82   : > { %12004 = vst [vmem:[#allocation45_spill] sm:$0xff] %v7025_v35  ;;  %5873 = vrcp.f32 %v3856_v4  ;;  %v7040_v28 = vmul.f32 %v3108_v6, %v2228_v14  ;;  %v7042_v48 = vmul.f32 %v3820_v25, %v3092_v37  ;;  %vm525_vm14 = vcmp.lt.f32.partialorder %v7014_v52, %v12006_v61 }
  0x83   : > { %vm526_vm15 = vcmp.lt.f32.partialorder %v7017_v56, %v12006_v61  ;;  %v2276_v53 = vmul.f32 %v6862_v33, %v2260_v17  ;;  %vm541_vm0 = vmand %vm503_vm12, %vm525_vm14  ;;  %vm589_vm1 = vcmp.ge.f32.partialorder %v7014_v52, %v12006_v61  ;;  %vm590_vm2 = vcmp.ge.f32.partialorder %v7017_v56, %v12006_v61 }
  0x84   : > { %vm611_vm3 = vcmp.lt.f32.partialorder %v7014_v52, %v12007_v50  ;;  %vm542_vm4 = vmand %vm504_vm13, %vm526_vm15  ;;  %v7056_v14 = vsel %vm541_vm0, 1.0, %v11958_v32  ;;  %vm612_vm5 = vcmp.lt.f32.partialorder %v7017_v56, %v12007_v50  ;;  %vm675_vm6 = vcmp.ge.f32.partialorder %v7014_v52, %v12007_v50 }
  0x85   : > { %vm676_vm7 = vcmp.ge.f32.partialorder %v7017_v56, %v12007_v50  ;;  %v7065_v33 = vsel %vm542_vm4, 1.0, %v11958_v32  ;;  %vm627_vm8 = vmand %vm589_vm1, %vm611_vm3  ;;  %vm697_vm9 = vcmp.lt.f32.partialorder %v7014_v52, %v12008_v24  ;;  %vm698_vm10 = vcmp.lt.f32.partialorder %v7017_v56, %v12008_v24 }
  0x86   : > { %vm761_vm11 = vcmp.ge.f32.partialorder %v7014_v52, %v12008_v24  ;;  %vm628_vm12 = vmand %vm590_vm2, %vm612_vm5  ;;  %v5187_v23 = vsel %vm627_vm8, 1.0, %v11958_v32  ;;  %vm762_vm13 = vcmp.ge.f32.partialorder %v7017_v56, %v12008_v24  ;;  %vm783_vm14 = vcmp.lt.f32.partialorder %v7014_v52, %v12009_v20 }
  0x87   : > { %vm784_vm15 = vcmp.lt.f32.partialorder %v7017_v56, %v12009_v20  ;;  %v5188_v42 = vsel %vm628_vm12, 1.0, %v11958_v32  ;;  %vm713_vm0 = vmand %vm675_vm6, %vm697_vm9  ;;  %v7083_v60 = vsub.f32 %v7014_v52, %v6368_v63  ;;  %v7087_v37 = vsub.f32 %v7017_v56, %v6368_v63 }
  0x88   : > { %v7091_v8 = vsub.f32 %v12007_v50, %v7014_v52  ;;  %v7093_v26 = vpop.eup %5869  ;;  %vm714_vm1 = vmand %vm676_vm7, %vm698_vm10  ;;  %v5203_v3 = vsel %vm713_vm0, 1.0, %v11958_v32  ;;  %v7101_v55 = vsub.f32 %v12007_v50, %v7017_v56  ;;  %v7105_v46 = vsub.f32 %v7014_v52, %v12006_v61 }
  0x89   : > { %12010 = vst [vmem:[#allocation46_spill] sm:$0xff] %v7093_v26  ;;  %v7109_v38 = vsub.f32 %v7017_v56, %v12006_v61  ;;  %v2315_v12 = vmul.f32 %v7093_v26, %v6982_v2  ;;  %v2316_v9 = vmul.f32 %v7093_v26, %v2292_v41  ;;  %v5204_v59 = vsel %vm714_vm1, 1.0, %v11958_v32  ;;  %vm799_vm2 = vmand %vm761_vm11, %vm783_vm14  ;;  %v12014_v26 = vld [vmem:[#allocation31_spill] sm:$0xff] }
  0x8a   : > { %v7111_v27 = vpop.eup %5871  ;;  %v1541_v11 = vmul.f32 %v12012_v45, %v7083_v60  ;;  %vm800_vm3 = vmand %vm762_vm13, %vm784_vm15  ;;  %v7135_v4 = vsel %vm799_vm2, 1.0, %v11958_v32  ;;  %v1542_v6 = vmul.f32 %v12012_v45, %v7087_v37  ;;  %v1597_v36 = vmul.f32 %v12014_v26, %v7091_v8 }
  0x8b   : > { %12011 = vst [vmem:[#allocation47_spill] sm:$0xff] %v7111_v27  ;;  %v3147_v34 = vmul.f32 %v7111_v27, %v6982_v2  ;;  %v3148_v58 = vmul.f32 %v7111_v27, %v2292_v41  ;;  %v2331_v17 = vmul.f32 %v6991_v19, %v2315_v12  ;;  %v2332_v7 = vmul.f32 %v7025_v35, %v2316_v9 }
  0x8c   : > { %v7139_v25 = vpop.eup %5873  ;;  %v7144_v51 = vsel %vm800_vm3, 1.0, %v11958_v32  ;;  %v1557_v49 = vmul.f32 %v7056_v14, %v1541_v11  ;;  %v1558_v27 = vmul.f32 %v7065_v33, %v1542_v6  ;;  %v1598_v9 = vmul.f32 %v12014_v26, %v7101_v55 }
  0x8d   : > { %12013 = vst [vmem:[#allocation48_spill] sm:$0xff] %v7139_v25  ;;  %v3859_v16 = vmul.f32 %v7139_v25, %v6982_v2  ;;  %v3860_v15 = vmul.f32 %v7139_v25, %v2292_v41  ;;  %v7154_v57 = vadd.f32 %v2331_v17, %v6995_v0  ;;  %v7156_v12 = vadd.f32 %v2332_v7, %v2276_v53  ;;  %v12019_v25 = vld [vmem:[#allocation15_spill] sm:$0xff] }
  0x8e   : > { %v1661_v11 = vmul.f32 %v12014_v26, %v7105_v46  ;;  %v1613_v35 = vmul.f32 %v5187_v23, %v1597_v36  ;;  %v1662_v2 = vmul.f32 %v12014_v26, %v7109_v38  ;;  %v7166_v41 = vsub.f32 %v12008_v24, %v7014_v52 }
  0x8f   : > { %12015 = vst [vmem:[#allocation49_spill] sm:$0xff] %v7154_v57  ;;  %12016 = vst [vmem:[#allocation50_spill] sm:$0xff] %v7156_v12  ;;  %v7170_v0 = vsub.f32 %v12008_v24, %v7017_v56  ;;  %v3163_v7 = vmul.f32 %v3147_v34, %v7154_v57  ;;  %v3164_v53 = vmul.f32 %v3148_v58, %v7156_v12 }
  0x90   : > { %12017 = vst [vmem:[#allocation51_spill] sm:$0xff] %v7166_v41  ;;  %v1614_v6 = vmul.f32 %v5188_v42, %v1598_v9  ;;  %v1677_v17 = vmul.f32 %v5187_v23, %v1661_v11  ;;  %v7174_v19 = vadd.f32 %v1613_v35, %v1557_v49  ;;  %v1678_v36 = vmul.f32 %v5188_v42, %v1662_v2  ;;  %v12022_v2 = vld [vmem:[#allocation16_spill] sm:$0xff] }
  0x91   : > { %12018 = vst [vmem:[#allocation52_spill] sm:$0xff] %v7170_v0  ;;  %v1717_v26 = vmul.f32 %v12019_v25, %v7166_v41  ;;  %v1718_v39 = vmul.f32 %v12019_v25, %v7170_v0  ;;  %v7181_v62 = vadd.f32 %v3163_v7, %v6998_v43  ;;  %v7184_v44 = vadd.f32 %v3164_v53, %v7040_v28 }
  0x92   : > { %v7186_v34 = vadd.f32 %v1614_v6, %v1558_v27  ;;  %v7190_v23 = vsub.f32 %v7014_v52, %v12007_v50  ;;  %v7194_v42 = vsub.f32 %v7017_v56, %v12007_v50  ;;  %v1813_v58 = vsub.f32 %v12009_v20, %v7014_v52 }
  0x93   : > { %12020 = vst [vmem:[#allocation53_spill] sm:$0xff] %v7181_v62  ;;  %12021 = vst [vmem:[#allocation54_spill] sm:$0xff] %v7184_v44  ;;  %v1733_v49 = vmul.f32 %v5203_v3, %v1717_v26  ;;  %v1734_v35 = vmul.f32 %v5204_v59, %v1718_v39  ;;  %v3875_v43 = vmul.f32 %v3859_v16, %v7181_v62 }
  0x94   : > { %v3876_v28 = vmul.f32 %v3860_v15, %v7184_v44  ;;  %v1781_v27 = vmul.f32 %v12019_v25, %v7190_v23  ;;  %v1814_v9 = vsub.f32 %v12009_v20, %v7017_v56  ;;  %v1782_v39 = vmul.f32 %v12019_v25, %v7194_v42 }
  0x95   : > { %v1749_v11 = vadd.f32 %v1733_v49, %v1677_v17  ;;  %v1750_v26 = vadd.f32 %v1734_v35, %v1678_v36  ;;  %v1837_v7 = vmul.f32 %v12022_v2, %v1813_v58  ;;  %v3891_v53 = vadd.f32 %v3875_v43, %v7007_v5 }
  0x96   : > { %v3892_v6 = vadd.f32 %v3876_v28, %v7042_v48  ;;  %v1797_v16 = vmul.f32 %v5203_v3, %v1781_v27  ;;  %v1838_v15 = vmul.f32 %v12022_v2, %v1814_v9  ;;  %v1798_v44 = vmul.f32 %v5204_v59, %v1782_v39 }
  0x97   : > { %v1853_v12 = vmul.f32 %v7135_v4, %v1837_v7  ;;  %v2669_v62 = vmul.f32 %v6681_v13, %v7083_v60  ;;  %v2670_v17 = vmul.f32 %v6681_v13, %v7087_v37  ;;  %4395 = vrot.lane.b32.xlu0 %v3891_v53, %s6047_s17  ;;  %v2709_v48 = vmul.f32 %v6697_v31, %v7166_v41  ;;  %v12023_v53 = vld [vmem:[#allocation19_spill] sm:$0xff] }
  0x98   : > { %4397 = vrot.lane.b32.xlu1 %v3892_v6, %s6047_s17  ;;  %v1854_v5 = vmul.f32 %v7144_v51, %v1838_v15  ;;  %v2710_v3 = vmul.f32 %v6697_v31, %v7170_v0  ;;  %v2757_v35 = vmul.f32 %v6697_v31, %v7105_v46  ;;  %v2758_v39 = vmul.f32 %v6697_v31, %v7109_v38 }
  0x99   : > { %v1869_v59 = vadd.f32 %v1853_v12, %v1797_v16  ;;  %v2685_v36 = vmul.f32 %v2669_v62, %v7174_v19  ;;  %v2686_v49 = vmul.f32 %v2670_v17, %v7186_v34  ;;  %v2725_v28 = vmul.f32 %v2709_v48, %v1749_v11 }
  0x9a   : > { %v1870_v43 = vadd.f32 %v1854_v5, %v1798_v44  ;;  %v2726_v27 = vmul.f32 %v2710_v3, %v1750_v26  ;;  %v2773_v7 = vmul.f32 %v2757_v35, %v1749_v11  ;;  %v2797_v6 = vmul.f32 %v12023_v53, %v1813_v58 }
  0x9b   : > { %v2798_v15 = vmul.f32 %v12023_v53, %v1814_v9  ;;  %v3469_v12 = vmul.f32 %v6711_v18, %v7083_v60  ;;  %v7232_v62 = vadd.f32 %v2725_v28, %v2685_v36  ;;  %v2774_v17 = vmul.f32 %v2758_v39, %v1750_v26  ;;  %v12026_v36 = vld [vmem:[#allocation9_spill] sm:$0xff] }
  0x9c   : > { %v7234_v16 = vadd.f32 %v2726_v27, %v2686_v49  ;;  %v3470_v44 = vmul.f32 %v6711_v18, %v7087_v37  ;;  %v2813_v5 = vmul.f32 %v2797_v6, %v1869_v59  ;;  %v3509_v3 = vmul.f32 %v6713_v1, %v1813_v58  ;;  %v12028_v18 = vld [vmem:[#allocation20_spill] sm:$0xff] }
  0x9d   : > { %12024 = vst [vmem:[#allocation55_spill] sm:$0xff] %v7232_v62  ;;  %v2814_v48 = vmul.f32 %v2798_v15, %v1870_v43  ;;  %v3510_v11 = vmul.f32 %v6713_v1, %v1814_v9  ;;  %v3485_v35 = vmul.f32 %v3469_v12, %v7232_v62  ;;  %vm847_vm4 = vcmp.ge.f32.partialorder %v7014_v52, %v12009_v20 }
  0x9e   : > { %12025 = vst [vmem:[#allocation56_spill] sm:$0xff] %v7234_v16  ;;  %v3486_v57 = vmul.f32 %v3470_v44, %v7234_v16  ;;  %vm848_vm5 = vcmp.ge.f32.partialorder %v7017_v56, %v12009_v20  ;;  %v2829_v60 = vadd.f32 %v2813_v5, %v2773_v7  ;;  %vm869_vm6 = vcmp.lt.f32.partialorder %v7014_v52, %v12026_v36 }
  0x9f   : > { %v2830_v26 = vadd.f32 %v2814_v48, %v2774_v17  ;;  %vm870_vm7 = vcmp.lt.f32.partialorder %v7017_v56, %v12026_v36  ;;  %vm885_vm8 = vmand %vm847_vm4, %vm869_vm6  ;;  %v7252_v37 = vsub.f32 %v7014_v52, %v12008_v24  ;;  %v7256_v58 = vsub.f32 %v7017_v56, %v12008_v24  ;;  %v12027_v17 = vld [vmem:[#allocation17_spill] sm:$0xff] }
  0xa0   : > { %v1933_v9 = vsub.f32 %v12026_v36, %v7014_v52  ;;  %v1934_v49 = vsub.f32 %v12026_v36, %v7017_v56  ;;  %v3525_v28 = vmul.f32 %v3509_v3, %v2829_v60  ;;  %vm886_vm9 = vmand %vm848_vm5, %vm870_vm7  ;;  %v5235_v39 = vsel %vm885_vm8, 1.0, %v11958_v32 }
  0xa1   : > { %v3526_v27 = vmul.f32 %v3510_v11, %v2830_v26  ;;  %v2845_v7 = vmul.f32 %v12023_v53, %v7190_v23  ;;  %v5236_v6 = vsel %vm886_vm9, 1.0, %v11958_v32  ;;  %v1901_v15 = vmul.f32 %v12022_v2, %v7252_v37 }
  0xa2   : > { %v1902_v12 = vmul.f32 %v12022_v2, %v7256_v58  ;;  %v1957_v44 = vmul.f32 %v12027_v17, %v1933_v9  ;;  %v3541_v5 = vadd.f32 %v3525_v28, %v3485_v35  ;;  %v1958_v3 = vmul.f32 %v12027_v17, %v1934_v49 }
  0xa3   : > { %v3542_v48 = vadd.f32 %v3526_v27, %v3486_v57  ;;  %v2846_v11 = vmul.f32 %v12023_v53, %v7194_v42  ;;  %v1917_v31 = vmul.f32 %v7135_v4, %v1901_v15  ;;  %v2861_v50 = vmul.f32 %v2845_v7, %v1869_v59 }
  0xa4   : > { %v1918_v25 = vmul.f32 %v7144_v51, %v1902_v12  ;;  %v1973_v24 = vmul.f32 %v5235_v39, %v1957_v44  ;;  %v1974_v62 = vmul.f32 %v5236_v6, %v1958_v3  ;;  %v2885_v2 = vmul.f32 %v12028_v18, %v1933_v9  ;;  %v12029_v51 = vld [vmem:[#allocation22_spill] sm:$0xff] }
  0xa5   : > { %v5611_v16 = vpack.i.bf16 %v3542_v48, %v3541_v5  ;;  %v2862_v0 = vmul.f32 %v2846_v11, %v1870_v43  ;;  %v2886_v35 = vmul.f32 %v12028_v18, %v1934_v49  ;;  %v3557_v57 = vmul.f32 %v6713_v1, %v7105_v46  ;;  %v12030_v12 = vld [vmem:[#allocation18_spill] sm:$0xff] }
  0xa6   : > { %v1989_v41 = vadd.f32 %v1973_v24, %v1917_v31  ;;  %v3558_v28 = vmul.f32 %v6713_v1, %v7109_v38  ;;  %v1990_v4 = vadd.f32 %v1974_v62, %v1918_v25  ;;  %v3597_v27 = vmul.f32 %v12029_v51, %v1933_v9 }
  0xa7   : > { %5612 = vrot.lane.b32.xlu0 %v5611_v16, %s6042_s5  ;;  %v3598_v59 = vmul.f32 %v12029_v51, %v1934_v49  ;;  %vm933_vm10 = vcmp.ge.f32.partialorder %v7014_v52, %v12026_v36  ;;  %v3573_v31 = vmul.f32 %v3557_v57, %v2829_v60  ;;  %vm934_vm11 = vcmp.ge.f32.partialorder %v7017_v56, %v12026_v36 }
  0xa8   : > { %v2901_v43 = vmul.f32 %v2885_v2, %v1989_v41  ;;  %v3574_v24 = vmul.f32 %v3558_v28, %v2830_v26  ;;  %v2902_v46 = vmul.f32 %v2886_v35, %v1990_v4  ;;  %vm955_vm12 = vcmp.lt.f32.partialorder %v7014_v52, %v6213_v29 }
  0xa9   : > { %vm956_vm13 = vcmp.lt.f32.partialorder %v7017_v56, %v6213_v29  ;;  %v7295_v38 = vsub.f32 %v7014_v52, %v12009_v20  ;;  %vm971_vm14 = vmand %vm933_vm10, %vm955_vm12  ;;  %v7299_v2 = vsub.f32 %v7017_v56, %v12009_v20  ;;  %v2053_v62 = vsub.f32 %v6213_v29, %v7014_v52 }
  0xaa   : > { %v2917_v25 = vadd.f32 %v2901_v43, %v2861_v50  ;;  %v2054_v16 = vsub.f32 %v6213_v29, %v7017_v56  ;;  %v2918_v60 = vadd.f32 %v2902_v46, %v2862_v0  ;;  %vm972_vm15 = vmand %vm934_vm11, %vm956_vm13  ;;  %v7306_v26 = vsel %vm971_vm14, 1.0, %v11958_v32 }
  0xab   : > { %v2021_v9 = vmul.f32 %v12027_v17, %v7295_v38  ;;  %v2933_v50 = vmul.f32 %v12028_v18, %v7252_v37  ;;  %v7313_v7 = vsel %vm972_vm15, 1.0, %v11958_v32  ;;  %v2022_v15 = vmul.f32 %v12027_v17, %v7299_v2 }
  0xac   : > { %v3613_v49 = vmul.f32 %v3597_v27, %v2917_v25  ;;  %v2077_v44 = vmul.f32 %v12030_v12, %v2053_v62  ;;  %v3614_v0 = vmul.f32 %v3598_v59, %v2918_v60  ;;  %v2078_v48 = vmul.f32 %v12030_v12, %v2054_v16 }
  0xad   : > { %v2037_v5 = vmul.f32 %v5235_v39, %v2021_v9  ;;  %v2934_v3 = vmul.f32 %v12028_v18, %v7256_v58  ;;  %v2038_v35 = vmul.f32 %v5236_v6, %v2022_v15  ;;  %v2949_v28 = vmul.f32 %v2933_v50, %v1989_v41  ;;  %v12031_v15 = vld [vmem:[#allocation28_spill] sm:$0xff] }
  0xae   : > { %v3629_v11 = vadd.f32 %v3613_v49, %v3573_v31  ;;  %v2093_v57 = vmul.f32 %v7306_v26, %v2077_v44  ;;  %v3630_v27 = vadd.f32 %v3614_v0, %v3574_v24  ;;  %v2094_v43 = vmul.f32 %v7313_v7, %v2078_v48 }
  0xaf   : > { %v2950_v46 = vmul.f32 %v2934_v3, %v1990_v4  ;;  %v2973_v17 = vmul.f32 %v6470_v10, %v2053_v62  ;;  %v2974_v39 = vmul.f32 %v6470_v10, %v2054_v16  ;;  %v3645_v59 = vmul.f32 %v12029_v51, %v7190_v23 }
  0xb0   : > { %v7324_v1 = vadd.f32 %v2093_v57, %v2037_v5  ;;  %v3646_v31 = vmul.f32 %v12029_v51, %v7194_v42  ;;  %v5616_v6 = vpack.i.bf16 %v3630_v27, %v3629_v11  ;;  %v7331_v9 = vadd.f32 %v2094_v43, %v2038_v35 }
  0xb1   : > { %v3685_v41 = vmul.f32 %v6490_v54, %v2053_v62  ;;  %v3686_v24 = vmul.f32 %v6490_v54, %v2054_v16  ;;  %v3661_v50 = vmul.f32 %v3645_v59, %v2917_v25  ;;  %vm331_vm0 = vcmp.ge.f32.partialorder %v7014_v52, %v12031_v15 }
  0xb2   : > { %v2989_v4 = vmul.f32 %v2973_v17, %v7324_v1  ;;  %v3662_v49 = vmul.f32 %v3646_v31, %v2918_v60  ;;  %5617 = vrot.lane.b32.xlu1 %v5616_v6, %s6043_s6  ;;  %v2990_v23 = vmul.f32 %v2974_v39, %v7331_v9  ;;  %vm332_vm1 = vcmp.ge.f32.partialorder %v7017_v56, %v12031_v15 }
  0xb3   : > { %vm353_vm2 = vcmp.lt.f32.partialorder %v7014_v52, %v6625_v30  ;;  %vm354_vm3 = vcmp.lt.f32.partialorder %v7017_v56, %v6625_v30  ;;  %vm417_vm5 = vcmp.ge.f32.partialorder %v7014_v52, %v6625_v30  ;;  %vm418_vm6 = vcmp.ge.f32.partialorder %v7017_v56, %v6625_v30 }
  0xb4   : > { %v7346_v42 = vadd.f32 %v2989_v4, %v2949_v28  ;;  %vm369_vm4 = vmand %vm331_vm0, %vm353_vm2  ;;  %vm439_vm7 = vcmp.lt.f32.partialorder %v7014_v52, %v6368_v63  ;;  %v7354_v17 = vadd.f32 %v2990_v23, %v2950_v46  ;;  %vm440_vm9 = vcmp.lt.f32.partialorder %v7017_v56, %v6368_v63 }
  0xb5   : > { %vm370_vm8 = vmand %vm332_vm1, %vm354_vm3  ;;  %v5139_v25 = vsel %vm369_vm4, 1.0, %v11958_v32  ;;  %v1277_v62 = vsub.f32 %v7014_v52, %v12031_v15  ;;  %v1278_v44 = vsub.f32 %v7017_v56, %v12031_v15  ;;  %v1333_v0 = vsub.f32 %v6368_v63, %v7014_v52 }
  0xb6   : > { %v3701_v16 = vmul.f32 %v3685_v41, %v7346_v42  ;;  %v5140_v60 = vsel %vm370_vm8, 1.0, %v11958_v32  ;;  %vm455_vm10 = vmand %vm417_vm5, %vm439_vm7  ;;  %v3702_v5 = vmul.f32 %v3686_v24, %v7354_v17  ;;  %v1334_v11 = vsub.f32 %v6368_v63, %v7017_v56 }
  0xb7   : > { %vm456_vm11 = vmand %vm418_vm6, %vm440_vm9  ;;  %v5155_v48 = vsel %vm455_vm10, 1.0, %v11958_v32  ;;  %v1301_v3 = vmul.f32 %v6859_v21, %v1277_v62  ;;  %v1302_v28 = vmul.f32 %v6859_v21, %v1278_v44  ;;  %v1357_v27 = vmul.f32 %v6875_v47, %v1333_v0  ;;  %v12032_v0 = vld [vmem:[#allocation35_spill] sm:$0xff] }
  0xb8   : > { %v3717_v35 = vadd.f32 %v3701_v16, %v3661_v50  ;;  %v5156_v57 = vsel %vm456_vm11, 1.0, %v11958_v32  ;;  %v3718_v43 = vadd.f32 %v3702_v5, %v3662_v49  ;;  %v1358_v39 = vmul.f32 %v6875_v47, %v1334_v11 }
  0xb9   : > { %v1317_v46 = vmul.f32 %v5139_v25, %v1301_v3  ;;  %v7378_v59 = vsub.f32 %v7014_v52, %v6625_v30  ;;  %v1318_v31 = vmul.f32 %v5140_v60, %v1302_v28  ;;  %v1373_v6 = vmul.f32 %v5155_v48, %v1357_v27 }
  0xba   : > { %v7382_v41 = vsub.f32 %v7017_v56, %v6625_v30  ;;  %v1453_v24 = vsub.f32 %v12006_v61, %v7014_v52  ;;  %v5621_v4 = vpack.i.bf16 %v3718_v43, %v3717_v35  ;;  %v1374_v50 = vmul.f32 %v5156_v57, %v1358_v39 }
  0xbb   : > { %v1421_v49 = vmul.f32 %v6875_v47, %v7378_v59  ;;  %v1454_v23 = vsub.f32 %v12006_v61, %v7017_v56  ;;  %v1389_v25 = vadd.f32 %v1373_v6, %v1317_v46  ;;  %v2493_v5 = vmul.f32 %v12032_v0, %v1277_v62 }
  0xbc   : > { %v1422_v16 = vmul.f32 %v6875_v47, %v7382_v41  ;;  %v1477_v60 = vmul.f32 %v12012_v45, %v1453_v24  ;;  %5622 = vrot.lane.b32.xlu0 %v5621_v4, %s6041_s27  ;;  %v1390_v3 = vadd.f32 %v1374_v50, %v1318_v31  ;;  %v2494_v28 = vmul.f32 %v12032_v0, %v1278_v44 }
  0xbd   : > { %v1437_v11 = vmul.f32 %v5155_v48, %v1421_v49  ;;  %v1478_v35 = vmul.f32 %v12012_v45, %v1454_v23  ;;  %v2509_v39 = vmul.f32 %v2493_v5, %v1389_v25  ;;  %v2533_v46 = vmul.f32 %v6903_v40, %v1453_v24  ;;  %v12033_v49 = vld [vmem:[#allocation26_spill] sm:$0xff] }
  0xbe   : > { %v1438_v27 = vmul.f32 %v5156_v57, %v1422_v16  ;;  %v1493_v43 = vmul.f32 %v7056_v14, %v1477_v60  ;;  %v2510_v47 = vmul.f32 %v2494_v28, %v1390_v3  ;;  %v2534_v21 = vmul.f32 %v6903_v40, %v1454_v23 }
  0xbf   : > { %v1494_v6 = vmul.f32 %v7065_v33, %v1478_v35  ;;  %v2581_v4 = vmul.f32 %v6903_v40, %v7378_v59  ;;  %v2582_v48 = vmul.f32 %v6903_v40, %v7382_v41  ;;  %v2621_v57 = vmul.f32 %v6681_v13, %v7091_v8 }
  0xc0   : > { %v1509_v31 = vadd.f32 %v1493_v43, %v1437_v11  ;;  %v2622_v14 = vmul.f32 %v6681_v13, %v7101_v55  ;;  %v3293_v24 = vmul.f32 %v6911_v22, %v1277_v62  ;;  %v3294_v33 = vmul.f32 %v6911_v22, %v1278_v44 }
  0xc1   : > { %v1510_v50 = vadd.f32 %v1494_v6, %v1438_v27  ;;  %v3333_v23 = vmul.f32 %v12033_v49, %v7091_v8  ;;  %v2637_v60 = vmul.f32 %v2621_v57, %v7174_v19  ;;  %v3334_v35 = vmul.f32 %v12033_v49, %v7101_v55  ;;  %v12034_v8 = vld [vmem:[#allocation40_spill] sm:$0xff] }
  0xc2   : > { %v2549_v25 = vmul.f32 %v2533_v46, %v1509_v31  ;;  %v2597_v16 = vmul.f32 %v2581_v4, %v1509_v31  ;;  %v2638_v5 = vmul.f32 %v2622_v14, %v7186_v34  ;;  %vm1019_vm12 = vcmp.ge.f32.partialorder %v7014_v52, %v6213_v29 }
  0xc3   : > { %v2550_v3 = vmul.f32 %v2534_v21, %v1510_v50  ;;  %v2598_v11 = vmul.f32 %v2582_v48, %v1510_v50  ;;  %vm1020_vm13 = vcmp.ge.f32.partialorder %v7017_v56, %v6213_v29  ;;  %vm1041_vm14 = vcmp.lt.f32.partialorder %v7014_v52, %v12034_v8 }
  0xc4   : > { %v2565_v62 = vadd.f32 %v2549_v25, %v2509_v39  ;;  %v2653_v28 = vadd.f32 %v2637_v60, %v2597_v16  ;;  %vm1042_vm15 = vcmp.lt.f32.partialorder %v7017_v56, %v12034_v8  ;;  %vm1057_vm0 = vmand %vm1019_vm12, %vm1041_vm14  ;;  %v7427_v21 = vsub.f32 %v7014_v52, %v12026_v36  ;;  %v12037_v25 = vld [vmem:[#allocation27_spill] sm:$0xff] }
  0xc5   : > { %v2566_v44 = vadd.f32 %v2550_v3, %v2510_v47  ;;  %v2654_v19 = vadd.f32 %v2638_v5, %v2598_v11  ;;  %vm1058_vm1 = vmand %vm1020_vm13, %vm1042_vm15  ;;  %v5267_v27 = vsel %vm1057_vm0, 1.0, %v11958_v32  ;;  %v7432_v43 = vsub.f32 %v7017_v56, %v12026_v36  ;;  %v12038_v5 = vld [vmem:[#allocation33_spill] sm:$0xff] }
  0xc6   : > { %12035 = vst [vmem:[#allocation57_spill] sm:$0xff] %v7427_v21  ;;  %v3309_v55 = vmul.f32 %v3293_v24, %v2565_v62  ;;  %v3349_v34 = vmul.f32 %v3333_v23, %v2653_v28  ;;  %v7435_v46 = vsel %vm1058_vm1, 1.0, %v11958_v32  ;;  %v2141_v6 = vmul.f32 %v12030_v12, %v7427_v21 }
  0xc7   : > { %12036 = vst [vmem:[#allocation58_spill] sm:$0xff] %v7432_v43  ;;  %v3310_v39 = vmul.f32 %v3294_v33, %v2566_v44  ;;  %v3350_v47 = vmul.f32 %v3334_v35, %v2654_v19  ;;  %v2142_v31 = vmul.f32 %v12030_v12, %v7432_v43  ;;  %v2173_v48 = vsub.f32 %v12034_v8, %v7014_v52 }
  0xc8   : > { %v3365_v4 = vadd.f32 %v3349_v34, %v3309_v55  ;;  %v2174_v57 = vsub.f32 %v12034_v8, %v7017_v56  ;;  %v2157_v50 = vmul.f32 %v7306_v26, %v2141_v6  ;;  %v3021_v24 = vmul.f32 %v6470_v10, %v7295_v38 }
  0xc9   : > { %v3366_v14 = vadd.f32 %v3350_v47, %v3310_v39  ;;  %v3022_v33 = vmul.f32 %v6470_v10, %v7299_v2  ;;  %v2158_v23 = vmul.f32 %v7313_v7, %v2142_v31  ;;  %v2197_v16 = vmul.f32 %v12037_v25, %v2173_v48  ;;  %v12039_v39 = vld [vmem:[#allocation32_spill] sm:$0xff] }
  0xca   : > { %v2198_v60 = vmul.f32 %v12037_v25, %v2174_v57  ;;  %v3061_v3 = vmul.f32 %v12038_v5, %v2173_v48  ;;  %v3037_v35 = vmul.f32 %v3021_v24, %v7324_v1  ;;  %v3062_v26 = vmul.f32 %v12038_v5, %v2174_v57 }
  0xcb   : > { %v5626_v11 = vpack.i.bf16 %v3366_v14, %v3365_v4  ;;  %v3038_v62 = vmul.f32 %v3022_v33, %v7331_v9  ;;  %v2213_v44 = vmul.f32 %v5267_v27, %v2197_v16  ;;  %v3733_v34 = vmul.f32 %v6490_v54, %v7252_v37  ;;  %v12040_v33 = vld [vmem:[#allocation51_spill] sm:$0xff]  ;;  %v12041_v16 = vld [vmem:[#allocation38_spill] sm:$0xff] }
  0xcc   : > { %v2214_v55 = vmul.f32 %v7435_v46, %v2198_v60  ;;  %v3734_v7 = vmul.f32 %v6490_v54, %v7256_v58  ;;  %v3773_v47 = vmul.f32 %v12039_v39, %v2173_v48  ;;  %v3774_v6 = vmul.f32 %v12039_v39, %v2174_v57  ;;  %v12042_v48 = vld [vmem:[#allocation52_spill] sm:$0xff] }
  0xcd   : > { %5627 = vrot.lane.b32.xlu1 %v5626_v11, %s6044_s9  ;;  %v3381_v1 = vmul.f32 %v12033_v49, %v7378_v59  ;;  %v3382_v9 = vmul.f32 %v12033_v49, %v7382_v41  ;;  %v2229_v4 = vadd.f32 %v2213_v44, %v2157_v50  ;;  %v3749_v14 = vmul.f32 %v3733_v34, %v7346_v42  ;;  %v12043_v59 = vld [vmem:[#allocation23_spill] sm:$0xff]  ;;  %v12045_v50 = vld [vmem:[#allocation56_spill] sm:$0xff] }
  0xce   : > { %v2230_v31 = vadd.f32 %v2214_v55, %v2158_v23  ;;  %v3750_v37 = vmul.f32 %v3734_v7, %v7354_v17  ;;  %v3421_v60 = vmul.f32 %v12041_v16, %v12040_v33  ;;  %v3422_v57 = vmul.f32 %v12041_v16, %v12042_v48  ;;  %v12044_v41 = vld [vmem:[#allocation55_spill] sm:$0xff] }
  0xcf   : > { %v3397_v24 = vmul.f32 %v3381_v1, %v2653_v28  ;;  %v3398_v58 = vmul.f32 %v3382_v9, %v2654_v19  ;;  %v3077_v11 = vmul.f32 %v3061_v3, %v2229_v4  ;;  %vm1105_vm2 = vcmp.ge.f32.partialorder %v7014_v52, %v12034_v8  ;;  %v12048_v1 = vld [vmem:[#allocation46_spill] sm:$0xff] }
  0xd0   : > { %v3078_v22 = vmul.f32 %v3062_v26, %v2230_v31  ;;  %vm1127_vm3 = vcmp.lt.f32.partialorder %v7014_v52, %v12043_v59  ;;  %v3437_v42 = vmul.f32 %v3421_v60, %v12044_v41  ;;  %v3438_v17 = vmul.f32 %v3422_v57, %v12045_v50  ;;  %v12050_v41 = vld [vmem:[#allocation48_spill] sm:$0xff] }
  0xd1   : > { %vm1143_vm4 = vmand %vm1105_vm2, %vm1127_vm3  ;;  %v7483_v28 = vsub.f32 %v7014_v52, %v6213_v29  ;;  %v2293_v19 = vsub.f32 %v12043_v59, %v7014_v52  ;;  %v3093_v23 = vadd.f32 %v3077_v11, %v3037_v35  ;;  %v3109_v44 = vmul.f32 %v12038_v5, %v7427_v21  ;;  %v12049_v52 = vld [vmem:[#allocation47_spill] sm:$0xff] }
  0xd2   : > { %v3094_v3 = vadd.f32 %v3078_v22, %v3038_v62  ;;  %v7488_v26 = vsel %vm1143_vm4, 1.0, %v11958_v32  ;;  %v3453_v55 = vadd.f32 %v3437_v42, %v3397_v24  ;;  %v3454_v34 = vadd.f32 %v3438_v17, %v3398_v58  ;;  %v7521_v17 = vld [vmem:[%s6187_s25 + $0x28] sm:$0xff]  ;;  %v12065_v21 = vld [vmem:[#allocation15_spill] sm:$0xff] }
  0xd3   : > { %12046 = vst [vmem:[#allocation51_spill] sm:$0xff] %v7483_v28  ;;  %12047 = vst [vmem:[#allocation52_spill] sm:$0xff] %v7488_v26  ;;  %v2261_v7 = vmul.f32 %v12037_v25, %v7483_v28  ;;  %v2317_v9 = vmul.f32 %v12048_v1, %v2293_v19  ;;  %v3789_v33 = vmul.f32 %v3773_v47, %v3093_v23  ;;  %v7503_v47 = vld [vmem:[%s6187_s25 + $0x20] sm:$0xff] }
  0xd4   : > { %v3790_v60 = vmul.f32 %v3774_v6, %v3094_v3  ;;  %v3125_v48 = vmul.f32 %v3109_v44, %v2229_v4  ;;  %v3149_v35 = vmul.f32 %v12049_v52, %v2293_v19  ;;  %v5636_v22 = vpack.i.bf16 %v3454_v34, %v3453_v55 }
  0xd5   : > { %v2277_v62 = vmul.f32 %v5267_v27, %v2261_v7  ;;  %v2333_v57 = vmul.f32 %v7488_v26, %v2317_v9  ;;  %v3821_v11 = vmul.f32 %v12039_v39, %v7295_v38  ;;  %v3805_v24 = vadd.f32 %v3789_v33, %v3749_v14 }
  0xd6   : > { %v3806_v58 = vadd.f32 %v3790_v60, %v3750_v37  ;;  %v3861_v42 = vmul.f32 %v12050_v41, %v2293_v19  ;;  %vm1106_vm5 = vcmp.ge.f32.partialorder %v7017_v56, %v12034_v8  ;;  %5637 = vrot.lane.b32.xlu1 %v5636_v22, %s6045_s10  ;;  %vm1128_vm6 = vcmp.lt.f32.partialorder %v7017_v56, %v12043_v59 }
  0xd7   : > { %v7506_v6 = vadd.f32 %v2333_v57, %v2277_v62  ;;  %v3837_v27 = vmul.f32 %v3821_v11, %v3093_v23  ;;  %v7512_v38 = vsub.f32 %v7017_v56, %v6213_v29  ;;  %vm1144_vm7 = vmand %vm1106_vm5, %vm1128_vm6  ;;  %v2294_v14 = vsub.f32 %v12043_v59, %v7017_v56  ;;  %v12057_v62 = vld [vmem:[#allocation7_spill] sm:$0xff] }
  0xd8   : > { %v5631_v4 = vpack.i.bf16 %v3806_v58, %v3805_v24  ;;  %v3110_v37 = vmul.f32 %v12038_v5, %v7432_v43  ;;  %v3822_v50 = vmul.f32 %v12039_v39, %v7299_v2  ;;  %v7525_v23 = vsel %vm1144_vm7, 1.0, %v11958_v32 }
  0xd9   : > { %12051 = vst [vmem:[#allocation55_spill] sm:$0xff] %v7506_v6  ;;  %12052 = vst [vmem:[#allocation56_spill] sm:$0xff] %v7512_v38  ;;  %v3165_v19 = vmul.f32 %v3149_v35, %v7506_v6  ;;  %v2262_v44 = vmul.f32 %v12037_v25, %v7512_v38  ;;  %vm505_vm8 = vcmp.ge.f32.partialorder %v7503_v47, %v6368_v63  ;;  %v12067_v25 = vld [vmem:[#allocation37_spill] sm:$0xff] }
  0xda   : > { %12053 = vst [vmem:[#allocation59_spill] sm:$0xff] %v7525_v23  ;;  %5632 = vrot.lane.b32.xlu0 %v5631_v4, %s6046_s11  ;;  %v2318_v56 = vmul.f32 %v12048_v1, %v2294_v14  ;;  %v3126_v55 = vmul.f32 %v3110_v37, %v2230_v31  ;;  %v3150_v2 = vmul.f32 %v12049_v52, %v2294_v14 }
  0xdb   : > { %v3838_v34 = vmul.f32 %v3822_v50, %v3094_v3  ;;  %v7534_v7 = vadd.f32 %v3165_v19, %v3125_v48  ;;  %v2278_v9 = vmul.f32 %v7435_v46, %v2262_v44  ;;  %v3862_v33 = vmul.f32 %v12050_v41, %v2294_v14  ;;  %v12055_v46 = vld [vmem:[#allocation6_spill] sm:$0xff]  ;;  %v12066_v41 = vld [vmem:[#allocation16_spill] sm:$0xff] }
  0xdc   : > { %vm506_vm9 = vcmp.ge.f32.partialorder %v7521_v17, %v6368_v63  ;;  %v2334_v60 = vmul.f32 %v7525_v23, %v2318_v56  ;;  %vm527_vm10 = vcmp.lt.f32.partialorder %v7503_v47, %v12006_v61  ;;  %vm528_vm11 = vcmp.lt.f32.partialorder %v7521_v17, %v12006_v61 }
  0xdd   : > { %12054 = vst [vmem:[#allocation60_spill] sm:$0xff] %v7534_v7  ;;  %vm591_vm12 = vcmp.ge.f32.partialorder %v7503_v47, %v12006_v61  ;;  %v3877_v31 = vmul.f32 %v3861_v42, %v7534_v7  ;;  %vm543_vm13 = vmand %vm505_vm8, %vm527_vm10  ;;  %vm592_vm14 = vcmp.ge.f32.partialorder %v7521_v17, %v12006_v61  ;;  %vm613_vm15 = vcmp.lt.f32.partialorder %v7503_v47, %v12055_v46 }
  0xde   : > { %vm614_vm0 = vcmp.lt.f32.partialorder %v7521_v17, %v12055_v46  ;;  %v7557_v3 = vadd.f32 %v2334_v60, %v2278_v9  ;;  %vm544_vm1 = vmand %vm506_vm9, %vm528_vm11  ;;  %v7560_v48 = vsel %vm543_vm13, 1.0, %v11958_v32  ;;  %vm677_vm2 = vcmp.ge.f32.partialorder %v7503_v47, %v12055_v46  ;;  %v12060_v9 = vld [vmem:[#allocation31_spill] sm:$0xff] }
  0xdf   : > { %vm678_vm3 = vcmp.ge.f32.partialorder %v7521_v17, %v12055_v46  ;;  %v3893_v35 = vadd.f32 %v3877_v31, %v3837_v27  ;;  %v7567_v22 = vsel %vm544_vm1, 1.0, %v11958_v32  ;;  %vm629_vm4 = vmand %vm591_vm12, %vm613_vm15  ;;  %vm699_vm5 = vcmp.lt.f32.partialorder %v7503_v47, %v12057_v62 }
  0xe0   : > { %12056 = vst [vmem:[#allocation61_spill] sm:$0xff] %v7557_v3  ;;  %vm700_vm6 = vcmp.lt.f32.partialorder %v7521_v17, %v12057_v62  ;;  %v3166_v57 = vmul.f32 %v3150_v2, %v7557_v3  ;;  %vm630_vm7 = vmand %vm592_vm14, %vm614_vm0  ;;  %v5189_v11 = vsel %vm629_vm4, 1.0, %v11958_v32  ;;  %vm763_vm8 = vcmp.ge.f32.partialorder %v7503_v47, %v12057_v62 }
  0xe1   : > { %vm764_vm9 = vcmp.ge.f32.partialorder %v7521_v17, %v12057_v62  ;;  %4399 = vrot.lane.b32.xlu0 %v3893_v35, %s6047_s17  ;;  %v5190_v24 = vsel %vm630_vm7, 1.0, %v11958_v32  ;;  %vm715_vm10 = vmand %vm677_vm2, %vm699_vm5  ;;  %vm785_vm11 = vcmp.lt.f32.partialorder %v7503_v47, %v12009_v20  ;;  %vm786_vm12 = vcmp.lt.f32.partialorder %v7521_v17, %v12009_v20 }
  0xe2   : > { %v7587_v58 = vsub.f32 %v7503_v47, %v6368_v63  ;;  %v7589_v42 = vadd.f32 %v3166_v57, %v3126_v55  ;;  %vm716_vm13 = vmand %vm678_vm3, %vm700_vm6  ;;  %v5205_v27 = vsel %vm715_vm10, 1.0, %v11958_v32  ;;  %v7597_v4 = vsub.f32 %v7521_v17, %v6368_v63 }
  0xe3   : > { %v7601_v14 = vsub.f32 %v12055_v46, %v7503_v47  ;;  %v5206_v37 = vsel %vm716_vm13, 1.0, %v11958_v32  ;;  %vm801_vm14 = vmand %vm763_vm8, %vm785_vm11  ;;  %v7608_v19 = vsub.f32 %v12055_v46, %v7521_v17  ;;  %v7612_v44 = vsub.f32 %v7503_v47, %v12006_v61 }
  0xe4   : > { %12058 = vst [vmem:[#allocation62_spill] sm:$0xff] %v7589_v42  ;;  %v1543_v50 = vmul.f32 %v12012_v45, %v7587_v58  ;;  %v3878_v56 = vmul.f32 %v3862_v33, %v7589_v42  ;;  %vm802_vm15 = vmand %vm764_vm9, %vm786_vm12  ;;  %v7619_v55 = vsel %vm801_vm14, 1.0, %v11958_v32  ;;  %v1544_v2 = vmul.f32 %v12012_v45, %v7597_v4 }
  0xe5   : > { %12059 = vst [vmem:[#allocation63_spill] sm:$0xff] %v7608_v19  ;;  %v1599_v60 = vmul.f32 %v12060_v9, %v7601_v14  ;;  %v7626_v31 = vsel %vm802_vm15, 1.0, %v11958_v32  ;;  %v1600_v33 = vmul.f32 %v12060_v9, %v7608_v19  ;;  %v7633_v57 = vsub.f32 %v7521_v17, %v12006_v61 }
  0xe6   : > { %v1559_v35 = vmul.f32 %v7560_v48, %v1543_v50  ;;  %v3894_v23 = vadd.f32 %v3878_v56, %v3838_v34  ;;  %v1560_v42 = vmul.f32 %v7567_v22, %v1544_v2  ;;  %v1663_v43 = vmul.f32 %v12060_v9, %v7612_v44 }
  0xe7   : > { %v1615_v3 = vmul.f32 %v5189_v11, %v1599_v60  ;;  %v1616_v38 = vmul.f32 %v5190_v24, %v1600_v33  ;;  %v1664_v26 = vmul.f32 %v12060_v9, %v7633_v57  ;;  %v7642_v50 = vsub.f32 %v12057_v62, %v7503_v47 }
  0xe8   : > { %v7646_v7 = vsub.f32 %v12057_v62, %v7521_v17  ;;  %4401 = vrot.lane.b32.xlu1 %v3894_v23, %s6047_s17  ;;  %v1679_v56 = vmul.f32 %v5189_v11, %v1663_v43  ;;  %v7653_v2 = vsub.f32 %v7503_v47, %v12055_v46  ;;  %v7657_v60 = vsub.f32 %v7521_v17, %v12055_v46 }
  0xe9   : > { %12061 = vst [vmem:[#allocation64_spill] sm:$0xff] %v7642_v50  ;;  %v7649_v34 = vadd.f32 %v1615_v3, %v1559_v35  ;;  %v7659_v33 = vadd.f32 %v1616_v38, %v1560_v42  ;;  %v1680_v6 = vmul.f32 %v5190_v24, %v1664_v26  ;;  %v1719_v28 = vmul.f32 %v12065_v21, %v7642_v50 }
  0xea   : > { %12062 = vst [vmem:[#allocation65_spill] sm:$0xff] %v7646_v7  ;;  %v1720_v23 = vmul.f32 %v12065_v21, %v7646_v7  ;;  %v1783_v43 = vmul.f32 %v12065_v21, %v7653_v2  ;;  %v1784_v3 = vmul.f32 %v12065_v21, %v7657_v60  ;;  %v1815_v11 = vsub.f32 %v12009_v20, %v7503_v47 }
  0xeb   : > { %12063 = vst [vmem:[#allocation66_spill] sm:$0xff] %v7649_v34  ;;  %12064 = vst [vmem:[#allocation67_spill] sm:$0xff] %v7659_v33  ;;  %v1816_v38 = vsub.f32 %v12009_v20, %v7521_v17  ;;  %v1735_v42 = vmul.f32 %v5205_v27, %v1719_v28  ;;  %v2671_v24 = vmul.f32 %v6681_v13, %v7587_v58 }
  0xec   : > { %v1736_v26 = vmul.f32 %v5206_v37, %v1720_v23  ;;  %v2672_v35 = vmul.f32 %v6681_v13, %v7597_v4  ;;  %v1799_v9 = vmul.f32 %v5205_v27, %v1783_v43  ;;  %v1800_v46 = vmul.f32 %v5206_v37, %v1784_v3 }
  0xed   : > { %v1839_v52 = vmul.f32 %v12066_v41, %v1815_v11  ;;  %v1840_v21 = vmul.f32 %v12066_v41, %v1816_v38  ;;  %v1751_v1 = vadd.f32 %v1735_v42, %v1679_v56  ;;  %v2687_v39 = vmul.f32 %v2671_v24, %v7649_v34  ;;  %v12068_v34 = vld [vmem:[#allocation39_spill] sm:$0xff] }
  0xee   : > { %v1752_v59 = vadd.f32 %v1736_v26, %v1680_v6  ;;  %v2688_v5 = vmul.f32 %v2672_v35, %v7659_v33  ;;  %v2711_v8 = vmul.f32 %v12067_v25, %v7642_v50  ;;  %v2712_v27 = vmul.f32 %v12067_v25, %v7646_v7 }
  0xef   : > { %v1855_v28 = vmul.f32 %v7619_v55, %v1839_v52  ;;  %v1856_v23 = vmul.f32 %v7626_v31, %v1840_v21  ;;  %v2759_v37 = vmul.f32 %v12067_v25, %v7612_v44  ;;  %v2760_v6 = vmul.f32 %v12067_v25, %v7633_v57 }
  0xf0   : > { %v2799_v56 = vmul.f32 %v12023_v53, %v1815_v11  ;;  %v2800_v43 = vmul.f32 %v12023_v53, %v1816_v38  ;;  %v2727_v42 = vmul.f32 %v2711_v8, %v1751_v1  ;;  %v2728_v21 = vmul.f32 %v2712_v27, %v1752_v59 }
  0xf1   : > { %v1871_v3 = vadd.f32 %v1855_v28, %v1799_v9  ;;  %v1872_v52 = vadd.f32 %v1856_v23, %v1800_v46  ;;  %v2775_v26 = vmul.f32 %v2759_v37, %v1751_v1  ;;  %v2776_v24 = vmul.f32 %v2760_v6, %v1752_v59  ;;  %v12069_v37 = vld [vmem:[#allocation17_spill] sm:$0xff] }
  0xf2   : > { %v3471_v35 = vmul.f32 %v12041_v16, %v7587_v58  ;;  %v3472_v7 = vmul.f32 %v12041_v16, %v7597_v4  ;;  %v7697_v50 = vadd.f32 %v2727_v42, %v2687_v39  ;;  %v7699_v33 = vadd.f32 %v2728_v21, %v2688_v5 }
  0xf3   : > { %v2815_v25 = vmul.f32 %v2799_v56, %v1871_v3  ;;  %v2816_v49 = vmul.f32 %v2800_v43, %v1872_v52  ;;  %v3511_v19 = vmul.f32 %v12068_v34, %v1815_v11  ;;  %v3512_v46 = vmul.f32 %v12068_v34, %v1816_v38 }
  0xf4   : > { %vm849_vm0 = vcmp.ge.f32.partialorder %v7503_v47, %v12009_v20  ;;  %vm850_vm1 = vcmp.ge.f32.partialorder %v7521_v17, %v12009_v20  ;;  %v3487_v1 = vmul.f32 %v3471_v35, %v7697_v50  ;;  %v3488_v39 = vmul.f32 %v3472_v7, %v7699_v33 }
  0xf5   : > { %v2831_v8 = vadd.f32 %v2815_v25, %v2775_v26  ;;  %v2832_v59 = vadd.f32 %v2816_v49, %v2776_v24  ;;  %vm871_vm2 = vcmp.lt.f32.partialorder %v7503_v47, %v12026_v36  ;;  %vm872_vm3 = vcmp.lt.f32.partialorder %v7521_v17, %v12026_v36 }
  0xf6   : > { %v7715_v5 = vsub.f32 %v7503_v47, %v12057_v62  ;;  %v7719_v58 = vsub.f32 %v7521_v17, %v12057_v62  ;;  %vm887_vm4 = vmand %vm849_vm0, %vm871_vm2  ;;  %v1935_v7 = vsub.f32 %v12026_v36, %v7503_v47  ;;  %v1936_v4 = vsub.f32 %v12026_v36, %v7521_v17 }
  0xf7   : > { %v3527_v25 = vmul.f32 %v3511_v19, %v2831_v8  ;;  %v3528_v49 = vmul.f32 %v3512_v46, %v2832_v59  ;;  %vm888_vm5 = vmand %vm850_vm1, %vm872_vm3  ;;  %v5237_v9 = vsel %vm887_vm4, 1.0, %v11958_v32  ;;  %v2847_v19 = vmul.f32 %v12023_v53, %v7653_v2 }
  0xf8   : > { %v1903_v11 = vmul.f32 %v12066_v41, %v7715_v5  ;;  %v1904_v38 = vmul.f32 %v12066_v41, %v7719_v58  ;;  %v5238_v27 = vsel %vm888_vm5, 1.0, %v11958_v32  ;;  %v1959_v6 = vmul.f32 %v12069_v37, %v1935_v7 }
  0xf9   : > { %v3543_v28 = vadd.f32 %v3527_v25, %v3487_v1  ;;  %v3544_v23 = vadd.f32 %v3528_v49, %v3488_v39  ;;  %v1960_v42 = vmul.f32 %v12069_v37, %v1936_v4  ;;  %v2848_v21 = vmul.f32 %v12023_v53, %v7657_v60 }
  0xfa   : > { %v1919_v56 = vmul.f32 %v7619_v55, %v1903_v11  ;;  %v1920_v43 = vmul.f32 %v7626_v31, %v1904_v38  ;;  %v1975_v24 = vmul.f32 %v5237_v9, %v1959_v6  ;;  %v2863_v35 = vmul.f32 %v2847_v19, %v1871_v3 }
  0xfb   : > { %v5641_v26 = vpack.i.bf16 %v3544_v23, %v3543_v28  ;;  %v2887_v46 = vmul.f32 %v12028_v18, %v1935_v7  ;;  %v1976_v1 = vmul.f32 %v5238_v27, %v1960_v42  ;;  %v2864_v39 = vmul.f32 %v2848_v21, %v1872_v52 }
  0xfc   : > { %v2888_v25 = vmul.f32 %v12028_v18, %v1936_v4  ;;  %v3559_v49 = vmul.f32 %v12068_v34, %v7612_v44  ;;  %v1991_v55 = vadd.f32 %v1975_v24, %v1919_v56  ;;  %v3560_v31 = vmul.f32 %v12068_v34, %v7633_v57 }
  0xfd   : > { %5642 = vrot.lane.b32.xlu0 %v5641_v26, %s6042_s5  ;;  %v3599_v11 = vmul.f32 %v12029_v51, %v1935_v7  ;;  %v3600_v38 = vmul.f32 %v12029_v51, %v1936_v4  ;;  %v1992_v3 = vadd.f32 %v1976_v1, %v1920_v43  ;;  %vm935_vm6 = vcmp.ge.f32.partialorder %v7503_v47, %v12026_v36 }
  0xfe   : > { %v3575_v19 = vmul.f32 %v3559_v49, %v2831_v8  ;;  %vm936_vm7 = vcmp.ge.f32.partialorder %v7521_v17, %v12026_v36  ;;  %v2903_v52 = vmul.f32 %v2887_v46, %v1991_v55  ;;  %v3576_v44 = vmul.f32 %v3560_v31, %v2832_v59 }
  0xff   : > { %vm957_vm8 = vcmp.lt.f32.partialorder %v7503_v47, %v6213_v29  ;;  %vm958_vm9 = vcmp.lt.f32.partialorder %v7521_v17, %v6213_v29  ;;  %v2904_v57 = vmul.f32 %v2888_v25, %v1992_v3  ;;  %v7758_v7 = vsub.f32 %v7503_v47, %v12009_v20 }
 0x100   : > { %vm973_vm10 = vmand %vm935_vm6, %vm957_vm8  ;;  %v7762_v8 = vsub.f32 %v7521_v17, %v12009_v20  ;;  %v2055_v4 = vsub.f32 %v6213_v29, %v7503_v47  ;;  %v2919_v59 = vadd.f32 %v2903_v52, %v2863_v35  ;;  %v2056_v23 = vsub.f32 %v6213_v29, %v7521_v17 }
 0x101   : > { %vm974_vm11 = vmand %vm936_vm7, %vm958_vm9  ;;  %v7767_v28 = vsel %vm973_vm10, 1.0, %v11958_v32  ;;  %v2935_v6 = vmul.f32 %v12028_v18, %v7715_v5  ;;  %v2920_v56 = vadd.f32 %v2904_v57, %v2864_v39  ;;  %v2023_v42 = vmul.f32 %v12069_v37, %v7758_v7 }
 0x102   : > { %v7774_v43 = vsel %vm974_vm11, 1.0, %v11958_v32  ;;  %v2024_v21 = vmul.f32 %v12069_v37, %v7762_v8  ;;  %v3615_v26 = vmul.f32 %v3599_v11, %v2919_v59  ;;  %v2079_v24 = vmul.f32 %v12030_v12, %v2055_v4 }
 0x103   : > { %v2080_v35 = vmul.f32 %v12030_v12, %v2056_v23  ;;  %v2936_v46 = vmul.f32 %v12028_v18, %v7719_v58  ;;  %v3616_v1 = vmul.f32 %v3600_v38, %v2920_v56  ;;  %v2039_v25 = vmul.f32 %v5237_v9, %v2023_v42 }
 0x104   : > { %v2040_v39 = vmul.f32 %v5238_v27, %v2024_v21  ;;  %v2951_v49 = vmul.f32 %v2935_v6, %v1991_v55  ;;  %v3631_v31 = vadd.f32 %v3615_v26, %v3575_v19  ;;  %v2095_v52 = vmul.f32 %v7767_v28, %v2079_v24  ;;  %v12070_v26 = vld [vmem:[#allocation10_spill] sm:$0xff] }
 0x105   : > { %v2096_v57 = vmul.f32 %v7774_v43, %v2080_v35  ;;  %v2952_v34 = vmul.f32 %v2936_v46, %v1992_v3  ;;  %v3632_v53 = vadd.f32 %v3616_v1, %v3576_v44  ;;  %v2975_v11 = vmul.f32 %v6470_v10, %v2055_v4  ;;  %v12071_v46 = vld [vmem:[#allocation41_spill] sm:$0xff] }
 0x106   : > { %v2976_v37 = vmul.f32 %v6470_v10, %v2056_v23  ;;  %v3647_v41 = vmul.f32 %v12029_v51, %v7653_v2  ;;  %v7790_v20 = vadd.f32 %v2095_v52, %v2039_v25  ;;  %v3648_v9 = vmul.f32 %v12029_v51, %v7657_v60 }
 0x107   : > { %v7792_v38 = vadd.f32 %v2096_v57, %v2040_v39  ;;  %v3687_v27 = vmul.f32 %v6490_v54, %v2055_v4  ;;  %v5646_v55 = vpack.i.bf16 %v3632_v53, %v3631_v31  ;;  %v3688_v3 = vmul.f32 %v6490_v54, %v2056_v23 }
 0x108   : > { %v3663_v19 = vmul.f32 %v3647_v41, %v2919_v59  ;;  %vm333_vm12 = vcmp.ge.f32.partialorder %v7503_v47, %v12031_v15  ;;  %v2991_v44 = vmul.f32 %v2975_v11, %v7790_v20  ;;  %v3664_v6 = vmul.f32 %v3648_v9, %v2920_v56 }
 0x109   : > { %v2992_v2 = vmul.f32 %v2976_v37, %v7792_v38  ;;  %vm334_vm13 = vcmp.ge.f32.partialorder %v7521_v17, %v12031_v15  ;;  %5647 = vrot.lane.b32.xlu1 %v5646_v55, %s6043_s6  ;;  %vm355_vm14 = vcmp.lt.f32.partialorder %v7503_v47, %v6625_v30  ;;  %vm356_vm15 = vcmp.lt.f32.partialorder %v7521_v17, %v6625_v30 }
 0x10a   : > { %vm419_vm0 = vcmp.ge.f32.partialorder %v7503_v47, %v6625_v30  ;;  %vm420_vm1 = vcmp.ge.f32.partialorder %v7521_v17, %v6625_v30  ;;  %v7813_v53 = vadd.f32 %v2991_v44, %v2951_v49  ;;  %vm371_vm2 = vmand %vm333_vm12, %vm355_vm14  ;;  %vm441_vm3 = vcmp.lt.f32.partialorder %v7503_v47, %v6368_v63 }
 0x10b   : > { %v7815_v41 = vadd.f32 %v2992_v2, %v2952_v34  ;;  %vm442_vm4 = vcmp.lt.f32.partialorder %v7521_v17, %v6368_v63  ;;  %vm372_vm5 = vmand %vm334_vm13, %vm356_vm15  ;;  %v5141_v60 = vsel %vm371_vm2, 1.0, %v11958_v32  ;;  %v1279_v37 = vsub.f32 %v7503_v47, %v12031_v15 }
 0x10c   : > { %v1280_v4 = vsub.f32 %v7521_v17, %v12031_v15  ;;  %v1335_v34 = vsub.f32 %v6368_v63, %v7503_v47  ;;  %v3703_v59 = vmul.f32 %v3687_v27, %v7813_v53  ;;  %v5142_v56 = vsel %vm372_vm5, 1.0, %v11958_v32  ;;  %vm457_vm6 = vmand %vm419_vm0, %vm441_vm3 }
 0x10d   : > { %v3704_v23 = vmul.f32 %v3688_v3, %v7815_v41  ;;  %v1336_v42 = vsub.f32 %v6368_v63, %v7521_v17  ;;  %vm458_vm7 = vmand %vm420_vm1, %vm442_vm4  ;;  %v5157_v21 = vsel %vm457_vm6, 1.0, %v11958_v32  ;;  %v1303_v24 = vmul.f32 %v12070_v26, %v1279_v37 }
 0x10e   : > { %v1304_v35 = vmul.f32 %v12070_v26, %v1280_v4  ;;  %v1359_v1 = vmul.f32 %v12071_v46, %v1335_v34  ;;  %v3719_v25 = vadd.f32 %v3703_v59, %v3663_v19  ;;  %v5158_v49 = vsel %vm458_vm7, 1.0, %v11958_v32 }
 0x10f   : > { %v3720_v39 = vadd.f32 %v3704_v23, %v3664_v6  ;;  %v1360_v31 = vmul.f32 %v12071_v46, %v1336_v42  ;;  %v1319_v52 = vmul.f32 %v5141_v60, %v1303_v24  ;;  %v7847_v9 = vsub.f32 %v7503_v47, %v6625_v30 }
 0x110   : > { %v1320_v57 = vmul.f32 %v5142_v56, %v1304_v35  ;;  %v1375_v11 = vmul.f32 %v5157_v21, %v1359_v1  ;;  %v7851_v3 = vsub.f32 %v7521_v17, %v6625_v30  ;;  %v1455_v19 = vsub.f32 %v12006_v61, %v7503_v47 }
 0x111   : > { %v5651_v27 = vpack.i.bf16 %v3720_v39, %v3719_v25  ;;  %v1376_v55 = vmul.f32 %v5158_v49, %v1360_v31  ;;  %v1423_v2 = vmul.f32 %v12071_v46, %v7847_v9  ;;  %v1456_v6 = vsub.f32 %v12006_v61, %v7521_v17 }
 0x112   : > { %v1391_v44 = vadd.f32 %v1375_v11, %v1319_v52  ;;  %v2495_v60 = vmul.f32 %v12032_v0, %v1279_v37  ;;  %v1424_v59 = vmul.f32 %v12071_v46, %v7851_v3  ;;  %v1479_v23 = vmul.f32 %v12012_v45, %v1455_v19 }
 0x113   : > { %5652 = vrot.lane.b32.xlu0 %v5651_v27, %s6041_s27  ;;  %v1392_v34 = vadd.f32 %v1376_v55, %v1320_v57  ;;  %v2496_v56 = vmul.f32 %v12032_v0, %v1280_v4  ;;  %v1439_v42 = vmul.f32 %v5157_v21, %v1423_v2  ;;  %v1480_v24 = vmul.f32 %v12012_v45, %v1456_v6 }
 0x114   : > { %v2511_v35 = vmul.f32 %v2495_v60, %v1391_v44  ;;  %v2535_v1 = vmul.f32 %v6903_v40, %v1455_v19  ;;  %v1440_v25 = vmul.f32 %v5158_v49, %v1424_v59  ;;  %v1495_v39 = vmul.f32 %v7560_v48, %v1479_v23  ;;  %v12072_v44 = vld [vmem:[#allocation63_spill] sm:$0xff]  ;;  %v12073_v19 = vld [vmem:[#allocation42_spill] sm:$0xff] }
 0x115   : > { %v2512_v31 = vmul.f32 %v2496_v56, %v1392_v34  ;;  %v2536_v52 = vmul.f32 %v6903_v40, %v1456_v6  ;;  %v1496_v57 = vmul.f32 %v7567_v22, %v1480_v24  ;;  %v2583_v11 = vmul.f32 %v6903_v40, %v7847_v9  ;;  %v12074_v60 = vld [vmem:[#allocation66_spill] sm:$0xff] }
 0x116   : > { %v2584_v27 = vmul.f32 %v6903_v40, %v7851_v3  ;;  %v2623_v21 = vmul.f32 %v6681_v13, %v7601_v14  ;;  %v1511_v55 = vadd.f32 %v1495_v39, %v1439_v42  ;;  %v2624_v49 = vmul.f32 %v6681_v13, %v12072_v44  ;;  %v12075_v34 = vld [vmem:[#allocation26_spill] sm:$0xff]  ;;  %v12076_v40 = vld [vmem:[#allocation67_spill] sm:$0xff] }
 0x117   : > { %v3295_v48 = vmul.f32 %v12073_v19, %v1279_v37  ;;  %v3296_v2 = vmul.f32 %v12073_v19, %v1280_v4  ;;  %v1512_v6 = vadd.f32 %v1496_v57, %v1440_v25  ;;  %v3335_v59 = vmul.f32 %v12075_v34, %v7601_v14  ;;  %v12077_v4 = vld [vmem:[#allocation40_spill] sm:$0xff] }
 0x118   : > { %v2639_v22 = vmul.f32 %v2623_v21, %v12074_v60  ;;  %v3336_v23 = vmul.f32 %v12075_v34, %v12072_v44  ;;  %v2551_v56 = vmul.f32 %v2535_v1, %v1511_v55  ;;  %v2599_v24 = vmul.f32 %v2583_v11, %v1511_v55 }
 0x119   : > { %v2640_v42 = vmul.f32 %v2624_v49, %v12076_v40  ;;  %vm1021_vm8 = vcmp.ge.f32.partialorder %v7503_v47, %v6213_v29  ;;  %v2552_v39 = vmul.f32 %v2536_v52, %v1512_v6  ;;  %v2600_v37 = vmul.f32 %v2584_v27, %v1512_v6 }
 0x11a   : > { %vm1022_vm9 = vcmp.ge.f32.partialorder %v7521_v17, %v6213_v29  ;;  %vm1043_vm10 = vcmp.lt.f32.partialorder %v7503_v47, %v12077_v4  ;;  %v2567_v25 = vadd.f32 %v2551_v56, %v2511_v35  ;;  %v2655_v14 = vadd.f32 %v2639_v22, %v2599_v24 }
 0x11b   : > { %vm1044_vm11 = vcmp.lt.f32.partialorder %v7521_v17, %v12077_v4  ;;  %vm1059_vm12 = vmand %vm1021_vm8, %vm1043_vm10  ;;  %v7896_v40 = vsub.f32 %v7503_v47, %v12026_v36  ;;  %v2568_v1 = vadd.f32 %v2552_v39, %v2512_v31  ;;  %v2656_v57 = vadd.f32 %v2640_v42, %v2600_v37 }
 0x11c   : > { %vm1060_vm13 = vmand %vm1022_vm9, %vm1044_vm11  ;;  %v7899_v52 = vsel %vm1059_vm12, 1.0, %v11958_v32  ;;  %v7903_v11 = vsub.f32 %v7521_v17, %v12026_v36  ;;  %v3311_v35 = vmul.f32 %v3295_v48, %v2567_v25  ;;  %v3351_v27 = vmul.f32 %v3335_v59, %v2655_v14  ;;  %v12081_v25 = vld [vmem:[#allocation33_spill] sm:$0xff] }
 0x11d   : > { %12078 = vst [vmem:[#allocation63_spill] sm:$0xff] %v7896_v40  ;;  %v7906_v21 = vsel %vm1060_vm13, 1.0, %v11958_v32  ;;  %v2143_v55 = vmul.f32 %v12030_v12, %v7896_v40  ;;  %v3312_v44 = vmul.f32 %v3296_v2, %v2568_v1  ;;  %v3352_v49 = vmul.f32 %v3336_v23, %v2656_v57  ;;  %v12080_v2 = vld [vmem:[#allocation27_spill] sm:$0xff] }
 0x11e   : > { %12079 = vst [vmem:[#allocation66_spill] sm:$0xff] %v7903_v11  ;;  %v2144_v31 = vmul.f32 %v12030_v12, %v7903_v11  ;;  %v2175_v6 = vsub.f32 %v12077_v4, %v7503_v47  ;;  %v3367_v60 = vadd.f32 %v3351_v27, %v3311_v35  ;;  %v2176_v48 = vsub.f32 %v12077_v4, %v7521_v17 }
 0x11f   : > { %v2159_v22 = vmul.f32 %v7767_v28, %v2143_v55  ;;  %v3023_v59 = vmul.f32 %v6470_v10, %v7758_v7  ;;  %v3368_v56 = vadd.f32 %v3352_v49, %v3312_v44  ;;  %v3024_v42 = vmul.f32 %v6470_v10, %v7762_v8 }
 0x120   : > { %v2160_v24 = vmul.f32 %v7774_v43, %v2144_v31  ;;  %v2199_v23 = vmul.f32 %v12080_v2, %v2175_v6  ;;  %v2200_v39 = vmul.f32 %v12080_v2, %v2176_v48  ;;  %v3063_v28 = vmul.f32 %v12081_v25, %v2175_v6  ;;  %v12082_v31 = vld [vmem:[#allocation32_spill] sm:$0xff] }
 0x121   : > { %v3039_v37 = vmul.f32 %v3023_v59, %v7790_v20  ;;  %v3064_v1 = vmul.f32 %v12081_v25, %v2176_v48  ;;  %v5656_v35 = vpack.i.bf16 %v3368_v56, %v3367_v60  ;;  %v3040_v55 = vmul.f32 %v3024_v42, %v7792_v38  ;;  %v12083_v42 = vld [vmem:[#allocation64_spill] sm:$0xff] }
 0x122   : > { %v2215_v27 = vmul.f32 %v7899_v52, %v2199_v23  ;;  %v3735_v43 = vmul.f32 %v6490_v54, %v7715_v5  ;;  %v2216_v44 = vmul.f32 %v7906_v21, %v2200_v39  ;;  %v3736_v49 = vmul.f32 %v6490_v54, %v7719_v58 }
 0x123   : > { %v3775_v19 = vmul.f32 %v12082_v31, %v2175_v6  ;;  %v3776_v20 = vmul.f32 %v12082_v31, %v2176_v48  ;;  %5657 = vrot.lane.b32.xlu1 %v5656_v35, %s6044_s9  ;;  %v3383_v38 = vmul.f32 %v12075_v34, %v7847_v9  ;;  %v3384_v5 = vmul.f32 %v12075_v34, %v7851_v3  ;;  %v12084_v6 = vld [vmem:[#allocation65_spill] sm:$0xff] }
 0x124   : > { %v2231_v59 = vadd.f32 %v2215_v27, %v2159_v22  ;;  %v3751_v60 = vmul.f32 %v3735_v43, %v7813_v53  ;;  %v2232_v56 = vadd.f32 %v2216_v44, %v2160_v24  ;;  %v3752_v23 = vmul.f32 %v3736_v49, %v7815_v41  ;;  %v12085_v24 = vld [vmem:[#allocation23_spill] sm:$0xff]  ;;  %v12088_v44 = vld [vmem:[#allocation46_spill] sm:$0xff] }
 0x125   : > { %v3423_v58 = vmul.f32 %v12041_v16, %v12083_v42  ;;  %v3424_v48 = vmul.f32 %v12041_v16, %v12084_v6  ;;  %v3399_v35 = vmul.f32 %v3383_v38, %v2655_v14  ;;  %v3400_v22 = vmul.f32 %v3384_v5, %v2656_v57 }
 0x126   : > { %v3079_v39 = vmul.f32 %v3063_v28, %v2231_v59  ;;  %vm1107_vm14 = vcmp.ge.f32.partialorder %v7503_v47, %v12077_v4  ;;  %v3080_v53 = vmul.f32 %v3064_v1, %v2232_v56  ;;  %vm1129_vm15 = vcmp.lt.f32.partialorder %v7503_v47, %v12085_v24 }
 0x127   : > { %v3439_v9 = vmul.f32 %v3423_v58, %v7697_v50  ;;  %v3440_v3 = vmul.f32 %v3424_v48, %v7699_v33  ;;  %vm1145_vm0 = vmand %vm1107_vm14, %vm1129_vm15  ;;  %v7955_v27 = vsub.f32 %v7503_v47, %v6213_v29  ;;  %v2295_v14 = vsub.f32 %v12085_v24, %v7503_v47  ;;  %v12089_v47 = vld [vmem:[#allocation47_spill] sm:$0xff] }
 0x128   : > { %v3095_v41 = vadd.f32 %v3079_v39, %v3039_v37  ;;  %v3111_v57 = vmul.f32 %v12081_v25, %v7896_v40  ;;  %v3096_v28 = vadd.f32 %v3080_v53, %v3040_v55  ;;  %v7962_v33 = vsel %vm1145_vm0, 1.0, %v11958_v32 }
 0x129   : > { %12086 = vst [vmem:[#allocation67_spill] sm:$0xff] %v7955_v27  ;;  %v3455_v50 = vadd.f32 %v3439_v9, %v3399_v35  ;;  %v3456_v1 = vadd.f32 %v3440_v3, %v3400_v22  ;;  %12087 = vst [vmem:[#allocation64_spill] sm:$0xff] %v7962_v33  ;;  %v2263_v37 = vmul.f32 %v12080_v2, %v7955_v27  ;;  %v7974_v22 = vld [vmem:[%s6187_s25 + $0x30] sm:$0xff] }
 0x12a   : > { %v3791_v43 = vmul.f32 %v3775_v19, %v3095_v41  ;;  %v2319_v49 = vmul.f32 %v12088_v44, %v2295_v14  ;;  %v3127_v38 = vmul.f32 %v3111_v57, %v2231_v59  ;;  %v3792_v5 = vmul.f32 %v3776_v20, %v3096_v28  ;;  %v12090_v19 = vld [vmem:[#allocation48_spill] sm:$0xff] }
 0x12b   : > { %v5666_v42 = vpack.i.bf16 %v3456_v1, %v3455_v50  ;;  %v3151_v58 = vmul.f32 %v12089_v47, %v2295_v14  ;;  %v3823_v55 = vmul.f32 %v12082_v31, %v7758_v7  ;;  %v2279_v48 = vmul.f32 %v7899_v52, %v2263_v37 }
 0x12c   : > { %v3807_v6 = vadd.f32 %v3791_v43, %v3751_v60  ;;  %v2335_v39 = vmul.f32 %v7962_v33, %v2319_v49  ;;  %v3863_v35 = vmul.f32 %v12090_v19, %v2295_v14  ;;  %v3808_v53 = vadd.f32 %v3792_v5, %v3752_v23  ;;  %v7992_v23 = vld [vmem:[%s6187_s25 + $0x38] sm:$0xff] }
 0x12d   : > { %5667 = vrot.lane.b32.xlu1 %v5666_v42, %s6045_s10  ;;  %v3839_v20 = vmul.f32 %v3823_v55, %v3095_v41  ;;  %vm1108_vm1 = vcmp.ge.f32.partialorder %v7521_v17, %v12077_v4  ;;  %vm1130_vm2 = vcmp.lt.f32.partialorder %v7521_v17, %v12085_v24  ;;  %v7985_v52 = vsub.f32 %v7521_v17, %v6213_v29 }
 0x12e   : > { %v7981_v7 = vadd.f32 %v2335_v39, %v2279_v48  ;;  %vm1146_vm3 = vmand %vm1108_vm1, %vm1130_vm2  ;;  %v2296_v59 = vsub.f32 %v12085_v24, %v7521_v17  ;;  %v3112_v60 = vmul.f32 %v12081_v25, %v7903_v11  ;;  %v5661_v9 = vpack.i.bf16 %v3808_v53, %v3807_v6  ;;  %v12097_v39 = vld [vmem:[#allocation8_spill] sm:$0xff] }
 0x12f   : > { %12092 = vst [vmem:[#allocation68_spill] sm:$0xff] %v7985_v52  ;;  %v7995_v3 = vsel %vm1146_vm3, 1.0, %v11958_v32  ;;  %v3824_v41 = vmul.f32 %v12082_v31, %v7762_v8  ;;  %vm507_vm4 = vcmp.ge.f32.partialorder %v7974_v22, %v6368_v63  ;;  %v2264_v17 = vmul.f32 %v12080_v2, %v7985_v52  ;;  %v12106_v2 = vld [vmem:[#allocation37_spill] sm:$0xff] }
 0x130   : > { %12091 = vst [vmem:[#allocation65_spill] sm:$0xff] %v7981_v7  ;;  %12093 = vst [vmem:[#allocation69_spill] sm:$0xff] %v7995_v3  ;;  %v3167_v14 = vmul.f32 %v3151_v58, %v7981_v7  ;;  %v2320_v57 = vmul.f32 %v12088_v44, %v2296_v59  ;;  %v3128_v50 = vmul.f32 %v3112_v60, %v2232_v56  ;;  %5662 = vrot.lane.b32.xlu0 %v5661_v9, %s6046_s11  ;;  %v12095_v56 = vld [vmem:[#allocation6_spill] sm:$0xff] }
 0x131   : > { %v3152_v1 = vmul.f32 %v12089_v47, %v2296_v59  ;;  %v3840_v43 = vmul.f32 %v3824_v41, %v3096_v28  ;;  %v3864_v37 = vmul.f32 %v12090_v19, %v2296_v59  ;;  %vm508_vm5 = vcmp.ge.f32.partialorder %v7992_v23, %v6368_v63 }
 0x132   : > { %v8010_v8 = vadd.f32 %v3167_v14, %v3127_v38  ;;  %v2280_v49 = vmul.f32 %v7906_v21, %v2264_v17  ;;  %v2336_v5 = vmul.f32 %v7995_v3, %v2320_v57  ;;  %vm529_vm6 = vcmp.lt.f32.partialorder %v7974_v22, %v12006_v61 }
 0x133   : > { %vm530_vm7 = vcmp.lt.f32.partialorder %v7992_v23, %v12006_v61  ;;  %vm545_vm8 = vmand %vm507_vm4, %vm529_vm6  ;;  %vm593_vm9 = vcmp.ge.f32.partialorder %v7974_v22, %v12006_v61  ;;  %vm594_vm10 = vcmp.ge.f32.partialorder %v7992_v23, %v12006_v61  ;;  %vm615_vm11 = vcmp.lt.f32.partialorder %v7974_v22, %v12095_v56 }
 0x134   : > { %12094 = vst [vmem:[#allocation70_spill] sm:$0xff] %v8010_v8  ;;  %v3879_v21 = vmul.f32 %v3863_v35, %v8010_v8  ;;  %v8028_v28 = vadd.f32 %v2336_v5, %v2280_v49  ;;  %vm546_vm12 = vmand %vm508_vm5, %vm530_vm7  ;;  %v8031_v38 = vsel %vm545_vm8, 1.0, %v11958_v32  ;;  %vm616_vm13 = vcmp.lt.f32.partialorder %v7992_v23, %v12095_v56  ;;  %v12099_v5 = vld [vmem:[#allocation31_spill] sm:$0xff] }
 0x135   : > { %v8036_v42 = vsel %vm546_vm12, 1.0, %v11958_v32  ;;  %vm631_vm14 = vmand %vm593_vm9, %vm615_vm11  ;;  %vm679_vm15 = vcmp.ge.f32.partialorder %v7974_v22, %v12095_v56  ;;  %vm680_vm0 = vcmp.ge.f32.partialorder %v7992_v23, %v12095_v56  ;;  %vm701_vm1 = vcmp.lt.f32.partialorder %v7974_v22, %v12057_v62 }
 0x136   : > { %12096 = vst [vmem:[#allocation71_spill] sm:$0xff] %v8028_v28  ;;  %v3895_v58 = vadd.f32 %v3879_v21, %v3839_v20  ;;  %v3168_v55 = vmul.f32 %v3152_v1, %v8028_v28  ;;  %vm632_vm2 = vmand %vm594_vm10, %vm616_vm13  ;;  %v5191_v6 = vsel %vm631_vm14, 1.0, %v11958_v32  ;;  %vm702_vm3 = vcmp.lt.f32.partialorder %v7992_v23, %v12057_v62 }
 0x137   : > { %v5192_v48 = vsel %vm632_vm2, 1.0, %v11958_v32  ;;  %vm717_vm4 = vmand %vm679_vm15, %vm701_vm1  ;;  %vm765_vm5 = vcmp.ge.f32.partialorder %v7974_v22, %v12057_v62  ;;  %vm766_vm6 = vcmp.ge.f32.partialorder %v7992_v23, %v12057_v62  ;;  %vm787_vm7 = vcmp.lt.f32.partialorder %v7974_v22, %v12097_v39 }
 0x138   : > { %4403 = vrot.lane.b32.xlu0 %v3895_v58, %s6047_s17  ;;  %v8056_v35 = vadd.f32 %v3168_v55, %v3128_v50  ;;  %vm718_vm8 = vmand %vm680_vm0, %vm702_vm3  ;;  %v5207_v53 = vsel %vm717_vm4, 1.0, %v11958_v32  ;;  %vm788_vm9 = vcmp.lt.f32.partialorder %v7992_v23, %v12097_v39  ;;  %v8063_v20 = vsub.f32 %v7974_v22, %v6368_v63 }
 0x139   : > { %v5208_v59 = vsel %vm718_vm8, 1.0, %v11958_v32  ;;  %vm803_vm10 = vmand %vm765_vm5, %vm787_vm7  ;;  %v8068_v60 = vsub.f32 %v7992_v23, %v6368_v63  ;;  %v8072_v9 = vsub.f32 %v12095_v56, %v7974_v22  ;;  %v8076_v41 = vsub.f32 %v12095_v56, %v7992_v23 }
 0x13a   : > { %12098 = vst [vmem:[#allocation72_spill] sm:$0xff] %v8056_v35  ;;  %v3880_v14 = vmul.f32 %v3864_v37, %v8056_v35  ;;  %vm804_vm11 = vmand %vm766_vm6, %vm788_vm9  ;;  %v8080_v17 = vsel %vm803_vm10, 1.0, %v11958_v32  ;;  %v1545_v57 = vmul.f32 %v12012_v45, %v8063_v20  ;;  %v8086_v50 = vsub.f32 %v7974_v22, %v12006_v61 }
 0x13b   : > { %v8089_v1 = vsel %vm804_vm11, 1.0, %v11958_v32  ;;  %v1546_v49 = vmul.f32 %v12012_v45, %v8068_v60  ;;  %v1601_v37 = vmul.f32 %v12099_v5, %v8072_v9  ;;  %v1602_v21 = vmul.f32 %v12099_v5, %v8076_v41 }
 0x13c   : > { %v3896_v58 = vadd.f32 %v3880_v14, %v3840_v43  ;;  %v1561_v55 = vmul.f32 %v8031_v38, %v1545_v57  ;;  %v8100_v3 = vsub.f32 %v7992_v23, %v12006_v61  ;;  %v1665_v35 = vmul.f32 %v12099_v5, %v8086_v50 }
 0x13d   : > { %v1562_v28 = vmul.f32 %v8036_v42, %v1546_v49  ;;  %v1617_v11 = vmul.f32 %v5191_v6, %v1601_v37  ;;  %v1618_v52 = vmul.f32 %v5192_v48, %v1602_v21  ;;  %v8107_v8 = vsub.f32 %v12057_v62, %v7974_v22  ;;  %v12104_v21 = vld [vmem:[#allocation15_spill] sm:$0xff] }
 0x13e   : > { %4405 = vrot.lane.b32.xlu1 %v3896_v58, %s6047_s17  ;;  %v1666_v43 = vmul.f32 %v12099_v5, %v8100_v3  ;;  %v1681_v14 = vmul.f32 %v5191_v6, %v1665_v35  ;;  %v8114_v57 = vsub.f32 %v12057_v62, %v7992_v23  ;;  %v8118_v33 = vsub.f32 %v7974_v22, %v12095_v56  ;;  %v12105_v5 = vld [vmem:[#allocation16_spill] sm:$0xff] }
 0x13f   : > { %12100 = vst [vmem:[#allocation73_spill] sm:$0xff] %v8107_v8  ;;  %v8120_v49 = vadd.f32 %v1617_v11, %v1561_v55  ;;  %v8122_v37 = vadd.f32 %v1618_v52, %v1562_v28  ;;  %v1721_v7 = vmul.f32 %v12104_v21, %v8107_v8  ;;  %v8128_v58 = vsub.f32 %v7992_v23, %v12095_v56 }
 0x140   : > { %12101 = vst [vmem:[#allocation74_spill] sm:$0xff] %v8114_v57  ;;  %v1682_v6 = vmul.f32 %v5192_v48, %v1666_v43  ;;  %v1722_v35 = vmul.f32 %v12104_v21, %v8114_v57  ;;  %v1785_v40 = vmul.f32 %v12104_v21, %v8118_v33  ;;  %v1817_v11 = vsub.f32 %v12097_v39, %v7974_v22 }
 0x141   : > { %12102 = vst [vmem:[#allocation75_spill] sm:$0xff] %v8120_v49  ;;  %12103 = vst [vmem:[#allocation76_spill] sm:$0xff] %v8122_v37  ;;  %v1737_v55 = vmul.f32 %v5207_v53, %v1721_v7  ;;  %v1786_v52 = vmul.f32 %v12104_v21, %v8128_v58  ;;  %v1818_v28 = vsub.f32 %v12097_v39, %v7992_v23 }
 0x142   : > { %v2673_v27 = vmul.f32 %v6681_v13, %v8063_v20  ;;  %v1738_v48 = vmul.f32 %v5208_v59, %v1722_v35  ;;  %v1801_v43 = vmul.f32 %v5207_v53, %v1785_v40  ;;  %v1841_v56 = vmul.f32 %v12105_v5, %v1817_v11 }
 0x143   : > { %v2674_v19 = vmul.f32 %v6681_v13, %v8068_v60  ;;  %v1753_v47 = vadd.f32 %v1737_v55, %v1681_v14  ;;  %v1802_v44 = vmul.f32 %v5208_v59, %v1786_v52  ;;  %v1842_v7 = vmul.f32 %v12105_v5, %v1818_v28  ;;  %v12107_v55 = vld [vmem:[#allocation19_spill] sm:$0xff] }
 0x144   : > { %v2689_v24 = vmul.f32 %v2673_v27, %v8120_v49  ;;  %v1754_v21 = vadd.f32 %v1738_v48, %v1682_v6  ;;  %v1857_v31 = vmul.f32 %v8080_v17, %v1841_v56  ;;  %v2713_v35 = vmul.f32 %v12106_v2, %v8107_v8 }
 0x145   : > { %v2690_v25 = vmul.f32 %v2674_v19, %v8122_v37  ;;  %v1858_v40 = vmul.f32 %v8089_v1, %v1842_v7  ;;  %v2714_v53 = vmul.f32 %v12106_v2, %v8114_v57  ;;  %v2761_v59 = vmul.f32 %v12106_v2, %v8086_v50 }
 0x146   : > { %v2762_v14 = vmul.f32 %v12106_v2, %v8100_v3  ;;  %v1873_v27 = vadd.f32 %v1857_v31, %v1801_v43  ;;  %v2729_v6 = vmul.f32 %v2713_v35, %v1753_v47  ;;  %v2801_v56 = vmul.f32 %v12107_v55, %v1817_v11  ;;  %v12109_v43 = vld [vmem:[#allocation39_spill] sm:$0xff] }
 0x147   : > { %v2802_v19 = vmul.f32 %v12107_v55, %v1818_v28  ;;  %v1874_v52 = vadd.f32 %v1858_v40, %v1802_v44  ;;  %v2730_v48 = vmul.f32 %v2714_v53, %v1754_v21  ;;  %v2777_v8 = vmul.f32 %v2761_v59, %v1753_v47 }
 0x148   : > { %v2778_v4 = vmul.f32 %v2762_v14, %v1754_v21  ;;  %v8160_v7 = vadd.f32 %v2729_v6, %v2689_v24  ;;  %v2817_v37 = vmul.f32 %v2801_v56, %v1873_v27  ;;  %v3473_v57 = vmul.f32 %v12041_v16, %v8063_v20 }
 0x149   : > { %v3474_v49 = vmul.f32 %v12041_v16, %v8068_v60  ;;  %v8166_v2 = vadd.f32 %v2730_v48, %v2690_v25  ;;  %v2818_v31 = vmul.f32 %v2802_v19, %v1874_v52  ;;  %v3513_v35 = vmul.f32 %v12109_v43, %v1817_v11 }
 0x14a   : > { %v3514_v34 = vmul.f32 %v12109_v43, %v1818_v28  ;;  %v2833_v44 = vadd.f32 %v2817_v37, %v2777_v8  ;;  %v3489_v47 = vmul.f32 %v3473_v57, %v8160_v7  ;;  %vm851_vm12 = vcmp.ge.f32.partialorder %v7974_v22, %v12097_v39 }
 0x14b   : > { %12108 = vst [vmem:[#allocation77_spill] sm:$0xff] %v8166_v2  ;;  %vm852_vm13 = vcmp.ge.f32.partialorder %v7992_v23, %v12097_v39  ;;  %v2834_v24 = vadd.f32 %v2818_v31, %v2778_v4  ;;  %v3490_v20 = vmul.f32 %v3474_v49, %v8166_v2  ;;  %vm873_vm14 = vcmp.lt.f32.partialorder %v7974_v22, %v12026_v36 }
 0x14c   : > { %vm874_vm15 = vcmp.lt.f32.partialorder %v7992_v23, %v12026_v36  ;;  %v3529_v25 = vmul.f32 %v3513_v35, %v2833_v44  ;;  %vm889_vm0 = vmand %vm851_vm12, %vm873_vm14  ;;  %v8182_v8 = vsub.f32 %v7974_v22, %v12057_v62  ;;  %v8186_v60 = vsub.f32 %v7992_v23, %v12057_v62 }
 0x14d   : > { %v1937_v4 = vsub.f32 %v12026_v36, %v7974_v22  ;;  %v3530_v57 = vmul.f32 %v3514_v34, %v2834_v24  ;;  %vm890_vm1 = vmand %vm852_vm13, %vm874_vm15  ;;  %v5239_v49 = vsel %vm889_vm0, 1.0, %v11958_v32  ;;  %v1938_v37 = vsub.f32 %v12026_v36, %v7992_v23  ;;  %v12110_v34 = vld [vmem:[#allocation17_spill] sm:$0xff] }
 0x14e   : > { %v2849_v21 = vmul.f32 %v12107_v55, %v8118_v33  ;;  %v3545_v11 = vadd.f32 %v3529_v25, %v3489_v47  ;;  %v5240_v28 = vsel %vm890_vm1, 1.0, %v11958_v32  ;;  %v1905_v40 = vmul.f32 %v12105_v5, %v8182_v8 }
 0x14f   : > { %v1906_v53 = vmul.f32 %v12105_v5, %v8186_v60  ;;  %v3546_v59 = vadd.f32 %v3530_v57, %v3490_v20  ;;  %v1961_v14 = vmul.f32 %v12110_v34, %v1937_v4  ;;  %v1962_v6 = vmul.f32 %v12110_v34, %v1938_v37 }
 0x150   : > { %v2850_v56 = vmul.f32 %v12107_v55, %v8128_v58  ;;  %v1921_v19 = vmul.f32 %v8080_v17, %v1905_v40  ;;  %v2865_v31 = vmul.f32 %v2849_v21, %v1873_v27  ;;  %v2889_v35 = vmul.f32 %v12028_v18, %v1937_v4 }
 0x151   : > { %v1922_v48 = vmul.f32 %v8089_v1, %v1906_v53  ;;  %v5671_v47 = vpack.i.bf16 %v3546_v59, %v3545_v11  ;;  %v1977_v25 = vmul.f32 %v5239_v49, %v1961_v14  ;;  %v1978_v62 = vmul.f32 %v5240_v28, %v1962_v6 }
 0x152   : > { %v2866_v2 = vmul.f32 %v2850_v56, %v1874_v52  ;;  %v2890_v20 = vmul.f32 %v12028_v18, %v1938_v37  ;;  %v3561_v57 = vmul.f32 %v12109_v43, %v8086_v50  ;;  %v3562_v5 = vmul.f32 %v12109_v43, %v8100_v3 }
 0x153   : > { %v3601_v55 = vmul.f32 %v12029_v51, %v1937_v4  ;;  %5672 = vrot.lane.b32.xlu0 %v5671_v47, %s6042_s5  ;;  %v1993_v17 = vadd.f32 %v1977_v25, %v1921_v19  ;;  %v1994_v1 = vadd.f32 %v1978_v62, %v1922_v48  ;;  %v3602_v27 = vmul.f32 %v12029_v51, %v1938_v37 }
 0x154   : > { %vm937_vm2 = vcmp.ge.f32.partialorder %v7974_v22, %v12026_v36  ;;  %v3577_v52 = vmul.f32 %v3561_v57, %v2833_v44  ;;  %v3578_v21 = vmul.f32 %v3562_v5, %v2834_v24  ;;  %vm938_vm3 = vcmp.ge.f32.partialorder %v7992_v23, %v12026_v36 }
 0x155   : > { %vm959_vm4 = vcmp.lt.f32.partialorder %v7974_v22, %v6213_v29  ;;  %v2905_v3 = vmul.f32 %v2889_v35, %v1993_v17  ;;  %v2906_v50 = vmul.f32 %v2890_v20, %v1994_v1  ;;  %vm960_vm5 = vcmp.lt.f32.partialorder %v7992_v23, %v6213_v29 }
 0x156   : > { %vm975_vm6 = vmand %vm937_vm2, %vm959_vm4  ;;  %v8225_v62 = vsub.f32 %v7974_v22, %v12097_v39  ;;  %v8232_v5 = vsub.f32 %v7992_v23, %v12097_v39  ;;  %v2057_v24 = vsub.f32 %v6213_v29, %v7974_v22  ;;  %v2058_v4 = vsub.f32 %v6213_v29, %v7992_v23 }
 0x157   : > { %vm976_vm7 = vmand %vm938_vm3, %vm960_vm5  ;;  %v8228_v44 = vsel %vm975_vm6, 1.0, %v11958_v32  ;;  %v2921_v37 = vadd.f32 %v2905_v3, %v2865_v31  ;;  %v2922_v11 = vadd.f32 %v2906_v50, %v2866_v2  ;;  %v2937_v56 = vmul.f32 %v12028_v18, %v8182_v8 }
 0x158   : > { %v8239_v40 = vsel %vm976_vm7, 1.0, %v11958_v32  ;;  %v2025_v53 = vmul.f32 %v12110_v34, %v8225_v62  ;;  %v2026_v59 = vmul.f32 %v12110_v34, %v8232_v5  ;;  %v2081_v14 = vmul.f32 %v12030_v12, %v2057_v24 }
 0x159   : > { %v2082_v6 = vmul.f32 %v12030_v12, %v2058_v4  ;;  %v3617_v19 = vmul.f32 %v3601_v55, %v2921_v37  ;;  %v3618_v48 = vmul.f32 %v3602_v27, %v2922_v11  ;;  %v2938_v2 = vmul.f32 %v12028_v18, %v8186_v60 }
 0x15a   : > { %v2041_v31 = vmul.f32 %v5239_v49, %v2025_v53  ;;  %v2042_v35 = vmul.f32 %v5240_v28, %v2026_v59  ;;  %v2097_v47 = vmul.f32 %v8228_v44, %v2081_v14  ;;  %v2953_v20 = vmul.f32 %v2937_v56, %v1993_v17 }
 0x15b   : > { %v2098_v25 = vmul.f32 %v8239_v40, %v2082_v6  ;;  %v3633_v57 = vadd.f32 %v3617_v19, %v3577_v52  ;;  %v3634_v3 = vadd.f32 %v3618_v48, %v3578_v21  ;;  %v2954_v50 = vmul.f32 %v2938_v2, %v1994_v1 }
 0x15c   : > { %v2977_v34 = vmul.f32 %v6470_v10, %v2057_v24  ;;  %v8254_v43 = vadd.f32 %v2097_v47, %v2041_v31  ;;  %v2978_v55 = vmul.f32 %v6470_v10, %v2058_v4  ;;  %v3649_v49 = vmul.f32 %v12029_v51, %v8118_v33 }
 0x15d   : > { %v8256_v39 = vadd.f32 %v2098_v25, %v2042_v35  ;;  %v5676_v28 = vpack.i.bf16 %v3634_v3, %v3633_v57  ;;  %v3650_v27 = vmul.f32 %v12029_v51, %v8128_v58  ;;  %v3689_v17 = vmul.f32 %v6490_v54, %v2057_v24 }
 0x15e   : > { %v3690_v52 = vmul.f32 %v6490_v54, %v2058_v4  ;;  %v2993_v1 = vmul.f32 %v2977_v34, %v8254_v43  ;;  %v3665_v53 = vmul.f32 %v3649_v49, %v2921_v37  ;;  %vm335_vm8 = vcmp.ge.f32.partialorder %v7974_v22, %v12031_v15 }
 0x15f   : > { %v2994_v21 = vmul.f32 %v2978_v55, %v8256_v39  ;;  %5677 = vrot.lane.b32.xlu1 %v5676_v28, %s6043_s6  ;;  %v3666_v59 = vmul.f32 %v3650_v27, %v2922_v11  ;;  %vm336_vm9 = vcmp.ge.f32.partialorder %v7992_v23, %v12031_v15  ;;  %vm357_vm10 = vcmp.lt.f32.partialorder %v7974_v22, %v6625_v30 }
 0x160   : > { %vm358_vm11 = vcmp.lt.f32.partialorder %v7992_v23, %v6625_v30  ;;  %v8276_v33 = vadd.f32 %v2993_v1, %v2953_v20  ;;  %vm373_vm12 = vmand %vm335_vm8, %vm357_vm10  ;;  %vm421_vm13 = vcmp.ge.f32.partialorder %v7974_v22, %v6625_v30  ;;  %vm422_vm14 = vcmp.ge.f32.partialorder %v7992_v23, %v6625_v30 }
 0x161   : > { %v8278_v58 = vadd.f32 %v2994_v21, %v2954_v50  ;;  %vm374_vm15 = vmand %vm336_vm9, %vm358_vm11  ;;  %v5143_v34 = vsel %vm373_vm12, 1.0, %v11958_v32  ;;  %vm443_vm0 = vcmp.lt.f32.partialorder %v7974_v22, %v6368_v63  ;;  %vm444_vm1 = vcmp.lt.f32.partialorder %v7992_v23, %v6368_v63 }
 0x162   : > { %v1281_v24 = vsub.f32 %v7974_v22, %v12031_v15  ;;  %v3705_v4 = vmul.f32 %v3689_v17, %v8276_v33  ;;  %v5144_v11 = vsel %vm374_vm15, 1.0, %v11958_v32  ;;  %vm459_vm2 = vmand %vm421_vm13, %vm443_vm0  ;;  %v1282_v14 = vsub.f32 %v7992_v23, %v12031_v15 }
 0x163   : > { %v3706_v37 = vmul.f32 %v3690_v52, %v8278_v58  ;;  %vm460_vm3 = vmand %vm422_vm14, %vm444_vm1  ;;  %v5159_v6 = vsel %vm459_vm2, 1.0, %v11958_v32  ;;  %v1337_v19 = vsub.f32 %v6368_v63, %v7974_v22  ;;  %v1338_v48 = vsub.f32 %v6368_v63, %v7992_v23 }
 0x164   : > { %v1305_v56 = vmul.f32 %v12070_v26, %v1281_v24  ;;  %v3721_v31 = vadd.f32 %v3705_v4, %v3665_v53  ;;  %v5160_v35 = vsel %vm460_vm3, 1.0, %v11958_v32  ;;  %v1306_v47 = vmul.f32 %v12070_v26, %v1282_v14 }
 0x165   : > { %v3722_v2 = vadd.f32 %v3706_v37, %v3666_v59  ;;  %v1361_v20 = vmul.f32 %v12071_v46, %v1337_v19  ;;  %v1362_v57 = vmul.f32 %v12071_v46, %v1338_v48  ;;  %v8308_v3 = vsub.f32 %v7974_v22, %v6625_v30 }
 0x166   : > { %v1321_v25 = vmul.f32 %v5143_v34, %v1305_v56  ;;  %v1322_v55 = vmul.f32 %v5144_v11, %v1306_v47  ;;  %v8312_v49 = vsub.f32 %v7992_v23, %v6625_v30  ;;  %v1457_v28 = vsub.f32 %v12006_v61, %v7974_v22 }
 0x167   : > { %v5681_v50 = vpack.i.bf16 %v3722_v2, %v3721_v31  ;;  %v1377_v27 = vmul.f32 %v5159_v6, %v1361_v20  ;;  %v1378_v17 = vmul.f32 %v5160_v35, %v1362_v57  ;;  %v1425_v52 = vmul.f32 %v12071_v46, %v8308_v3  ;;  %v12111_v31 = vld [vmem:[#allocation36_spill] sm:$0xff] }
 0x168   : > { %v1458_v1 = vsub.f32 %v12006_v61, %v7992_v23  ;;  %v1426_v21 = vmul.f32 %v12071_v46, %v8312_v49  ;;  %v1481_v53 = vmul.f32 %v12012_v45, %v1457_v28  ;;  %v2497_v59 = vmul.f32 %v12032_v0, %v1281_v24 }
 0x169   : > { %5682 = vrot.lane.b32.xlu0 %v5681_v50, %s6041_s27  ;;  %v2498_v34 = vmul.f32 %v12032_v0, %v1282_v14  ;;  %v1393_v4 = vadd.f32 %v1377_v27, %v1321_v25  ;;  %v1394_v37 = vadd.f32 %v1378_v17, %v1322_v55  ;;  %v1441_v11 = vmul.f32 %v5159_v6, %v1425_v52  ;;  %v12112_v55 = vld [vmem:[#allocation42_spill] sm:$0xff] }
 0x16a   : > { %v1482_v56 = vmul.f32 %v12012_v45, %v1458_v1  ;;  %v1442_v19 = vmul.f32 %v5160_v35, %v1426_v21  ;;  %v1497_v48 = vmul.f32 %v8031_v38, %v1481_v53  ;;  %v2537_v2 = vmul.f32 %v12111_v31, %v1457_v28  ;;  %v12113_v27 = vld [vmem:[#allocation26_spill] sm:$0xff]  ;;  %v12114_v21 = vld [vmem:[#allocation75_spill] sm:$0xff] }
 0x16b   : > { %v2538_v47 = vmul.f32 %v12111_v31, %v1458_v1  ;;  %v2513_v57 = vmul.f32 %v2497_v59, %v1393_v4  ;;  %v2514_v50 = vmul.f32 %v2498_v34, %v1394_v37  ;;  %v2585_v46 = vmul.f32 %v12111_v31, %v8308_v3  ;;  %v12115_v59 = vld [vmem:[#allocation76_spill] sm:$0xff] }
 0x16c   : > { %v1498_v20 = vmul.f32 %v8036_v42, %v1482_v56  ;;  %v1513_v0 = vadd.f32 %v1497_v48, %v1441_v11  ;;  %v2586_v6 = vmul.f32 %v12111_v31, %v8312_v49  ;;  %v2625_v35 = vmul.f32 %v6681_v13, %v8072_v9 }
 0x16d   : > { %v2626_v38 = vmul.f32 %v6681_v13, %v8076_v41  ;;  %v3297_v28 = vmul.f32 %v12112_v55, %v1281_v24  ;;  %v3298_v42 = vmul.f32 %v12112_v55, %v1282_v14  ;;  %v3337_v17 = vmul.f32 %v12113_v27, %v8072_v9  ;;  %v12116_v9 = vld [vmem:[#allocation40_spill] sm:$0xff]  ;;  %v12150_v55 = vld [vmem:[#allocation39_spill] sm:$0xff] }
 0x16e   : > { %v1514_v25 = vadd.f32 %v1498_v20, %v1442_v19  ;;  %v2553_v52 = vmul.f32 %v2537_v2, %v1513_v0  ;;  %v2601_v1 = vmul.f32 %v2585_v46, %v1513_v0  ;;  %v2641_v53 = vmul.f32 %v2625_v35, %v12114_v21  ;;  %v12119_v21 = vld [vmem:[#allocation27_spill] sm:$0xff] }
 0x16f   : > { %v2642_v34 = vmul.f32 %v2626_v38, %v12115_v59  ;;  %v3338_v11 = vmul.f32 %v12113_v27, %v8076_v41  ;;  %vm1023_vm4 = vcmp.ge.f32.partialorder %v7974_v22, %v6213_v29  ;;  %vm1024_vm5 = vcmp.ge.f32.partialorder %v7992_v23, %v6213_v29 }
 0x170   : > { %v2554_v4 = vmul.f32 %v2538_v47, %v1514_v25  ;;  %v2602_v37 = vmul.f32 %v2586_v6, %v1514_v25  ;;  %v2569_v24 = vadd.f32 %v2553_v52, %v2513_v57  ;;  %v2657_v56 = vadd.f32 %v2641_v53, %v2601_v1 }
 0x171   : > { %vm1045_vm6 = vcmp.lt.f32.partialorder %v7974_v22, %v12116_v9  ;;  %vm1046_vm7 = vcmp.lt.f32.partialorder %v7992_v23, %v12116_v9  ;;  %v8357_v41 = vsub.f32 %v7974_v22, %v12026_v36  ;;  %v8362_v2 = vsub.f32 %v7992_v23, %v12026_v36 }
 0x172   : > { %v2570_v0 = vadd.f32 %v2554_v4, %v2514_v50  ;;  %v2658_v46 = vadd.f32 %v2642_v34, %v2602_v37  ;;  %vm1061_vm8 = vmand %vm1023_vm4, %vm1045_vm6  ;;  %v3313_v14 = vmul.f32 %v3297_v28, %v2569_v24  ;;  %v3353_v19 = vmul.f32 %v3337_v17, %v2657_v56  ;;  %v12120_v34 = vld [vmem:[#allocation33_spill] sm:$0xff] }
 0x173   : > { %12117 = vst [vmem:[#allocation75_spill] sm:$0xff] %v8357_v41  ;;  %vm1062_vm9 = vmand %vm1024_vm5, %vm1046_vm7  ;;  %v5271_v48 = vsel %vm1061_vm8, 1.0, %v11958_v32  ;;  %v2145_v50 = vmul.f32 %v12030_v12, %v8357_v41  ;;  %v2146_v35 = vmul.f32 %v12030_v12, %v8362_v2  ;;  %v2177_v38 = vsub.f32 %v12116_v9, %v7974_v22 }
 0x174   : > { %12118 = vst [vmem:[#allocation76_spill] sm:$0xff] %v8362_v2  ;;  %v3314_v47 = vmul.f32 %v3298_v42, %v2570_v0  ;;  %v3354_v20 = vmul.f32 %v3338_v11, %v2658_v46  ;;  %v8365_v57 = vsel %vm1062_vm9, 1.0, %v11958_v32  ;;  %v3369_v6 = vadd.f32 %v3353_v19, %v3313_v14 }
 0x175   : > { %v2178_v25 = vsub.f32 %v12116_v9, %v7992_v23  ;;  %v2161_v42 = vmul.f32 %v8228_v44, %v2145_v50  ;;  %v3025_v17 = vmul.f32 %v6470_v10, %v8225_v62  ;;  %v3026_v52 = vmul.f32 %v6470_v10, %v8232_v5 }
 0x176   : > { %v3370_v28 = vadd.f32 %v3354_v20, %v3314_v47  ;;  %v2162_v1 = vmul.f32 %v8239_v40, %v2146_v35  ;;  %v2201_v53 = vmul.f32 %v12119_v21, %v2177_v38  ;;  %v3065_v4 = vmul.f32 %v12120_v34, %v2177_v38  ;;  %v12121_v47 = vld [vmem:[#allocation32_spill] sm:$0xff] }
 0x177   : > { %v2202_v59 = vmul.f32 %v12119_v21, %v2178_v25  ;;  %v3041_v11 = vmul.f32 %v3025_v17, %v8254_v43  ;;  %v3042_v24 = vmul.f32 %v3026_v52, %v8256_v39  ;;  %v3066_v44 = vmul.f32 %v12120_v34, %v2178_v25  ;;  %v12122_v52 = vld [vmem:[#allocation73_spill] sm:$0xff] }
 0x178   : > { %v5686_v37 = vpack.i.bf16 %v3370_v28, %v3369_v6  ;;  %v2217_v0 = vmul.f32 %v5271_v48, %v2201_v53  ;;  %v3737_v19 = vmul.f32 %v6490_v54, %v8182_v8  ;;  %v3738_v40 = vmul.f32 %v6490_v54, %v8186_v60 }
 0x179   : > { %v2218_v14 = vmul.f32 %v8365_v57, %v2202_v59  ;;  %v3777_v20 = vmul.f32 %v12121_v47, %v2177_v38  ;;  %v3778_v50 = vmul.f32 %v12121_v47, %v2178_v25  ;;  %v3385_v39 = vmul.f32 %v12113_v27, %v8308_v3  ;;  %v12123_v38 = vld [vmem:[#allocation74_spill] sm:$0xff]  ;;  %v12124_v3 = vld [vmem:[#allocation23_spill] sm:$0xff] }
 0x17a   : > { %5687 = vrot.lane.b32.xlu1 %v5686_v37, %s6044_s9  ;;  %v3386_v43 = vmul.f32 %v12113_v27, %v8312_v49  ;;  %v2233_v6 = vadd.f32 %v2217_v0, %v2161_v42  ;;  %v3753_v28 = vmul.f32 %v3737_v19, %v8276_v33  ;;  %v3754_v8 = vmul.f32 %v3738_v40, %v8278_v58  ;;  %v12125_v49 = vld [vmem:[#allocation77_spill] sm:$0xff]  ;;  %v12128_v19 = vld [vmem:[#allocation46_spill] sm:$0xff] }
 0x17b   : > { %v2234_v35 = vadd.f32 %v2218_v14, %v2162_v1  ;;  %v3401_v17 = vmul.f32 %v3385_v39, %v2657_v56  ;;  %v3425_v53 = vmul.f32 %v12041_v16, %v12122_v52  ;;  %v3426_v25 = vmul.f32 %v12041_v16, %v12123_v38 }
 0x17c   : > { %v3402_v60 = vmul.f32 %v3386_v43, %v2658_v46  ;;  %v3081_v59 = vmul.f32 %v3065_v4, %v2233_v6  ;;  %vm1109_vm10 = vcmp.ge.f32.partialorder %v7974_v22, %v12116_v9  ;;  %vm1131_vm11 = vcmp.lt.f32.partialorder %v7974_v22, %v12124_v3 }
 0x17d   : > { %v3082_v37 = vmul.f32 %v3066_v44, %v2234_v35  ;;  %v3441_v33 = vmul.f32 %v3425_v53, %v8160_v7  ;;  %v3442_v58 = vmul.f32 %v3426_v25, %v12125_v49  ;;  %vm1147_vm12 = vmand %vm1109_vm10, %vm1131_vm11  ;;  %v8413_v56 = vsub.f32 %v7974_v22, %v6213_v29  ;;  %v8451_v49 = vld [vmem:[%s6187_s25 + $0x48] sm:$0xff] }
 0x17e   : > { %v2297_v46 = vsub.f32 %v12124_v3, %v7974_v22  ;;  %v3097_v42 = vadd.f32 %v3081_v59, %v3041_v11  ;;  %v8418_v4 = vsel %vm1147_vm12, 1.0, %v11958_v32  ;;  %v3113_v44 = vmul.f32 %v12120_v34, %v8357_v41  ;;  %v12129_v22 = vld [vmem:[#allocation47_spill] sm:$0xff]  ;;  %v12130_v59 = vld [vmem:[#allocation48_spill] sm:$0xff] }
 0x17f   : > { %12126 = vst [vmem:[#allocation73_spill] sm:$0xff] %v8413_v56  ;;  %v3098_v1 = vadd.f32 %v3082_v37, %v3042_v24  ;;  %12127 = vst [vmem:[#allocation74_spill] sm:$0xff] %v8418_v4  ;;  %v3457_v0 = vadd.f32 %v3441_v33, %v3401_v17  ;;  %v3458_v7 = vadd.f32 %v3442_v58, %v3402_v60  ;;  %v12146_v41 = vld [vmem:[#allocation15_spill] sm:$0xff] }
 0x180   : > { %v2265_v14 = vmul.f32 %v12119_v21, %v8413_v56  ;;  %v2321_v40 = vmul.f32 %v12128_v19, %v2297_v46  ;;  %v3793_v39 = vmul.f32 %v3777_v20, %v3097_v42  ;;  %v3129_v52 = vmul.f32 %v3113_v44, %v2233_v6  ;;  %v8433_v20 = vld [vmem:[%s6187_s25 + $0x40] sm:$0xff] }
 0x181   : > { %v3794_v43 = vmul.f32 %v3778_v50, %v3098_v1  ;;  %v3153_v11 = vmul.f32 %v12129_v22, %v2297_v46  ;;  %v5696_v24 = vpack.i.bf16 %v3458_v7, %v3457_v0  ;;  %v3825_v25 = vmul.f32 %v12121_v47, %v8225_v62 }
 0x182   : > { %v2281_v53 = vmul.f32 %v5271_v48, %v2265_v14  ;;  %v2337_v38 = vmul.f32 %v8418_v4, %v2321_v40  ;;  %v3809_v17 = vadd.f32 %v3793_v39, %v3753_v28  ;;  %v3865_v37 = vmul.f32 %v12130_v59, %v2297_v46 }
 0x183   : > { %v3810_v60 = vadd.f32 %v3794_v43, %v3754_v8  ;;  %vm1110_vm13 = vcmp.ge.f32.partialorder %v7992_v23, %v12116_v9  ;;  %5697 = vrot.lane.b32.xlu1 %v5696_v24, %s6045_s10  ;;  %v3841_v48 = vmul.f32 %v3825_v25, %v3097_v42  ;;  %vm1132_vm14 = vcmp.lt.f32.partialorder %v7992_v23, %v12124_v3  ;;  %v12137_v24 = vld [vmem:[#allocation7_spill] sm:$0xff] }
 0x184   : > { %v8436_v50 = vadd.f32 %v2337_v38, %v2281_v53  ;;  %v8442_v62 = vsub.f32 %v7992_v23, %v6213_v29  ;;  %vm1148_vm15 = vmand %vm1110_vm13, %vm1132_vm14  ;;  %v2298_v28 = vsub.f32 %v12124_v3, %v7992_v23  ;;  %v3114_v8 = vmul.f32 %v12120_v34, %v8362_v2 }
 0x185   : > { %v5691_v6 = vpack.i.bf16 %v3810_v60, %v3809_v17  ;;  %v3826_v33 = vmul.f32 %v12121_v47, %v8232_v5  ;;  %v8455_v46 = vsel %vm1148_vm15, 1.0, %v11958_v32  ;;  %vm509_vm0 = vcmp.ge.f32.partialorder %v8433_v20, %v6368_v63  ;;  %v12138_v17 = vld [vmem:[#allocation8_spill] sm:$0xff] }
 0x186   : > { %12131 = vst [vmem:[#allocation77_spill] sm:$0xff] %v8436_v50  ;;  %12132 = vst [vmem:[#allocation78_spill] sm:$0xff] %v8442_v62  ;;  %v3169_v58 = vmul.f32 %v3153_v11, %v8436_v50  ;;  %v2266_v42 = vmul.f32 %v12119_v21, %v8442_v62  ;;  %v2322_v23 = vmul.f32 %v12128_v19, %v2298_v28  ;;  %v12148_v21 = vld [vmem:[#allocation37_spill] sm:$0xff] }
 0x187   : > { %12133 = vst [vmem:[#allocation79_spill] sm:$0xff] %v8455_v46  ;;  %5692 = vrot.lane.b32.xlu0 %v5691_v6, %s6046_s11  ;;  %v3130_v44 = vmul.f32 %v3114_v8, %v2234_v35  ;;  %v3154_v5 = vmul.f32 %v12129_v22, %v2298_v28  ;;  %v3842_v0 = vmul.f32 %v3826_v33, %v3098_v1 }
 0x188   : > { %v8464_v7 = vadd.f32 %v3169_v58, %v3129_v52  ;;  %v2282_v14 = vmul.f32 %v8365_v57, %v2266_v42  ;;  %v3866_v40 = vmul.f32 %v12130_v59, %v2298_v28  ;;  %vm510_vm1 = vcmp.ge.f32.partialorder %v8451_v49, %v6368_v63  ;;  %v12135_v57 = vld [vmem:[#allocation6_spill] sm:$0xff]  ;;  %v12147_v59 = vld [vmem:[#allocation16_spill] sm:$0xff] }
 0x189   : > { %v2338_v39 = vmul.f32 %v8455_v46, %v2322_v23  ;;  %vm531_vm2 = vcmp.lt.f32.partialorder %v8433_v20, %v12006_v61  ;;  %vm532_vm3 = vcmp.lt.f32.partialorder %v8451_v49, %v12006_v61  ;;  %vm595_vm4 = vcmp.ge.f32.partialorder %v8433_v20, %v12006_v61 }
 0x18a   : > { %12134 = vst [vmem:[#allocation80_spill] sm:$0xff] %v8464_v7  ;;  %v3881_v35 = vmul.f32 %v3865_v37, %v8464_v7  ;;  %vm547_vm5 = vmand %vm509_vm0, %vm531_vm2  ;;  %vm596_vm6 = vcmp.ge.f32.partialorder %v8451_v49, %v12006_v61  ;;  %vm617_vm7 = vcmp.lt.f32.partialorder %v8433_v20, %v12135_v57  ;;  %vm618_vm8 = vcmp.lt.f32.partialorder %v8451_v49, %v12135_v57 }
 0x18b   : > { %v8487_v1 = vadd.f32 %v2338_v39, %v2282_v14  ;;  %vm548_vm9 = vmand %vm510_vm1, %vm532_vm3  ;;  %v8490_v43 = vsel %vm547_vm5, 1.0, %v11958_v32  ;;  %vm681_vm10 = vcmp.ge.f32.partialorder %v8433_v20, %v12135_v57  ;;  %vm682_vm11 = vcmp.ge.f32.partialorder %v8451_v49, %v12135_v57  ;;  %v12141_v14 = vld [vmem:[#allocation31_spill] sm:$0xff] }
 0x18c   : > { %v3897_v52 = vadd.f32 %v3881_v35, %v3841_v48  ;;  %v8497_v11 = vsel %vm548_vm9, 1.0, %v11958_v32  ;;  %vm633_vm12 = vmand %vm595_vm4, %vm617_vm7  ;;  %vm703_vm13 = vcmp.lt.f32.partialorder %v8433_v20, %v12137_v24  ;;  %vm704_vm14 = vcmp.lt.f32.partialorder %v8451_v49, %v12137_v24 }
 0x18d   : > { %12136 = vst [vmem:[#allocation81_spill] sm:$0xff] %v8487_v1  ;;  %v3170_v53 = vmul.f32 %v3154_v5, %v8487_v1  ;;  %vm634_vm15 = vmand %vm596_vm6, %vm618_vm8  ;;  %v5193_v38 = vsel %vm633_vm12, 1.0, %v11958_v32  ;;  %vm767_vm0 = vcmp.ge.f32.partialorder %v8433_v20, %v12137_v24  ;;  %vm768_vm1 = vcmp.ge.f32.partialorder %v8451_v49, %v12137_v24 }
 0x18e   : > { %4407 = vrot.lane.b32.xlu0 %v3897_v52, %s6047_s17  ;;  %v5194_v25 = vsel %vm634_vm15, 1.0, %v11958_v32  ;;  %vm719_vm2 = vmand %vm681_vm10, %vm703_vm13  ;;  %vm789_vm3 = vcmp.lt.f32.partialorder %v8433_v20, %v12138_v17  ;;  %vm790_vm4 = vcmp.lt.f32.partialorder %v8451_v49, %v12138_v17  ;;  %v8517_v60 = vsub.f32 %v8433_v20, %v6368_v63 }
 0x18f   : > { %v8519_v37 = vadd.f32 %v3170_v53, %v3130_v44  ;;  %vm720_vm5 = vmand %vm682_vm11, %vm704_vm14  ;;  %v5209_v48 = vsel %vm719_vm2, 1.0, %v11958_v32  ;;  %v8527_v6 = vsub.f32 %v8451_v49, %v6368_v63  ;;  %v8531_v28 = vsub.f32 %v12135_v57, %v8433_v20 }
 0x190   : > { %v5210_v8 = vsel %vm720_vm5, 1.0, %v11958_v32  ;;  %vm805_vm6 = vmand %vm767_vm0, %vm789_vm3  ;;  %v1547_v33 = vmul.f32 %v12012_v45, %v8517_v60  ;;  %v8538_v58 = vsub.f32 %v12135_v57, %v8451_v49  ;;  %v8542_v42 = vsub.f32 %v8433_v20, %v12006_v61 }
 0x191   : > { %12139 = vst [vmem:[#allocation82_spill] sm:$0xff] %v8519_v37  ;;  %v3882_v23 = vmul.f32 %v3866_v40, %v8519_v37  ;;  %vm806_vm7 = vmand %vm768_vm1, %vm790_vm4  ;;  %v8549_v44 = vsel %vm805_vm6, 1.0, %v11958_v32  ;;  %v1548_v5 = vmul.f32 %v12012_v45, %v8527_v6  ;;  %v1603_v39 = vmul.f32 %v12141_v14, %v8531_v28 }
 0x192   : > { %12140 = vst [vmem:[#allocation83_spill] sm:$0xff] %v8538_v58  ;;  %v8556_v35 = vsel %vm806_vm7, 1.0, %v11958_v32  ;;  %v1563_v52 = vmul.f32 %v8490_v43, %v1547_v33  ;;  %v1604_v40 = vmul.f32 %v12141_v14, %v8538_v58  ;;  %v8563_v53 = vsub.f32 %v8451_v49, %v12006_v61 }
 0x193   : > { %v3898_v37 = vadd.f32 %v3882_v23, %v3842_v0  ;;  %v1564_v1 = vmul.f32 %v8497_v11, %v1548_v5  ;;  %v1619_v46 = vmul.f32 %v5193_v38, %v1603_v39  ;;  %v1667_v2 = vmul.f32 %v12141_v14, %v8542_v42 }
 0x194   : > { %v1620_v62 = vmul.f32 %v5194_v25, %v1604_v40  ;;  %v1668_v7 = vmul.f32 %v12141_v14, %v8563_v53  ;;  %v8572_v33 = vsub.f32 %v12137_v24, %v8433_v20  ;;  %v8576_v50 = vsub.f32 %v12137_v24, %v8451_v49 }
 0x195   : > { %4409 = vrot.lane.b32.xlu1 %v3898_v37, %s6047_s17  ;;  %v8579_v0 = vadd.f32 %v1619_v46, %v1563_v52  ;;  %v1683_v23 = vmul.f32 %v5193_v38, %v1667_v2  ;;  %v8583_v5 = vsub.f32 %v8433_v20, %v12135_v57  ;;  %v8587_v39 = vsub.f32 %v8451_v49, %v12135_v57 }
 0x196   : > { %12142 = vst [vmem:[#allocation84_spill] sm:$0xff] %v8572_v33  ;;  %12143 = vst [vmem:[#allocation85_spill] sm:$0xff] %v8576_v50  ;;  %v8589_v40 = vadd.f32 %v1620_v62, %v1564_v1  ;;  %v1684_v4 = vmul.f32 %v5194_v25, %v1668_v7  ;;  %v1723_v56 = vmul.f32 %v12146_v41, %v8572_v33 }
 0x197   : > { %12144 = vst [vmem:[#allocation86_spill] sm:$0xff] %v8579_v0  ;;  %v1724_v37 = vmul.f32 %v12146_v41, %v8576_v50  ;;  %v1787_v2 = vmul.f32 %v12146_v41, %v8583_v5  ;;  %v1788_v46 = vmul.f32 %v12146_v41, %v8587_v39  ;;  %v1819_v38 = vsub.f32 %v12138_v17, %v8433_v20 }
 0x198   : > { %12145 = vst [vmem:[#allocation87_spill] sm:$0xff] %v8589_v40  ;;  %v1820_v62 = vsub.f32 %v12138_v17, %v8451_v49  ;;  %v1739_v1 = vmul.f32 %v5209_v48, %v1723_v56  ;;  %v2675_v25 = vmul.f32 %v6681_v13, %v8517_v60  ;;  %v2676_v52 = vmul.f32 %v6681_v13, %v8527_v6 }
 0x199   : > { %v1740_v7 = vmul.f32 %v5210_v8, %v1724_v37  ;;  %v1803_v14 = vmul.f32 %v5209_v48, %v1787_v2  ;;  %v1804_v57 = vmul.f32 %v5210_v8, %v1788_v46  ;;  %v1843_v22 = vmul.f32 %v12147_v59, %v1819_v38 }
 0x19a   : > { %v1844_v41 = vmul.f32 %v12147_v59, %v1820_v62  ;;  %v1755_v19 = vadd.f32 %v1739_v1, %v1683_v23  ;;  %v2691_v47 = vmul.f32 %v2675_v25, %v8579_v0  ;;  %v2692_v34 = vmul.f32 %v2676_v52, %v8589_v40  ;;  %v12149_v23 = vld [vmem:[#allocation19_spill] sm:$0xff] }
 0x19b   : > { %v1756_v3 = vadd.f32 %v1740_v7, %v1684_v4  ;;  %v1859_v56 = vmul.f32 %v8549_v44, %v1843_v22  ;;  %v2715_v9 = vmul.f32 %v12148_v21, %v8572_v33  ;;  %v2716_v48 = vmul.f32 %v12148_v21, %v8576_v50 }
 0x19c   : > { %v1860_v37 = vmul.f32 %v8556_v35, %v1844_v41  ;;  %v2763_v8 = vmul.f32 %v12148_v21, %v8542_v42  ;;  %v2764_v4 = vmul.f32 %v12148_v21, %v8563_v53  ;;  %v2803_v2 = vmul.f32 %v12149_v23, %v1819_v38 }
 0x19d   : > { %v2804_v46 = vmul.f32 %v12149_v23, %v1820_v62  ;;  %v1875_v1 = vadd.f32 %v1859_v56, %v1803_v14  ;;  %v2731_v7 = vmul.f32 %v2715_v9, %v1755_v19  ;;  %v2732_v41 = vmul.f32 %v2716_v48, %v1756_v3  ;;  %v12151_v48 = vld [vmem:[#allocation17_spill] sm:$0xff] }
 0x19e   : > { %v1876_v22 = vadd.f32 %v1860_v37, %v1804_v57  ;;  %v2779_v25 = vmul.f32 %v2763_v8, %v1755_v19  ;;  %v2780_v52 = vmul.f32 %v2764_v4, %v1756_v3  ;;  %v3475_v33 = vmul.f32 %v12041_v16, %v8517_v60 }
 0x19f   : > { %v3476_v50 = vmul.f32 %v12041_v16, %v8527_v6  ;;  %v8627_v40 = vadd.f32 %v2731_v7, %v2691_v47  ;;  %v8629_v27 = vadd.f32 %v2732_v41, %v2692_v34  ;;  %v2819_v21 = vmul.f32 %v2803_v2, %v1875_v1 }
 0x1a0   : > { %v2820_v0 = vmul.f32 %v2804_v46, %v1876_v22  ;;  %v3515_v58 = vmul.f32 %v12150_v55, %v1819_v38  ;;  %v3516_v57 = vmul.f32 %v12150_v55, %v1820_v62  ;;  %vm853_vm8 = vcmp.ge.f32.partialorder %v8433_v20, %v12138_v17 }
 0x1a1   : > { %vm854_vm9 = vcmp.ge.f32.partialorder %v8451_v49, %v12138_v17  ;;  %v2835_v9 = vadd.f32 %v2819_v21, %v2779_v25  ;;  %v3491_v19 = vmul.f32 %v3475_v33, %v8627_v40  ;;  %v3492_v47 = vmul.f32 %v3476_v50, %v8629_v27 }
 0x1a2   : > { %v2836_v3 = vadd.f32 %v2820_v0, %v2780_v52  ;;  %vm875_vm10 = vcmp.lt.f32.partialorder %v8433_v20, %v12026_v36  ;;  %vm876_vm11 = vcmp.lt.f32.partialorder %v8451_v49, %v12026_v36  ;;  %v8645_v34 = vsub.f32 %v8433_v20, %v12137_v24 }
 0x1a3   : > { %v8649_v60 = vsub.f32 %v8451_v49, %v12137_v24  ;;  %v3531_v21 = vmul.f32 %v3515_v58, %v2835_v9  ;;  %vm891_vm12 = vmand %vm853_vm8, %vm875_vm10  ;;  %v1939_v50 = vsub.f32 %v12026_v36, %v8433_v20  ;;  %v1940_v14 = vsub.f32 %v12026_v36, %v8451_v49 }
 0x1a4   : > { %v3532_v6 = vmul.f32 %v3516_v57, %v2836_v3  ;;  %vm892_vm13 = vmand %vm854_vm9, %vm876_vm11  ;;  %v5241_v33 = vsel %vm891_vm12, 1.0, %v11958_v32  ;;  %v1907_v0 = vmul.f32 %v12147_v59, %v8645_v34  ;;  %v2851_v58 = vmul.f32 %v12149_v23, %v8583_v5 }
 0x1a5   : > { %v1908_v38 = vmul.f32 %v12147_v59, %v8649_v60  ;;  %v3547_v62 = vadd.f32 %v3531_v21, %v3491_v19  ;;  %v5242_v37 = vsel %vm892_vm13, 1.0, %v11958_v32  ;;  %v1963_v8 = vmul.f32 %v12151_v48, %v1939_v50 }
 0x1a6   : > { %v3548_v56 = vadd.f32 %v3532_v6, %v3492_v47  ;;  %v1923_v4 = vmul.f32 %v8549_v44, %v1907_v0  ;;  %v1964_v46 = vmul.f32 %v12151_v48, %v1940_v14  ;;  %v2852_v7 = vmul.f32 %v12149_v23, %v8587_v39 }
 0x1a7   : > { %v1924_v2 = vmul.f32 %v8556_v35, %v1908_v38  ;;  %v1979_v25 = vmul.f32 %v5241_v33, %v1963_v8  ;;  %v2867_v52 = vmul.f32 %v2851_v58, %v1875_v1  ;;  %v2891_v57 = vmul.f32 %v12028_v18, %v1939_v50 }
 0x1a8   : > { %v5701_v41 = vpack.i.bf16 %v3548_v56, %v3547_v62  ;;  %v1980_v19 = vmul.f32 %v5242_v37, %v1964_v46  ;;  %v2868_v47 = vmul.f32 %v2852_v7, %v1876_v22  ;;  %v2892_v21 = vmul.f32 %v12028_v18, %v1940_v14 }
 0x1a9   : > { %v3563_v6 = vmul.f32 %v12150_v55, %v8542_v42  ;;  %v1995_v44 = vadd.f32 %v1979_v25, %v1923_v4  ;;  %v3564_v35 = vmul.f32 %v12150_v55, %v8563_v53  ;;  %v3603_v0 = vmul.f32 %v12029_v51, %v1939_v50 }
 0x1aa   : > { %5702 = vrot.lane.b32.xlu0 %v5701_v41, %s6042_s5  ;;  %v3604_v38 = vmul.f32 %v12029_v51, %v1940_v14  ;;  %v1996_v1 = vadd.f32 %v1980_v19, %v1924_v2  ;;  %vm939_vm14 = vcmp.ge.f32.partialorder %v8433_v20, %v12026_v36  ;;  %vm940_vm15 = vcmp.ge.f32.partialorder %v8451_v49, %v12026_v36 }
 0x1ab   : > { %v3579_v58 = vmul.f32 %v3563_v6, %v2835_v9  ;;  %v2907_v22 = vmul.f32 %v2891_v57, %v1995_v44  ;;  %v3580_v42 = vmul.f32 %v3564_v35, %v2836_v3  ;;  %vm961_vm0 = vcmp.lt.f32.partialorder %v8433_v20, %v6213_v29 }
 0x1ac   : > { %vm962_vm1 = vcmp.lt.f32.partialorder %v8451_v49, %v6213_v29  ;;  %v2908_v53 = vmul.f32 %v2892_v21, %v1996_v1  ;;  %vm977_vm2 = vmand %vm939_vm14, %vm961_vm0  ;;  %v8688_v50 = vsub.f32 %v8433_v20, %v12138_v17  ;;  %v8692_v9 = vsub.f32 %v8451_v49, %v12138_v17 }
 0x1ad   : > { %v2059_v14 = vsub.f32 %v6213_v29, %v8433_v20  ;;  %v2923_v3 = vadd.f32 %v2907_v22, %v2867_v52  ;;  %vm978_vm3 = vmand %vm940_vm15, %vm962_vm1  ;;  %v8697_v62 = vsel %vm977_vm2, 1.0, %v11958_v32  ;;  %v2060_v56 = vsub.f32 %v6213_v29, %v8451_v49 }
 0x1ae   : > { %v2939_v8 = vmul.f32 %v12028_v18, %v8645_v34  ;;  %v2924_v4 = vadd.f32 %v2908_v53, %v2868_v47  ;;  %v8704_v2 = vsel %vm978_vm3, 1.0, %v11958_v32  ;;  %v2027_v46 = vmul.f32 %v12151_v48, %v8688_v50 }
 0x1af   : > { %v2028_v7 = vmul.f32 %v12151_v48, %v8692_v9  ;;  %v3619_v41 = vmul.f32 %v3603_v0, %v2923_v3  ;;  %v2083_v25 = vmul.f32 %v12030_v12, %v2059_v14  ;;  %v2084_v52 = vmul.f32 %v12030_v12, %v2060_v56 }
 0x1b0   : > { %v2940_v57 = vmul.f32 %v12028_v18, %v8649_v60  ;;  %v3620_v19 = vmul.f32 %v3604_v38, %v2924_v4  ;;  %v2043_v21 = vmul.f32 %v5241_v33, %v2027_v46  ;;  %v2955_v6 = vmul.f32 %v2939_v8, %v1995_v44 }
 0x1b1   : > { %v2044_v47 = vmul.f32 %v5242_v37, %v2028_v7  ;;  %v3635_v35 = vadd.f32 %v3619_v41, %v3579_v58  ;;  %v2099_v22 = vmul.f32 %v8697_v62, %v2083_v25  ;;  %v2100_v53 = vmul.f32 %v8704_v2, %v2084_v52  ;;  %v12152_v52 = vld [vmem:[#allocation41_spill] sm:$0xff] }
 0x1b2   : > { %v2956_v55 = vmul.f32 %v2940_v57, %v1996_v1  ;;  %v3636_v23 = vadd.f32 %v3620_v19, %v3580_v42  ;;  %v2979_v0 = vmul.f32 %v6470_v10, %v2059_v14  ;;  %v2980_v48 = vmul.f32 %v6470_v10, %v2060_v56 }
 0x1b3   : > { %v3651_v59 = vmul.f32 %v12029_v51, %v8583_v5  ;;  %v8720_v17 = vadd.f32 %v2099_v22, %v2043_v21  ;;  %v8722_v38 = vadd.f32 %v2100_v53, %v2044_v47  ;;  %v3652_v33 = vmul.f32 %v12029_v51, %v8587_v39 }
 0x1b4   : > { %v3691_v37 = vmul.f32 %v6490_v54, %v2059_v14  ;;  %v5706_v44 = vpack.i.bf16 %v3636_v23, %v3635_v35  ;;  %v3692_v1 = vmul.f32 %v6490_v54, %v2060_v56  ;;  %vm337_vm4 = vcmp.ge.f32.partialorder %v8433_v20, %v12031_v15 }
 0x1b5   : > { %v3667_v58 = vmul.f32 %v3651_v59, %v2923_v3  ;;  %v2995_v42 = vmul.f32 %v2979_v0, %v8720_v17  ;;  %v2996_v5 = vmul.f32 %v2980_v48, %v8722_v38  ;;  %v3668_v8 = vmul.f32 %v3652_v33, %v2924_v4 }
 0x1b6   : > { %vm338_vm5 = vcmp.ge.f32.partialorder %v8451_v49, %v12031_v15  ;;  %5707 = vrot.lane.b32.xlu1 %v5706_v44, %s6043_s6  ;;  %vm359_vm6 = vcmp.lt.f32.partialorder %v8433_v20, %v6625_v30  ;;  %vm360_vm7 = vcmp.lt.f32.partialorder %v8451_v49, %v6625_v30  ;;  %vm423_vm8 = vcmp.ge.f32.partialorder %v8433_v20, %v6625_v30 }
 0x1b7   : > { %vm424_vm9 = vcmp.ge.f32.partialorder %v8451_v49, %v6625_v30  ;;  %v8743_v59 = vadd.f32 %v2995_v42, %v2955_v6  ;;  %v8745_v39 = vadd.f32 %v2996_v5, %v2956_v55  ;;  %vm375_vm10 = vmand %vm337_vm4, %vm359_vm6  ;;  %vm445_vm11 = vcmp.lt.f32.partialorder %v8433_v20, %v6368_v63 }
 0x1b8   : > { %vm446_vm12 = vcmp.lt.f32.partialorder %v8451_v49, %v6368_v63  ;;  %vm376_vm13 = vmand %vm338_vm5, %vm360_vm7  ;;  %v5145_v23 = vsel %vm375_vm10, 1.0, %v11958_v32  ;;  %v1283_v48 = vsub.f32 %v8433_v20, %v12031_v15  ;;  %v1284_v14 = vsub.f32 %v8451_v49, %v12031_v15 }
 0x1b9   : > { %v1339_v55 = vsub.f32 %v6368_v63, %v8433_v20  ;;  %v3707_v3 = vmul.f32 %v3691_v37, %v8743_v59  ;;  %v3708_v56 = vmul.f32 %v3692_v1, %v8745_v39  ;;  %v5146_v4 = vsel %vm376_vm13, 1.0, %v11958_v32  ;;  %vm461_vm14 = vmand %vm423_vm8, %vm445_vm11 }
 0x1ba   : > { %v1340_v46 = vsub.f32 %v6368_v63, %v8451_v49  ;;  %vm462_vm15 = vmand %vm424_vm9, %vm446_vm12  ;;  %v5161_v7 = vsel %vm461_vm14, 1.0, %v11958_v32  ;;  %v1307_v41 = vmul.f32 %v12070_v26, %v1283_v48  ;;  %v1308_v25 = vmul.f32 %v12070_v26, %v1284_v14 }
 0x1bb   : > { %v1363_v57 = vmul.f32 %v12152_v52, %v1339_v55  ;;  %v3723_v19 = vadd.f32 %v3707_v3, %v3667_v58  ;;  %v3724_v21 = vadd.f32 %v3708_v56, %v3668_v8  ;;  %v5162_v47 = vsel %vm462_vm15, 1.0, %v11958_v32  ;;  %v12153_v8 = vld [vmem:[#allocation35_spill] sm:$0xff] }
 0x1bc   : > { %v1364_v6 = vmul.f32 %v12152_v52, %v1340_v46  ;;  %v1323_v35 = vmul.f32 %v5145_v23, %v1307_v41  ;;  %v1324_v22 = vmul.f32 %v5146_v4, %v1308_v25  ;;  %v8777_v0 = vsub.f32 %v8433_v20, %v6625_v30 }
 0x1bd   : > { %v1379_v53 = vmul.f32 %v5161_v7, %v1363_v57  ;;  %v5711_v33 = vpack.i.bf16 %v3724_v21, %v3723_v19  ;;  %v8781_v44 = vsub.f32 %v8451_v49, %v6625_v30  ;;  %v1459_v58 = vsub.f32 %v12006_v61, %v8433_v20 }
 0x1be   : > { %v1380_v37 = vmul.f32 %v5162_v47, %v1364_v6  ;;  %v1427_v42 = vmul.f32 %v12152_v52, %v8777_v0  ;;  %v1460_v5 = vsub.f32 %v12006_v61, %v8451_v49  ;;  %v2499_v23 = vmul.f32 %v12153_v8, %v1283_v48 }
 0x1bf   : > { %v1395_v1 = vadd.f32 %v1379_v53, %v1323_v35  ;;  %5712 = vrot.lane.b32.xlu0 %v5711_v33, %s6041_s27  ;;  %v1428_v3 = vmul.f32 %v12152_v52, %v8781_v44  ;;  %v1483_v56 = vmul.f32 %v12012_v45, %v1459_v58  ;;  %v2500_v4 = vmul.f32 %v12153_v8, %v1284_v14 }
 0x1c0   : > { %v1396_v55 = vadd.f32 %v1380_v37, %v1324_v22  ;;  %v1443_v46 = vmul.f32 %v5161_v7, %v1427_v42  ;;  %v1484_v41 = vmul.f32 %v12012_v45, %v1460_v5  ;;  %v2539_v57 = vmul.f32 %v12111_v31, %v1459_v58  ;;  %v12155_v58 = vld [vmem:[#allocation42_spill] sm:$0xff] }
 0x1c1   : > { %v2515_v25 = vmul.f32 %v2499_v23, %v1395_v1  ;;  %v1444_v19 = vmul.f32 %v5162_v47, %v1428_v3  ;;  %v1499_v21 = vmul.f32 %v8490_v43, %v1483_v56  ;;  %v2540_v35 = vmul.f32 %v12111_v31, %v1460_v5  ;;  %v12154_v1 = vld [vmem:[#allocation83_spill] sm:$0xff]  ;;  %v12156_v23 = vld [vmem:[#allocation86_spill] sm:$0xff] }
 0x1c2   : > { %v2516_v6 = vmul.f32 %v2500_v4, %v1396_v55  ;;  %v1500_v22 = vmul.f32 %v8497_v11, %v1484_v41  ;;  %v2587_v53 = vmul.f32 %v12111_v31, %v8777_v0  ;;  %v2588_v33 = vmul.f32 %v12111_v31, %v8781_v44  ;;  %v12157_v55 = vld [vmem:[#allocation26_spill] sm:$0xff]  ;;  %v12158_v31 = vld [vmem:[#allocation87_spill] sm:$0xff] }
 0x1c3   : > { %v2627_v7 = vmul.f32 %v6681_v13, %v8531_v28  ;;  %v1515_v37 = vadd.f32 %v1499_v21, %v1443_v46  ;;  %v2628_v47 = vmul.f32 %v6681_v13, %v12154_v1  ;;  %v3299_v43 = vmul.f32 %v12155_v58, %v1283_v48 }
 0x1c4   : > { %v3300_v42 = vmul.f32 %v12155_v58, %v1284_v14  ;;  %v1516_v5 = vadd.f32 %v1500_v22, %v1444_v19  ;;  %v3339_v3 = vmul.f32 %v12157_v55, %v8531_v28  ;;  %v3340_v56 = vmul.f32 %v12157_v55, %v12154_v1  ;;  %v12159_v14 = vld [vmem:[#allocation40_spill] sm:$0xff] }
 0x1c5   : > { %v2643_v11 = vmul.f32 %v2627_v7, %v12156_v23  ;;  %v2555_v4 = vmul.f32 %v2539_v57, %v1515_v37  ;;  %v2603_v41 = vmul.f32 %v2587_v53, %v1515_v37  ;;  %v2644_v46 = vmul.f32 %v2628_v47, %v12158_v31 }
 0x1c6   : > { %vm1025_vm0 = vcmp.ge.f32.partialorder %v8433_v20, %v6213_v29  ;;  %v2556_v21 = vmul.f32 %v2540_v35, %v1516_v5  ;;  %v2604_v48 = vmul.f32 %v2588_v33, %v1516_v5  ;;  %vm1026_vm1 = vcmp.ge.f32.partialorder %v8451_v49, %v6213_v29 }
 0x1c7   : > { %vm1047_vm2 = vcmp.lt.f32.partialorder %v8433_v20, %v12159_v14  ;;  %v2571_v19 = vadd.f32 %v2555_v4, %v2515_v25  ;;  %v2659_v28 = vadd.f32 %v2643_v11, %v2603_v41  ;;  %vm1048_vm3 = vcmp.lt.f32.partialorder %v8451_v49, %v12159_v14 }
 0x1c8   : > { %vm1063_vm4 = vmand %vm1025_vm0, %vm1047_vm2  ;;  %v8826_v31 = vsub.f32 %v8433_v20, %v12026_v36  ;;  %v2572_v57 = vadd.f32 %v2556_v21, %v2516_v6  ;;  %v2660_v22 = vadd.f32 %v2644_v46, %v2604_v48  ;;  %v8833_v53 = vsub.f32 %v8451_v49, %v12026_v36 }
 0x1c9   : > { %vm1064_vm5 = vmand %vm1026_vm1, %vm1048_vm3  ;;  %v8829_v35 = vsel %vm1063_vm4, 1.0, %v11958_v32  ;;  %v3315_v25 = vmul.f32 %v3299_v43, %v2571_v19  ;;  %v3355_v33 = vmul.f32 %v3339_v3, %v2659_v28  ;;  %v2179_v5 = vsub.f32 %v12159_v14, %v8433_v20  ;;  %v12163_v19 = vld [vmem:[#allocation33_spill] sm:$0xff] }
 0x1ca   : > { %12160 = vst [vmem:[#allocation83_spill] sm:$0xff] %v8826_v31  ;;  %12161 = vst [vmem:[#allocation86_spill] sm:$0xff] %v8833_v53  ;;  %v8836_v7 = vsel %vm1064_vm5, 1.0, %v11958_v32  ;;  %v2147_v37 = vmul.f32 %v12030_v12, %v8826_v31  ;;  %v3316_v1 = vmul.f32 %v3300_v42, %v2572_v57  ;;  %v3356_v47 = vmul.f32 %v3340_v56, %v2660_v22  ;;  %v12162_v42 = vld [vmem:[#allocation27_spill] sm:$0xff] }
 0x1cb   : > { %v2148_v6 = vmul.f32 %v12030_v12, %v8833_v53  ;;  %v3371_v23 = vadd.f32 %v3355_v33, %v3315_v25  ;;  %v2180_v43 = vsub.f32 %v12159_v14, %v8451_v49  ;;  %v3027_v3 = vmul.f32 %v6470_v10, %v8688_v50 }
 0x1cc   : > { %v2163_v11 = vmul.f32 %v8697_v62, %v2147_v37  ;;  %v3372_v4 = vadd.f32 %v3356_v47, %v3316_v1  ;;  %v2203_v56 = vmul.f32 %v12162_v42, %v2179_v5  ;;  %v3028_v46 = vmul.f32 %v6470_v10, %v8692_v9 }
 0x1cd   : > { %v2164_v41 = vmul.f32 %v8704_v2, %v2148_v6  ;;  %v2204_v21 = vmul.f32 %v12162_v42, %v2180_v43  ;;  %v3043_v48 = vmul.f32 %v3027_v3, %v8720_v17  ;;  %v3067_v62 = vmul.f32 %v12163_v19, %v2179_v5  ;;  %v12164_v6 = vld [vmem:[#allocation32_spill] sm:$0xff] }
 0x1ce   : > { %v3068_v57 = vmul.f32 %v12163_v19, %v2180_v43  ;;  %v5716_v25 = vpack.i.bf16 %v3372_v4, %v3371_v23  ;;  %v2219_v33 = vmul.f32 %v8829_v35, %v2203_v56  ;;  %v3044_v37 = vmul.f32 %v3028_v46, %v8722_v38  ;;  %v12166_v46 = vld [vmem:[#allocation85_spill] sm:$0xff] }
 0x1cf   : > { %v3739_v2 = vmul.f32 %v6490_v54, %v8645_v34  ;;  %v2220_v1 = vmul.f32 %v8836_v7, %v2204_v21  ;;  %v3740_v47 = vmul.f32 %v6490_v54, %v8649_v60  ;;  %v3779_v58 = vmul.f32 %v12164_v6, %v2179_v5  ;;  %v12165_v60 = vld [vmem:[#allocation84_spill] sm:$0xff] }
 0x1d0   : > { %v3780_v17 = vmul.f32 %v12164_v6, %v2180_v43  ;;  %5717 = vrot.lane.b32.xlu1 %v5716_v25, %s6044_s9  ;;  %v2235_v3 = vadd.f32 %v2219_v33, %v2163_v11  ;;  %v3387_v38 = vmul.f32 %v12157_v55, %v8777_v0  ;;  %v3388_v34 = vmul.f32 %v12157_v55, %v8781_v44 }
 0x1d1   : > { %v3755_v23 = vmul.f32 %v3739_v2, %v8743_v59  ;;  %v8872_v4 = vadd.f32 %v2220_v1, %v2164_v41  ;;  %v3756_v56 = vmul.f32 %v3740_v47, %v8745_v39  ;;  %v3427_v5 = vmul.f32 %v12041_v16, %v12165_v60  ;;  %v12167_v41 = vld [vmem:[#allocation23_spill] sm:$0xff]  ;;  %v12170_v1 = vld [vmem:[#allocation46_spill] sm:$0xff]  ;;  %v5136_v60 = vld [vmem:[%s11554_s1 + $0xb] sm:$0x1] }
 0x1d2   : > { %v3428_v43 = vmul.f32 %v12041_v16, %v12166_v46  ;;  %v3083_v21 = vmul.f32 %v3067_v62, %v2235_v3  ;;  %v3403_v11 = vmul.f32 %v3387_v38, %v2659_v28  ;;  %v3404_v25 = vmul.f32 %v3388_v34, %v2660_v22 }
 0x1d3   : > { %vm1111_vm6 = vcmp.ge.f32.partialorder %v8433_v20, %v12159_v14  ;;  %v3084_v59 = vmul.f32 %v3068_v57, %v8872_v4  ;;  %v3443_v0 = vmul.f32 %v3427_v5, %v8627_v40  ;;  %vm1133_vm7 = vcmp.lt.f32.partialorder %v8433_v20, %v12167_v41 }
 0x1d4   : > { %v3444_v44 = vmul.f32 %v3428_v43, %v8629_v27  ;;  %v3099_v39 = vadd.f32 %v3083_v21, %v3043_v48  ;;  %vm1149_vm8 = vmand %vm1111_vm6, %vm1133_vm7  ;;  %v8888_v33 = vsub.f32 %v8433_v20, %v6213_v29  ;;  %v2299_v28 = vsub.f32 %v12167_v41, %v8433_v20  ;;  %v12171_v43 = vld [vmem:[#allocation47_spill] sm:$0xff] }
 0x1d5   : > { %v3115_v22 = vmul.f32 %v12163_v19, %v8826_v31  ;;  %v8894_v62 = vadd.f32 %v3084_v59, %v3044_v37  ;;  %v3459_v40 = vadd.f32 %v3443_v0, %v3403_v11  ;;  %v8897_v27 = vsel %vm1149_vm8, 1.0, %v11958_v32 }
 0x1d6   : > { %12168 = vst [vmem:[#allocation87_spill] sm:$0xff] %v8888_v33  ;;  %v3460_v57 = vadd.f32 %v3444_v44, %v3404_v25  ;;  %12169 = vst [vmem:[#allocation40_spill] sm:$0xff] %v8897_v27  ;;  %v3795_v48 = vmul.f32 %v3779_v58, %v3099_v39  ;;  %v2267_v2 = vmul.f32 %v12162_v42, %v8888_v33 }
 0x1d7   : > { %v2323_v47 = vmul.f32 %v12170_v1, %v2299_v28  ;;  %v3796_v38 = vmul.f32 %v3780_v17, %v8894_v62  ;;  %v3131_v34 = vmul.f32 %v3115_v22, %v2235_v3  ;;  %v3827_v37 = vmul.f32 %v12164_v6, %v8688_v50  ;;  %v12172_v17 = vld [vmem:[#allocation48_spill] sm:$0xff]  ;;  %v12173_v50 = vld [vmem:[#allocation5_spill] sm:$0xff] }
 0x1d8   : > { %v5726_v20 = vpack.i.bf16 %v3460_v57, %v3459_v40  ;;  %v3811_v5 = vadd.f32 %v3795_v48, %v3755_v23  ;;  %v2283_v46 = vmul.f32 %v8829_v35, %v2267_v2  ;;  %v3155_v21 = vmul.f32 %v12171_v43, %v2299_v28  ;;  %v5945_v3 = vld [vmem:[%s6187_s25] sm:$0xff]  ;;  %v5946_v35 = vld [vmem:[%s11554_s1 + $0xa] sm:$0x1]  ;;  %v5947_v57 = vld [vmem:[%s11554_s1 + $0x9] sm:$0x1] }
 0x1d9   : > { %v2339_v58 = vmul.f32 %v8897_v27, %v2323_v47  ;;  %v3812_v11 = vadd.f32 %v3796_v38, %v3756_v56  ;;  %v3867_v25 = vmul.f32 %v12172_v17, %v2299_v28  ;;  %vm1189_vm9 = vcmp.ge.f32.partialorder %v5945_v3, %v12167_v41  ;;  %v12175_v56 = vld [vmem:[#allocation24_spill] sm:$0xff] }
 0x1da   : > { %5727 = vrot.lane.b32.xlu1 %v5726_v20, %s6045_s10  ;;  %v8916_v59 = vrot.slane %v5136_v60, %v12173_v50  ;;  %v2363_v23 = vsub.f32 %v5945_v3, %v12159_v14  ;;  %v2427_v44 = vsub.f32 %v5136_v60, %v5946_v35  ;;  %v3195_v22 = vmul.f32 %v12171_v43, %v12175_v56  ;;  %v5949_v35 = vld [vmem:[%s6187_s25 + $0x8] sm:$0xff] }
 0x1db   : > { %v8918_v0 = vadd.f32 %v2339_v58, %v2283_v46  ;;  %v5721_v40 = vpack.i.bf16 %v3812_v11, %v3811_v5  ;;  %v3843_v28 = vmul.f32 %v3827_v37, %v3099_v39  ;;  %v3227_v48 = vsub.f32 %v5136_v60, %v5947_v57  ;;  %v12176_v39 = vld [vmem:[#allocation49_spill] sm:$0xff]  ;;  %v12177_v46 = vld [vmem:[#allocation11_spill] sm:$0xff] }
 0x1dc   : > { %vm1211_vm10 = vcmp.lt.f32.partialorder %v5945_v3, %v8916_v59  ;;  %v2379_v47 = vmul.f32 %v12170_v1, %v2363_v23  ;;  %v8933_v38 = vsub.f32 %v8916_v59, %v5945_v3  ;;  %v2432_v20 = vrot.slane %v2427_v44, %v12173_v50  ;;  %v12179_v44 = vld [vmem:[#allocation43_spill] sm:$0xff] }
 0x1dd   : > { %12174 = vst [vmem:[#allocation84_spill] sm:$0xff] %v8918_v0  ;;  %v3171_v2 = vmul.f32 %v3155_v21, %v8918_v0  ;;  %vm1227_vm11 = vmand %vm1189_vm9, %vm1211_vm10  ;;  %5722 = vrot.lane.b32.xlu0 %v5721_v40, %s6046_s11  ;;  %v8938_v37 = vmul.f32 %v3195_v22, %v12176_v39  ;;  %v3232_v5 = vrot.slane %v3227_v48, %v12173_v50  ;;  %v5948_v21 = vld [vmem:[%s11554_s1 + $0x8] sm:$0x1]  ;;  %v12181_v48 = vld [vmem:[#allocation44_spill] sm:$0xff] }
 0x1de   : > { %v3907_v58 = vmul.f32 %v12172_v17, %v12177_v46  ;;  %v3939_v11 = vsub.f32 %v5136_v60, %v5948_v21  ;;  %v8949_v3 = vsel %vm1227_vm11, 1.0, %v11958_v32  ;;  %5875 = vrcp.f32 %v2432_v20  ;;  %v12182_v20 = vld [vmem:[#allocation14_spill] sm:$0xff] }
 0x1df   : > { %v8946_v23 = vadd.f32 %v3171_v2, %v3131_v34  ;;  %vm1190_vm12 = vcmp.ge.f32.partialorder %v5949_v35, %v12167_v41  ;;  %v8954_v56 = vmul.f32 %v12179_v44, %v2379_v47  ;;  %5877 = vrcp.f32 %v3232_v5  ;;  %v12180_v34 = vld [vmem:[#allocation53_spill] sm:$0xff]  ;;  %v8991_v44 = vld [vmem:[%s6187_s25 + $0x58] sm:$0xff] }
 0x1e0   : > { %v3944_v22 = vrot.slane %v3939_v11, %v12173_v50  ;;  %vm1212_vm13 = vcmp.lt.f32.partialorder %v5949_v35, %v8916_v59  ;;  %v8960_v40 = vmul.f32 %v3907_v58, %v12180_v34  ;;  %v2364_v57 = vsub.f32 %v5949_v35, %v12159_v14  ;;  %v12183_v58 = vld [vmem:[#allocation50_spill] sm:$0xff] }
 0x1e1   : > { %12178 = vst [vmem:[#allocation85_spill] sm:$0xff] %v8946_v23  ;;  %v3883_v60 = vmul.f32 %v3867_v25, %v8946_v23  ;;  %vm1228_vm14 = vmand %vm1190_vm12, %vm1212_vm13  ;;  %v3196_v2 = vmul.f32 %v12171_v43, %v12181_v48  ;;  %v8966_v47 = vsub.f32 %v8916_v59, %v5949_v35  ;;  %v3908_v50 = vmul.f32 %v12172_v17, %v12182_v20  ;;  %v8973_v25 = vld [vmem:[%s6187_s25 + $0x50] sm:$0xff] }
 0x1e2   : > { %5879 = vrcp.f32 %v3944_v22  ;;  %vm1112_vm15 = vcmp.ge.f32.partialorder %v8451_v49, %v12159_v14  ;;  %v5298_v5 = vsel %vm1228_vm14, 1.0, %v11958_v32  ;;  %v2380_v46 = vmul.f32 %v12170_v1, %v2364_v57  ;;  %v12185_v22 = vld [vmem:[#allocation54_spill] sm:$0xff] }
 0x1e3   : > { %v3899_v39 = vadd.f32 %v3883_v60, %v3843_v28  ;;  %vm1134_vm0 = vcmp.lt.f32.partialorder %v8451_v49, %v12167_v41  ;;  %v8980_v21 = vmul.f32 %v3196_v2, %v12183_v58  ;;  %v8984_v11 = vsub.f32 %v8451_v49, %v6213_v29 }
 0x1e4   : > { %vm1150_vm1 = vmand %vm1112_vm15, %vm1134_vm0  ;;  %v2300_v35 = vsub.f32 %v12167_v41, %v8451_v49  ;;  %v3116_v28 = vmul.f32 %v12163_v19, %v8833_v53  ;;  %v8995_v60 = vmul.f32 %v3908_v50, %v12185_v22  ;;  %v3828_v57 = vmul.f32 %v12164_v6, %v8692_v9  ;;  %v12187_v49 = vld [vmem:[#allocation45_spill] sm:$0xff] }
 0x1e5   : > { %12184 = vst [vmem:[#allocation23_spill] sm:$0xff] %v8984_v11  ;;  %4411 = vrot.lane.b32.xlu0 %v3899_v39, %s6047_s17  ;;  %v8998_v34 = vsel %vm1150_vm1, 1.0, %v11958_v32  ;;  %vm511_vm2 = vcmp.ge.f32.partialorder %v8973_v25, %v6368_v63  ;;  %v2396_v48 = vmul.f32 %v12187_v49, %v2380_v46  ;;  %v2268_v2 = vmul.f32 %v12162_v42, %v8984_v11 }
 0x1e6   : > { %12186 = vst [vmem:[#allocation46_spill] sm:$0xff] %v8998_v34  ;;  %v2324_v20 = vmul.f32 %v12170_v1, %v2300_v35  ;;  %v3132_v39 = vmul.f32 %v3116_v28, %v8872_v4  ;;  %v3156_v50 = vmul.f32 %v12171_v43, %v2300_v35  ;;  %v3844_v58 = vmul.f32 %v3828_v57, %v8894_v62  ;;  %v12188_v28 = vld [vmem:[#allocation6_spill] sm:$0xff] }
 0x1e7   : > { %vm512_vm3 = vcmp.ge.f32.partialorder %v8991_v44, %v6368_v63  ;;  %vm533_vm4 = vcmp.lt.f32.partialorder %v8973_v25, %v12006_v61  ;;  %v2284_v9 = vmul.f32 %v8836_v7, %v2268_v2  ;;  %vm534_vm5 = vcmp.lt.f32.partialorder %v8991_v44, %v12006_v61 }
 0x1e8   : > { %v2340_v46 = vmul.f32 %v8998_v34, %v2324_v20  ;;  %vm549_vm6 = vmand %vm511_vm2, %vm533_vm4  ;;  %vm597_vm7 = vcmp.ge.f32.partialorder %v8973_v25, %v12006_v61  ;;  %v9021_v4 = vpop.eup %5875  ;;  %v3868_v62 = vmul.f32 %v12172_v17, %v2300_v35  ;;  %vm598_vm9 = vcmp.ge.f32.partialorder %v8991_v44, %v12006_v61 }
 0x1e9   : > { %vm550_vm8 = vmand %vm512_vm3, %vm534_vm5  ;;  %vm619_vm10 = vcmp.lt.f32.partialorder %v8973_v25, %v12188_v28  ;;  %vm620_vm11 = vcmp.lt.f32.partialorder %v8991_v44, %v12188_v28  ;;  %v9030_v7 = vpop.eup %5877  ;;  %v2435_v22 = vmul.f32 %v9021_v4, %v8933_v38  ;;  %v2436_v57 = vmul.f32 %v9021_v4, %v8966_v47 }
 0x1ea   : > { %v9036_v49 = vadd.f32 %v2340_v46, %v2284_v9  ;;  %v9039_v35 = vsel %vm549_vm6, 1.0, %v11958_v32  ;;  %vm635_vm12 = vmand %vm597_vm7, %vm619_vm10  ;;  %v3235_v2 = vmul.f32 %v9030_v7, %v8933_v38  ;;  %v3236_v20 = vmul.f32 %v9030_v7, %v8966_v47 }
 0x1eb   : > { %12190 = vst [vmem:[#allocation48_spill] sm:$0xff] %v9039_v35  ;;  %v9046_v34 = vsel %vm550_vm8, 1.0, %v11958_v32  ;;  %vm636_vm13 = vmand %vm598_vm9, %vm620_vm11  ;;  %vm683_vm14 = vcmp.ge.f32.partialorder %v8973_v25, %v12188_v28  ;;  %v2451_v9 = vmul.f32 %v8949_v3, %v2435_v22  ;;  %v2452_v46 = vmul.f32 %v5298_v5, %v2436_v57 }
 0x1ec   : > { %12189 = vst [vmem:[#allocation47_spill] sm:$0xff] %v9036_v49  ;;  %12191 = vst [vmem:[#allocation5_spill] sm:$0xff] %v9046_v34  ;;  %v9050_v53 = vpop.eup %5879  ;;  %v3172_v23 = vmul.f32 %v3156_v50, %v9036_v49  ;;  %v5195_v11 = vsel %vm635_vm12, 1.0, %v11958_v32  ;;  %v5196_v0 = vsel %vm636_vm13, 1.0, %v11958_v32  ;;  %vm684_vm15 = vcmp.ge.f32.partialorder %v8991_v44, %v12188_v28  ;;  %v12193_v50 = vld [vmem:[#allocation8_spill] sm:$0xff] }
 0x1ed   : > { %v3947_v27 = vmul.f32 %v9050_v53, %v8933_v38  ;;  %vm705_vm0 = vcmp.lt.f32.partialorder %v8973_v25, %v12137_v24  ;;  %v2467_v31 = vadd.f32 %v2451_v9, %v8954_v56  ;;  %v2468_v33 = vadd.f32 %v2452_v46, %v2396_v48 }
 0x1ee   : > { %v9063_v3 = vadd.f32 %v3172_v23, %v3132_v39  ;;  %vm706_vm1 = vcmp.lt.f32.partialorder %v8991_v44, %v12137_v24  ;;  %vm721_vm2 = vmand %vm683_vm14, %vm705_vm0  ;;  %v3948_v38 = vmul.f32 %v9050_v53, %v8966_v47  ;;  %vm769_vm4 = vcmp.ge.f32.partialorder %v8973_v25, %v12137_v24 }
 0x1ef   : > { %vm722_vm3 = vmand %vm684_vm15, %vm706_vm1  ;;  %v5211_v5 = vsel %vm721_vm2, 1.0, %v11958_v32  ;;  %vm791_vm5 = vcmp.lt.f32.partialorder %v8973_v25, %v12193_v50  ;;  %v3251_v56 = vmul.f32 %v3235_v2, %v2467_v31  ;;  %v3252_v48 = vmul.f32 %v3236_v20, %v2468_v33 }
 0x1f0   : > { %12192 = vst [vmem:[#allocation24_spill] sm:$0xff] %v9063_v3  ;;  %v3884_v23 = vmul.f32 %v3868_v62, %v9063_v3  ;;  %vm770_vm6 = vcmp.ge.f32.partialorder %v8991_v44, %v12137_v24  ;;  %vm807_vm7 = vmand %vm769_vm4, %vm791_vm5  ;;  %v5212_v39 = vsel %vm722_vm3, 1.0, %v11958_v32  ;;  %vm792_vm8 = vcmp.lt.f32.partialorder %v8991_v44, %v12193_v50 }
 0x1f1   : > { %v9082_v47 = vsub.f32 %v8973_v25, %v6368_v63  ;;  %v9086_v22 = vsub.f32 %v8991_v44, %v6368_v63  ;;  %v3267_v31 = vadd.f32 %v3251_v56, %v8938_v37  ;;  %v3268_v33 = vadd.f32 %v3252_v48, %v8980_v21  ;;  %v12196_v56 = vld [vmem:[#allocation31_spill] sm:$0xff]  ;;  %vm9117_vm9 = vmand %vm770_vm6, %vm792_vm8 }
 0x1f2   : > { %v9091_v62 = vsel %vm807_vm7, 1.0, %v11958_v32  ;;  %v9095_v57 = vsub.f32 %v12188_v28, %v8973_v25  ;;  %v3900_v2 = vadd.f32 %v3884_v23, %v3844_v58  ;;  %v9103_v46 = vsub.f32 %v12188_v28, %v8991_v44 }
 0x1f3   : > { %v1549_v20 = vmul.f32 %v12012_v45, %v9082_v47  ;;  %v1550_v9 = vmul.f32 %v12012_v45, %v9086_v22  ;;  %v3963_v37 = vmul.f32 %v3947_v27, %v3267_v31  ;;  %v3964_v21 = vmul.f32 %v3948_v38, %v3268_v33 }
 0x1f4   : > { %12194 = vst [vmem:[#allocation49_spill] sm:$0xff] %v9095_v57  ;;  %12195 = vst [vmem:[#allocation11_spill] sm:$0xff] %v9103_v46  ;;  %v1605_v48 = vmul.f32 %v12196_v56, %v9095_v57  ;;  %v9109_v3 = vsub.f32 %v8973_v25, %v12006_v61  ;;  %v1606_v23 = vmul.f32 %v12196_v56, %v9103_v46  ;;  %v12204_v46 = vld [vmem:[#allocation16_spill] sm:$0xff] }
 0x1f5   : > { %v1565_v27 = vmul.f32 %v9039_v35, %v1549_v20  ;;  %v1566_v38 = vmul.f32 %v9046_v34, %v1550_v9  ;;  %v9127_v31 = vsub.f32 %v8991_v44, %v12006_v61  ;;  %v3979_v33 = vadd.f32 %v3963_v37, %v8960_v40 }
 0x1f6   : > { %v3980_v49 = vadd.f32 %v3964_v21, %v8995_v60  ;;  %v1621_v6 = vmul.f32 %v5195_v11, %v1605_v48  ;;  %v1669_v19 = vmul.f32 %v12196_v56, %v9109_v3  ;;  %v1622_v42 = vmul.f32 %v5196_v0, %v1606_v23 }
 0x1f7   : > { %v1670_v20 = vmul.f32 %v12196_v56, %v9127_v31  ;;  %v9137_v9 = vsub.f32 %v12137_v24, %v8973_v25  ;;  %v9141_v55 = vsub.f32 %v12137_v24, %v8991_v44  ;;  %4459 = vrot.lane.b32.xlu1 %v3979_v33, %s6048_s7  ;;  %v9148_v40 = vsel %vm9117_vm9, 1.0, %v11958_v32  ;;  %v12203_v56 = vld [vmem:[#allocation15_spill] sm:$0xff] }
 0x1f8   : > { %4461 = vrot.lane.b32.xlu0 %v3980_v49, %s6048_s7  ;;  %v9150_v60 = vadd.f32 %v1621_v6, %v1565_v27  ;;  %v1685_v37 = vmul.f32 %v5195_v11, %v1669_v19  ;;  %v9154_v21 = vsub.f32 %v8973_v25, %v12188_v28  ;;  %v9156_v48 = vadd.f32 %v1622_v42, %v1566_v38 }
 0x1f9   : > { %12199 = vst [vmem:[#allocation43_spill] sm:$0xff] %v9137_v9  ;;  %12200 = vst [vmem:[#allocation53_spill] sm:$0xff] %v9141_v55  ;;  %v1686_v23 = vmul.f32 %v5196_v0, %v1670_v20  ;;  %v1725_v33 = vmul.f32 %v12203_v56, %v9137_v9  ;;  %v1726_v49 = vmul.f32 %v12203_v56, %v9141_v55 }
 0x1fa   : > { %12201 = vst [vmem:[#allocation44_spill] sm:$0xff] %v9150_v60  ;;  %12202 = vst [vmem:[#allocation14_spill] sm:$0xff] %v9156_v48  ;;  %v9164_v58 = vsub.f32 %v8991_v44, %v12188_v28  ;;  %v1789_v19 = vmul.f32 %v12203_v56, %v9154_v21  ;;  %v1821_v6 = vsub.f32 %v12193_v50, %v8973_v25 }
 0x1fb   : > { %v1822_v42 = vsub.f32 %v12193_v50, %v8991_v44  ;;  %v1741_v0 = vmul.f32 %v5211_v5, %v1725_v33  ;;  %v1742_v11 = vmul.f32 %v5212_v39, %v1726_v49  ;;  %v2677_v27 = vmul.f32 %v6681_v13, %v9082_v47  ;;  %4413 = vrot.lane.b32.xlu1 %v3900_v2, %s6047_s17  ;;  %v12205_v2 = vld [vmem:[#allocation37_spill] sm:$0xff] }
 0x1fc   : > { %v2678_v38 = vmul.f32 %v6681_v13, %v9086_v22  ;;  %v1790_v20 = vmul.f32 %v12203_v56, %v9164_v58  ;;  %v1805_v28 = vmul.f32 %v5211_v5, %v1789_v19  ;;  %v1845_v57 = vmul.f32 %v12204_v46, %v1821_v6 }
 0x1fd   : > { %v1846_v34 = vmul.f32 %v12204_v46, %v1822_v42  ;;  %v1757_v35 = vadd.f32 %v1741_v0, %v1685_v37  ;;  %v1758_v8 = vadd.f32 %v1742_v11, %v1686_v23  ;;  %v2693_v33 = vmul.f32 %v2677_v27, %v9150_v60  ;;  %v12206_v23 = vld [vmem:[#allocation19_spill] sm:$0xff] }
 0x1fe   : > { %v2694_v49 = vmul.f32 %v2678_v38, %v9156_v48  ;;  %v1806_v45 = vmul.f32 %v5212_v39, %v1790_v20  ;;  %v1861_v61 = vmul.f32 %v9091_v62, %v1845_v57  ;;  %v2717_v52 = vmul.f32 %v12205_v2, %v9137_v9 }
 0x1ff   : > { %v1862_v13 = vmul.f32 %v9148_v40, %v1846_v34  ;;  %v2718_v5 = vmul.f32 %v12205_v2, %v9141_v55  ;;  %v2765_v19 = vmul.f32 %v12205_v2, %v9109_v3  ;;  %v2766_v37 = vmul.f32 %v12205_v2, %v9127_v31 }
 0x200   : > { %v2805_v0 = vmul.f32 %v12206_v23, %v1821_v6  ;;  %v1877_v11 = vadd.f32 %v1861_v61, %v1805_v28  ;;  %v2733_v27 = vmul.f32 %v2717_v52, %v1757_v35  ;;  %v2806_v57 = vmul.f32 %v12206_v23, %v1822_v42  ;;  %v12208_v61 = vld [vmem:[#allocation39_spill] sm:$0xff] }
 0x201   : > { %v1878_v39 = vadd.f32 %v1862_v13, %v1806_v45  ;;  %v2734_v34 = vmul.f32 %v2718_v5, %v1758_v8  ;;  %v2781_v38 = vmul.f32 %v2765_v19, %v1757_v35  ;;  %v2782_v20 = vmul.f32 %v2766_v37, %v1758_v8 }
 0x202   : > { %v3477_v56 = vmul.f32 %v12041_v16, %v9082_v47  ;;  %v9197_v55 = vadd.f32 %v2733_v27, %v2693_v33  ;;  %v2821_v9 = vmul.f32 %v2805_v0, %v1877_v11  ;;  %v3478_v2 = vmul.f32 %v12041_v16, %v9086_v22  ;;  %v12209_v27 = vld [vmem:[#allocation17_spill] sm:$0xff] }
 0x203   : > { %v2822_v48 = vmul.f32 %v2806_v57, %v1878_v39  ;;  %v9201_v60 = vadd.f32 %v2734_v34, %v2694_v49  ;;  %v3517_v13 = vmul.f32 %v12208_v61, %v1821_v6  ;;  %v3518_v45 = vmul.f32 %v12208_v61, %v1822_v42 }
 0x204   : > { %vm855_vm10 = vcmp.ge.f32.partialorder %v8973_v25, %v12193_v50  ;;  %v2837_v52 = vadd.f32 %v2821_v9, %v2781_v38  ;;  %v3493_v28 = vmul.f32 %v3477_v56, %v9197_v55  ;;  %vm856_vm11 = vcmp.ge.f32.partialorder %v8991_v44, %v12193_v50 }
 0x205   : > { %12207 = vst [vmem:[#allocation50_spill] sm:$0xff] %v9201_v60  ;;  %v2838_v8 = vadd.f32 %v2822_v48, %v2782_v20  ;;  %v3494_v35 = vmul.f32 %v3478_v2, %v9201_v60  ;;  %vm877_vm12 = vcmp.lt.f32.partialorder %v8973_v25, %v12026_v36  ;;  %vm878_vm13 = vcmp.lt.f32.partialorder %v8991_v44, %v12026_v36 }
 0x206   : > { %v9217_v47 = vsub.f32 %v8973_v25, %v12137_v24  ;;  %v3533_v22 = vmul.f32 %v3517_v13, %v2837_v52  ;;  %vm893_vm14 = vmand %vm855_vm10, %vm877_vm12  ;;  %v9221_v56 = vsub.f32 %v8991_v44, %v12137_v24  ;;  %v1941_v48 = vsub.f32 %v12026_v36, %v8973_v25 }
 0x207   : > { %v3534_v9 = vmul.f32 %v3518_v45, %v2838_v8  ;;  %vm894_vm15 = vmand %vm856_vm11, %vm878_vm13  ;;  %v5243_v6 = vsel %vm893_vm14, 1.0, %v11958_v32  ;;  %v1942_v33 = vsub.f32 %v12026_v36, %v8991_v44  ;;  %v2853_v49 = vmul.f32 %v12206_v23, %v9154_v21 }
 0x208   : > { %v1909_v42 = vmul.f32 %v12204_v46, %v9217_v47  ;;  %v3549_v2 = vadd.f32 %v3533_v22, %v3493_v28  ;;  %v5244_v19 = vsel %vm894_vm15, 1.0, %v11958_v32  ;;  %v1910_v37 = vmul.f32 %v12204_v46, %v9221_v56 }
 0x209   : > { %v3550_v5 = vadd.f32 %v3534_v9, %v3494_v35  ;;  %v1965_v57 = vmul.f32 %v12209_v27, %v1941_v48  ;;  %v1966_v34 = vmul.f32 %v12209_v27, %v1942_v33  ;;  %v2854_v38 = vmul.f32 %v12206_v23, %v9164_v58 }
 0x20a   : > { %v1925_v0 = vmul.f32 %v9091_v62, %v1909_v42  ;;  %v1926_v13 = vmul.f32 %v9148_v40, %v1910_v37  ;;  %v2869_v45 = vmul.f32 %v2853_v49, %v1877_v11  ;;  %v2893_v28 = vmul.f32 %v12028_v18, %v1941_v48 }
 0x20b   : > { %v5731_v20 = vpack.i.bf16 %v3550_v5, %v3549_v2  ;;  %v1981_v35 = vmul.f32 %v5243_v6, %v1965_v57  ;;  %v1982_v22 = vmul.f32 %v5244_v19, %v1966_v34  ;;  %v2870_v9 = vmul.f32 %v2854_v38, %v1878_v39 }
 0x20c   : > { %v2894_v46 = vmul.f32 %v12028_v18, %v1942_v33  ;;  %v3565_v62 = vmul.f32 %v12208_v61, %v9109_v3  ;;  %v3566_v42 = vmul.f32 %v12208_v61, %v9127_v31  ;;  %v3605_v2 = vmul.f32 %v12029_v51, %v1941_v48 }
 0x20d   : > { %5732 = vrot.lane.b32.xlu0 %v5731_v20, %s6042_s5  ;;  %v3606_v40 = vmul.f32 %v12029_v51, %v1942_v33  ;;  %v1997_v11 = vadd.f32 %v1981_v35, %v1925_v0  ;;  %v1998_v49 = vadd.f32 %v1982_v22, %v1926_v13  ;;  %vm941_vm0 = vcmp.ge.f32.partialorder %v8973_v25, %v12026_v36 }
 0x20e   : > { %vm942_vm1 = vcmp.ge.f32.partialorder %v8991_v44, %v12026_v36  ;;  %v3581_v39 = vmul.f32 %v3565_v62, %v2837_v52  ;;  %v3582_v5 = vmul.f32 %v3566_v42, %v2838_v8  ;;  %vm963_vm2 = vcmp.lt.f32.partialorder %v8973_v25, %v6213_v29 }
 0x20f   : > { %vm964_vm3 = vcmp.lt.f32.partialorder %v8991_v44, %v6213_v29  ;;  %v2909_v3 = vmul.f32 %v2893_v28, %v1997_v11  ;;  %v2910_v31 = vmul.f32 %v2894_v46, %v1998_v49  ;;  %vm979_vm4 = vmand %vm941_vm0, %vm963_vm2  ;;  %v9260_v48 = vsub.f32 %v8973_v25, %v12193_v50 }
 0x210   : > { %v9264_v33 = vsub.f32 %v8991_v44, %v12193_v50  ;;  %vm980_vm5 = vmand %vm942_vm1, %vm964_vm3  ;;  %v9267_v52 = vsel %vm979_vm4, 1.0, %v11958_v32  ;;  %v2061_v8 = vsub.f32 %v6213_v29, %v8973_v25  ;;  %v2062_v37 = vsub.f32 %v6213_v29, %v8991_v44 }
 0x211   : > { %v2941_v46 = vmul.f32 %v12028_v18, %v9217_v47  ;;  %v2925_v0 = vadd.f32 %v2909_v3, %v2869_v45  ;;  %v2926_v57 = vadd.f32 %v2910_v31, %v2870_v9  ;;  %v9276_v34 = vsel %vm980_vm5, 1.0, %v11958_v32 }
 0x212   : > { %v2029_v38 = vmul.f32 %v12209_v27, %v9260_v48  ;;  %v2030_v20 = vmul.f32 %v12209_v27, %v9264_v33  ;;  %v2085_v13 = vmul.f32 %v12030_v12, %v2061_v8  ;;  %v2086_v28 = vmul.f32 %v12030_v12, %v2062_v37 }
 0x213   : > { %v2942_v35 = vmul.f32 %v12028_v18, %v9221_v56  ;;  %v3621_v22 = vmul.f32 %v3605_v2, %v2925_v0  ;;  %v3622_v62 = vmul.f32 %v3606_v40, %v2926_v57  ;;  %v2957_v9 = vmul.f32 %v2941_v46, %v1997_v11 }
 0x214   : > { %v2045_v45 = vmul.f32 %v5243_v6, %v2029_v38  ;;  %v2046_v42 = vmul.f32 %v5244_v19, %v2030_v20  ;;  %v2101_v3 = vmul.f32 %v9267_v52, %v2085_v13  ;;  %v2102_v31 = vmul.f32 %v9276_v34, %v2086_v28  ;;  %v12212_v13 = vld [vmem:[#allocation55_spill] sm:$0xff] }
 0x215   : > { %v2958_v61 = vmul.f32 %v2942_v35, %v1998_v49  ;;  %v3637_v23 = vadd.f32 %v3621_v22, %v3581_v39  ;;  %v3638_v27 = vadd.f32 %v3622_v62, %v3582_v5  ;;  %v2981_v50 = vmul.f32 %v6470_v10, %v2061_v8  ;;  %v5950_v49 = vld [vmem:[%s6187_s25 + $0x10] sm:$0xff]  ;;  %v12213_v62 = vld [vmem:[#allocation60_spill] sm:$0xff] }
 0x216   : > { %v2982_v24 = vmul.f32 %v6470_v10, %v2062_v37  ;;  %v9290_v60 = vadd.f32 %v2101_v3, %v2045_v45  ;;  %v9292_v18 = vadd.f32 %v2102_v31, %v2046_v42  ;;  %v3653_v6 = vmul.f32 %v12029_v51, %v9154_v21 }
 0x217   : > { %v3654_v19 = vmul.f32 %v12029_v51, %v9164_v58  ;;  %v5736_v2 = vpack.i.bf16 %v3638_v27, %v3637_v23  ;;  %v3693_v40 = vmul.f32 %v6490_v54, %v2061_v8  ;;  %v3694_v11 = vmul.f32 %v6490_v54, %v2062_v37  ;;  %v12210_v23 = vld [vmem:[#allocation51_spill] sm:$0xff] }
 0x218   : > { %vm1191_vm6 = vcmp.ge.f32.partialorder %v5950_v49, %v12167_v41  ;;  %v2997_v39 = vmul.f32 %v2981_v50, %v9290_v60  ;;  %v2998_v5 = vmul.f32 %v2982_v24, %v9292_v18  ;;  %v3669_v46 = vmul.f32 %v3653_v6, %v2925_v0  ;;  %v12211_v50 = vld [vmem:[#allocation57_spill] sm:$0xff] }
 0x219   : > { %v3670_v38 = vmul.f32 %v3654_v19, %v2926_v57  ;;  %5737 = vrot.lane.b32.xlu1 %v5736_v2, %s6043_s6  ;;  %vm1213_vm7 = vcmp.lt.f32.partialorder %v5950_v49, %v8916_v59  ;;  %v2365_v21 = vsub.f32 %v5950_v49, %v12159_v14  ;;  %v2413_v58 = vsub.f32 %v8916_v59, %v5950_v49 }
 0x21a   : > { %v3197_v27 = vmul.f32 %v12171_v43, %v12210_v23  ;;  %v9310_v8 = vadd.f32 %v2997_v39, %v2957_v9  ;;  %v9312_v37 = vadd.f32 %v2998_v5, %v2958_v61  ;;  %vm1229_vm8 = vmand %vm1191_vm6, %vm1213_vm7  ;;  %v3909_v24 = vmul.f32 %v12172_v17, %v12211_v50  ;;  %v12214_v9 = vld [vmem:[#allocation52_spill] sm:$0xff] }
 0x21b   : > { %vm339_vm9 = vcmp.ge.f32.partialorder %v8973_v25, %v12031_v15  ;;  %v5299_v0 = vsel %vm1229_vm8, 1.0, %v11958_v32  ;;  %v2381_v57 = vmul.f32 %v12170_v1, %v2365_v21  ;;  %v2437_v20 = vmul.f32 %v9021_v4, %v2413_v58 }
 0x21c   : > { %v3213_v28 = vmul.f32 %v3197_v27, %v12212_v13  ;;  %v3709_v35 = vmul.f32 %v3693_v40, %v9310_v8  ;;  %v3710_v61 = vmul.f32 %v3694_v11, %v9312_v37  ;;  %v3237_v22 = vmul.f32 %v9030_v7, %v2413_v58 }
 0x21d   : > { %v3925_v45 = vmul.f32 %v3909_v24, %v12213_v62  ;;  %v2397_v42 = vmul.f32 %v12214_v9, %v2381_v57  ;;  %v2453_v3 = vmul.f32 %v5299_v0, %v2437_v20  ;;  %v3949_v31 = vmul.f32 %v9050_v53, %v2413_v58  ;;  %v12215_v57 = vld [vmem:[#allocation41_spill] sm:$0xff] }
 0x21e   : > { %vm340_vm10 = vcmp.ge.f32.partialorder %v8991_v44, %v12031_v15  ;;  %v3725_v6 = vadd.f32 %v3709_v35, %v3669_v46  ;;  %v3726_v19 = vadd.f32 %v3710_v61, %v3670_v38  ;;  %vm361_vm11 = vcmp.lt.f32.partialorder %v8973_v25, %v6625_v30 }
 0x21f   : > { %vm362_vm12 = vcmp.lt.f32.partialorder %v8991_v44, %v6625_v30  ;;  %v2469_v2 = vadd.f32 %v2453_v3, %v2397_v42  ;;  %vm377_vm13 = vmand %vm339_vm9, %vm361_vm11  ;;  %vm425_vm14 = vcmp.ge.f32.partialorder %v8973_v25, %v6625_v30  ;;  %vm426_vm15 = vcmp.ge.f32.partialorder %v8991_v44, %v6625_v30 }
 0x220   : > { %vm447_vm0 = vcmp.lt.f32.partialorder %v8973_v25, %v6368_v63  ;;  %v5741_v40 = vpack.i.bf16 %v3726_v19, %v3725_v6  ;;  %vm378_vm1 = vmand %vm340_vm10, %vm362_vm12  ;;  %v5147_v11 = vsel %vm377_vm13, 1.0, %v11958_v32  ;;  %vm448_vm2 = vcmp.lt.f32.partialorder %v8991_v44, %v6368_v63 }
 0x221   : > { %v1285_v49 = vsub.f32 %v8973_v25, %v12031_v15  ;;  %v3253_v39 = vmul.f32 %v3237_v22, %v2469_v2  ;;  %v5148_v5 = vsel %vm378_vm1, 1.0, %v11958_v32  ;;  %vm463_vm3 = vmand %vm425_vm14, %vm447_vm0  ;;  %v1286_v46 = vsub.f32 %v8991_v44, %v12031_v15 }
 0x222   : > { %v1341_v38 = vsub.f32 %v6368_v63, %v8973_v25  ;;  %5742 = vrot.lane.b32.xlu0 %v5741_v40, %s6041_s27  ;;  %vm464_vm4 = vmand %vm426_vm15, %vm448_vm2  ;;  %v5163_v21 = vsel %vm463_vm3, 1.0, %v11958_v32  ;;  %v1342_v23 = vsub.f32 %v6368_v63, %v8991_v44  ;;  %v9360_v27 = vsub.f32 %v8973_v25, %v6625_v30 }
 0x223   : > { %v1309_v58 = vmul.f32 %v12070_v26, %v1285_v49  ;;  %v3269_v50 = vadd.f32 %v3253_v39, %v3213_v28  ;;  %v5164_v24 = vsel %vm464_vm4, 1.0, %v11958_v32  ;;  %v1310_v0 = vmul.f32 %v12070_v26, %v1286_v46  ;;  %v12216_v28 = vld [vmem:[#allocation13_spill] sm:$0xff] }
 0x224   : > { %v1365_v20 = vmul.f32 %v12215_v57, %v1341_v38  ;;  %v1366_v35 = vmul.f32 %v12215_v57, %v1342_v23  ;;  %v9368_v61 = vsub.f32 %v8991_v44, %v6625_v30  ;;  %v1429_v22 = vmul.f32 %v12215_v57, %v9360_v27  ;;  %v12217_v38 = vld [vmem:[#allocation30_spill] sm:$0xff]  ;;  %v12218_v23 = vld [vmem:[#allocation35_spill] sm:$0xff] }
 0x225   : > { %v1325_v13 = vmul.f32 %v5147_v11, %v1309_v58  ;;  %v3965_v62 = vmul.f32 %v3949_v31, %v3269_v50  ;;  %v1326_v9 = vmul.f32 %v5148_v5, %v1310_v0  ;;  %v1461_v3 = vsub.f32 %v12216_v28, %v8973_v25  ;;  %v12224_v30 = vld [vmem:[#allocation11_spill] sm:$0xff] }
 0x226   : > { %v1381_v42 = vmul.f32 %v5163_v21, %v1365_v20  ;;  %v1382_v6 = vmul.f32 %v5164_v24, %v1366_v35  ;;  %v1430_v19 = vmul.f32 %v12215_v57, %v9368_v61  ;;  %v1445_v2 = vmul.f32 %v5163_v21, %v1429_v22  ;;  %v12219_v20 = vld [vmem:[#allocation48_spill] sm:$0xff] }
 0x227   : > { %v1462_v40 = vsub.f32 %v12216_v28, %v8991_v44  ;;  %v3981_v11 = vadd.f32 %v3965_v62, %v3925_v45  ;;  %v1485_v58 = vmul.f32 %v12217_v38, %v1461_v3  ;;  %v2501_v26 = vmul.f32 %v12218_v23, %v1285_v49  ;;  %v12220_v22 = vld [vmem:[#allocation36_spill] sm:$0xff] }
 0x228   : > { %v1397_v39 = vadd.f32 %v1381_v42, %v1325_v13  ;;  %v1398_v31 = vadd.f32 %v1382_v6, %v1326_v9  ;;  %v1446_v5 = vmul.f32 %v5164_v24, %v1430_v19  ;;  %v2502_v0 = vmul.f32 %v12218_v23, %v1286_v46  ;;  %v12221_v13 = vld [vmem:[#allocation5_spill] sm:$0xff]  ;;  %v12223_v23 = vld [vmem:[#allocation34_spill] sm:$0xff] }
 0x229   : > { %v1486_v50 = vmul.f32 %v12217_v38, %v1462_v40  ;;  %4463 = vrot.lane.b32.xlu1 %v3981_v11, %s6048_s7  ;;  %v1501_v35 = vmul.f32 %v12219_v20, %v1485_v58  ;;  %v2541_v57 = vmul.f32 %v12220_v22, %v1461_v3  ;;  %v2542_v45 = vmul.f32 %v12220_v22, %v1462_v40  ;;  %v12222_v19 = vld [vmem:[#allocation49_spill] sm:$0xff] }
 0x22a   : > { %v2517_v21 = vmul.f32 %v2501_v26, %v1397_v39  ;;  %v2518_v42 = vmul.f32 %v2502_v0, %v1398_v31  ;;  %v2589_v9 = vmul.f32 %v12220_v22, %v9360_v27  ;;  %v2590_v24 = vmul.f32 %v12220_v22, %v9368_v61  ;;  %v12225_v39 = vld [vmem:[#allocation42_spill] sm:$0xff] }
 0x22b   : > { %v1502_v62 = vmul.f32 %v12221_v13, %v1486_v50  ;;  %v1517_v6 = vadd.f32 %v1501_v35, %v1445_v2  ;;  %v2629_v11 = vmul.f32 %v12223_v23, %v12222_v19  ;;  %v2630_v26 = vmul.f32 %v12223_v23, %v12224_v30  ;;  %v12226_v31 = vld [vmem:[#allocation26_spill] sm:$0xff]  ;;  %v12227_v2 = vld [vmem:[#allocation44_spill] sm:$0xff] }
 0x22c   : > { %v3301_v3 = vmul.f32 %v12225_v39, %v1285_v49  ;;  %v3302_v40 = vmul.f32 %v12225_v39, %v1286_v46  ;;  %v3341_v50 = vmul.f32 %v12226_v31, %v12222_v19  ;;  %v3342_v0 = vmul.f32 %v12226_v31, %v12224_v30  ;;  %v12228_v22 = vld [vmem:[#allocation14_spill] sm:$0xff] }
 0x22d   : > { %v1518_v58 = vadd.f32 %v1502_v62, %v1446_v5  ;;  %v2557_v20 = vmul.f32 %v2541_v57, %v1517_v6  ;;  %v2605_v13 = vmul.f32 %v2589_v9, %v1517_v6  ;;  %v2645_v35 = vmul.f32 %v2629_v11, %v12227_v2  ;;  %v12231_v11 = vld [vmem:[#allocation27_spill] sm:$0xff]  ;;  %v12232_v2 = vld [vmem:[#allocation33_spill] sm:$0xff] }
 0x22e   : > { %v2646_v15 = vmul.f32 %v2630_v26, %v12228_v22  ;;  %vm1027_vm5 = vcmp.ge.f32.partialorder %v8973_v25, %v6213_v29  ;;  %vm1028_vm6 = vcmp.ge.f32.partialorder %v8991_v44, %v6213_v29  ;;  %vm1049_vm7 = vcmp.lt.f32.partialorder %v8973_v25, %v12159_v14 }
 0x22f   : > { %v2558_v51 = vmul.f32 %v2542_v45, %v1518_v58  ;;  %v2606_v38 = vmul.f32 %v2590_v24, %v1518_v58  ;;  %v2573_v49 = vadd.f32 %v2557_v20, %v2517_v21  ;;  %v9407_v46 = vadd.f32 %v2645_v35, %v2605_v13  ;;  %vm1065_vm9 = vmand %vm1027_vm5, %vm1049_vm7 }
 0x230   : > { %vm1050_vm8 = vcmp.lt.f32.partialorder %v8991_v44, %v12159_v14  ;;  %v9417_v5 = vsub.f32 %v8973_v25, %v12026_v36  ;;  %v9421_v22 = vsub.f32 %v8991_v44, %v12026_v36  ;;  %v9425_v62 = vsel %vm1065_vm9, 1.0, %v11958_v32 }
 0x231   : > { %v2574_v30 = vadd.f32 %v2558_v51, %v2518_v42  ;;  %v9413_v57 = vadd.f32 %v2646_v15, %v2606_v38  ;;  %v3317_v21 = vmul.f32 %v3301_v3, %v2573_v49  ;;  %v3357_v45 = vmul.f32 %v3341_v50, %v9407_v46  ;;  %vm1066_vm10 = vmand %vm1028_vm6, %vm1050_vm8 }
 0x232   : > { %12229 = vst [vmem:[#allocation54_spill] sm:$0xff] %v9417_v5  ;;  %12230 = vst [vmem:[#allocation45_spill] sm:$0xff] %v9421_v22  ;;  %v2181_v51 = vsub.f32 %v12159_v14, %v8973_v25  ;;  %v9431_v42 = vsel %vm1066_vm10, 1.0, %v11958_v32  ;;  %v2149_v9 = vmul.f32 %v12030_v12, %v9417_v5  ;;  %v2150_v6 = vmul.f32 %v12030_v12, %v9421_v22 }
 0x233   : > { %v3318_v15 = vmul.f32 %v3302_v40, %v2574_v30  ;;  %v3358_v38 = vmul.f32 %v3342_v0, %v9413_v57  ;;  %v3373_v24 = vadd.f32 %v3357_v45, %v3317_v21  ;;  %v2182_v19 = vsub.f32 %v12159_v14, %v8991_v44 }
 0x234   : > { %v2205_v26 = vmul.f32 %v12231_v11, %v2181_v51  ;;  %v2165_v58 = vmul.f32 %v9267_v52, %v2149_v9  ;;  %v3029_v40 = vmul.f32 %v6470_v10, %v9260_v48  ;;  %v3030_v50 = vmul.f32 %v6470_v10, %v9264_v33  ;;  %v12233_v9 = vld [vmem:[#allocation32_spill] sm:$0xff] }
 0x235   : > { %v3374_v3 = vadd.f32 %v3358_v38, %v3318_v15  ;;  %v2166_v0 = vmul.f32 %v9276_v34, %v2150_v6  ;;  %v2206_v20 = vmul.f32 %v12231_v11, %v2182_v19  ;;  %v3069_v35 = vmul.f32 %v12232_v2, %v2181_v51  ;;  %v5951_v6 = vld [vmem:[%s6187_s25 + $0x18] sm:$0xff] }
 0x236   : > { %v2221_v13 = vmul.f32 %v9425_v62, %v2205_v26  ;;  %v3045_v30 = vmul.f32 %v3029_v40, %v9290_v60  ;;  %v3046_v52 = vmul.f32 %v3030_v50, %v9292_v18  ;;  %v3070_v21 = vmul.f32 %v12232_v2, %v2182_v19 }
 0x237   : > { %v5746_v49 = vpack.i.bf16 %v3374_v3, %v3373_v24  ;;  %v2222_v45 = vmul.f32 %v9431_v42, %v2206_v20  ;;  %v3741_v34 = vmul.f32 %v6490_v54, %v9217_v47  ;;  %v3742_v38 = vmul.f32 %v6490_v54, %v9221_v56  ;;  %v12235_v20 = vld [vmem:[#allocation58_spill] sm:$0xff]  ;;  %v12240_v54 = vld [vmem:[#allocation53_spill] sm:$0xff] }
 0x238   : > { %v9453_v15 = vadd.f32 %v2221_v13, %v2165_v58  ;;  %v3781_v24 = vmul.f32 %v12233_v9, %v2181_v51  ;;  %v3782_v60 = vmul.f32 %v12233_v9, %v2182_v19  ;;  %vm1192_vm11 = vcmp.ge.f32.partialorder %v5951_v6, %v12167_v41  ;;  %v12234_v58 = vld [vmem:[#allocation56_spill] sm:$0xff] }
 0x239   : > { %5747 = vrot.lane.b32.xlu0 %v5746_v49, %s6044_s9  ;;  %vm1214_vm12 = vcmp.lt.f32.partialorder %v5951_v6, %v8916_v59  ;;  %v9465_v18 = vadd.f32 %v2222_v45, %v2166_v0  ;;  %v3757_v47 = vmul.f32 %v3741_v34, %v9310_v8  ;;  %v3758_v3 = vmul.f32 %v3742_v38, %v9312_v37  ;;  %v12236_v49 = vld [vmem:[#allocation61_spill] sm:$0xff]  ;;  %v4659_v38 = vld [vmem:[%s11555_s2 + $0x80] sm:$0xff] }
 0x23a   : > { %v3085_v26 = vmul.f32 %v3069_v35, %v9453_v15  ;;  %vm1230_vm13 = vmand %vm1192_vm11, %vm1214_vm12  ;;  %v2366_v51 = vsub.f32 %v5951_v6, %v12159_v14  ;;  %v2414_v19 = vsub.f32 %v8916_v59, %v5951_v6  ;;  %v3198_v40 = vmul.f32 %v12171_v43, %v12234_v58  ;;  %v12237_v6 = vld [vmem:[#allocation62_spill] sm:$0xff] }
 0x23b   : > { %v5300_v56 = vsel %vm1230_vm13, 1.0, %v11958_v32  ;;  %v3086_v50 = vmul.f32 %v3070_v21, %v9465_v18  ;;  %v3910_v13 = vmul.f32 %v12172_v17, %v12235_v20  ;;  %v3389_v8 = vmul.f32 %v12226_v31, %v9360_v27  ;;  %v4660_v27 = vld [vmem:[%s11555_s2 + $0x88] sm:$0xff]  ;;  %v12238_v20 = vld [vmem:[#allocation59_spill] sm:$0xff] }
 0x23c   : > { %v3101_v0 = vadd.f32 %v3085_v26, %v3045_v30  ;;  %v2382_v37 = vmul.f32 %v12170_v1, %v2366_v51  ;;  %v2438_v35 = vmul.f32 %v9021_v4, %v2414_v19  ;;  %v3214_v45 = vmul.f32 %v3198_v40, %v12236_v49  ;;  %v4643_v51 = vld [vmem:[%s11555_s2] sm:$0xff]  ;;  %v4644_v40 = vld [vmem:[%s11555_s2 + $0x8] sm:$0xff] }
 0x23d   : > { %v3238_v34 = vmul.f32 %v9030_v7, %v2414_v19  ;;  %v9487_v21 = vadd.f32 %v3086_v50, %v3046_v52  ;;  %v3926_v26 = vmul.f32 %v3910_v13, %v12237_v6  ;;  %v3950_v58 = vmul.f32 %v9050_v53, %v2414_v19  ;;  %v12239_v6 = vld [vmem:[#allocation43_spill] sm:$0xff] }
 0x23e   : > { %v3797_v30 = vmul.f32 %v3781_v24, %v3101_v0  ;;  %v2398_v52 = vmul.f32 %v12238_v20, %v2382_v37  ;;  %v2454_v50 = vmul.f32 %v5300_v56, %v2438_v35  ;;  %v3390_v24 = vmul.f32 %v12226_v31, %v9368_v61  ;;  %v12241_v61 = vld [vmem:[#allocation50_spill] sm:$0xff] }
 0x23f   : > { %v3405_v19 = vmul.f32 %v3389_v8, %v9407_v46  ;;  %v3798_v13 = vmul.f32 %v3782_v60, %v9487_v21  ;;  %v3429_v39 = vmul.f32 %v12041_v16, %v12239_v6  ;;  %v3430_v10 = vmul.f32 %v12041_v16, %v12240_v54  ;;  %v12246_v6 = vld [vmem:[#allocation63_spill] sm:$0xff] }
 0x240   : > { %v3813_v49 = vadd.f32 %v3797_v30, %v3757_v47  ;;  %v2470_v12 = vadd.f32 %v2454_v50, %v2398_v52  ;;  %v3406_v36 = vmul.f32 %v3390_v24, %v9413_v57  ;;  %v5483_v23 = vpack.c.bf16 %v4660_v27, %v4659_v38  ;;  %v5952_v52 = vld [vmem:[%s6187_s25 + $0x20] sm:$0xff]  ;;  %v12245_v24 = vld [vmem:[#allocation67_spill] sm:$0xff] }
 0x241   : > { %v5485_v37 = vpack.c.bf16 %v4644_v40, %v4643_v51  ;;  %v3814_v56 = vadd.f32 %v3798_v13, %v3758_v3  ;;  %v3445_v35 = vmul.f32 %v3429_v39, %v9197_v55  ;;  %v3446_v20 = vmul.f32 %v3430_v10, %v12241_v61  ;;  %v4661_v51 = vld [vmem:[%s11555_s2 + $0x90] sm:$0xff]  ;;  %v4646_v13 = vld [vmem:[%s11555_s2 + $0x18] sm:$0xff] }
 0x242   : > { %vm1113_vm14 = vcmp.ge.f32.partialorder %v8973_v25, %v12159_v14  ;;  %v3254_v46 = vmul.f32 %v3238_v34, %v2470_v12  ;;  %5484 = vmatprep.subr.bf16.mxu0 %v5483_v23  ;;  %vm1135_vm15 = vcmp.lt.f32.partialorder %v8973_v25, %v12167_v41  ;;  %v9518_v54 = vsub.f32 %v8973_v25, %v6213_v29 }
 0x243   : > { %v2301_v57 = vsub.f32 %v12167_v41, %v8973_v25  ;;  %v5751_v60 = vpack.i.bf16 %v3814_v56, %v3813_v49  ;;  %v3461_v47 = vadd.f32 %v3445_v35, %v3405_v19  ;;  %v3462_v55 = vadd.f32 %v3446_v20, %v3406_v36  ;;  %5486 = vmatpush3.bf16.msra.mxu0 %v5485_v37  ;;  %vm1151_vm0 = vmand %vm1113_vm14, %vm1135_vm15  ;;  %v12247_v20 = vld [vmem:[#allocation65_spill] sm:$0xff] }
 0x244   : > { %12242 = vst [vmem:[#allocation51_spill] sm:$0xff] %v9518_v54  ;;  %v3117_v10 = vmul.f32 %v12232_v2, %v9417_v5  ;;  %v3270_v12 = vadd.f32 %v3254_v46, %v3214_v45  ;;  %v9525_v23 = vsel %vm1151_vm0, 1.0, %v11958_v32  ;;  %v2269_v39 = vmul.f32 %v12231_v11, %v9518_v54 }
 0x245   : > { %12243 = vst [vmem:[#allocation57_spill] sm:$0xff] %v9525_v23  ;;  %v2325_v3 = vmul.f32 %v12170_v1, %v2301_v57  ;;  %5752 = vrot.lane.b32.xlu1 %v5751_v60, %s6046_s11  ;;  %v5756_v25 = vpack.i.bf16 %v3462_v55, %v3461_v47  ;;  %v3157_v8 = vmul.f32 %v12171_v43, %v2301_v57  ;;  %v12248_v60 = vld [vmem:[#allocation64_spill] sm:$0xff]  ;;  %v12249_v55 = vld [vmem:[#allocation70_spill] sm:$0xff] }
 0x246   : > { %v3133_v36 = vmul.f32 %v3117_v10, %v9453_v15  ;;  %v3829_v34 = vmul.f32 %v12233_v9, %v9260_v48  ;;  %v3966_v45 = vmul.f32 %v3950_v58, %v3270_v12  ;;  %v2285_v38 = vmul.f32 %v9425_v62, %v2269_v39  ;;  %v4662_v15 = vld [vmem:[%s11555_s2 + $0x98] sm:$0xff] }
 0x247   : > { %v2341_v30 = vmul.f32 %v9525_v23, %v2325_v3  ;;  %v3869_v27 = vmul.f32 %v12172_v17, %v2301_v57  ;;  %vm1193_vm1 = vcmp.ge.f32.partialorder %v5952_v52, %v12167_v41  ;;  %vm1215_vm2 = vcmp.lt.f32.partialorder %v5952_v52, %v8916_v59 }
 0x248   : > { %v3845_v40 = vmul.f32 %v3829_v34, %v3101_v0  ;;  %v2367_v48 = vsub.f32 %v5952_v52, %v12159_v14  ;;  %v3982_v62 = vadd.f32 %v3966_v45, %v3926_v26  ;;  %vm1231_vm3 = vmand %vm1193_vm1, %vm1215_vm2  ;;  %v2415_v50 = vsub.f32 %v8916_v59, %v5952_v52  ;;  %v4645_v0 = vld [vmem:[%s11555_s2 + $0x10] sm:$0xff]  ;;  %v5953_v34 = vld [vmem:[%s6187_s25 + $0x28] sm:$0xff] }
 0x249   : > { %v9548_v58 = vadd.f32 %v2341_v30, %v2285_v38  ;;  %v3199_v19 = vmul.f32 %v12171_v43, %v12245_v24  ;;  %5757 = vrot.lane.b32.xlu1 %v5756_v25, %s6045_s10  ;;  %v5301_v26 = vsel %vm1231_vm3, 1.0, %v11958_v32  ;;  %v3911_v37 = vmul.f32 %v12172_v17, %v12246_v6  ;;  %v12251_v38 = vld [vmem:[#allocation68_spill] sm:$0xff]  ;;  %v12253_v24 = vld [vmem:[#allocation71_spill] sm:$0xff] }
 0x24a   : > { %v2383_v49 = vmul.f32 %v12170_v1, %v2367_v48  ;;  %v5487_v56 = vpack.c.bf16 %v4662_v15, %v4661_v51  ;;  %4465 = vrot.lane.b32.xlu0 %v3982_v62, %s6048_s7  ;;  %v2439_v61 = vmul.f32 %v9021_v4, %v2415_v50  ;;  %v3239_v57 = vmul.f32 %v9030_v7, %v2415_v50  ;;  %v12252_v51 = vld [vmem:[#allocation66_spill] sm:$0xff] }
 0x24b   : > { %12244 = vst [vmem:[#allocation55_spill] sm:$0xff] %v9548_v58  ;;  %v3173_v35 = vmul.f32 %v3157_v8, %v9548_v58  ;;  %v3215_v46 = vmul.f32 %v3199_v19, %v12247_v20  ;;  %v3927_v10 = vmul.f32 %v3911_v37, %v12249_v55  ;;  %v3951_v12 = vmul.f32 %v9050_v53, %v2415_v50  ;;  %v4663_v37 = vld [vmem:[%s11555_s2 + $0xa0] sm:$0xff] }
 0x24c   : > { %v2399_v47 = vmul.f32 %v12248_v60, %v2383_v49  ;;  %5488 = vmatprep.subr.bf16.mxu0 %v5487_v56  ;;  %v5489_v39 = vpack.c.bf16 %v4646_v13, %v4645_v0  ;;  %v2455_v25 = vmul.f32 %v5301_v26, %v2439_v61  ;;  %vm1194_vm4 = vcmp.ge.f32.partialorder %v5953_v34, %v12167_v41  ;;  %v12254_v49 = vld [vmem:[#allocation72_spill] sm:$0xff]  ;;  %v4664_v56 = vld [vmem:[%s11555_s2 + $0xa8] sm:$0xff] }
 0x24d   : > { %v9572_v3 = vadd.f32 %v3173_v35, %v3133_v36  ;;  %vm1216_vm5 = vcmp.lt.f32.partialorder %v5953_v34, %v8916_v59  ;;  %v2368_v8 = vsub.f32 %v5953_v34, %v12159_v14  ;;  %v2416_v45 = vsub.f32 %v8916_v59, %v5953_v34  ;;  %v12255_v35 = vld [vmem:[#allocation69_spill] sm:$0xff] }
 0x24e   : > { %5490 = vmatpush3.bf16.msra.mxu0 %v5489_v39  ;;  %vm1232_vm6 = vmand %vm1194_vm4, %vm1216_vm5  ;;  %v3200_v30 = vmul.f32 %v12171_v43, %v12251_v38  ;;  %v3912_v15 = vmul.f32 %v12172_v17, %v12252_v51  ;;  %v2471_v52 = vadd.f32 %v2455_v25, %v2399_v47  ;;  %vm1114_vm7 = vcmp.ge.f32.partialorder %v8991_v44, %v12159_v14 }
 0x24f   : > { %12250 = vst [vmem:[#allocation60_spill] sm:$0xff] %v9572_v3  ;;  %v3885_v36 = vmul.f32 %v3869_v27, %v9572_v3  ;;  %v5302_v48 = vsel %vm1232_vm6, 1.0, %v11958_v32  ;;  %v2384_v62 = vmul.f32 %v12170_v1, %v2368_v8  ;;  %v2440_v50 = vmul.f32 %v9021_v4, %v2416_v45  ;;  %v4647_v8 = vld [vmem:[%s11555_s2 + $0x20] sm:$0xff] }
 0x250   : > { %v3216_v19 = vmul.f32 %v3200_v30, %v12253_v24  ;;  %v3240_v0 = vmul.f32 %v9030_v7, %v2416_v45  ;;  %v3255_v26 = vmul.f32 %v3239_v57, %v2471_v52  ;;  %v3928_v6 = vmul.f32 %v3912_v15, %v12254_v49  ;;  %v9634_v15 = vld [vmem:[%s6187_s25 + $0x68] sm:$0xff]  ;;  %v12269_v3 = vld [vmem:[#allocation16_spill] sm:$0xff] }
 0x251   : > { %v3901_v13 = vadd.f32 %v3885_v36, %v3845_v40  ;;  %v3952_v27 = vmul.f32 %v9050_v53, %v2416_v45  ;;  %v2400_v61 = vmul.f32 %v12255_v35, %v2384_v62  ;;  %v2456_v20 = vmul.f32 %v5302_v48, %v2440_v50  ;;  %v9628_v45 = vld [vmem:[%s6187_s25 + $0x60] sm:$0xff] }
 0x252   : > { %vm1136_vm8 = vcmp.lt.f32.partialorder %v8991_v44, %v12167_v41  ;;  %v9604_v40 = vsub.f32 %v8991_v44, %v6213_v29  ;;  %v3271_v57 = vadd.f32 %v3255_v26, %v3215_v46  ;;  %v2302_v60 = vsub.f32 %v12167_v41, %v8991_v44  ;;  %v4648_v44 = vld [vmem:[%s11555_s2 + $0x28] sm:$0xff]  ;;  %v12262_v35 = vld [vmem:[#allocation8_spill] sm:$0xff] }
 0x253   : > { %4415 = vrot.lane.b32.xlu0 %v3901_v13, %s6047_s17  ;;  %vm1152_vm9 = vmand %vm1114_vm7, %vm1136_vm8  ;;  %v3118_v47 = vmul.f32 %v12232_v2, %v9421_v22  ;;  %v3830_v55 = vmul.f32 %v12233_v9, %v9264_v33  ;;  %v2472_v39 = vadd.f32 %v2456_v20, %v2400_v61  ;;  %v5491_v34 = vpack.c.bf16 %v4664_v56, %v4663_v37 }
 0x254   : > { %12256 = vst [vmem:[#allocation52_spill] sm:$0xff] %v9604_v40  ;;  %v9617_v25 = vsel %vm1152_vm9, 1.0, %v11958_v32  ;;  %v2270_v46 = vmul.f32 %v12231_v11, %v9604_v40  ;;  %v3967_v38 = vmul.f32 %v3951_v12, %v3271_v57  ;;  %v2326_v33 = vmul.f32 %v12170_v1, %v2302_v60 }
 0x255   : > { %12257 = vst [vmem:[#allocation48_spill] sm:$0xff] %v9617_v25  ;;  %v3134_v30 = vmul.f32 %v3118_v47, %v9465_v18  ;;  %v3158_v51 = vmul.f32 %v12171_v43, %v2302_v60  ;;  %v3256_v36 = vmul.f32 %v3240_v0, %v2472_v39  ;;  %v3846_v48 = vmul.f32 %v3830_v55, %v9487_v21  ;;  %v12263_v39 = vld [vmem:[#allocation30_spill] sm:$0xff] }
 0x256   : > { %v2286_v52 = vmul.f32 %v9431_v42, %v2270_v46  ;;  %v3870_v62 = vmul.f32 %v12172_v17, %v2302_v60  ;;  %5492 = vmatprep.subr.bf16.mxu0 %v5491_v34  ;;  %v3983_v50 = vadd.f32 %v3967_v38, %v3927_v10  ;;  %v2342_v24 = vmul.f32 %v9617_v25, %v2326_v33 }
 0x257   : > { %v5493_v12 = vpack.c.bf16 %v4648_v44, %v4647_v8  ;;  %vm513_vm10 = vcmp.ge.f32.partialorder %v9628_v45, %v6368_v63  ;;  %v3272_v18 = vadd.f32 %v3256_v36, %v3216_v19  ;;  %vm514_vm11 = vcmp.ge.f32.partialorder %v9634_v15, %v6368_v63  ;;  %v12259_v19 = vld [vmem:[#allocation6_spill] sm:$0xff] }
 0x258   : > { %vm535_vm12 = vcmp.lt.f32.partialorder %v9628_v45, %v12216_v28  ;;  %vm536_vm13 = vcmp.lt.f32.partialorder %v9634_v15, %v12216_v28  ;;  %4467 = vrot.lane.b32.xlu1 %v3983_v50, %s6048_s7  ;;  %v9649_v42 = vadd.f32 %v2342_v24, %v2286_v52  ;;  %vm599_vm15 = vcmp.ge.f32.partialorder %v9628_v45, %v12216_v28 }
 0x259   : > { %5494 = vmatpush3.bf16.msra.mxu0 %v5493_v12  ;;  %vm551_vm14 = vmand %vm513_vm10, %vm535_vm12  ;;  %vm600_vm0 = vcmp.ge.f32.partialorder %v9634_v15, %v12216_v28  ;;  %v3968_v21 = vmul.f32 %v3952_v27, %v3272_v18  ;;  %vm621_vm2 = vcmp.lt.f32.partialorder %v9628_v45, %v12259_v19  ;;  %vm622_vm3 = vcmp.lt.f32.partialorder %v9634_v15, %v12259_v19  ;;  %v12260_v27 = vld [vmem:[#allocation7_spill] sm:$0xff] }
 0x25a   : > { %12258 = vst [vmem:[#allocation5_spill] sm:$0xff] %v9649_v42  ;;  %vm552_vm1 = vmand %vm514_vm11, %vm536_vm13  ;;  %v9656_v10 = vsel %vm551_vm14, 1.0, %v11958_v32  ;;  %v3174_v0 = vmul.f32 %v3158_v51, %v9649_v42  ;;  %vm685_vm5 = vcmp.ge.f32.partialorder %v9628_v45, %v12259_v19  ;;  %vm686_vm6 = vcmp.ge.f32.partialorder %v9634_v15, %v12259_v19 }
 0x25b   : > { %v9664_v13 = vsel %vm552_vm1, 1.0, %v11958_v32  ;;  %vm637_vm4 = vmand %vm599_vm15, %vm621_vm2  ;;  %v3984_v26 = vadd.f32 %v3968_v21, %v3928_v6  ;;  %vm707_vm8 = vcmp.lt.f32.partialorder %v9628_v45, %v12260_v27  ;;  %vm708_vm9 = vcmp.lt.f32.partialorder %v9634_v15, %v12260_v27 }
 0x25c   : > { %vm638_vm7 = vmand %vm600_vm0, %vm622_vm3  ;;  %v5197_v49 = vsel %vm637_vm4, 1.0, %v11958_v32  ;;  %v9675_v37 = vadd.f32 %v3174_v0, %v3134_v30  ;;  %vm771_vm11 = vcmp.ge.f32.partialorder %v9628_v45, %v12260_v27  ;;  %vm772_vm12 = vcmp.ge.f32.partialorder %v9634_v15, %v12260_v27  ;;  %v12264_v30 = vld [vmem:[#allocation31_spill] sm:$0xff] }
 0x25d   : > { %v5198_v56 = vsel %vm638_vm7, 1.0, %v11958_v32  ;;  %vm723_vm10 = vmand %vm685_vm5, %vm707_vm8  ;;  %4469 = vrot.lane.b32.xlu0 %v3984_v26, %s6048_s7  ;;  %vm793_vm14 = vcmp.lt.f32.partialorder %v9628_v45, %v12262_v35  ;;  %vm794_vm15 = vcmp.lt.f32.partialorder %v9634_v15, %v12262_v35  ;;  %v9690_v61 = vsub.f32 %v9628_v45, %v6368_v63 }
 0x25e   : > { %12261 = vst [vmem:[#allocation49_spill] sm:$0xff] %v9675_v37  ;;  %vm724_vm13 = vmand %vm686_vm6, %vm708_vm9  ;;  %v5213_v6 = vsel %vm723_vm10, 1.0, %v11958_v32  ;;  %v3886_v20 = vmul.f32 %v3870_v62, %v9675_v37  ;;  %v9696_v60 = vsub.f32 %v9634_v15, %v6368_v63  ;;  %v9700_v47 = vsub.f32 %v12259_v19, %v9628_v45 }
 0x25f   : > { %v5214_v57 = vsel %vm724_vm13, 1.0, %v11958_v32  ;;  %vm809_vm0 = vmand %vm771_vm11, %vm793_vm14  ;;  %v1551_v46 = vmul.f32 %v12263_v39, %v9690_v61  ;;  %v9709_v34 = vsub.f32 %v12259_v19, %v9634_v15  ;;  %v9713_v8 = vsub.f32 %v9628_v45, %v12216_v28 }
 0x260   : > { %vm810_vm1 = vmand %vm772_vm12, %vm794_vm15  ;;  %v9703_v55 = vsel %vm809_vm0, 1.0, %v11958_v32  ;;  %v3902_v44 = vadd.f32 %v3886_v20, %v3846_v48  ;;  %v1552_v33 = vmul.f32 %v12263_v39, %v9696_v60  ;;  %v1607_v51 = vmul.f32 %v12264_v30, %v9700_v47 }
 0x261   : > { %v9716_v38 = vsel %vm810_vm1, 1.0, %v11958_v32  ;;  %v1567_v36 = vmul.f32 %v9656_v10, %v1551_v46  ;;  %v1608_v52 = vmul.f32 %v12264_v30, %v9709_v34  ;;  %v9727_v62 = vsub.f32 %v9634_v15, %v12216_v28 }
 0x262   : > { %v1671_v48 = vmul.f32 %v12264_v30, %v9713_v8  ;;  %4417 = vrot.lane.b32.xlu1 %v3902_v44, %s6047_s17  ;;  %v1568_v50 = vmul.f32 %v9664_v13, %v1552_v33  ;;  %v1623_v24 = vmul.f32 %v5197_v49, %v1607_v51  ;;  %v9735_v12 = vsub.f32 %v12260_v27, %v9628_v45  ;;  %v12267_v44 = vld [vmem:[#allocation15_spill] sm:$0xff] }
 0x263   : > { %v9739_v18 = vsub.f32 %v12260_v27, %v9634_v15  ;;  %v1624_v21 = vmul.f32 %v5198_v56, %v1608_v52  ;;  %v1672_v0 = vmul.f32 %v12264_v30, %v9727_v62  ;;  %v9745_v20 = vsub.f32 %v9628_v45, %v12259_v19 }
 0x264   : > { %12265 = vst [vmem:[#allocation11_spill] sm:$0xff] %v9735_v12  ;;  %v1687_v26 = vmul.f32 %v5197_v49, %v1671_v48  ;;  %v9747_v46 = vadd.f32 %v1623_v24, %v1567_v36  ;;  %v1727_v33 = vmul.f32 %v12267_v44, %v9735_v12  ;;  %v9755_v37 = vsub.f32 %v9634_v15, %v12259_v19 }
 0x265   : > { %12266 = vst [vmem:[#allocation44_spill] sm:$0xff] %v9739_v18  ;;  %v1728_v51 = vmul.f32 %v12267_v44, %v9739_v18  ;;  %v9757_v52 = vadd.f32 %v1624_v21, %v1568_v50  ;;  %v1688_v25 = vmul.f32 %v5198_v56, %v1672_v0  ;;  %v1791_v49 = vmul.f32 %v12267_v44, %v9745_v20  ;;  %v12270_v50 = vld [vmem:[#allocation34_spill] sm:$0xff] }
 0x266   : > { %v1823_v36 = vsub.f32 %v12262_v35, %v9628_v45  ;;  %v1743_v48 = vmul.f32 %v5213_v6, %v1727_v33  ;;  %v1792_v42 = vmul.f32 %v12267_v44, %v9755_v37  ;;  %v1824_v22 = vsub.f32 %v12262_v35, %v9634_v15 }
 0x267   : > { %12268 = vst [vmem:[#allocation14_spill] sm:$0xff] %v9757_v52  ;;  %v1744_v24 = vmul.f32 %v5214_v57, %v1728_v51  ;;  %v1807_v40 = vmul.f32 %v5213_v6, %v1791_v49  ;;  %v2679_v56 = vmul.f32 %v12270_v50, %v9690_v61  ;;  %v2680_v21 = vmul.f32 %v12270_v50, %v9696_v60  ;;  %v12271_v6 = vld [vmem:[#allocation37_spill] sm:$0xff] }
 0x268   : > { %v1847_v58 = vmul.f32 %v12269_v3, %v1823_v36  ;;  %v1759_v0 = vadd.f32 %v1743_v48, %v1687_v26  ;;  %v1808_v5 = vmul.f32 %v5214_v57, %v1792_v42  ;;  %v1848_v33 = vmul.f32 %v12269_v3, %v1824_v22  ;;  %v12272_v26 = vld [vmem:[#allocation19_spill] sm:$0xff] }
 0x269   : > { %v1760_v23 = vadd.f32 %v1744_v24, %v1688_v25  ;;  %v2695_v54 = vmul.f32 %v2679_v56, %v9747_v46  ;;  %v2696_v44 = vmul.f32 %v2680_v21, %v9757_v52  ;;  %v2719_v49 = vmul.f32 %v12271_v6, %v9735_v12 }
 0x26a   : > { %v1863_v51 = vmul.f32 %v9703_v55, %v1847_v58  ;;  %v1864_v30 = vmul.f32 %v9716_v38, %v1848_v33  ;;  %v2720_v19 = vmul.f32 %v12271_v6, %v9739_v18  ;;  %v2767_v25 = vmul.f32 %v12271_v6, %v9713_v8 }
 0x26b   : > { %v2768_v42 = vmul.f32 %v12271_v6, %v9727_v62  ;;  %v2735_v58 = vmul.f32 %v2719_v49, %v1759_v0  ;;  %v2807_v48 = vmul.f32 %v12272_v26, %v1823_v36  ;;  %v2808_v24 = vmul.f32 %v12272_v26, %v1824_v22 }
 0x26c   : > { %v1879_v57 = vadd.f32 %v1863_v51, %v1807_v40  ;;  %v1880_v56 = vadd.f32 %v1864_v30, %v1808_v5  ;;  %v2736_v21 = vmul.f32 %v2720_v19, %v1760_v23  ;;  %v2783_v12 = vmul.f32 %v2767_v25, %v1759_v0  ;;  %v12275_v51 = vld [vmem:[#allocation39_spill] sm:$0xff] }
 0x26d   : > { %v2784_v9 = vmul.f32 %v2768_v42, %v1760_v23  ;;  %v9787_v33 = vadd.f32 %v2735_v58, %v2695_v54  ;;  %v3479_v18 = vmul.f32 %v12041_v16, %v9690_v61  ;;  %v3480_v11 = vmul.f32 %v12041_v16, %v9696_v60  ;;  %v12276_v61 = vld [vmem:[#allocation9_spill] sm:$0xff] }
 0x26e   : > { %v2823_v2 = vmul.f32 %v2807_v48, %v1879_v57  ;;  %v9793_v6 = vadd.f32 %v2736_v21, %v2696_v44  ;;  %v2824_v40 = vmul.f32 %v2808_v24, %v1880_v56  ;;  %v3519_v49 = vmul.f32 %v12275_v51, %v1823_v36 }
 0x26f   : > { %12273 = vst [vmem:[#allocation56_spill] sm:$0xff] %v9787_v33  ;;  %v3520_v52 = vmul.f32 %v12275_v51, %v1824_v22  ;;  %v3495_v19 = vmul.f32 %v3479_v18, %v9787_v33  ;;  %vm857_vm2 = vcmp.ge.f32.partialorder %v9628_v45, %v12262_v35  ;;  %vm858_vm3 = vcmp.ge.f32.partialorder %v9634_v15, %v12262_v35 }
 0x270   : > { %12274 = vst [vmem:[#allocation58_spill] sm:$0xff] %v9793_v6  ;;  %v2839_v5 = vadd.f32 %v2823_v2, %v2783_v12  ;;  %v2840_v54 = vadd.f32 %v2824_v40, %v2784_v9  ;;  %v3496_v23 = vmul.f32 %v3480_v11, %v9793_v6  ;;  %vm879_vm4 = vcmp.lt.f32.partialorder %v9628_v45, %v12276_v61 }
 0x271   : > { %vm880_vm5 = vcmp.lt.f32.partialorder %v9634_v15, %v12276_v61  ;;  %vm895_vm6 = vmand %vm857_vm2, %vm879_vm4  ;;  %v9809_v22 = vsub.f32 %v9628_v45, %v12260_v27  ;;  %v9813_v2 = vsub.f32 %v9634_v15, %v12260_v27  ;;  %v1943_v9 = vsub.f32 %v12276_v61, %v9628_v45  ;;  %v4665_v27 = vld [vmem:[%s11555_s2 + $0xb0] sm:$0xff] }
 0x272   : > { %v3535_v60 = vmul.f32 %v3519_v49, %v2839_v5  ;;  %v3536_v11 = vmul.f32 %v3520_v52, %v2840_v54  ;;  %vm896_vm7 = vmand %vm858_vm3, %vm880_vm5  ;;  %v5245_v30 = vsel %vm895_vm6, 1.0, %v11958_v32  ;;  %v1944_v12 = vsub.f32 %v12276_v61, %v9634_v15  ;;  %v12277_v52 = vld [vmem:[#allocation17_spill] sm:$0xff] }
 0x273   : > { %v2855_v18 = vmul.f32 %v12272_v26, %v9745_v20  ;;  %v5246_v36 = vsel %vm896_vm7, 1.0, %v11958_v32  ;;  %v1911_v0 = vmul.f32 %v12269_v3, %v9809_v22  ;;  %v1912_v25 = vmul.f32 %v12269_v3, %v9813_v2 }
 0x274   : > { %v3551_v44 = vadd.f32 %v3535_v60, %v3495_v19  ;;  %v3552_v42 = vadd.f32 %v3536_v11, %v3496_v23  ;;  %v1967_v58 = vmul.f32 %v12277_v52, %v1943_v9  ;;  %v1968_v48 = vmul.f32 %v12277_v52, %v1944_v12  ;;  %v12278_v19 = vld [vmem:[#allocation20_spill] sm:$0xff]  ;;  %v4666_v23 = vld [vmem:[%s11555_s2 + $0xb8] sm:$0xff] }
 0x275   : > { %v2856_v24 = vmul.f32 %v12272_v26, %v9755_v37  ;;  %v1927_v21 = vmul.f32 %v9703_v55, %v1911_v0  ;;  %v1928_v40 = vmul.f32 %v9716_v38, %v1912_v25  ;;  %v2871_v49 = vmul.f32 %v2855_v18, %v1879_v57  ;;  %v4649_v55 = vld [vmem:[%s11555_s2 + $0x30] sm:$0xff]  ;;  %v4650_v38 = vld [vmem:[%s11555_s2 + $0x38] sm:$0xff] }
 0x276   : > { %v2895_v60 = vmul.f32 %v12278_v19, %v1943_v9  ;;  %v5761_v11 = vpack.i.bf16 %v3552_v42, %v3551_v44  ;;  %v1983_v3 = vmul.f32 %v5245_v30, %v1967_v58  ;;  %v1984_v6 = vmul.f32 %v5246_v36, %v1968_v48  ;;  %v12279_v44 = vld [vmem:[#allocation22_spill] sm:$0xff] }
 0x277   : > { %v2872_v33 = vmul.f32 %v2856_v24, %v1880_v56  ;;  %v2896_v57 = vmul.f32 %v12278_v19, %v1944_v12  ;;  %v3567_v18 = vmul.f32 %v12275_v51, %v9713_v8  ;;  %v3568_v0 = vmul.f32 %v12275_v51, %v9727_v62 }
 0x278   : > { %v3607_v25 = vmul.f32 %v12279_v44, %v1943_v9  ;;  %5762 = vrot.lane.b32.xlu0 %v5761_v11, %s6042_s5  ;;  %v1999_v56 = vadd.f32 %v1983_v3, %v1927_v21  ;;  %v2000_v42 = vadd.f32 %v1984_v6, %v1928_v40  ;;  %v3608_v58 = vmul.f32 %v12279_v44, %v1944_v12  ;;  %v12280_v40 = vld [vmem:[#allocation18_spill] sm:$0xff] }
 0x279   : > { %v5495_v48 = vpack.c.bf16 %v4666_v23, %v4665_v27  ;;  %v3583_v24 = vmul.f32 %v3567_v18, %v2839_v5  ;;  %v3584_v26 = vmul.f32 %v3568_v0, %v2840_v54  ;;  %v5497_v16 = vpack.c.bf16 %v4650_v38, %v4649_v55 }
 0x27a   : > { %vm943_vm8 = vcmp.ge.f32.partialorder %v9628_v45, %v12276_v61  ;;  %v2911_v31 = vmul.f32 %v2895_v60, %v1999_v56  ;;  %v2912_v8 = vmul.f32 %v2896_v57, %v2000_v42  ;;  %vm944_vm9 = vcmp.ge.f32.partialorder %v9634_v15, %v12276_v61 }
 0x27b   : > { %5496 = vmatprep.subr.bf16.mxu0 %v5495_v48  ;;  %vm965_vm10 = vcmp.lt.f32.partialorder %v9628_v45, %v6213_v29  ;;  %vm966_vm11 = vcmp.lt.f32.partialorder %v9634_v15, %v6213_v29  ;;  %v9864_v3 = vsub.f32 %v9628_v45, %v12262_v35  ;;  %v9868_v27 = vsub.f32 %v9634_v15, %v12262_v35 }
 0x27c   : > { %5498 = vmatpush3.bf16.msra.mxu0 %v5497_v16  ;;  %vm981_vm12 = vmand %vm943_vm8, %vm965_vm10  ;;  %v2063_v62 = vsub.f32 %v6213_v29, %v9628_v45  ;;  %v2927_v6 = vadd.f32 %v2911_v31, %v2871_v49  ;;  %v2928_v5 = vadd.f32 %v2912_v8, %v2872_v33  ;;  %v2064_v54 = vsub.f32 %v6213_v29, %v9634_v15 }
 0x27d   : > { %vm982_vm13 = vmand %vm944_vm9, %vm966_vm11  ;;  %v9873_v16 = vsel %vm981_vm12, 1.0, %v11958_v32  ;;  %v2031_v12 = vmul.f32 %v12277_v52, %v9864_v3  ;;  %v2032_v21 = vmul.f32 %v12277_v52, %v9868_v27  ;;  %v2943_v23 = vmul.f32 %v12278_v19, %v9809_v22  ;;  %v12281_v52 = vld [vmem:[#allocation21_spill] sm:$0xff] }
 0x27e   : > { %v9878_v9 = vsel %vm982_vm13, 1.0, %v11958_v32  ;;  %v2087_v60 = vmul.f32 %v12280_v40, %v2063_v62  ;;  %v3623_v31 = vmul.f32 %v3607_v25, %v2927_v6  ;;  %v3624_v33 = vmul.f32 %v3608_v58, %v2928_v5 }
 0x27f   : > { %v2088_v49 = vmul.f32 %v12280_v40, %v2064_v54  ;;  %v2047_v11 = vmul.f32 %v5245_v30, %v2031_v12  ;;  %v2048_v55 = vmul.f32 %v5246_v36, %v2032_v21  ;;  %v2944_v57 = vmul.f32 %v12278_v19, %v9813_v2  ;;  %v12282_v21 = vld [vmem:[#allocation25_spill] sm:$0xff]  ;;  %v12288_v19 = vld [vmem:[#allocation28_spill] sm:$0xff] }
 0x280   : > { %v2103_v38 = vmul.f32 %v9873_v16, %v2087_v60  ;;  %v3639_v18 = vadd.f32 %v3623_v31, %v3583_v24  ;;  %v3640_v0 = vadd.f32 %v3624_v33, %v3584_v26  ;;  %v2959_v8 = vmul.f32 %v2943_v23, %v1999_v56  ;;  %v4667_v31 = vld [vmem:[%s11555_s2 + $0xc0] sm:$0xff]  ;;  %v12283_v23 = vld [vmem:[#allocation73_spill] sm:$0xff] }
 0x281   : > { %v2104_v48 = vmul.f32 %v9878_v9, %v2088_v49  ;;  %v2960_v58 = vmul.f32 %v2944_v57, %v2000_v42  ;;  %v2983_v51 = vmul.f32 %v12281_v52, %v2063_v62  ;;  %v2984_v35 = vmul.f32 %v12281_v52, %v2064_v54  ;;  %v5954_v42 = vld [vmem:[%s6187_s25 + $0x30] sm:$0xff]  ;;  %v12284_v57 = vld [vmem:[#allocation75_spill] sm:$0xff] }
 0x282   : > { %v9892_v25 = vadd.f32 %v2103_v38, %v2047_v11  ;;  %v5766_v30 = vpack.i.bf16 %v3640_v0, %v3639_v18  ;;  %v3655_v12 = vmul.f32 %v12279_v44, %v9745_v20  ;;  %v3656_v24 = vmul.f32 %v12279_v44, %v9755_v37  ;;  %v4668_v20 = vld [vmem:[%s11555_s2 + $0xc8] sm:$0xff] }
 0x283   : > { %v9896_v36 = vadd.f32 %v2104_v48, %v2048_v55  ;;  %v3695_v56 = vmul.f32 %v12282_v21, %v2063_v62  ;;  %v3696_v60 = vmul.f32 %v12282_v21, %v2064_v54  ;;  %vm1195_vm14 = vcmp.ge.f32.partialorder %v5954_v42, %v12167_v41  ;;  %v4652_v18 = vld [vmem:[%s11555_s2 + $0x48] sm:$0xff] }
 0x284   : > { %v2999_v26 = vmul.f32 %v2983_v51, %v9892_v25  ;;  %5767 = vrot.lane.b32.xlu1 %v5766_v30, %s6043_s6  ;;  %v3671_v51 = vmul.f32 %v3655_v12, %v2927_v6  ;;  %v3672_v33 = vmul.f32 %v3656_v24, %v2928_v5  ;;  %vm1217_vm15 = vcmp.lt.f32.partialorder %v5954_v42, %v8916_v59  ;;  %v4651_v5 = vld [vmem:[%s11555_s2 + $0x40] sm:$0xff]  ;;  %v12285_v24 = vld [vmem:[#allocation74_spill] sm:$0xff] }
 0x285   : > { %v3000_v37 = vmul.f32 %v2984_v35, %v9896_v36  ;;  %vm1233_vm0 = vmand %vm1195_vm14, %vm1217_vm15  ;;  %v2369_v54 = vsub.f32 %v5954_v42, %v12159_v14  ;;  %v2417_v49 = vsub.f32 %v8916_v59, %v5954_v42  ;;  %v3201_v11 = vmul.f32 %v12171_v43, %v12283_v23 }
 0x286   : > { %v9916_v62 = vadd.f32 %v2999_v26, %v2959_v8  ;;  %v5303_v38 = vsel %vm1233_vm0, 1.0, %v11958_v32  ;;  %v3913_v35 = vmul.f32 %v12172_v17, %v12284_v57  ;;  %v5499_v6 = vpack.c.bf16 %v4668_v20, %v4667_v31  ;;  %v12287_v57 = vld [vmem:[#allocation80_spill] sm:$0xff] }
 0x287   : > { %v9922_v55 = vadd.f32 %v3000_v37, %v2960_v58  ;;  %v2385_v48 = vmul.f32 %v12170_v1, %v2369_v54  ;;  %v2441_v8 = vmul.f32 %v9021_v4, %v2417_v49  ;;  %v3241_v30 = vmul.f32 %v9030_v7, %v2417_v49  ;;  %v12286_v37 = vld [vmem:[#allocation77_spill] sm:$0xff] }
 0x288   : > { %v3711_v0 = vmul.f32 %v3695_v56, %v9916_v62  ;;  %5500 = vmatprep.subr.bf16.mxu0 %v5499_v6  ;;  %v5501_v31 = vpack.c.bf16 %v4652_v18, %v4651_v5  ;;  %v3217_v23 = vmul.f32 %v3201_v11, %v12286_v37  ;;  %v3929_v44 = vmul.f32 %v3913_v35, %v12287_v57 }
 0x289   : > { %v3712_v58 = vmul.f32 %v3696_v60, %v9922_v55  ;;  %v2401_v26 = vmul.f32 %v12285_v24, %v2385_v48  ;;  %v2457_v42 = vmul.f32 %v5303_v38, %v2441_v8  ;;  %v3953_v56 = vmul.f32 %v9050_v53, %v2417_v49  ;;  %v12289_v60 = vld [vmem:[#allocation29_spill] sm:$0xff] }
 0x28a   : > { %v3727_v12 = vadd.f32 %v3711_v0, %v3671_v51  ;;  %5502 = vmatpush3.bf16.msra.mxu0 %v5501_v31  ;;  %vm341_vm1 = vcmp.ge.f32.partialorder %v9628_v45, %v12288_v19  ;;  %vm342_vm2 = vcmp.ge.f32.partialorder %v9634_v15, %v12288_v19  ;;  %vm363_vm3 = vcmp.lt.f32.partialorder %v9628_v45, %v12289_v60  ;;  %v12291_v24 = vld [vmem:[#allocation41_spill] sm:$0xff] }
 0x28b   : > { %v3728_v20 = vadd.f32 %v3712_v58, %v3672_v33  ;;  %v2473_v54 = vadd.f32 %v2457_v42, %v2401_v26  ;;  %vm364_vm4 = vcmp.lt.f32.partialorder %v9634_v15, %v12289_v60  ;;  %vm379_vm5 = vmand %vm341_vm1, %vm363_vm3  ;;  %vm427_vm6 = vcmp.ge.f32.partialorder %v9628_v45, %v12289_v60  ;;  %v12290_v58 = vld [vmem:[#allocation10_spill] sm:$0xff] }
 0x28c   : > { %vm428_vm7 = vcmp.ge.f32.partialorder %v9634_v15, %v12289_v60  ;;  %vm380_vm8 = vmand %vm342_vm2, %vm364_vm4  ;;  %v5149_v49 = vsel %vm379_vm5, 1.0, %v11958_v32  ;;  %vm449_vm9 = vcmp.lt.f32.partialorder %v9628_v45, %v6368_v63  ;;  %vm450_vm10 = vcmp.lt.f32.partialorder %v9634_v15, %v6368_v63 }
 0x28d   : > { %v5771_v51 = vpack.i.bf16 %v3728_v20, %v3727_v12  ;;  %v3257_v33 = vmul.f32 %v3241_v30, %v2473_v54  ;;  %v5150_v11 = vsel %vm380_vm8, 1.0, %v11958_v32  ;;  %vm465_vm11 = vmand %vm427_vm6, %vm449_vm9  ;;  %v1287_v38 = vsub.f32 %v9628_v45, %v12288_v19 }
 0x28e   : > { %v1288_v35 = vsub.f32 %v9634_v15, %v12288_v19  ;;  %v1343_v6 = vsub.f32 %v6368_v63, %v9628_v45  ;;  %vm466_vm12 = vmand %vm428_vm7, %vm450_vm10  ;;  %v5165_v18 = vsel %vm465_vm11, 1.0, %v11958_v32  ;;  %v1344_v0 = vsub.f32 %v6368_v63, %v9634_v15  ;;  %v12292_v19 = vld [vmem:[#allocation35_spill] sm:$0xff] }
 0x28f   : > { %5772 = vrot.lane.b32.xlu0 %v5771_v51, %s6041_s27  ;;  %v3273_v5 = vadd.f32 %v3257_v33, %v3217_v23  ;;  %v9972_v48 = vsub.f32 %v9628_v45, %v12289_v60  ;;  %v5166_v8 = vsel %vm466_vm12, 1.0, %v11958_v32  ;;  %v1311_v30 = vmul.f32 %v12290_v58, %v1287_v38 }
 0x290   : > { %v1312_v12 = vmul.f32 %v12290_v58, %v1288_v35  ;;  %v1367_v26 = vmul.f32 %v12291_v24, %v1343_v6  ;;  %v1368_v31 = vmul.f32 %v12291_v24, %v1344_v0  ;;  %v9981_v20 = vsub.f32 %v9634_v15, %v12289_v60 }
 0x291   : > { %v3969_v42 = vmul.f32 %v3953_v56, %v3273_v5  ;;  %v1431_v37 = vmul.f32 %v12291_v24, %v9972_v48  ;;  %v1327_v23 = vmul.f32 %v5149_v49, %v1311_v30  ;;  %v1463_v51 = vsub.f32 %v12216_v28, %v9628_v45 }
 0x292   : > { %v1328_v57 = vmul.f32 %v5150_v11, %v1312_v12  ;;  %v1383_v54 = vmul.f32 %v5165_v18, %v1367_v26  ;;  %v1384_v58 = vmul.f32 %v5166_v8, %v1368_v31  ;;  %v1432_v56 = vmul.f32 %v12291_v24, %v9981_v20 }
 0x293   : > { %v3985_v33 = vadd.f32 %v3969_v42, %v3929_v44  ;;  %v1447_v6 = vmul.f32 %v5165_v18, %v1431_v37  ;;  %v1464_v0 = vsub.f32 %v12216_v28, %v9634_v15  ;;  %v1487_v60 = vmul.f32 %v12263_v39, %v1463_v51  ;;  %v12293_v44 = vld [vmem:[#allocation36_spill] sm:$0xff] }
 0x294   : > { %v1399_v5 = vadd.f32 %v1383_v54, %v1327_v23  ;;  %v2503_v63 = vmul.f32 %v12292_v19, %v1287_v38  ;;  %v1400_v49 = vadd.f32 %v1384_v58, %v1328_v57  ;;  %v1448_v11 = vmul.f32 %v5166_v8, %v1432_v56  ;;  %v12295_v56 = vld [vmem:[#allocation26_spill] sm:$0xff] }
 0x295   : > { %4471 = vrot.lane.b32.xlu1 %v3985_v33, %s6048_s7  ;;  %v2504_v30 = vmul.f32 %v12292_v19, %v1288_v35  ;;  %v2543_v12 = vmul.f32 %v12293_v44, %v1463_v51  ;;  %v1488_v26 = vmul.f32 %v12263_v39, %v1464_v0  ;;  %v1503_v18 = vmul.f32 %v9656_v10, %v1487_v60  ;;  %v12294_v10 = vld [vmem:[#allocation42_spill] sm:$0xff] }
 0x296   : > { %v2519_v42 = vmul.f32 %v2503_v63, %v1399_v5  ;;  %v2544_v31 = vmul.f32 %v12293_v44, %v1464_v0  ;;  %v2591_v23 = vmul.f32 %v12293_v44, %v9972_v48  ;;  %v2592_v54 = vmul.f32 %v12293_v44, %v9981_v20 }
 0x297   : > { %v2520_v37 = vmul.f32 %v2504_v30, %v1400_v49  ;;  %v2631_v8 = vmul.f32 %v12270_v50, %v9700_v47  ;;  %v1504_v58 = vmul.f32 %v9664_v13, %v1488_v26  ;;  %v1519_v57 = vadd.f32 %v1503_v18, %v1447_v6  ;;  %v12296_v13 = vld [vmem:[#allocation14_spill] sm:$0xff] }
 0x298   : > { %v2632_v51 = vmul.f32 %v12270_v50, %v9709_v34  ;;  %v3303_v63 = vmul.f32 %v12294_v10, %v1287_v38  ;;  %v3304_v33 = vmul.f32 %v12294_v10, %v1288_v35  ;;  %v3343_v5 = vmul.f32 %v12295_v56, %v9700_v47  ;;  %v12308_v50 = vld [vmem:[#allocation81_spill] sm:$0xff] }
 0x299   : > { %v2647_v60 = vmul.f32 %v2631_v8, %v9747_v46  ;;  %v3344_v0 = vmul.f32 %v12295_v56, %v9709_v34  ;;  %v1520_v49 = vadd.f32 %v1504_v58, %v1448_v11  ;;  %v2559_v30 = vmul.f32 %v2543_v12, %v1519_v57 }
 0x29a   : > { %v2607_v44 = vmul.f32 %v2591_v23, %v1519_v57  ;;  %v2648_v6 = vmul.f32 %v2632_v51, %v12296_v13  ;;  %vm1029_vm13 = vcmp.ge.f32.partialorder %v9628_v45, %v6213_v29  ;;  %vm1030_vm14 = vcmp.ge.f32.partialorder %v9634_v15, %v6213_v29 }
 0x29b   : > { %vm1051_vm15 = vcmp.lt.f32.partialorder %v9628_v45, %v12159_v14  ;;  %vm1052_vm0 = vcmp.lt.f32.partialorder %v9634_v15, %v12159_v14  ;;  %v2560_v47 = vmul.f32 %v2544_v31, %v1520_v49  ;;  %v2575_v46 = vadd.f32 %v2559_v30, %v2519_v42 }
 0x29c   : > { %v2608_v34 = vmul.f32 %v2592_v54, %v1520_v49  ;;  %v10024_v38 = vadd.f32 %v2647_v60, %v2607_v44  ;;  %vm1067_vm1 = vmand %vm1029_vm13, %vm1051_vm15  ;;  %v10031_v11 = vsub.f32 %v9628_v45, %v12276_v61  ;;  %v10035_v12 = vsub.f32 %v9634_v15, %v12276_v61  ;;  %v12299_v60 = vld [vmem:[#allocation27_spill] sm:$0xff] }
 0x29d   : > { %vm1068_vm2 = vmand %vm1030_vm14, %vm1052_vm0  ;;  %v10027_v35 = vsel %vm1067_vm1, 1.0, %v11958_v32  ;;  %v2183_v26 = vsub.f32 %v12159_v14, %v9628_v45  ;;  %v2576_v18 = vadd.f32 %v2560_v47, %v2520_v37  ;;  %v3319_v44 = vmul.f32 %v3303_v63, %v2575_v46  ;;  %v12300_v46 = vld [vmem:[#allocation33_spill] sm:$0xff] }
 0x29e   : > { %12297 = vst [vmem:[#allocation61_spill] sm:$0xff] %v10031_v11  ;;  %12298 = vst [vmem:[#allocation62_spill] sm:$0xff] %v10035_v12  ;;  %v10039_v42 = vadd.f32 %v2648_v6, %v2608_v34  ;;  %v3359_v31 = vmul.f32 %v3343_v5, %v10024_v38  ;;  %v10043_v23 = vsel %vm1068_vm2, 1.0, %v11958_v32  ;;  %v2151_v54 = vmul.f32 %v12280_v40, %v10031_v11  ;;  %v4669_v34 = vld [vmem:[%s11555_s2 + $0xd0] sm:$0xff] }
 0x29f   : > { %v2152_v8 = vmul.f32 %v12280_v40, %v10035_v12  ;;  %v2184_v58 = vsub.f32 %v12159_v14, %v9634_v15  ;;  %v3320_v57 = vmul.f32 %v3304_v33, %v2576_v18  ;;  %v2207_v63 = vmul.f32 %v12299_v60, %v2183_v26  ;;  %v4670_v18 = vld [vmem:[%s11555_s2 + $0xd8] sm:$0xff] }
 0x2a0   : > { %v3360_v37 = vmul.f32 %v3344_v0, %v10039_v42  ;;  %v3375_v51 = vadd.f32 %v3359_v31, %v3319_v44  ;;  %v2167_v5 = vmul.f32 %v9873_v16, %v2151_v54  ;;  %v3031_v13 = vmul.f32 %v12281_v52, %v9864_v3  ;;  %v4653_v44 = vld [vmem:[%s11555_s2 + $0x50] sm:$0xff]  ;;  %v4654_v31 = vld [vmem:[%s11555_s2 + $0x58] sm:$0xff]  ;;  %v10076_v54 = vpop.permute.xlu0 %5582 }
 0x2a1   : > { %v2168_v49 = vmul.f32 %v9878_v9, %v2152_v8  ;;  %v2208_v30 = vmul.f32 %v12299_v60, %v2184_v58  ;;  %v2223_v47 = vmul.f32 %v10027_v35, %v2207_v63  ;;  %v3032_v33 = vmul.f32 %v12281_v52, %v9868_v27 }
 0x2a2   : > { %v3376_v6 = vadd.f32 %v3360_v37, %v3320_v57  ;;  %v3071_v0 = vmul.f32 %v12300_v46, %v2183_v26  ;;  %v3072_v9 = vmul.f32 %v12300_v46, %v2184_v58  ;;  %v3047_v37 = vmul.f32 %v3031_v13, %v9892_v25 }
 0x2a3   : > { %v2224_v16 = vmul.f32 %v10043_v23, %v2208_v30  ;;  %v10078_v57 = vadd.f32 %v2223_v47, %v2167_v5  ;;  %v3743_v63 = vmul.f32 %v12282_v21, %v9809_v22  ;;  %v3048_v10 = vmul.f32 %v3032_v33, %v9896_v36  ;;  %v5955_v36 = vld [vmem:[%s6187_s25 + $0x38] sm:$0xff] }
 0x2a4   : > { %v5776_v8 = vpack.i.bf16 %v3376_v6, %v3375_v51  ;;  %v3744_v19 = vmul.f32 %v12282_v21, %v9813_v2  ;;  %v12301_v51 = vld [vmem:[#allocation32_spill] sm:$0xff]  ;;  %v5503_v6 = vpack.c.bf16 %v4670_v18, %v4669_v34  ;;  %v5505_v47 = vpack.c.bf16 %v4654_v31, %v4653_v44  ;;  %v12302_v18 = vld [vmem:[#allocation78_spill] sm:$0xff] }
 0x2a5   : > { %v10083_v30 = vadd.f32 %v2224_v16, %v2168_v49  ;;  %v3087_v24 = vmul.f32 %v3071_v0, %v10078_v57  ;;  %v3783_v5 = vmul.f32 %v12301_v51, %v2183_v26  ;;  %v3784_v13 = vmul.f32 %v12301_v51, %v2184_v58  ;;  %v10104_v58 = vpop.permute.xlu0 %5587  ;;  %v4671_v31 = vld [vmem:[%s11555_s2 + $0xe0] sm:$0xff] }
 0x2a6   : > { %5777 = vrot.lane.b32.xlu0 %v5776_v8, %s6044_s9  ;;  %v3759_v49 = vmul.f32 %v3743_v63, %v9916_v62  ;;  %5504 = vmatprep.subr.bf16.mxu0 %v5503_v6  ;;  %vm1196_vm3 = vcmp.ge.f32.partialorder %v5955_v36, %v12167_v41  ;;  %v3760_v33 = vmul.f32 %v3744_v19, %v9922_v55  ;;  %vm4558_vm6 = vcmask 130048   ;;  %v4672_v8 = vld [vmem:[%s11555_s2 + $0xe8] sm:$0xff]  ;;  %v12307_v21 = vld [vmem:[#allocation44_spill] sm:$0xff] }
 0x2a7   : > { %v3088_v25 = vmul.f32 %v3072_v9, %v10083_v30  ;;  %v10093_v22 = vadd.f32 %v3087_v24, %v3047_v37  ;;  %5506 = vmatpush3.bf16.msra.mxu0 %v5505_v47  ;;  %vm1218_vm4 = vcmp.lt.f32.partialorder %v5955_v36, %v8916_v59  ;;  %v2370_v62 = vsub.f32 %v5955_v36, %v12159_v14  ;;  %v4655_v47 = vld [vmem:[%s11555_s2 + $0x60] sm:$0xff] }
 0x2a8   : > { %vm1234_vm5 = vmand %vm1196_vm3, %vm1218_vm4  ;;  %v2418_v24 = vsub.f32 %v8916_v59, %v5955_v36  ;;  %v3391_v19 = vmul.f32 %v12295_v56, %v9972_v48  ;;  %v3202_v44 = vmul.f32 %v12171_v43, %v12302_v18  ;;  %v5589_v63 = vunpack.i.l.bf16 %v10104_v58  ;;  %v12305_v18 = vld [vmem:[#allocation11_spill] sm:$0xff] }
 0x2a9   : > { %v10098_v2 = vadd.f32 %v3088_v25, %v3048_v10  ;;  %v3799_v0 = vmul.f32 %v3783_v5, %v10093_v22  ;;  %v5304_v10 = vsel %vm1234_vm5, 1.0, %v11958_v32  ;;  %v2386_v16 = vmul.f32 %v12170_v1, %v2370_v62  ;;  %v12303_v5 = vld [vmem:[#allocation76_spill] sm:$0xff]  ;;  %v4656_v25 = vld [vmem:[%s11555_s2 + $0x68] sm:$0xff] }
 0x2aa   : > { %v2442_v9 = vmul.f32 %v9021_v4, %v2418_v24  ;;  %v3242_v48 = vmul.f32 %v9030_v7, %v2418_v24  ;;  %v3914_v6 = vmul.f32 %v12172_v17, %v12303_v5  ;;  %v3407_v62 = vmul.f32 %v3391_v19, %v10024_v38  ;;  %v12306_v5 = vld [vmem:[#allocation38_spill] sm:$0xff]  ;;  %v12310_v19 = vld [vmem:[#allocation56_spill] sm:$0xff] }
 0x2ab   : > { %v3800_v34 = vmul.f32 %v3784_v13, %v10098_v2  ;;  %v3815_v55 = vadd.f32 %v3799_v0, %v3759_v49  ;;  %v10132_v13 = vpop.permute.xlu1 %5592  ;;  %v12304_v49 = vld [vmem:[#allocation79_spill] sm:$0xff]  ;;  %v3392_v0 = vmul.f32 %v12295_v56, %v9981_v20  ;;  %v3431_v26 = vmul.f32 %v12306_v5, %v12305_v18 }
 0x2ac   : > { %v2402_v36 = vmul.f32 %v12304_v49, %v2386_v16  ;;  %v3432_v52 = vmul.f32 %v12306_v5, %v12307_v21  ;;  %v5507_v40 = vpack.c.bf16 %v4672_v8, %v4671_v31  ;;  %v3218_v39 = vmul.f32 %v3202_v44, %v12308_v50  ;;  %v10158_v8 = vpop.permute.xlu0 %5602 }
 0x2ad   : > { %v3816_v37 = vadd.f32 %v3800_v34, %v3760_v33  ;;  %v2458_v33 = vmul.f32 %v5304_v10, %v2442_v9  ;;  %v3408_v28 = vmul.f32 %v3392_v0, %v10039_v42  ;;  %v5509_v16 = vpack.c.bf16 %v4656_v25, %v4655_v47  ;;  %v12311_v9 = vld [vmem:[#allocation58_spill] sm:$0xff] }
 0x2ae   : > { %v5594_v10 = vunpack.i.l.bf16 %v10132_v13  ;;  %v12309_v20 = vunpack.i.l.bf16 %v10076_v54  ;;  %v3448_v21 = vmul.f32 %v3432_v52, %v12311_v9  ;;  %5508 = vmatprep.subr.bf16.mxu0 %v5507_v40  ;;  %v3954_v50 = vmul.f32 %v9050_v53, %v2418_v24  ;;  %v12313_v40 = vld [vmem:[#allocation82_spill] sm:$0xff] }
 0x2af   : > { %v5781_v34 = vpack.i.bf16 %v3816_v37, %v3815_v55  ;;  %v2474_v61 = vadd.f32 %v2458_v33, %v2402_v36  ;;  %v3447_v55 = vmul.f32 %v3431_v26, %v12310_v19  ;;  %5510 = vmatpush3.bf16.msra.mxu0 %v5509_v16  ;;  %vm1115_vm7 = vcmp.ge.f32.partialorder %v9628_v45, %v12159_v14  ;;  %v4673_v36 = vld [vmem:[%s11555_s2 + $0xf0] sm:$0xff]  ;;  %v4674_v33 = vld [vmem:[%s11555_s2 + $0xf8] sm:$0xff] }
 0x2b0   : > { %v10149_v38 = vsel %vm4558_vm6, %v12309_v20, %v5589_v63  ;;  %vm1137_vm8 = vcmp.lt.f32.partialorder %v9628_v45, %v12167_v41  ;;  %v3464_v44 = vadd.f32 %v3448_v21, %v3408_v28  ;;  %v10162_v26 = vsub.f32 %v9628_v45, %v6213_v29  ;;  %v12315_v20 = vld [vmem:[#allocation87_spill] sm:$0xff] }
 0x2b1   : > { %5782 = vrot.lane.b32.xlu1 %v5781_v34, %s6046_s11  ;;  %v3258_v31 = vmul.f32 %v3242_v48, %v2474_v61  ;;  %v3463_v42 = vadd.f32 %v3447_v55, %v3407_v62  ;;  %vm1153_vm9 = vmand %vm1115_vm7, %vm1137_vm8  ;;  %v2303_v61 = vsub.f32 %v12167_v41, %v9628_v45  ;;  %v3930_v24 = vmul.f32 %v3914_v6, %v12313_v40  ;;  %v5956_v62 = vld [vmem:[%s6187_s25 + $0x40] sm:$0xff]  ;;  %v4658_v55 = vld [vmem:[%s11555_s2 + $0x78] sm:$0xff] }
 0x2b2   : > { %12312 = vst [vmem:[#allocation59_spill] sm:$0xff] %v10162_v26  ;;  %v10168_v37 = vsel %vm1153_vm9, 1.0, %v11958_v32  ;;  %v3119_v28 = vmul.f32 %v12300_v46, %v10031_v11  ;;  %v2271_v48 = vmul.f32 %v12299_v60, %v10162_v26  ;;  %v3831_v25 = vmul.f32 %v12301_v51, %v9864_v3  ;;  %v12317_v40 = vld [vmem:[#allocation83_spill] sm:$0xff] }
 0x2b3   : > { %v3274_v52 = vadd.f32 %v3258_v31, %v3218_v39  ;;  %12314 = vst [vmem:[#allocation43_spill] sm:$0xff] %v10168_v37  ;;  %v5786_v63 = vpack.i.bf16 %v3464_v44, %v3463_v42  ;;  %v2327_v47 = vmul.f32 %v12170_v1, %v2303_v61  ;;  %v5604_v39 = vunpack.i.l.bf16 %v10158_v8 }
 0x2b4   : > { %v3135_v6 = vmul.f32 %v3119_v28, %v10078_v57  ;;  %v3159_v49 = vmul.f32 %v12171_v43, %v2303_v61  ;;  %v2287_v0 = vmul.f32 %v10027_v35, %v2271_v48  ;;  %vm1197_vm10 = vcmp.ge.f32.partialorder %v5956_v62, %v12167_v41  ;;  %v10192_v57 = vpop.permute.xlu1 %5597  ;;  %v4657_v35 = vld [vmem:[%s11555_s2 + $0x70] sm:$0xff] }
 0x2b5   : > { %v3970_v45 = vmul.f32 %v3954_v50, %v3274_v52  ;;  %5787 = vrot.lane.b32.xlu1 %v5786_v63, %s6045_s10  ;;  %v2343_v3 = vmul.f32 %v10168_v37, %v2327_v47  ;;  %vm1219_vm11 = vcmp.lt.f32.partialorder %v5956_v62, %v8916_v59  ;;  %v2371_v18 = vsub.f32 %v5956_v62, %v12159_v14  ;;  %v12318_v63 = vld [vmem:[#allocation84_spill] sm:$0xff] }
 0x2b6   : > { %vm1235_vm12 = vmand %vm1197_vm10, %vm1219_vm11  ;;  %v2419_v16 = vsub.f32 %v8916_v59, %v5956_v62  ;;  %v3203_v19 = vmul.f32 %v12171_v43, %v12315_v20  ;;  %v3847_v21 = vmul.f32 %v3831_v25, %v10093_v22  ;;  %v5511_v50 = vpack.c.bf16 %v4674_v33, %v4673_v36  ;;  %v12319_v25 = vld [vmem:[#allocation40_spill] sm:$0xff]  ;;  %v5957_v33 = vld [vmem:[%s6187_s25 + $0x48] sm:$0xff] }
 0x2b7   : > { %v3986_v34 = vadd.f32 %v3970_v45, %v3930_v24  ;;  %v10204_v9 = vadd.f32 %v2343_v3, %v2287_v0  ;;  %v5305_v31 = vsel %vm1235_vm12, 1.0, %v11958_v32  ;;  %v3871_v42 = vmul.f32 %v12172_v17, %v2303_v61  ;;  %v12321_v3 = vld [vmem:[#allocation23_spill] sm:$0xff]  ;;  %v12322_v20 = vld [vmem:[#allocation85_spill] sm:$0xff] }
 0x2b8   : > { %v2387_v44 = vmul.f32 %v12170_v1, %v2371_v18  ;;  %v2443_v52 = vmul.f32 %v9021_v4, %v2419_v16  ;;  %v3915_v24 = vmul.f32 %v12172_v17, %v12317_v40  ;;  %v3219_v48 = vmul.f32 %v3203_v19, %v12318_v63  ;;  %5512 = vmatprep.subr.bf16.mxu0 %v5511_v50  ;;  %v12324_v63 = vld [vmem:[#allocation86_spill] sm:$0xff] }
 0x2b9   : > { %12316 = vst [vmem:[#allocation53_spill] sm:$0xff] %v10204_v9  ;;  %4473 = vrot.lane.b32.xlu0 %v3986_v34, %s6048_s7  ;;  %v3175_v28 = vmul.f32 %v3159_v49, %v10204_v9  ;;  %v3243_v22 = vmul.f32 %v9030_v7, %v2419_v16  ;;  %v5513_v47 = vpack.c.bf16 %v4658_v55, %v4657_v35  ;;  %v10227_v34 = vpop.permute.xlu1 %5607  ;;  %vm4575_vm0 = vcmask 424960  }
 0x2ba   : > { %v2403_v45 = vmul.f32 %v12319_v25, %v2387_v44  ;;  %v2459_v36 = vmul.f32 %v5305_v31, %v2443_v52  ;;  %vm1198_vm13 = vcmp.ge.f32.partialorder %v5957_v33, %v12167_v41  ;;  %vm1220_vm14 = vcmp.lt.f32.partialorder %v5957_v33, %v8916_v59  ;;  %v12323_v52 = vld [vmem:[#allocation47_spill] sm:$0xff]  ;;  %v10239_v25 = vpop.permute.xlu0 %4395 }
 0x2bb   : > { %v10221_v61 = vadd.f32 %v3175_v28, %v3135_v6  ;;  %5514 = vmatpush3.bf16.msra.mxu0 %v5513_v47  ;;  %vm1236_vm15 = vmand %vm1198_vm13, %vm1220_vm14  ;;  %v2372_v49 = vsub.f32 %v5957_v33, %v12159_v14  ;;  %v2420_v0 = vsub.f32 %v8916_v59, %v5957_v33  ;;  %v3204_v62 = vmul.f32 %v12171_v43, %v12321_v3 }
 0x2bc   : > { %v2475_v18 = vadd.f32 %v2459_v36, %v2403_v45  ;;  %v3931_v19 = vmul.f32 %v3915_v24, %v12322_v20  ;;  %v5306_v35 = vsel %vm1236_vm15, 1.0, %v11958_v32  ;;  %v3955_v55 = vmul.f32 %v9050_v53, %v2419_v16  ;;  %12325 = vst [vmem:[#allocation67_spill] sm:$0xff] %v10239_v25  ;;  %v12326_v45 = vld [vmem:[#allocation46_spill] sm:$0xff] }
 0x2bd   : > { %12320 = vst [vmem:[#allocation50_spill] sm:$0xff] %v10221_v61  ;;  %v3887_v6 = vmul.f32 %v3871_v42, %v10221_v61  ;;  %v2388_v31 = vmul.f32 %v12170_v1, %v2372_v49  ;;  %v2444_v50 = vmul.f32 %v9021_v4, %v2420_v0  ;;  %v3220_v40 = vmul.f32 %v3204_v62, %v12323_v52  ;;  %v5958_v62 = vld [vmem:[%s6187_s25 + $0x68] sm:$0xff] }
 0x2be   : > { %v3259_v44 = vmul.f32 %v3243_v22, %v2475_v18  ;;  %v3244_v28 = vmul.f32 %v9030_v7, %v2420_v0  ;;  %v3916_v47 = vmul.f32 %v12172_v17, %v12324_v63  ;;  %v4576_v16 = vsel %vm4575_vm0, %v10149_v38, %v5594_v10 }
 0x2bf   : > { %v3903_v24 = vadd.f32 %v3887_v6, %v3847_v21  ;;  %v2404_v36 = vmul.f32 %v12326_v45, %v2388_v31  ;;  %v2460_v42 = vmul.f32 %v5306_v35, %v2444_v50  ;;  %vm11865_vm1 = vcmask 719872  }
 0x2c0   : > { %v3275_v22 = vadd.f32 %v3259_v44, %v3219_v48  ;;  %vm4609_vm2 = vcmask 1014784   ;;  %vm1116_vm3 = vcmp.ge.f32.partialorder %v9634_v15, %v12159_v14  ;;  %v4593_v33 = vsel %vm11865_vm1, %v4576_v16, %v5604_v39  ;;  %v10259_v48 = vpop.permute.xlu1 %4397  ;;  %v12330_v44 = vld [vmem:[#allocation24_spill] sm:$0xff] }
 0x2c1   : > { %4419 = vrot.lane.b32.xlu0 %v3903_v24, %s6047_s17  ;;  %v2476_v21 = vadd.f32 %v2460_v42, %v2404_v36  ;;  %vm1138_vm4 = vcmp.lt.f32.partialorder %v9634_v15, %v12167_v41  ;;  %v10256_v49 = vsub.f32 %v9634_v15, %v6213_v29  ;;  %v5590_v10 = vunpack.i.h.bf16 %v10104_v58  ;;  %12328 = vst [vmem:[#allocation65_spill] sm:$0xff] %v10259_v48  ;;  %v10283_v24 = vld [vmem:[%s6187_s25] sm:$0xff]  ;;  %v10287_v36 = vld [vmem:[%s6187_s25 + $0x70] sm:$0xff]  ;;  %v10295_v42 = vld [vmem:[%s6187_s25 + $0x78] sm:$0xff] }
 0x2c2   : > { %v3971_v38 = vmul.f32 %v3955_v55, %v3275_v22  ;;  %v4610_v3 = vsel %vm4609_vm2, %v4593_v33, %v10239_v25  ;;  %vm1154_vm5 = vmand %vm1116_vm3, %vm1138_vm4  ;;  %v2304_v18 = vsub.f32 %v12167_v41, %v5958_v62  ;;  %v3956_v20 = vmul.f32 %v9050_v53, %v2420_v0 }
 0x2c3   : > { %12327 = vst [vmem:[#allocation63_spill] sm:$0xff] %v10256_v49  ;;  %v3260_v39 = vmul.f32 %v3244_v28, %v2476_v21  ;;  %4801 = vmatprep.mubr.f32.mxu0 %v4610_v3  ;;  %v10267_v15 = vsel %vm1154_vm5, 1.0, %v11958_v32  ;;  %v2272_v58 = vmul.f32 %v12299_v60, %v10256_v49  ;;  %v11866_v35 = vunpack.i.h.bf16 %v10076_v54 }
 0x2c4   : > { %12329 = vst [vmem:[#allocation64_spill] sm:$0xff] %v10267_v15  ;;  %v3987_v6 = vadd.f32 %v3971_v38, %v3931_v19  ;;  %v2328_v55 = vmul.f32 %v12170_v1, %v2304_v18  ;;  %v3120_v31 = vmul.f32 %v12300_v46, %v10035_v12  ;;  %v3932_v0 = vmul.f32 %v3916_v47, %v12330_v44  ;;  %v10301_v38 = vpop.permute.xlu1 %5617  ;;  %v12339_v44 = vld [vmem:[#allocation7_spill] sm:$0xff]  ;;  %v12353_v46 = vld [vmem:[#allocation16_spill] sm:$0xff] }
 0x2c5   : > { %v3276_v50 = vadd.f32 %v3260_v39, %v3220_v40  ;;  %v2288_v52 = vmul.f32 %v10043_v23, %v2272_v58  ;;  %v3832_v28 = vmul.f32 %v12301_v51, %v9868_v27  ;;  %v3160_v19 = vmul.f32 %v12171_v43, %v2304_v18  ;;  %v12334_v58 = vld [vmem:[#allocation13_spill] sm:$0xff] }
 0x2c6   : > { %4475 = vrot.lane.b32.xlu1 %v3987_v6, %s6048_s7  ;;  %v2344_v63 = vmul.f32 %v10267_v15, %v2328_v55  ;;  %v211_v45 = vsub.f32 0.0, %v10283_v24  ;;  %v5595_v40 = vunpack.i.h.bf16 %v10132_v13  ;;  %v4560_v23 = vsel %vm4558_vm6, %v11866_v35, %v5590_v10  ;;  %v12332_v10 = vld [vmem:[#allocation12_spill] sm:$0xff]  ;;  %v12336_v6 = vld [vmem:[#allocation6_spill] sm:$0xff] }
 0x2c7   : > { %v3972_v47 = vmul.f32 %v3956_v20, %v3276_v50  ;;  %v5605_v16 = vunpack.i.h.bf16 %v10158_v8  ;;  %v3136_v21 = vmul.f32 %v3120_v31, %v10083_v30  ;;  %v3848_v62 = vmul.f32 %v3832_v28, %v10098_v2  ;;  %v10309_v8 = vpop.permute.xlu0 %5612  ;;  %v12341_v28 = vld [vmem:[#allocation8_spill] sm:$0xff] }
 0x2c8   : > { %v10298_v22 = vadd.f32 %v2344_v63, %v2288_v52  ;;  %v227_v33 = vmul.f32 1.442695, %v211_v45  ;;  %vm515_vm7 = vcmp.ge.f32.partialorder %v10287_v36, %v12332_v10  ;;  %v3872_v20 = vmul.f32 %v12172_v17, %v2304_v18  ;;  %12333 = vst [vmem:[#allocation68_spill] sm:$0xff] %v10309_v8 }
 0x2c9   : > { %v3988_v3 = vadd.f32 %v3972_v47, %v3932_v0  ;;  %vm516_vm8 = vcmp.ge.f32.partialorder %v10295_v42, %v12332_v10  ;;  %v4577_v30 = vsel %vm4575_vm0, %v4560_v23, %v5595_v40  ;;  %vm537_vm9 = vcmp.lt.f32.partialorder %v10287_v36, %v12334_v58  ;;  %v10347_v0 = vpop.permute.xlu1 %5627 }
 0x2ca   : > { %12331 = vst [vmem:[#allocation70_spill] sm:$0xff] %v10298_v22  ;;  %v3176_v39 = vmul.f32 %v3160_v19, %v10298_v22  ;;  %5881 = vpow2.f32 %v227_v33  ;;  %vm538_vm10 = vcmp.lt.f32.partialorder %v10295_v42, %v12334_v58  ;;  %vm601_vm11 = vcmp.ge.f32.partialorder %v10287_v36, %v12334_v58  ;;  %vm553_vm12 = vmand %vm515_vm7, %vm537_vm9 }
 0x2cb   : > { %4477 = vrot.lane.b32.xlu0 %v3988_v3, %s6048_s7  ;;  %v10324_v18 = vsel %vm11865_vm1, %v4577_v30, %v5605_v16  ;;  %vm602_vm13 = vcmp.ge.f32.partialorder %v10295_v42, %v12334_v58  ;;  %vm623_vm14 = vcmp.lt.f32.partialorder %v10287_v36, %v12336_v6  ;;  %vm554_vm15 = vmand %vm516_vm8, %vm538_vm10  ;;  %v10331_v55 = vsel %vm553_vm12, 1.0, %v11958_v32  ;;  %12340 = vst [vmem:[#allocation69_spill] sm:$0xff] %v10347_v0  ;;  %v10366_v40 = vpop.permute.xlu0 %5622  ;;  %v12344_v3 = vld [vmem:[#allocation30_spill] sm:$0xff] }
 0x2cc   : > { %v10321_v2 = vadd.f32 %v3176_v39, %v3136_v21  ;;  %12337 = vst [vmem:[#allocation71_spill] sm:$0xff] %v10331_v55  ;;  %vm624_vm3 = vcmp.lt.f32.partialorder %v10295_v42, %v12336_v6  ;;  %vm687_vm4 = vcmp.ge.f32.partialorder %v10287_v36, %v12336_v6  ;;  %vm688_vm5 = vcmp.ge.f32.partialorder %v10295_v42, %v12336_v6  ;;  %vm639_vm7 = vmand %vm601_vm11, %vm623_vm14 }
 0x2cd   : > { %v10341_v50 = vsel %vm554_vm15, 1.0, %v11958_v32  ;;  %vm709_vm8 = vcmp.lt.f32.partialorder %v10287_v36, %v12339_v44  ;;  %vm710_vm9 = vcmp.lt.f32.partialorder %v10295_v42, %v12339_v44  ;;  %vm640_vm10 = vmand %vm602_vm13, %vm624_vm3  ;;  %v5199_v52 = vsel %vm639_vm7, 1.0, %v11958_v32  ;;  %v10419_v15 = vpop.permute.xlu1 %5637 }
 0x2ce   : > { %12335 = vst [vmem:[#allocation66_spill] sm:$0xff] %v10321_v2  ;;  %v3888_v31 = vmul.f32 %v3872_v20, %v10321_v2  ;;  %12338 = vst [vmem:[#allocation72_spill] sm:$0xff] %v10341_v50  ;;  %vm773_vm12 = vcmp.ge.f32.partialorder %v10287_v36, %v12339_v44  ;;  %vm774_vm1 = vcmp.ge.f32.partialorder %v10295_v42, %v12339_v44  ;;  %v5200_v19 = vsel %vm640_vm10, 1.0, %v11958_v32 }
 0x2cf   : > { %vm795_vm11 = vcmp.lt.f32.partialorder %v10287_v36, %v12341_v28  ;;  %vm725_vm14 = vmand %vm687_vm4, %vm709_vm8  ;;  %vm796_vm13 = vcmp.lt.f32.partialorder %v10295_v42, %v12341_v28  ;;  %v10364_v45 = vsub.f32 %v10287_v36, %v12332_v10  ;;  %v10374_v47 = vsub.f32 %v10295_v42, %v12332_v10  ;;  %12346 = vst [vmem:[#allocation74_spill] sm:$0xff] %v10419_v15  ;;  %v10430_v51 = vpop.permute.xlu0 %5632 }
 0x2d0   : > { %v3904_v63 = vadd.f32 %v3888_v31, %v3848_v62  ;;  %vm726_vm15 = vmand %vm688_vm5, %vm710_vm9  ;;  %v5215_v23 = vsel %vm725_vm14, 1.0, %v11958_v32  ;;  %v10378_v16 = vsub.f32 %v12336_v6, %v10287_v36  ;;  %v10382_v21 = vsub.f32 %v12336_v6, %v10295_v42  ;;  %12349 = vst [vmem:[#allocation14_spill] sm:$0xff] %v10430_v51 }
 0x2d1   : > { %v5216_v33 = vsel %vm726_vm15, 1.0, %v11958_v32  ;;  %vm811_vm3 = vmand %vm773_vm12, %vm795_vm11  ;;  %v1553_v62 = vmul.f32 %v12344_v3, %v10364_v45  ;;  %v10393_v39 = vsub.f32 %v10287_v36, %v12334_v58  ;;  %v10397_v20 = vsub.f32 %v10295_v42, %v12334_v58  ;;  %v10461_v51 = vpop.permute.xlu1 %4401  ;;  %v12356_v58 = vld [vmem:[#allocation37_spill] sm:$0xff] }
 0x2d2   : > { %12342 = vst [vmem:[#allocation73_spill] sm:$0xff] %v10378_v16  ;;  %12343 = vst [vmem:[#allocation75_spill] sm:$0xff] %v10382_v21  ;;  %4421 = vrot.lane.b32.xlu1 %v3904_v63, %s6047_s17  ;;  %v10403_v30 = vsel %vm811_vm3, 1.0, %v11958_v32  ;;  %v1554_v31 = vmul.f32 %v12344_v3, %v10374_v47  ;;  %v12345_v63 = vld [vmem:[#allocation31_spill] sm:$0xff]  ;;  %v10424_v0 = vsub.f32 %v12339_v44, %v10287_v36  ;;  %vm4524_vm5 = vcmask 588800  }
 0x2d3   : > { %vm812_vm4 = vmand %vm774_vm1, %vm796_vm13  ;;  %v1609_v35 = vmul.f32 %v12345_v63, %v10378_v16  ;;  %v1610_v13 = vmul.f32 %v12345_v63, %v10382_v21  ;;  %v1569_v2 = vmul.f32 %v10331_v55, %v1553_v62  ;;  %v1673_v12 = vmul.f32 %v12345_v63, %v10393_v39  ;;  %12354 = vst [vmem:[#allocation76_spill] sm:$0xff] %v10461_v51 }
 0x2d4   : > { %v5882_v27 = vpop.eup %5881  ;;  %v10412_v25 = vsel %vm812_vm4, 1.0, %v11958_v32  ;;  %v1674_v22 = vmul.f32 %v12345_v63, %v10397_v20  ;;  %v1570_v49 = vmul.f32 %v10341_v50, %v1554_v31  ;;  %12347 = vst [vmem:[#allocation77_spill] sm:$0xff] %v10424_v0  ;;  %v10428_v62 = vsub.f32 %v12339_v44, %v10295_v42 }
 0x2d5   : > { %v259_v61 = vadd.f32 1.0, %v5882_v27  ;;  %v1625_v11 = vmul.f32 %v5199_v52, %v1609_v35  ;;  %v1626_v9 = vmul.f32 %v5200_v19, %v1610_v13  ;;  %v1689_v37 = vmul.f32 %v5199_v52, %v1673_v12  ;;  %v12351_v12 = vld [vmem:[#allocation15_spill] sm:$0xff] }
 0x2d6   : > { %v1690_v26 = vmul.f32 %v5200_v19, %v1674_v22  ;;  %12348 = vst [vmem:[#allocation80_spill] sm:$0xff] %v10428_v62  ;;  %v10438_v35 = vsub.f32 %v10287_v36, %v12336_v6  ;;  %v1729_v22 = vmul.f32 %v12351_v12, %v10424_v0  ;;  %v1730_v13 = vmul.f32 %v12351_v12, %v10428_v62 }
 0x2d7   : > { %5883 = vrcp.f32 %v259_v61  ;;  %v10432_v63 = vadd.f32 %v1625_v11, %v1569_v2  ;;  %v10434_v27 = vadd.f32 %v1626_v9, %v1570_v49  ;;  %v10446_v52 = vsub.f32 %v10295_v42, %v12336_v6  ;;  %v12352_v49 = vld [vmem:[#allocation34_spill] sm:$0xff] }
 0x2d8   : > { %v1825_v11 = vsub.f32 %v12341_v28, %v10287_v36  ;;  %vm4507_vm1 = vcmask 293888   ;;  %v1793_v9 = vmul.f32 %v12351_v12, %v10438_v35  ;;  %v1826_v61 = vsub.f32 %v12341_v28, %v10295_v42 }
 0x2d9   : > { %12350 = vst [vmem:[#allocation78_spill] sm:$0xff] %v10434_v27  ;;  %v2681_v2 = vmul.f32 %v12352_v49, %v10364_v45  ;;  %v2682_v19 = vmul.f32 %v12352_v49, %v10374_v47  ;;  %v1745_v31 = vmul.f32 %v5215_v23, %v1729_v22  ;;  %v1746_v6 = vmul.f32 %v5216_v33, %v1730_v13  ;;  %v10467_v13 = vpop.permute.xlu0 %4399 }
 0x2da   : > { %v1794_v15 = vmul.f32 %v12351_v12, %v10446_v52  ;;  %v1849_v60 = vmul.f32 %v12353_v46, %v1825_v11  ;;  %vm4541_vm7 = vcmask 883712   ;;  %v1809_v56 = vmul.f32 %v5215_v23, %v1793_v9  ;;  %12355 = vst [vmem:[#allocation79_spill] sm:$0xff] %v10467_v13 }
 0x2db   : > { %v1850_v21 = vmul.f32 %v12353_v46, %v1826_v61  ;;  %v2697_v16 = vmul.f32 %v2681_v2, %v10432_v63  ;;  %v2698_v50 = vmul.f32 %v2682_v19, %v10434_v27  ;;  %v1761_v55 = vadd.f32 %v1745_v31, %v1689_v37  ;;  %v12357_v37 = vld [vmem:[#allocation19_spill] sm:$0xff] }
 0x2dc   : > { %v1762_v49 = vadd.f32 %v1746_v6, %v1690_v26  ;;  %v1810_v3 = vmul.f32 %v5216_v33, %v1794_v15  ;;  %v1865_v22 = vmul.f32 %v10403_v30, %v1849_v60  ;;  %v2721_v51 = vmul.f32 %v12356_v58, %v10424_v0 }
 0x2dd   : > { %v1866_v12 = vmul.f32 %v10412_v25, %v1850_v21  ;;  %v2722_v23 = vmul.f32 %v12356_v58, %v10428_v62  ;;  %v2769_v9 = vmul.f32 %v12356_v58, %v10393_v39  ;;  %v2770_v26 = vmul.f32 %v12356_v58, %v10397_v20 }
 0x2de   : > { %v10476_v2 = vadd.f32 %v1865_v22, %v1809_v56  ;;  %v2809_v60 = vmul.f32 %v12357_v37, %v1825_v11  ;;  %v2810_v15 = vmul.f32 %v12357_v37, %v1826_v61  ;;  %v2737_v21 = vmul.f32 %v2721_v51, %v1761_v55  ;;  %v10489_v22 = vpop.permute.xlu1 %5647 }
 0x2df   : > { %v10482_v33 = vadd.f32 %v1866_v12, %v1810_v3  ;;  %v2738_v19 = vmul.f32 %v2722_v23, %v1762_v49  ;;  %v2785_v31 = vmul.f32 %v2769_v9, %v1761_v55  ;;  %v2786_v6 = vmul.f32 %v2770_v26, %v1762_v49  ;;  %12358 = vst [vmem:[#allocation11_spill] sm:$0xff] %v10489_v22  ;;  %v12361_v3 = vld [vmem:[#allocation39_spill] sm:$0xff]  ;;  %v12364_v9 = vld [vmem:[#allocation9_spill] sm:$0xff] }
 0x2e0   : > { %v2825_v13 = vmul.f32 %v2809_v60, %v10476_v2  ;;  %v3481_v62 = vmul.f32 %v12306_v5, %v10364_v45  ;;  %v3482_v56 = vmul.f32 %v12306_v5, %v10374_v47  ;;  %v10491_v0 = vadd.f32 %v2737_v21, %v2697_v16  ;;  %v10501_v45 = vpop.permute.xlu0 %5642 }
 0x2e1   : > { %v5884_v58 = vpop.eup %5883  ;;  %v10493_v27 = vadd.f32 %v2738_v19, %v2698_v50  ;;  %v2826_v51 = vmul.f32 %v2810_v15, %v10482_v33  ;;  %v3521_v55 = vmul.f32 %v12361_v3, %v1825_v11  ;;  %v3522_v23 = vmul.f32 %v12361_v3, %v1826_v61  ;;  %12362 = vst [vmem:[#allocation81_spill] sm:$0xff] %v10501_v45 }
 0x2e2   : > { %12359 = vst [vmem:[#allocation38_spill] sm:$0xff] %v10491_v0  ;;  %v307_v49 = vmul.f32 %v10283_v24, %v5884_v58  ;;  %v2841_v12 = vadd.f32 %v2825_v13, %v2785_v31  ;;  %vm859_vm8 = vcmp.ge.f32.partialorder %v10287_v36, %v12341_v28  ;;  %v3497_v16 = vmul.f32 %v3481_v62, %v10491_v0  ;;  %v10533_v58 = vpop.permute.xlu1 %5657 }
 0x2e3   : > { %12360 = vst [vmem:[#allocation44_spill] sm:$0xff] %v10493_v27  ;;  %v2842_v47 = vadd.f32 %v2826_v51, %v2786_v6  ;;  %v3498_v50 = vmul.f32 %v3482_v56, %v10493_v27  ;;  %vm860_vm9 = vcmp.ge.f32.partialorder %v10295_v42, %v12341_v28  ;;  %v12363_v11 = vunpack.i.l.bf16 %v10192_v57  ;;  %12367 = vst [vmem:[#allocation56_spill] sm:$0xff] %v10533_v58 }
 0x2e4   : > { %v3537_v13 = vmul.f32 %v3521_v55, %v2841_v12  ;;  %vm881_vm10 = vcmp.lt.f32.partialorder %v10287_v36, %v12364_v9  ;;  %vm882_vm12 = vcmp.lt.f32.partialorder %v10295_v42, %v12364_v9  ;;  %v12365_v61 = vunpack.i.l.bf16 %v10227_v34 }
 0x2e5   : > { %v4508_v24 = vsel %vm4507_vm1, %v307_v49, %v12363_v11  ;;  %v3538_v26 = vmul.f32 %v3522_v23, %v2842_v47  ;;  %vm897_vm11 = vmand %vm859_vm8, %vm881_vm10  ;;  %v10519_v60 = vsub.f32 %v10287_v36, %v12339_v44  ;;  %v10523_v15 = vsub.f32 %v10295_v42, %v12339_v44 }
 0x2e6   : > { %v4525_v62 = vsel %vm4524_vm5, %v4508_v24, %v12365_v61  ;;  %v12366_v21 = vunpack.i.l.bf16 %v10076_v54  ;;  %v4611_v31 = vsel %vm4609_vm2, %v10324_v18, %v10259_v48  ;;  %v3553_v6 = vadd.f32 %v3537_v13, %v3497_v16  ;;  %vm898_vm14 = vmand %vm860_vm9, %vm882_vm12  ;;  %v12368_v16 = vld [vmem:[#allocation17_spill] sm:$0xff]  ;;  %v10548_v24 = vpop.permute.xlu0 %5652  ;;  %v10570_v58 = vpop.permute.xlu1 %5667 }
 0x2e7   : > { %v1945_v56 = vsub.f32 %v12364_v9, %v10287_v36  ;;  %v3554_v51 = vadd.f32 %v3538_v26, %v3498_v50  ;;  %v10536_v44 = vsel %vm897_vm11, 1.0, %v11958_v32  ;;  %v1913_v55 = vmul.f32 %v12353_v46, %v10519_v60  ;;  %12369 = vst [vmem:[#allocation58_spill] sm:$0xff] %v10548_v24  ;;  %12371 = vst [vmem:[#allocation82_spill] sm:$0xff] %v10570_v58 }
 0x2e8   : > { %v4542_v19 = vsel %vm4541_vm7, %v4525_v62, %v12366_v21  ;;  %v1914_v49 = vmul.f32 %v12353_v46, %v10523_v15  ;;  %v1946_v23 = vsub.f32 %v12364_v9, %v10295_v42  ;;  %v2857_v50 = vmul.f32 %v12357_v37, %v10438_v35 }
 0x2e9   : > { %4802 = vmatmul.mubr.f32.vlgmr.msra.gmra.mrb[0].mxu0 %v4542_v19  ;;  %v1969_v11 = vmul.f32 %v12368_v16, %v1945_v56  ;;  %v5791_v13 = vpack.i.bf16 %v3554_v51, %v3553_v6  ;;  %v5248_v61 = vsel %vm898_vm14, 1.0, %v11958_v32  ;;  %v1929_v62 = vmul.f32 %v10403_v30, %v1913_v55 }
 0x2ea   : > { %4806 = vmatprep.mubr.f32.mxu0 %v4611_v31  ;;  %v2858_v46 = vmul.f32 %v12357_v37, %v10446_v52  ;;  %v1930_v26 = vmul.f32 %v10412_v25, %v1914_v49  ;;  %v1970_v21 = vmul.f32 %v12368_v16, %v1946_v23  ;;  %v12370_v31 = vld [vmem:[#allocation20_spill] sm:$0xff]  ;;  %v2873_v6 = vmul.f32 %v2857_v50, %v10476_v2  ;;  %v10567_v49 = vld [vmem:[%s6187_s25 + $0x8] sm:$0xff]  ;;  %v12372_v50 = vld [vmem:[#allocation22_spill] sm:$0xff] }
 0x2eb   : > { %v1985_v19 = vmul.f32 %v10536_v44, %v1969_v11  ;;  %v2897_v18 = vmul.f32 %v12370_v31, %v1945_v56  ;;  %5792 = vrot.lane.b32.xlu0 %v5791_v13, %s6042_s5  ;;  %v3569_v30 = vmul.f32 %v12361_v3, %v10393_v39  ;;  %v3570_v37 = vmul.f32 %v12361_v3, %v10397_v20 }
 0x2ec   : > { %v1986_v51 = vmul.f32 %v5248_v61, %v1970_v21  ;;  %v2898_v55 = vmul.f32 %v12370_v31, %v1946_v23  ;;  %v212_v11 = vsub.f32 0.0, %v10567_v49  ;;  %v2874_v2 = vmul.f32 %v2858_v46, %v10482_v33  ;;  %v10576_v21 = vpop.permute.xlu0 %5662 }
 0x2ed   : > { %v2001_v25 = vadd.f32 %v1985_v19, %v1929_v62  ;;  %v3609_v48 = vmul.f32 %v12372_v50, %v1945_v56  ;;  %v3610_v39 = vmul.f32 %v12372_v50, %v1946_v23  ;;  %v3585_v3 = vmul.f32 %v3569_v30, %v2841_v12  ;;  %12373 = vst [vmem:[#allocation87_spill] sm:$0xff] %v10576_v21 }
 0x2ee   : > { %v2002_v24 = vadd.f32 %v1986_v51, %v1930_v26  ;;  %v229_v62 = vmul.f32 1.442695, %v212_v11  ;;  %v3586_v19 = vmul.f32 %v3570_v37, %v2842_v47  ;;  %vm945_vm13 = vcmp.ge.f32.partialorder %v10287_v36, %v12364_v9  ;;  %v10604_v37 = vpop.permute.xlu1 %4405 }
 0x2ef   : > { %v2913_v20 = vmul.f32 %v2897_v18, %v2001_v25  ;;  %vm946_vm15 = vcmp.ge.f32.partialorder %v10295_v42, %v12364_v9  ;;  %vm967_vm3 = vcmp.lt.f32.partialorder %v10287_v36, %v6213_v29  ;;  %vm968_vm4 = vcmp.lt.f32.partialorder %v10295_v42, %v6213_v29  ;;  %12374 = vst [vmem:[#allocation83_spill] sm:$0xff] %v10604_v37 }
 0x2f0   : > { %v2914_v33 = vmul.f32 %v2898_v55, %v2002_v24  ;;  %5885 = vpow2.f32 %v229_v62  ;;  %vm983_vm8 = vmand %vm945_vm13, %vm967_vm3  ;;  %v10591_v47 = vsub.f32 %v10287_v36, %v12341_v28  ;;  %v10595_v18 = vsub.f32 %v10295_v42, %v12341_v28  ;;  %v12375_v55 = vld [vmem:[#allocation18_spill] sm:$0xff]  ;;  %v10616_v13 = vpop.permute.xlu0 %4403 }
 0x2f1   : > { %v2929_v56 = vadd.f32 %v2913_v20, %v2873_v6  ;;  %vm984_vm9 = vmand %vm946_vm15, %vm968_vm4  ;;  %v10587_v12 = vsel %vm983_vm8, 1.0, %v11958_v32  ;;  %v2065_v23 = vsub.f32 %v6213_v29, %v10287_v36  ;;  %v2066_v30 = vsub.f32 %v6213_v29, %v10295_v42  ;;  %12376 = vst [vmem:[#allocation84_spill] sm:$0xff] %v10616_v13 }
 0x2f2   : > { %v2930_v46 = vadd.f32 %v2914_v33, %v2874_v2  ;;  %v10600_v6 = vsel %vm984_vm9, 1.0, %v11958_v32  ;;  %v2033_v51 = vmul.f32 %v12368_v16, %v10591_v47  ;;  %v2034_v28 = vmul.f32 %v12368_v16, %v10595_v18 }
 0x2f3   : > { %v3625_v26 = vmul.f32 %v3609_v48, %v2929_v56  ;;  %v2089_v11 = vmul.f32 %v12375_v55, %v2065_v23  ;;  %v2945_v2 = vmul.f32 %v12370_v31, %v10519_v60  ;;  %v2090_v62 = vmul.f32 %v12375_v55, %v2066_v30 }
 0x2f4   : > { %v3626_v48 = vmul.f32 %v3610_v39, %v2930_v46  ;;  %v2946_v33 = vmul.f32 %v12370_v31, %v10523_v15  ;;  %v2049_v37 = vmul.f32 %v10536_v44, %v2033_v51  ;;  %v2050_v58 = vmul.f32 %v5248_v61, %v2034_v28  ;;  %v12377_v39 = vld [vmem:[#allocation21_spill] sm:$0xff] }
 0x2f5   : > { %v3641_v20 = vadd.f32 %v3625_v26, %v3585_v3  ;;  %v2105_v21 = vmul.f32 %v10587_v12, %v2089_v11  ;;  %v2961_v16 = vmul.f32 %v2945_v2, %v2001_v25  ;;  %v2106_v45 = vmul.f32 %v10600_v6, %v2090_v62  ;;  %v12378_v25 = vld [vmem:[#allocation25_spill] sm:$0xff]  ;;  %v10637_v2 = vld [vmem:[%s6187_s25 + $0x50] sm:$0xff] }
 0x2f6   : > { %v3642_v22 = vadd.f32 %v3626_v48, %v3586_v19  ;;  %v2962_v27 = vmul.f32 %v2946_v33, %v2002_v24  ;;  %v2985_v3 = vmul.f32 %v12377_v39, %v2065_v23  ;;  %v2986_v0 = vmul.f32 %v12377_v39, %v2066_v30  ;;  %v10633_v24 = vpop.permute.xlu1 %5677  ;;  %12380 = vst [vmem:[#allocation23_spill] sm:$0xff] %v10637_v2 }
 0x2f7   : > { %v10622_v26 = vadd.f32 %v2105_v21, %v2049_v37  ;;  %v3657_v31 = vmul.f32 %v12372_v50, %v10438_v35  ;;  %v3658_v44 = vmul.f32 %v12372_v50, %v10446_v52  ;;  %v10629_v51 = vadd.f32 %v2106_v45, %v2050_v58  ;;  %12379 = vst [vmem:[#allocation40_spill] sm:$0xff] %v10633_v24  ;;  %v10649_v58 = vpop.permute.xlu0 %5672 }
 0x2f8   : > { %v5796_v61 = vpack.i.bf16 %v3642_v22, %v3641_v20  ;;  %v3697_v19 = vmul.f32 %v12378_v25, %v2065_v23  ;;  %v3698_v28 = vmul.f32 %v12378_v25, %v2066_v30  ;;  %vm1199_vm10 = vcmp.ge.f32.partialorder %v10637_v2, %v12167_v41  ;;  %12381 = vst [vmem:[#allocation85_spill] sm:$0xff] %v10649_v58  ;;  %v12382_v23 = vld [vmem:[#allocation51_spill] sm:$0xff]  ;;  %v12383_v30 = vld [vmem:[#allocation54_spill] sm:$0xff] }
 0x2f9   : > { %v3001_v21 = vmul.f32 %v2985_v3, %v10622_v26  ;;  %v3673_v37 = vmul.f32 %v3657_v31, %v2929_v56  ;;  %v3674_v11 = vmul.f32 %v3658_v44, %v2930_v46  ;;  %v3002_v52 = vmul.f32 %v2986_v0, %v10629_v51 }
 0x2fa   : > { %v5886_v35 = vpop.eup %5885  ;;  %5797 = vrot.lane.b32.xlu1 %v5796_v61, %s6043_s6  ;;  %vm1221_vm12 = vcmp.lt.f32.partialorder %v10637_v2, %v8916_v59  ;;  %v2373_v22 = vsub.f32 %v10637_v2, %v12159_v14  ;;  %v2421_v45 = vsub.f32 %v8916_v59, %v10637_v2  ;;  %v3205_v46 = vmul.f32 %v12171_v43, %v12382_v23  ;;  %v12384_v61 = vld [vmem:[#allocation57_spill] sm:$0xff] }
 0x2fb   : > { %v260_v50 = vadd.f32 1.0, %v5886_v35  ;;  %v10651_v56 = vadd.f32 %v3001_v21, %v2961_v16  ;;  %vm1237_vm11 = vmand %vm1199_vm10, %vm1221_vm12  ;;  %v3917_v0 = vmul.f32 %v12172_v17, %v12383_v30  ;;  %v10657_v48 = vadd.f32 %v3002_v52, %v2962_v27  ;;  %v10668_v52 = vpop.permute.xlu1 %5687 }
 0x2fc   : > { %v5307_v20 = vsel %vm1237_vm11, 1.0, %v11958_v32  ;;  %v2389_v62 = vmul.f32 %v12170_v1, %v2373_v22  ;;  %v2445_v33 = vmul.f32 %v9021_v4, %v2421_v45  ;;  %v3245_v27 = vmul.f32 %v9030_v7, %v2421_v45  ;;  %12385 = vst [vmem:[#allocation47_spill] sm:$0xff] %v10668_v52  ;;  %v12391_v52 = vld [vmem:[#allocation28_spill] sm:$0xff] }
 0x2fd   : > { %5887 = vrcp.f32 %v260_v50  ;;  %v3713_v31 = vmul.f32 %v3697_v19, %v10651_v56  ;;  %v3714_v44 = vmul.f32 %v3698_v28, %v10657_v48  ;;  %v12386_v22 = vunpack.i.l.bf16 %v10301_v38  ;;  %v12388_v19 = vld [vmem:[#allocation55_spill] sm:$0xff] }
 0x2fe   : > { %v2405_v21 = vmul.f32 %v12384_v61, %v2389_v62  ;;  %v2461_v35 = vmul.f32 %v5307_v20, %v2445_v33  ;;  %v12387_v23 = vunpack.i.l.bf16 %v10309_v8  ;;  %v3221_v3 = vmul.f32 %v3205_v46, %v12388_v19  ;;  %v12389_v62 = vld [vmem:[#allocation60_spill] sm:$0xff]  ;;  %v10681_v61 = vpop.permute.xlu0 %5682 }
 0x2ff   : > { %v3729_v16 = vadd.f32 %v3713_v31, %v3673_v37  ;;  %v3730_v28 = vadd.f32 %v3714_v44, %v3674_v11  ;;  %v3933_v20 = vmul.f32 %v3917_v0, %v12389_v62  ;;  %v3957_v33 = vmul.f32 %v9050_v53, %v2421_v45  ;;  %12390 = vst [vmem:[#allocation86_spill] sm:$0xff] %v10681_v61  ;;  %v10708_v44 = vpop.permute.xlu1 %5697  ;;  %v12395_v62 = vld [vmem:[#allocation41_spill] sm:$0xff] }
 0x300   : > { %v10675_v30 = vsel %vm4558_vm6, %v12387_v23, %v12386_v22  ;;  %v2477_v2 = vadd.f32 %v2461_v35, %v2405_v21  ;;  %vm343_vm14 = vcmp.ge.f32.partialorder %v10287_v36, %v12391_v52  ;;  %vm344_vm13 = vcmp.ge.f32.partialorder %v10295_v42, %v12391_v52  ;;  %v12392_v22 = vld [vmem:[#allocation29_spill] sm:$0xff]  ;;  %12393 = vst [vmem:[#allocation46_spill] sm:$0xff] %v10708_v44  ;;  %v12394_v35 = vld [vmem:[#allocation10_spill] sm:$0xff] }
 0x301   : > { %vm365_vm15 = vcmp.lt.f32.partialorder %v10287_v36, %v12392_v22  ;;  %vm366_vm3 = vcmp.lt.f32.partialorder %v10295_v42, %v12392_v22  ;;  %v5801_v37 = vpack.i.bf16 %v3730_v28, %v3729_v16  ;;  %vm429_vm8 = vcmp.ge.f32.partialorder %v10287_v36, %v12392_v22 }
 0x302   : > { %v3261_v11 = vmul.f32 %v3245_v27, %v2477_v2  ;;  %vm381_vm4 = vmand %vm343_vm14, %vm365_vm15  ;;  %vm430_vm9 = vcmp.ge.f32.partialorder %v10295_v42, %v12392_v22  ;;  %vm451_vm12 = vcmp.lt.f32.partialorder %v10287_v36, %v12332_v10  ;;  %vm452_vm11 = vcmp.lt.f32.partialorder %v10295_v42, %v12332_v10 }
 0x303   : > { %vm382_vm10 = vmand %vm344_vm13, %vm366_vm3  ;;  %v5151_v45 = vsel %vm381_vm4, 1.0, %v11958_v32  ;;  %v1289_v46 = vsub.f32 %v10287_v36, %v12391_v52  ;;  %5802 = vrot.lane.b32.xlu0 %v5801_v37, %s6041_s27  ;;  %v1290_v16 = vsub.f32 %v10295_v42, %v12391_v52  ;;  %v1345_v31 = vsub.f32 %v12332_v10, %v10287_v36 }
 0x304   : > { %v3277_v2 = vadd.f32 %v3261_v11, %v3221_v3  ;;  %v5152_v0 = vsel %vm382_vm10, 1.0, %v11958_v32  ;;  %vm467_vm14 = vmand %vm429_vm8, %vm451_vm12  ;;  %v1346_v23 = vsub.f32 %v12332_v10, %v10295_v42  ;;  %v10716_v3 = vsub.f32 %v10287_v36, %v12392_v22  ;;  %v10721_v11 = vpop.permute.xlu0 %5692 }
 0x305   : > { %vm468_vm13 = vmand %vm430_vm9, %vm452_vm11  ;;  %v5167_v21 = vsel %vm467_vm14, 1.0, %v11958_v32  ;;  %v1313_v27 = vmul.f32 %v12394_v35, %v1289_v46  ;;  %v1314_v28 = vmul.f32 %v12394_v35, %v1290_v16  ;;  %v1369_v37 = vmul.f32 %v12395_v62, %v1345_v31  ;;  %12396 = vst [vmem:[#allocation24_spill] sm:$0xff] %v10721_v11 }
 0x306   : > { %v3973_v19 = vmul.f32 %v3957_v33, %v3277_v2  ;;  %v5168_v52 = vsel %vm468_vm13, 1.0, %v11958_v32  ;;  %v1370_v61 = vmul.f32 %v12395_v62, %v1346_v23  ;;  %v10726_v10 = vsub.f32 %v10295_v42, %v12392_v22 }
 0x307   : > { %v5888_v50 = vpop.eup %5887  ;;  %v1329_v44 = vmul.f32 %v5151_v45, %v1313_v27  ;;  %v1433_v24 = vmul.f32 %v12395_v62, %v10716_v3  ;;  %v1330_v58 = vmul.f32 %v5152_v0, %v1314_v28  ;;  %v1385_v35 = vmul.f32 %v5167_v21, %v1369_v37  ;;  %v12397_v45 = vld [vmem:[#allocation13_spill] sm:$0xff]  ;;  %v12402_v28 = vld [vmem:[#allocation30_spill] sm:$0xff] }
 0x308   : > { %v308_v33 = vmul.f32 %v10567_v49, %v5888_v50  ;;  %v3989_v2 = vadd.f32 %v3973_v19, %v3933_v20  ;;  %v1386_v13 = vmul.f32 %v5168_v52, %v1370_v61  ;;  %v1434_v31 = vmul.f32 %v12395_v62, %v10726_v10  ;;  %v12399_v50 = vld [vmem:[#allocation35_spill] sm:$0xff]  ;;  %v10742_v61 = vpop.permute.xlu1 %4409 }
 0x309   : > { %v1449_v11 = vmul.f32 %v5167_v21, %v1433_v24  ;;  %v1465_v27 = vsub.f32 %v12397_v45, %v10287_v36  ;;  %v12398_v23 = vunpack.i.h.bf16 %v10192_v57  ;;  %v1401_v8 = vadd.f32 %v1385_v35, %v1329_v44  ;;  %12400 = vst [vmem:[#allocation12_spill] sm:$0xff] %v10742_v61  ;;  %v10753_v35 = vpop.permute.xlu0 %4407 }
 0x30a   : > { %4479 = vrot.lane.b32.xlu1 %v3989_v2, %s6048_s7  ;;  %v1466_v49 = vsub.f32 %v12397_v45, %v10295_v42  ;;  %v2505_v20 = vmul.f32 %v12399_v50, %v1289_v46  ;;  %v12401_v0 = vunpack.i.h.bf16 %v10227_v34  ;;  %v1402_v21 = vadd.f32 %v1386_v13, %v1330_v58  ;;  %v12404_v45 = vld [vmem:[#allocation71_spill] sm:$0xff] }
 0x30b   : > { %v4509_v22 = vsel %vm4507_vm1, %v308_v33, %v12398_v23  ;;  %v1450_v19 = vmul.f32 %v5168_v52, %v1434_v31  ;;  %v1489_v57 = vmul.f32 %v12402_v28, %v1465_v27  ;;  %v12403_v62 = vunpack.i.h.bf16 %v10076_v54  ;;  %v12405_v23 = vld [vmem:[#allocation36_spill] sm:$0xff] }
 0x30c   : > { %v4526_v24 = vsel %vm4524_vm5, %v4509_v22, %v12401_v0  ;;  %v1490_v44 = vmul.f32 %v12402_v28, %v1466_v49  ;;  %v2506_v33 = vmul.f32 %v12399_v50, %v1290_v16  ;;  %v2521_v2 = vmul.f32 %v2505_v20, %v1401_v8  ;;  %v12406_v54 = vld [vmem:[#allocation72_spill] sm:$0xff]  ;;  %v12407_v50 = vld [vmem:[#allocation73_spill] sm:$0xff]  ;;  %v12408_v8 = vld [vmem:[#allocation34_spill] sm:$0xff] }
 0x30d   : > { %v4543_v37 = vsel %vm4541_vm7, %v4526_v24, %v12403_v62  ;;  %v1505_v34 = vmul.f32 %v12404_v45, %v1489_v57  ;;  %v2545_v22 = vmul.f32 %v12405_v23, %v1465_v27  ;;  %v2546_v13 = vmul.f32 %v12405_v23, %v1466_v49  ;;  %v12409_v28 = vld [vmem:[#allocation75_spill] sm:$0xff]  ;;  %v12410_v62 = vld [vmem:[#allocation42_spill] sm:$0xff] }
 0x30e   : > { %4807 = vmatmul.mubr.f32.gmra.mrb[2].mxu0 %v4543_v37  ;;  %v2593_v58 = vmul.f32 %v12405_v23, %v10716_v3  ;;  %v1506_v52 = vmul.f32 %v12406_v54, %v1490_v44  ;;  %v2522_v31 = vmul.f32 %v2506_v33, %v1402_v21  ;;  %v2594_v0 = vmul.f32 %v12405_v23, %v10726_v10  ;;  %v12411_v44 = vld [vmem:[#allocation26_spill] sm:$0xff]  ;;  %v10774_v23 = vpop.permute.xlu1 %5707 }
 0x30f   : > { %v2633_v20 = vmul.f32 %v12408_v8, %v12407_v50  ;;  %v1521_v24 = vadd.f32 %v1505_v34, %v1449_v11  ;;  %v2634_v57 = vmul.f32 %v12408_v8, %v12409_v28  ;;  %v3305_v27 = vmul.f32 %v12410_v62, %v1289_v46  ;;  %12412 = vst [vmem:[#allocation6_spill] sm:$0xff] %v10774_v23  ;;  %v12413_v34 = vld [vmem:[#allocation78_spill] sm:$0xff] }
 0x310   : > { %v3306_v49 = vmul.f32 %v12410_v62, %v1290_v16  ;;  %v1522_v37 = vadd.f32 %v1506_v52, %v1450_v19  ;;  %v3345_v21 = vmul.f32 %v12411_v44, %v12407_v50  ;;  %v3346_v33 = vmul.f32 %v12411_v44, %v12409_v28 }
 0x311   : > { %v2649_v45 = vmul.f32 %v2633_v20, %v10432_v63  ;;  %v2561_v54 = vmul.f32 %v2545_v22, %v1521_v24  ;;  %v2609_v11 = vmul.f32 %v2593_v58, %v1521_v24  ;;  %v2650_v61 = vmul.f32 %v2634_v57, %v12413_v34  ;;  %v10783_v63 = vpop.permute.xlu0 %5702 }
 0x312   : > { %vm1031_vm15 = vcmp.ge.f32.partialorder %v10287_v36, %v6213_v29  ;;  %v2562_v46 = vmul.f32 %v2546_v13, %v1522_v37  ;;  %v2610_v16 = vmul.f32 %v2594_v0, %v1522_v37  ;;  %vm1032_vm3 = vcmp.ge.f32.partialorder %v10295_v42, %v6213_v29  ;;  %v12414_v13 = vld [vmem:[#allocation14_spill] sm:$0xff] }
 0x313   : > { %vm1053_vm4 = vcmp.lt.f32.partialorder %v10287_v36, %v12159_v14  ;;  %v2577_v19 = vadd.f32 %v2561_v54, %v2521_v2  ;;  %v10785_v52 = vadd.f32 %v2649_v45, %v2609_v11  ;;  %vm1054_vm8 = vcmp.lt.f32.partialorder %v10295_v42, %v12159_v14  ;;  %v12416_v54 = vld [vmem:[#allocation27_spill] sm:$0xff] }
 0x314   : > { %vm1069_vm9 = vmand %vm1031_vm15, %vm1053_vm4  ;;  %v10791_v22 = vsub.f32 %v10287_v36, %v12364_v9  ;;  %v2578_v0 = vadd.f32 %v2562_v46, %v2522_v31  ;;  %v10794_v50 = vadd.f32 %v2650_v61, %v2610_v16  ;;  %v10798_v8 = vsub.f32 %v10295_v42, %v12364_v9  ;;  %v10811_v9 = vpop.permute.xlu1 %5717 }
 0x315   : > { %vm1070_vm10 = vmand %vm1032_vm3, %vm1054_vm8  ;;  %v3321_v2 = vmul.f32 %v3305_v27, %v2577_v19  ;;  %v3361_v20 = vmul.f32 %v3345_v21, %v10785_v52  ;;  %v10802_v24 = vsel %vm1069_vm9, 1.0, %v11958_v32  ;;  %v2185_v31 = vsub.f32 %v12159_v14, %v10287_v36  ;;  %12415 = vst [vmem:[#allocation7_spill] sm:$0xff] %v10811_v9  ;;  %v10824_v34 = vpop.permute.xlu0 %5712  ;;  %v12418_v19 = vld [vmem:[#allocation33_spill] sm:$0xff] }
 0x316   : > { %v2153_v28 = vmul.f32 %v12375_v55, %v10791_v22  ;;  %v3322_v57 = vmul.f32 %v3306_v49, %v2578_v0  ;;  %v3362_v62 = vmul.f32 %v3346_v33, %v10794_v50  ;;  %v2154_v61 = vmul.f32 %v12375_v55, %v10798_v8  ;;  %12417 = vst [vmem:[#allocation8_spill] sm:$0xff] %v10824_v34 }
 0x317   : > { %v3377_v27 = vadd.f32 %v3361_v20, %v3321_v2  ;;  %v10814_v37 = vsel %vm1070_vm10, 1.0, %v11958_v32  ;;  %v2186_v45 = vsub.f32 %v12159_v14, %v10295_v42  ;;  %v3033_v49 = vmul.f32 %v12377_v39, %v10591_v47 }
 0x318   : > { %v3378_v21 = vadd.f32 %v3362_v62, %v3322_v57  ;;  %v2169_v33 = vmul.f32 %v10587_v12, %v2153_v28  ;;  %v2209_v55 = vmul.f32 %v12416_v54, %v2185_v31  ;;  %v3034_v11 = vmul.f32 %v12377_v39, %v10595_v18  ;;  %v12419_v62 = vld [vmem:[#allocation32_spill] sm:$0xff] }
 0x319   : > { %v2170_v46 = vmul.f32 %v10600_v6, %v2154_v61  ;;  %v2210_v16 = vmul.f32 %v12416_v54, %v2186_v45  ;;  %v3049_v42 = vmul.f32 %v3033_v49, %v10622_v26  ;;  %v3073_v0 = vmul.f32 %v12418_v19, %v2185_v31  ;;  %v10844_v49 = vld [vmem:[%s6187_s25 + $0x58] sm:$0xff] }
 0x31a   : > { %v5806_v2 = vpack.i.bf16 %v3378_v21, %v3377_v27  ;;  %v2225_v20 = vmul.f32 %v10802_v24, %v2209_v55  ;;  %v3074_v12 = vmul.f32 %v12418_v19, %v2186_v45  ;;  %v3745_v28 = vmul.f32 %v12378_v25, %v10519_v60  ;;  %v10850_v60 = vpop.permute.xlu1 %5727  ;;  %v12421_v55 = vld [vmem:[#allocation52_spill] sm:$0xff] }
 0x31b   : > { %v2226_v39 = vmul.f32 %v10814_v37, %v2210_v16  ;;  %v3050_v57 = vmul.f32 %v3034_v11, %v10629_v51  ;;  %v3746_v6 = vmul.f32 %v12378_v25, %v10523_v15  ;;  %v3785_v61 = vmul.f32 %v12419_v62, %v2185_v31  ;;  %12420 = vst [vmem:[#allocation31_spill] sm:$0xff] %v10850_v60  ;;  %v12425_v60 = vld [vmem:[#allocation48_spill] sm:$0xff] }
 0x31c   : > { %5807 = vrot.lane.b32.xlu0 %v5806_v2, %s6044_s9  ;;  %v10840_v26 = vadd.f32 %v2225_v20, %v2169_v33  ;;  %v3786_v27 = vmul.f32 %v12419_v62, %v2186_v45  ;;  %vm1200_vm12 = vcmp.ge.f32.partialorder %v10844_v49, %v12167_v41  ;;  %vm1222_vm11 = vcmp.lt.f32.partialorder %v10844_v49, %v8916_v59  ;;  %v12423_v20 = vld [vmem:[#allocation45_spill] sm:$0xff]  ;;  %s5335_s9 = sshll.u32 %s6093_s16, 11 }
 0x31d   : > { %v10852_v51 = vadd.f32 %v2226_v39, %v2170_v46  ;;  %v3761_v15 = vmul.f32 %v3745_v28, %v10651_v56  ;;  %vm1238_vm14 = vmand %vm1200_vm12, %vm1222_vm11  ;;  %v2374_v25 = vsub.f32 %v10844_v49, %v12159_v14  ;;  %v2422_v31 = vsub.f32 %v8916_v59, %v10844_v49  ;;  %v10864_v46 = vpop.permute.xlu0 %5722  ;;  %s11504_s19 = scalar_lea.hbm %s11556_s3, %s5335_s9 }
 0x31e   : > { %v3089_v45 = vmul.f32 %v3073_v0, %v10840_v26  ;;  %v3762_v21 = vmul.f32 %v3746_v6, %v10657_v48  ;;  %v5308_v33 = vsel %vm1238_vm14, 1.0, %v11958_v32  ;;  %v3206_v11 = vmul.f32 %v12171_v43, %v12421_v55  ;;  %12422 = vst [vmem:[#allocation15_spill] sm:$0xff] %v10864_v46  ;;  %v12424_v0 = vld [vmem:[#allocation5_spill] sm:$0xff] }
 0x31f   : > { %v3090_v56 = vmul.f32 %v3074_v12, %v10852_v51  ;;  %v2390_v16 = vmul.f32 %v12170_v1, %v2374_v25  ;;  %v2446_v2 = vmul.f32 %v9021_v4, %v2422_v31  ;;  %v3918_v28 = vmul.f32 %v12172_v17, %v12423_v20  ;;  %v12427_v20 = vld [vmem:[#allocation80_spill] sm:$0xff] }
 0x320   : > { %v10871_v39 = vadd.f32 %v3089_v45, %v3049_v42  ;;  %v3222_v48 = vmul.f32 %v3206_v11, %v12424_v0  ;;  %v3246_v6 = vmul.f32 %v9030_v7, %v2422_v31  ;;  %v3958_v58 = vmul.f32 %v9050_v53, %v2422_v31  ;;  %v12426_v45 = vld [vmem:[#allocation77_spill] sm:$0xff]  ;;  %v12430_v0 = vld [vmem:[#allocation44_spill] sm:$0xff] }
 0x321   : > { %v10876_v55 = vadd.f32 %v3090_v56, %v3050_v57  ;;  %v2406_v9 = vmul.f32 %v12425_v60, %v2390_v16  ;;  %v2462_v12 = vmul.f32 %v5308_v33, %v2446_v2  ;;  %v3393_v25 = vmul.f32 %v12411_v44, %v10716_v3  ;;  %v10888_v57 = vpop.permute.xlu1 %4459  ;;  %v12429_v16 = vld [vmem:[#allocation38_spill] sm:$0xff] }
 0x322   : > { %v3801_v46 = vmul.f32 %v3785_v61, %v10871_v39  ;;  %v3394_v42 = vmul.f32 %v12411_v44, %v10726_v10  ;;  %v3433_v11 = vmul.f32 %v12306_v5, %v12426_v45  ;;  %v3434_v31 = vmul.f32 %v12306_v5, %v12427_v20  ;;  %v10899_v5 = vpop.permute.xlu0 %4411 }
 0x323   : > { %v3802_v60 = vmul.f32 %v3786_v27, %v10876_v55  ;;  %v2478_v33 = vadd.f32 %v2462_v12, %v2406_v9  ;;  %v3409_v56 = vmul.f32 %v3393_v25, %v10785_v52  ;;  %v12428_v3 = vunpack.i.l.bf16 %v10366_v40  ;;  %12431 = vst [vmem:[#allocation16_spill] sm:$0xff] %v10899_v5  ;;  %v10905_v27 = vld [vmem:[%s6187_s25 + $0x10] sm:$0xff]  ;;  %v12448_v5 = vld [vmem:[#allocation61_spill] sm:$0xff] }
 0x324   : > { %v3817_v10 = vadd.f32 %v3801_v46, %v3761_v15  ;;  %v3410_v44 = vmul.f32 %v3394_v42, %v10794_v50  ;;  %v3449_v2 = vmul.f32 %v3433_v11, %v12429_v16  ;;  %v3450_v45 = vmul.f32 %v3434_v31, %v12430_v0  ;;  %v12434_v46 = vld [vmem:[#allocation79_spill] sm:$0xff]  ;;  %v12435_v31 = vld [vmem:[#allocation49_spill] sm:$0xff] }
 0x325   : > { %v4578_v61 = vsel %vm4575_vm0, %v10675_v30, %v12428_v3  ;;  %v3818_v20 = vadd.f32 %v3802_v60, %v3762_v21  ;;  %v3262_v34 = vmul.f32 %v3246_v6, %v2478_v33  ;;  %v12432_v9 = vunpack.i.l.bf16 %v12414_v13  ;;  %v10912_v60 = vpop.permute.xlu1 %4413 }
 0x326   : > { %vm12433_vm13 = vcmask 719872   ;;  %v213_v12 = vsub.f32 0.0, %v10905_v27  ;;  %v5620_v30 = vunpack.i.h.bf16 %v10301_v38  ;;  %v3465_v15 = vadd.f32 %v3449_v2, %v3409_v56  ;;  %12436 = vst [vmem:[#allocation37_spill] sm:$0xff] %v10912_v60  ;;  %v12437_v38 = vld [vmem:[#allocation68_spill] sm:$0xff] }
 0x327   : > { %v4595_v52 = vsel %vm12433_vm13, %v4578_v61, %v12432_v9  ;;  %v3466_v50 = vadd.f32 %v3450_v45, %v3410_v44  ;;  %v5811_v42 = vpack.i.bf16 %v3818_v20, %v3817_v10  ;;  %v3278_v11 = vadd.f32 %v3262_v34, %v3222_v48  ;;  %v10924_v10 = vpop.permute.xlu0 %4461  ;;  %v10938_v45 = vld [vmem:[%s6187_s25 + $0x60] sm:$0xff]  ;;  %v10952_v9 = vld [vmem:[%s6187_s25 + $0x18] sm:$0xff] }
 0x328   : > { %v4612_v25 = vsel %vm4609_vm2, %v4595_v52, %v12434_v46  ;;  %v3934_v21 = vmul.f32 %v3918_v28, %v12435_v31  ;;  %v231_v6 = vmul.f32 1.442695, %v213_v12  ;;  %vm1117_vm15 = vcmp.ge.f32.partialorder %v10287_v36, %v12159_v14  ;;  %v12439_v28 = vld [vmem:[#allocation69_spill] sm:$0xff]  ;;  %12440 = vst [vmem:[#allocation19_spill] sm:$0xff] %v10938_v45  ;;  %v12441_v12 = vld [vmem:[#allocation74_spill] sm:$0xff] }
 0x329   : > { %4811 = vmatprep.mubr.f32.mxu0 %v4612_v25  ;;  %5812 = vrot.lane.b32.xlu1 %v5811_v42, %s6046_s11  ;;  %v3974_v33 = vmul.f32 %v3958_v58, %v3278_v11  ;;  %v5816_v3 = vpack.i.bf16 %v3466_v50, %v3465_v15  ;;  %v12438_v56 = vunpack.i.h.bf16 %v12437_v38  ;;  %v5625_v34 = vunpack.i.h.bf16 %v10366_v40  ;;  %v10960_v42 = vpop.permute.xlu1 %5737 }
 0x32a   : > { %5889 = vpow2.f32 %v231_v6  ;;  %vm1139_vm3 = vcmp.lt.f32.partialorder %v10287_v36, %v12167_v41  ;;  %v10929_v16 = vsub.f32 %v10287_v36, %v6213_v29  ;;  %v2305_v2 = vsub.f32 %v12167_v41, %v10287_v36  ;;  %12442 = vst [vmem:[#allocation39_spill] sm:$0xff] %v10960_v42 }
 0x32b   : > { %v4562_v61 = vsel %vm4558_vm6, %v12438_v56, %v5620_v30  ;;  %v3990_v44 = vadd.f32 %v3974_v33, %v3934_v21  ;;  %vm1155_vm4 = vmand %vm1117_vm15, %vm1139_vm3  ;;  %v5635_v40 = vunpack.i.h.bf16 %v12414_v13  ;;  %vm1201_vm8 = vcmp.ge.f32.partialorder %v10938_v45, %v12167_v41  ;;  %v12443_v33 = vld [vmem:[#allocation81_spill] sm:$0xff]  ;;  %v10972_v48 = vpop.permute.xlu0 %5732 }
 0x32c   : > { %v10935_v0 = vsel %vm1155_vm4, 1.0, %v11958_v32  ;;  %vm1223_vm9 = vcmp.lt.f32.partialorder %v10938_v45, %v8916_v59  ;;  %v2273_v36 = vmul.f32 %v12416_v54, %v10929_v16  ;;  %v2329_v13 = vmul.f32 %v12170_v1, %v2305_v2  ;;  %12445 = vst [vmem:[#allocation9_spill] sm:$0xff] %v10972_v48  ;;  %v12446_v48 = vld [vmem:[#allocation43_spill] sm:$0xff] }
 0x32d   : > { %4481 = vrot.lane.b32.xlu0 %v3990_v44, %s6048_s7  ;;  %5817 = vrot.lane.b32.xlu1 %v5816_v3, %s6045_s10  ;;  %v3121_v20 = vmul.f32 %v12418_v19, %v10791_v22  ;;  %vm1239_vm10 = vmand %vm1201_vm8, %vm1223_vm9  ;;  %v214_v52 = vsub.f32 0.0, %v10952_v9  ;;  %v3161_v50 = vmul.f32 %v12171_v43, %v2305_v2  ;;  %v3833_v25 = vmul.f32 %v12419_v62, %v10591_v47  ;;  %v12444_v44 = vld [vmem:[#allocation59_spill] sm:$0xff] }
 0x32e   : > { %v2289_v11 = vmul.f32 %v10802_v24, %v2273_v36  ;;  %v2345_v31 = vmul.f32 %v10935_v0, %v2329_v13  ;;  %v2375_v21 = vsub.f32 %v10938_v45, %v12159_v14  ;;  %v2423_v6 = vsub.f32 %v8916_v59, %v10938_v45 }
 0x32f   : > { %v5309_v56 = vsel %vm1239_vm10, 1.0, %v11958_v32  ;;  %v3207_v30 = vmul.f32 %v12171_v43, %v12444_v44  ;;  %v233_v47 = vmul.f32 1.442695, %v214_v52  ;;  %v3137_v24 = vmul.f32 %v3121_v20, %v10840_v26  ;;  %v12447_v20 = vld [vmem:[#allocation53_spill] sm:$0xff] }
 0x330   : > { %v10974_v15 = vadd.f32 %v2345_v31, %v2289_v11  ;;  %v2391_v36 = vmul.f32 %v12170_v1, %v2375_v21  ;;  %v2447_v13 = vmul.f32 %v9021_v4, %v2423_v6  ;;  %v4579_v58 = vsel %vm4575_vm0, %v4562_v61, %v5625_v34  ;;  %v10989_v61 = vld [vmem:[%s6187_s25 + $0x68] sm:$0xff] }
 0x331   : > { %v3849_v3 = vmul.f32 %v3833_v25, %v10871_v39  ;;  %v3873_v42 = vmul.f32 %v12172_v17, %v2305_v2  ;;  %5891 = vpow2.f32 %v233_v47  ;;  %v3247_v60 = vmul.f32 %v9030_v7, %v2423_v6  ;;  %12449 = vst [vmem:[#allocation17_spill] sm:$0xff] %v10989_v61  ;;  %v10993_v39 = vpop.permute.xlu1 %4463 }
 0x332   : > { %v3177_v52 = vmul.f32 %v3161_v50, %v10974_v15  ;;  %v2407_v11 = vmul.f32 %v12446_v48, %v2391_v36  ;;  %v2463_v31 = vmul.f32 %v5309_v56, %v2447_v13  ;;  %v3223_v21 = vmul.f32 %v3207_v30, %v12447_v20  ;;  %v12450_v50 = vld [vmem:[#allocation63_spill] sm:$0xff]  ;;  %v11006_v56 = vpop.permute.xlu0 %5742 }
 0x333   : > { %v3919_v45 = vmul.f32 %v12172_v17, %v12448_v5  ;;  %vm1202_vm12 = vcmp.ge.f32.partialorder %v10989_v61, %v12167_v41  ;;  %vm1224_vm11 = vcmp.lt.f32.partialorder %v10989_v61, %v8916_v59  ;;  %v2376_v48 = vsub.f32 %v10989_v61, %v12159_v14  ;;  %12451 = vst [vmem:[#allocation20_spill] sm:$0xff] %v11006_v56 }
 0x334   : > { %v5890_v44 = vpop.eup %5889  ;;  %v10995_v34 = vadd.f32 %v3177_v52, %v3137_v24  ;;  %v2479_v2 = vadd.f32 %v2463_v31, %v2407_v11  ;;  %v3959_v30 = vmul.f32 %v9050_v53, %v2423_v6  ;;  %vm1240_vm14 = vmand %vm1202_vm12, %vm1224_vm11  ;;  %v2424_v5 = vsub.f32 %v8916_v59, %v10989_v61  ;;  %v12453_v11 = vld [vmem:[#allocation50_spill] sm:$0xff] }
 0x335   : > { %v261_v26 = vadd.f32 1.0, %v5890_v44  ;;  %v3208_v25 = vmul.f32 %v12171_v43, %v12450_v50  ;;  %v5310_v36 = vsel %vm1240_vm14, 1.0, %v11958_v32  ;;  %v2392_v13 = vmul.f32 %v12170_v1, %v2376_v48  ;;  %v12452_v44 = vld [vmem:[#allocation11_spill] sm:$0xff]  ;;  %v12454_v50 = vld [vmem:[#allocation64_spill] sm:$0xff] }
 0x336   : > { %v3889_v47 = vmul.f32 %v3873_v42, %v10995_v34  ;;  %v3263_v24 = vmul.f32 %v3247_v60, %v2479_v2  ;;  %v5649_v52 = vunpack.i.l.bf16 %v12452_v44  ;;  %v4596_v6 = vsel %vm12433_vm13, %v4579_v58, %v5635_v40  ;;  %v11018_v60 = vld [vmem:[%s6187_s25 + $0x78] sm:$0xff]  ;;  %v11028_v40 = vpop.permute.xlu1 %5752  ;;  %v12456_v2 = vld [vmem:[#allocation62_spill] sm:$0xff] }
 0x337   : > { %5893 = vrcp.f32 %v261_v26  ;;  %v3935_v31 = vmul.f32 %v3919_v45, %v12453_v11  ;;  %v2448_v26 = vmul.f32 %v9021_v4, %v2424_v5  ;;  %v2408_v23 = vmul.f32 %v12454_v50, %v2392_v13  ;;  %v12459_v50 = vld [vmem:[#allocation76_spill] sm:$0xff] }
 0x338   : > { %v3905_v20 = vadd.f32 %v3889_v47, %v3849_v3  ;;  %v3279_v61 = vadd.f32 %v3263_v24, %v3223_v21  ;;  %v3248_v56 = vmul.f32 %v9030_v7, %v2424_v5  ;;  %vm1118_vm15 = vcmp.ge.f32.partialorder %v11018_v60, %v12159_v14  ;;  %v12455_v3 = vld [vmem:[#allocation70_spill] sm:$0xff] }
 0x339   : > { %v2464_v42 = vmul.f32 %v5310_v36, %v2448_v26  ;;  %vm1140_vm3 = vcmp.lt.f32.partialorder %v11018_v60, %v12167_v41  ;;  %v11026_v58 = vsub.f32 %v11018_v60, %v6213_v29  ;;  %v3224_v21 = vmul.f32 %v3208_v25, %v12455_v3 }
 0x33a   : > { %4423 = vrot.lane.b32.xlu0 %v3905_v20, %s6047_s17  ;;  %v3975_v45 = vmul.f32 %v3959_v30, %v3279_v61  ;;  %v3920_v48 = vmul.f32 %v12172_v17, %v12456_v2  ;;  %vm1156_vm4 = vmand %vm1118_vm15, %vm1140_vm3  ;;  %v2306_v47 = vsub.f32 %v12167_v41, %v11018_v60  ;;  %v3122_v61 = vmul.f32 %v12418_v19, %v10798_v8  ;;  %v11043_v30 = vpop.permute.xlu0 %5747  ;;  %v12460_v2 = vld [vmem:[#allocation66_spill] sm:$0xff] }
 0x33b   : > { %v5892_v24 = vpop.eup %5891  ;;  %v2480_v36 = vadd.f32 %v2464_v42, %v2408_v23  ;;  %v11037_v13 = vsel %vm1156_vm4, 1.0, %v11958_v32  ;;  %v2274_v29 = vmul.f32 %v12416_v54, %v11026_v58  ;;  %12457 = vst [vmem:[#allocation22_spill] sm:$0xff] %v11043_v30  ;;  %v12458_v25 = vunpack.i.l.bf16 %v12443_v33 }
 0x33c   : > { %v3991_v26 = vadd.f32 %v3975_v45, %v3935_v31  ;;  %v262_v20 = vadd.f32 1.0, %v5892_v24  ;;  %v2330_v23 = vmul.f32 %v12170_v1, %v2306_v47  ;;  %v4613_v42 = vsel %vm4609_vm2, %v4596_v6, %v12459_v50  ;;  %v11063_v6 = vld [vmem:[%s6187_s25 + $0x70] sm:$0xff] }
 0x33d   : > { %v11048_v11 = vsel %vm4558_vm6, %v12458_v25, %v5649_v52  ;;  %v3264_v3 = vmul.f32 %v3248_v56, %v2480_v36  ;;  %v3960_v54 = vmul.f32 %v9050_v53, %v2424_v5  ;;  %v2290_v19 = vmul.f32 %v10814_v37, %v2274_v29  ;;  %v11067_v37 = vpop.permute.xlu1 %5757 }
 0x33e   : > { %4483 = vrot.lane.b32.xlu1 %v3991_v26, %s6048_s7  ;;  %5895 = vrcp.f32 %v262_v20  ;;  %v3936_v30 = vmul.f32 %v3920_v48, %v12460_v2  ;;  %v2346_v52 = vmul.f32 %v11037_v13, %v2330_v23  ;;  %v3162_v31 = vmul.f32 %v12171_v43, %v2306_v47 }
 0x33f   : > { %v3280_v24 = vadd.f32 %v3264_v3, %v3224_v21  ;;  %v3138_v25 = vmul.f32 %v3122_v61, %v10852_v51  ;;  %v3834_v56 = vmul.f32 %v12419_v62, %v10595_v18  ;;  %vm1203_vm8 = vcmp.ge.f32.partialorder %v11063_v6, %v12167_v41  ;;  %v12461_v21 = vld [vmem:[#allocation58_spill] sm:$0xff]  ;;  %v11080_v61 = vpop.permute.xlu0 %4465 }
 0x340   : > { %v11070_v48 = vadd.f32 %v2346_v52, %v2290_v19  ;;  %vm1225_vm9 = vcmp.lt.f32.partialorder %v11063_v6, %v8916_v59  ;;  %v2377_v51 = vsub.f32 %v11063_v6, %v12159_v14  ;;  %v5654_v36 = vunpack.i.l.bf16 %v12461_v21 }
 0x341   : > { %v5894_v45 = vpop.eup %5893  ;;  %v3976_v18 = vmul.f32 %v3960_v54, %v3280_v24  ;;  %v3874_v62 = vmul.f32 %v12172_v17, %v2306_v47  ;;  %vm1241_vm10 = vmand %vm1203_vm8, %vm1225_vm9  ;;  %v2425_v29 = vsub.f32 %v8916_v59, %v11063_v6  ;;  %v12463_v54 = vunpack.i.l.bf16 %v12441_v12 }
 0x342   : > { %v309_v5 = vmul.f32 %v10905_v27, %v5894_v45  ;;  %v12462_v27 = vunpack.i.l.bf16 %v12439_v28  ;;  %v3178_v20 = vmul.f32 %v3162_v31, %v11070_v48  ;;  %v5311_v23 = vsel %vm1241_vm10, 1.0, %v11958_v32  ;;  %vm12475_vm8 = vmmov %vm12433_vm13 }
 0x343   : > { %v2393_v3 = vmul.f32 %v12170_v1, %v2377_v51  ;;  %v3992_v19 = vadd.f32 %v3976_v18, %v3936_v30  ;;  %v2449_v2 = vmul.f32 %v9021_v4, %v2425_v29  ;;  %v3209_v52 = vmul.f32 %v12171_v43, %v10929_v16  ;;  %v12465_v51 = vld [vmem:[#allocation87_spill] sm:$0xff]  ;;  %vm12482_vm9 = vmmov %vm12475_vm8 }
 0x344   : > { %v4510_v26 = vsel %vm4507_vm1, %v309_v5, %v12462_v27  ;;  %v12464_v45 = vunpack.i.l.bf16 %v12437_v38  ;;  %v3194_v5 = vadd.f32 %v3178_v20, %v3138_v25  ;;  %v3850_v31 = vmul.f32 %v3834_v56, %v10876_v55  ;;  %vm12486_vm10 = vmmov %vm12475_vm8 }
 0x345   : > { %v4527_v47 = vsel %vm4524_vm5, %v4510_v26, %v12463_v54  ;;  %v2409_v27 = vmul.f32 %v10935_v0, %v2393_v3  ;;  %4485 = vrot.lane.b32.xlu0 %v3992_v19, %s6048_s7  ;;  %v5664_v26 = vunpack.i.l.bf16 %v12465_v51  ;;  %v2465_v30 = vmul.f32 %v5311_v23, %v2449_v2  ;;  %v11104_v54 = vpop.permute.xlu1 %4467 }
 0x346   : > { %v4544_v24 = vsel %vm4541_vm7, %v4527_v47, %v12464_v45  ;;  %v3249_v18 = vmul.f32 %v9030_v7, %v2425_v29  ;;  %v3921_v16 = vmul.f32 %v12172_v17, %v10791_v22  ;;  %v3890_v25 = vmul.f32 %v3874_v62, %v3194_v5  ;;  %v11121_v47 = vld [vmem:[%s6187_s25 + $0x20] sm:$0xff] }
 0x347   : > { %4812 = vmatmul.mubr.f32.gmra.mrb[4].mxu0 %v4544_v24  ;;  %vm1204_vm12 = vcmp.ge.f32.partialorder %v11018_v60, %v12167_v41  ;;  %vm1226_vm11 = vcmp.lt.f32.partialorder %v11018_v60, %v8916_v59  ;;  %v2378_v55 = vsub.f32 %v11018_v60, %v12159_v14  ;;  %v2481_v0 = vadd.f32 %v2465_v30, %v2409_v27 }
 0x348   : > { %4816 = vmatprep.mubr.f32.mxu0 %v4613_v42  ;;  %v3225_v56 = vmul.f32 %v3209_v52, %v10974_v15  ;;  %v3961_v20 = vmul.f32 %v9050_v53, %v2425_v29  ;;  %vm1242_vm14 = vmand %vm1204_vm12, %vm1226_vm11  ;;  %v2426_v22 = vsub.f32 %v8916_v59, %v11018_v60  ;;  %v11116_v42 = vpop.permute.xlu0 %4415  ;;  %v5896_v62 = vpop.eup %5895  ;;  %v3906_v23 = vadd.f32 %v3890_v25, %v3850_v31 }
 0x349   : > { %v5312_v41 = vsel %vm1242_vm14, 1.0, %v11958_v32  ;;  %v2394_v3 = vmul.f32 %v12170_v1, %v2378_v55  ;;  %v215_v14 = vsub.f32 0.0, %v11121_v47  ;;  %v310_v15 = vmul.f32 %v10952_v9, %v5896_v62  ;;  %vm12493_vm12 = vmmov %vm12475_vm8 }
 0x34a   : > { %v3265_v19 = vmul.f32 %v3249_v18, %v2481_v0  ;;  %v2450_v29 = vmul.f32 %v9021_v4, %v2426_v22  ;;  %v3210_v59 = vmul.f32 %v12171_v43, %v11026_v58  ;;  %4425 = vrot.lane.b32.xlu1 %v3906_v23, %s6047_s17  ;;  %v3937_v2 = vmul.f32 %v3921_v16, %v10995_v34  ;;  %v11138_v43 = vpop.permute.xlu1 %4417  ;;  %v11170_v23 = vld [vmem:[%s6187_s25 + $0x30] sm:$0xff]  ;;  %vm12499_vm11 = vmmov %vm12475_vm8 }
 0x34b   : > { %v2410_v32 = vmul.f32 %v11037_v13, %v2394_v3  ;;  %v3250_v1 = vmul.f32 %v9030_v7, %v2426_v22  ;;  %v4580_v52 = vsel %vm4575_vm0, %v11048_v11, %v5654_v36  ;;  %v12466_v45 = vunpack.i.h.bf16 %v12439_v28  ;;  %v12468_v13 = vld [vmem:[#allocation84_spill] sm:$0xff]  ;;  %v4677_v3 = vld [vmem:[%s11555_s2 + $0x110] sm:$0xff]  ;;  %vm12501_vm14 = vmmov %vm12475_vm8 }
 0x34c   : > { %v3281_v24 = vadd.f32 %v3265_v19, %v3225_v56  ;;  %v2466_v4 = vmul.f32 %v5312_v41, %v2450_v29  ;;  %v4597_v31 = vsel %vm12433_vm13, %v4580_v52, %v5664_v26  ;;  %v12467_v58 = vunpack.i.h.bf16 %v12441_v12  ;;  %v11151_v16 = vpop.permute.xlu0 %4469  ;;  %v4675_v56 = vld [vmem:[%s11555_s2 + $0x100] sm:$0xff]  ;;  %v11180_v29 = vld [vmem:[%s6187_s25 + $0x38] sm:$0xff]  ;;  %vm12503_vm13 = vmmov %vm12475_vm8 }
 0x34d   : > { %v4511_v9 = vsel %vm4507_vm1, %v310_v15, %v12466_v45  ;;  %v3922_v7 = vmul.f32 %v12172_v17, %v10798_v8  ;;  %v4614_v11 = vsel %vm4609_vm2, %v4597_v31, %v12468_v13  ;;  %v235_v28 = vmul.f32 1.442695, %v215_v14  ;;  %v11155_v8 = vld [vmem:[%s6187_s25 + $0x28] sm:$0xff]  ;;  %v4678_v14 = vld [vmem:[%s11555_s2 + $0x118] sm:$0xff] }
 0x34e   : > { %v4528_v34 = vsel %vm4524_vm5, %v4511_v9, %v12467_v58  ;;  %v12469_v36 = vunpack.i.h.bf16 %v12437_v38  ;;  %v3977_v30 = vmul.f32 %v3961_v20, %v3281_v24  ;;  %v2482_v26 = vadd.f32 %v2466_v4, %v2410_v32  ;;  %v4676_v20 = vld [vmem:[%s11555_s2 + $0x108] sm:$0xff]  ;;  %v4679_v32 = vld [vmem:[%s11555_s2 + $0x120] sm:$0xff]  ;;  %v4681_v4 = vld [vmem:[%s11555_s2 + $0x130] sm:$0xff] }
 0x34f   : > { %v3226_v18 = vmul.f32 %v3210_v59, %v11070_v48  ;;  %5897 = vpow2.f32 %v235_v28  ;;  %v3962_v17 = vmul.f32 %v9050_v53, %v2426_v22  ;;  %v216_v38 = vsub.f32 0.0, %v11155_v8  ;;  %v11165_v53 = vpop.permute.xlu1 %5767  ;;  %v4682_v31 = vld [vmem:[%s11555_s2 + $0x138] sm:$0xff] }
 0x350   : > { %v4545_v27 = vsel %vm4541_vm7, %v4528_v34, %v12469_v36  ;;  %v3993_v12 = vadd.f32 %v3977_v30, %v3937_v2  ;;  %v3266_v25 = vmul.f32 %v3250_v1, %v2482_v26  ;;  %v3938_v0 = vmul.f32 %v3922_v7, %v3194_v5  ;;  %v11167_v62 = vpop.permute.xlu0 %5762  ;;  %v4680_v1 = vld [vmem:[%s11555_s2 + $0x128] sm:$0xff]  ;;  %v12470_v26 = vld [vmem:[#allocation67_spill] sm:$0xff] }
 0x351   : > { %4817 = vmatmul.mubr.f32.gmra.mrb[6].mxu0 %v4545_v27  ;;  %v237_v48 = vmul.f32 1.442695, %v216_v38  ;;  %v217_v5 = vsub.f32 0.0, %v11170_v23  ;;  %v5515_v41 = vpack.c.bf16 %v4676_v20, %v4675_v56  ;;  %v218_v59 = vsub.f32 0.0, %v11180_v29  ;;  %v12471_v56 = vld [vmem:[#allocation85_spill] sm:$0xff] }
 0x352   : > { %4821 = vmatprep.mubr.f32.mxu0 %v4614_v11  ;;  %4487 = vrot.lane.b32.xlu0 %v3993_v12, %s6048_s7  ;;  %v3282_v55 = vadd.f32 %v3266_v25, %v3226_v18  ;;  %v5519_v2 = vpack.c.bf16 %v4678_v14, %v4677_v3  ;;  %v5523_v34 = vpack.c.bf16 %v4680_v1, %v4679_v32  ;;  %vm4626_vm15 = vcmask 261120   ;;  %v11201_v11 = vld [vmem:[%s6187_s25 + $0x40] sm:$0xff] }
 0x353   : > { %5899 = vpow2.f32 %v237_v48  ;;  %v239_v19 = vmul.f32 1.442695, %v217_v5  ;;  %5516 = vmatprep.subr.bf16.mxu1 %v5515_v41  ;;  %v11190_v52 = vpop.permute.xlu1 %4471  ;;  %v241_v9 = vmul.f32 1.442695, %v218_v59  ;;  %v5527_v7 = vpack.c.bf16 %v4682_v31, %v4681_v4  ;;  %v12473_v14 = vld [vmem:[#allocation56_spill] sm:$0xff] }
 0x354   : > { %v3978_v22 = vmul.f32 %v3962_v17, %v3282_v55  ;;  %5518 = vmatpush3.bf16.msra.mxu1 %v5515_v41  ;;  %v11198_v58 = vpop.permute.xlu0 %5772  ;;  %vm4684_vm3 = vcmask 556032   ;;  %v219_v28 = vsub.f32 0.0, %v11201_v11  ;;  %v5645_v27 = vunpack.i.h.bf16 %v12443_v33  ;;  %v11214_v55 = vld [vmem:[%s6187_s25 + $0x48] sm:$0xff] }
 0x355   : > { %5901 = vpow2.f32 %v239_v19  ;;  %5520 = vmatprep.subr.bf16.mxu1 %v5519_v2  ;;  %v5650_v30 = vunpack.i.h.bf16 %v12452_v44  ;;  %v4627_v18 = vsel %vm4626_vm15, %v12470_v26, %v10888_v57  ;;  %v5655_v38 = vunpack.i.h.bf16 %v12461_v21  ;;  %v12472_v57 = vld [vmem:[#allocation40_spill] sm:$0xff] }
 0x356   : > { %v3994_v15 = vadd.f32 %v3978_v22, %v3938_v0  ;;  %5903 = vpow2.f32 %v241_v9  ;;  %5459 = vmatprep.mubr.msk.f32.mxu1 %vm4684_vm3, %v4627_v18  ;;  %v243_v17 = vmul.f32 1.442695, %v219_v28  ;;  %v220_v0 = vsub.f32 0.0, %v11214_v55  ;;  %v4683_v21 = vld [vmem:[%s11555_s2 + $0x140] sm:$0xf]  ;;  %v12476_v28 = vld [vmem:[#allocation86_spill] sm:$0xff] }
 0x357   : > { %v11209_v12 = vpop.permute.xlu1 %5782  ;;  %v5665_v44 = vunpack.i.h.bf16 %v12465_v51  ;;  %v5675_v20 = vunpack.i.h.bf16 %v12471_v56  ;;  %v5680_v22 = vunpack.i.h.bf16 %v12472_v57  ;;  %v4564_v5 = vsel %vm4558_vm6, %v5645_v27, %v5650_v30  ;;  %v12477_v26 = vld [vmem:[#allocation24_spill] sm:$0xff] }
 0x358   : > { %4489 = vrot.lane.b32.xlu1 %v3994_v15, %s6048_s7  ;;  %5522 = vmatpush3.bf16.msra.mxu1 %v5519_v2  ;;  %v11217_v48 = vpop.permute.xlu0 %5777  ;;  %vm4733_vm4 = vcmask 1043456   ;;  %v245_v41 = vmul.f32 1.442695, %v220_v0  ;;  %v5660_v51 = vunpack.i.h.bf16 %v12473_v14  ;;  %v5659_v15 = vunpack.i.l.bf16 %v12473_v14  ;;  %v12474_v2 = vld [vmem:[#allocation82_spill] sm:$0xff] }
 0x359   : > { %v5898_v45 = vpop.eup %5897  ;;  %5524 = vmatprep.subr.bf16.mxu1 %v5523_v34  ;;  %v5674_v19 = vunpack.i.l.bf16 %v12471_v56  ;;  %v5679_v59 = vunpack.i.l.bf16 %v12472_v57  ;;  %v5670_v32 = vunpack.i.h.bf16 %v12474_v2  ;;  %v4581_v1 = vsel %vm4575_vm0, %v4564_v5, %v5655_v38 }
 0x35a   : > { %v263_v24 = vadd.f32 1.0, %v5898_v45  ;;  %v5669_v4 = vunpack.i.l.bf16 %v12474_v2  ;;  %v4566_v31 = vsel %vm4558_vm6, %v5675_v20, %v5680_v22  ;;  %v5694_v18 = vunpack.i.l.bf16 %v12477_v26  ;;  %v12479_v22 = vld [vmem:[#allocation23_spill] sm:$0xff] }
 0x35b   : > { %v11234_v9 = vpop.permute.xlu1 %5787  ;;  %v4629_v57 = vsel %vm4626_vm15, %v12434_v46, %v10993_v39  ;;  %v221_v5 = vsub.f32 0.0, %v12479_v22  ;;  %v5685_v14 = vunpack.i.h.bf16 %v12476_v28 }
 0x35c   : > { %5905 = vrcp.f32 %v263_v24  ;;  %5526 = vmatpush3.bf16.msra.mxu1 %v5523_v34  ;;  %v4598_v34 = vsel %vm12475_vm8, %v4581_v1, %v5665_v44  ;;  %v11247_v38 = vpop.permute.xlu0 %4473  ;;  %v4565_v44 = vsel %vm4558_vm6, %v5674_v19, %v5679_v59  ;;  %v12481_v1 = vld [vmem:[#allocation47_spill] sm:$0xff] }
 0x35d   : > { %v5900_v36 = vpop.eup %5899  ;;  %5528 = vmatprep.subr.bf16.mxu1 %v5527_v7  ;;  %v5690_v59 = vunpack.i.h.bf16 %v12481_v1  ;;  %v247_v46 = vmul.f32 1.442695, %v221_v5 }
 0x35e   : > { %v264_v25 = vadd.f32 1.0, %v5900_v36  ;;  %v5684_v36 = vunpack.i.l.bf16 %v12476_v28 }
 0x35f   : > { %v5902_v3 = vpop.eup %5901  ;;  %v4476_v28 = vpop.permute.xlu1 %4475 }
 0x360   : > { %5907 = vrcp.f32 %v264_v25  ;;  %v265_v45 = vadd.f32 1.0, %v5902_v3  ;;  %5530 = vmatpush3.bf16.msra.mxu1 %v5527_v7  ;;  %v5904_v24 = vpop.eup %5903  ;;  %v12478_v25 = vld [vmem:[#allocation65_spill] sm:$0xff] }
 0x361   : > { %5909 = vpow2.f32 %v243_v17  ;;  %5457 = vmatprep.subr.msk.mxu1 %vm4733_vm4, %v4683_v21  ;;  %v266_v7 = vadd.f32 1.0, %v5904_v24  ;;  %v4628_v17 = vsel %vm4626_vm15, %v12478_v25, %v10924_v10  ;;  %v222_v10 = vsub.f32 0.0, %v10844_v49 }
 0x362   : > { %5911 = vpow2.f32 %v245_v41  ;;  %v12480_v41 = vld [vmem:[#allocation83_spill] sm:$0xff] }
 0x363   : > { %5913 = vrcp.f32 %v265_v45  ;;  %v4615_v3 = vsel %vm4609_vm2, %v4598_v34, %v12480_v41  ;;  %v4582_v45 = vsel %vm4575_vm0, %v4565_v44, %v5684_v36  ;;  %v249_v34 = vmul.f32 1.442695, %v222_v10  ;;  %v11308_v2 = vpop.permute.xlu1 %4421 }
 0x364   : > { %5915 = vrcp.f32 %v266_v7  ;;  %5458 = vmatpush3.msk.msra.mxu1 %vm4733_vm4, %v4683_v21  ;;  %v4599_v24 = vsel %vm12482_vm9, %v4582_v45, %v5694_v18  ;;  %v4630_v21 = vsel %vm4626_vm15, %v12459_v50, %v11080_v61  ;;  %v5689_v7 = vunpack.i.l.bf16 %v12481_v1  ;;  %v12484_v61 = vld [vmem:[#allocation46_spill] sm:$0xff]  ;;  %vm12504_vm4 = vmmov %vm12475_vm8 }
 0x365   : > { %5460 = vmatmul.mubr.msk.f32.vlgmr.msra.gmra.mrb[0].mxu1 %vm4684_vm3, %v4628_v17  ;;  %5917 = vpow2.f32 %v247_v46  ;;  %v5695_v50 = vunpack.i.h.bf16 %v12477_v26  ;;  %v5700_v17 = vunpack.i.h.bf16 %v12484_v61  ;;  %v5699_v44 = vunpack.i.l.bf16 %v12484_v61  ;;  %v12485_v26 = vld [vmem:[#allocation6_spill] sm:$0xff]  ;;  %vm12505_vm8 = vmmov %vm12504_vm4 }
 0x366   : > { %v5906_v30 = vpop.eup %5905  ;;  %5462 = vmatprep.mubr.msk.f32.mxu1 %vm4684_vm3, %v4629_v57  ;;  %5919 = vpow2.f32 %v249_v34  ;;  %v4616_v57 = vsel %vm4609_vm2, %v4599_v24, %v10753_v35  ;;  %v5709_v5 = vunpack.i.l.bf16 %v12485_v26  ;;  %v4583_v10 = vsel %vm4575_vm0, %v4566_v31, %v5685_v14  ;;  %v12489_v34 = vld [vmem:[#allocation12_spill] sm:$0xff]  ;;  %vm12506_vm9 = vmmov %vm12504_vm4 }
 0x367   : > { %v311_v0 = vmul.f32 %v11121_v47, %v5906_v30  ;;  %v12483_v30 = vunpack.i.l.bf16 %v12443_v33  ;;  %v5705_v14 = vunpack.i.h.bf16 %v10783_v63  ;;  %v5710_v24 = vunpack.i.h.bf16 %v12485_v26 }
 0x369   : > { %v4512_v47 = vsel %vm4507_vm1, %v311_v0, %v5659_v15  ;;  %v11282_v0 = vpop.permute.xlu0 %4419  ;;  %5463 = vmatmul.mubr.msk.f32.gmra.mrb[2].mxu1 %vm4684_vm3, %v4630_v21  ;;  %v12488_v21 = vld [vmem:[#allocation15_spill] sm:$0xff]  ;;  %v4568_v1 = vsel %vm4558_vm6, %v5705_v14, %v5710_v24 }
 0x36a   : > { %v4529_v39 = vsel %vm4524_vm5, %v4512_v47, %v5669_v4  ;;  %v5908_v15 = vpop.eup %5907  ;;  %v4631_v4 = vsel %vm4626_vm15, %v12468_v13, %v11104_v54  ;;  %v5704_v54 = vunpack.i.l.bf16 %v10783_v63 }
 0x36b   : > { %v4546_v36 = vsel %vm4541_vm7, %v4529_v39, %v12483_v30  ;;  %v5910_v18 = vpop.eup %5909  ;;  %v312_v25 = vmul.f32 %v11155_v8, %v5908_v15  ;;  %5465 = vmatprep.mubr.msk.f32.mxu1 %vm4684_vm3, %v4631_v4  ;;  %v4600_v39 = vsel %vm12486_vm10, %v4583_v10, %v5695_v50  ;;  %v12490_v15 = vld [vmem:[#allocation19_spill] sm:$0xff]  ;;  %v12491_v50 = vld [vmem:[#allocation16_spill] sm:$0xff]  ;;  %vm12507_vm10 = vmmov %vm12504_vm4 }
 0x36c   : > { %4822 = vmatmul.mubr.f32.gmra.mrb[8].mxu0 %v4546_v36  ;;  %v267_v13 = vadd.f32 1.0, %v5910_v18  ;;  %v5912_v22 = vpop.eup %5911  ;;  %v223_v30 = vsub.f32 0.0, %v12490_v15  ;;  %v4617_v18 = vsel %vm4609_vm2, %v4600_v39, %v12489_v34  ;;  %v4635_v61 = vsel %vm4626_vm15, %v12491_v50, %v4476_v28  ;;  %v12494_v28 = vld [vmem:[#allocation37_spill] sm:$0xff] }
 0x36d   : > { %4826 = vmatprep.mubr.f32.mxu0 %v4615_v3  ;;  %v4513_v8 = vsel %vm4507_vm1, %v312_v25, %v5660_v51  ;;  %v4632_v3 = vsel %vm4626_vm15, %v12480_v41, %v11151_v16  ;;  %v268_v45 = vadd.f32 1.0, %v5912_v22  ;;  %v4633_v51 = vsel %vm4626_vm15, %v10753_v35, %v11190_v52  ;;  %v5914_v46 = vpop.eup %5913  ;;  %v12487_v16 = vld [vmem:[#allocation8_spill] sm:$0xff]  ;;  %v4478_v36 = vpop.permute.xlu0 %4477 }
 0x36e   : > { %v4530_v47 = vsel %vm4524_vm5, %v4513_v8, %v5670_v32  ;;  %5921 = vrcp.f32 %v267_v13  ;;  %v5714_v41 = vunpack.i.l.bf16 %v12487_v16  ;;  %v313_v32 = vmul.f32 %v11170_v23, %v5914_v46  ;;  %5466 = vmatmul.mubr.msk.f32.gmra.mrb[4].mxu1 %vm4684_vm3, %v4632_v3  ;;  %v5916_v33 = vpop.eup %5915  ;;  %v12492_v8 = vld [vmem:[#allocation17_spill] sm:$0xff]  ;;  %v12495_v46 = vld [vmem:[#allocation7_spill] sm:$0xff] }
 0x36f   : > { %v4547_v31 = vsel %vm4541_vm7, %v4530_v47, %v5645_v27  ;;  %v5724_v35 = vunpack.i.l.bf16 %v12488_v21  ;;  %5923 = vrcp.f32 %v268_v45  ;;  %v4567_v52 = vsel %vm4558_vm6, %v5704_v54, %v5709_v5  ;;  %5468 = vmatprep.mubr.msk.f32.mxu1 %vm4684_vm3, %v4633_v51  ;;  %v5918_v26 = vpop.eup %5917  ;;  %v11344_v45 = vpop.permute.xlu1 %5797 }
 0x370   : > { %4827 = vmatmul.mubr.f32.gmra.mrb[10].mxu0 %v4547_v31  ;;  %v5715_v27 = vunpack.i.h.bf16 %v12487_v16  ;;  %v4634_v23 = vsel %vm4626_vm15, %v12489_v34, %v11247_v38  ;;  %v4514_v4 = vsel %vm4507_vm1, %v313_v32, %v5689_v7  ;;  %v314_v25 = vmul.f32 %v11180_v29, %v5916_v33  ;;  %v5920_v10 = vpop.eup %5919  ;;  %v12496_v32 = vld [vmem:[#allocation31_spill] sm:$0xff]  ;;  %v12497_v33 = vld [vmem:[#allocation9_spill] sm:$0xff] }
 0x371   : > { %4831 = vmatprep.mubr.f32.mxu0 %v4616_v57  ;;  %v4531_v57 = vsel %vm4524_vm5, %v4514_v4, %v5699_v44  ;;  %v4584_v13 = vsel %vm4575_vm0, %v4567_v52, %v5714_v41  ;;  %v251_v22 = vmul.f32 1.442695, %v223_v30  ;;  %v224_v38 = vsub.f32 0.0, %v12492_v8  ;;  %v12498_v34 = vld [vmem:[#allocation39_spill] sm:$0xff] }
 0x372   : > { %v4548_v7 = vsel %vm4541_vm7, %v4531_v57, %v5674_v19  ;;  %v4515_v5 = vsel %vm4507_vm1, %v314_v25, %v5690_v59  ;;  %v4601_v29 = vsel %vm12493_vm12, %v4584_v13, %v5724_v35  ;;  %5469 = vmatmul.mubr.msk.f32.gmra.mrb[6].mxu1 %vm4684_vm3, %v4634_v23  ;;  %v4636_v44 = vsel %vm4626_vm15, %v12494_v28, %v4478_v36 }
 0x373   : > { %v4532_v3 = vsel %vm4524_vm5, %v4515_v5, %v5700_v17  ;;  %v269_v47 = vadd.f32 1.0, %v5918_v26  ;;  %5471 = vmatprep.mubr.msk.f32.mxu1 %vm4684_vm3, %v4635_v61  ;;  %5925 = vpow2.f32 %v251_v22  ;;  %v253_v19 = vmul.f32 1.442695, %v224_v38 }
 0x374   : > { %4832 = vmatmul.mubr.f32.gmra.mrb[12].mxu0 %v4548_v7  ;;  %v5725_v59 = vunpack.i.h.bf16 %v12488_v21  ;;  %v270_v51 = vadd.f32 1.0, %v5920_v10  ;;  %v5720_v31 = vunpack.i.h.bf16 %v12495_v46  ;;  %v5719_v39 = vunpack.i.l.bf16 %v12495_v46 }
 0x375   : > { %4836 = vmatprep.mubr.f32.mxu0 %v4617_v18  ;;  %v4618_v17 = vsel %vm4609_vm2, %v4601_v29, %v12491_v50  ;;  %5927 = vrcp.f32 %v269_v47  ;;  %v4549_v41 = vsel %vm4541_vm7, %v4532_v3, %v5675_v20  ;;  %v5729_v35 = vunpack.i.l.bf16 %v12496_v32  ;;  %v12502_v47 = vld [vmem:[#allocation22_spill] sm:$0xff] }
 0x376   : > { %v4585_v24 = vsel %vm4575_vm0, %v4568_v1, %v5715_v27  ;;  %5929 = vrcp.f32 %v270_v51  ;;  %5472 = vmatmul.mubr.msk.f32.gmra.mrb[8].mxu1 %vm4684_vm3, %v4636_v44  ;;  %v5734_v52 = vunpack.i.l.bf16 %v12497_v33  ;;  %v5739_v23 = vunpack.i.l.bf16 %v12498_v34  ;;  %v12500_v27 = vld [vmem:[#allocation20_spill] sm:$0xff] }
 0x377   : > { %5931 = vpow2.f32 %v253_v19  ;;  %v5730_v56 = vunpack.i.h.bf16 %v12496_v32  ;;  %v4602_v20 = vsel %vm12499_vm11, %v4585_v24, %v5725_v59  ;;  %v5735_v36 = vunpack.i.h.bf16 %v12497_v33 }
 0x378   : > { %v5922_v16 = vpop.eup %5921  ;;  %4837 = vmatmul.mubr.f32.gmra.mrb[14].mxu0 %v4549_v41  ;;  %v5744_v4 = vunpack.i.l.bf16 %v12500_v27  ;;  %v5754_v50 = vunpack.i.l.bf16 %v11028_v40  ;;  %v4619_v13 = vsel %vm4609_vm2, %v4602_v20, %v12494_v28  ;;  %v5745_v7 = vunpack.i.h.bf16 %v12500_v27 }
 0x379   : > { %v315_v21 = vmul.f32 %v11201_v11, %v5922_v16  ;;  %v5924_v30 = vpop.eup %5923  ;;  %4841 = vmatprep.mubr.f32.mxu0 %v4618_v17  ;;  %v5740_v11 = vunpack.i.h.bf16 %v12498_v34  ;;  %v5755_v10 = vunpack.i.h.bf16 %v11028_v40  ;;  %v5749_v19 = vunpack.i.l.bf16 %v12502_v47  ;;  %v5975_v40 = vld [vmem:[%s6187_s25 + $0x50] sm:$0xff]  ;;  %s162_s25 = sand.u32 1, %s6030_s13  }
 0x37a   : > { %v316_v25 = vmul.f32 %v11214_v55, %v5924_v30  ;;  %v4569_v55 = vsel %vm4558_vm6, %v5734_v52, %v5739_v23  ;;  %v225_v51 = vsub.f32 0.0, %v11063_v6  ;;  %v5750_v63 = vunpack.i.h.bf16 %v12502_v47  ;;  %s5123_s5 = sshll.u32 %s162_s25, 7  ;;  %s11512_s20 = scalar_lea.sflag [#allocation3], %s162_s25 }
 0x37b   : > { %v4516_v18 = vsel %vm4507_vm1, %v315_v21, %v5719_v39  ;;  %v4586_v29 = vsel %vm4575_vm0, %v4569_v55, %v5744_v4  ;;  %v4570_v44 = vsel %vm4558_vm6, %v5735_v36, %v5740_v11  ;;  %v5764_v16 = vunpack.i.l.bf16 %v11167_v62  ;;  %s11483_s6 = scalar_lea.vmem [#allocation2], %s5123_s5 }
 0x37c   : > { %v4480_v61 = vpop.permute.xlu1 %4479  ;;  %v4533_v57 = vsel %vm4524_vm5, %v4516_v18, %v5729_v35  ;;  %v4517_v26 = vsel %vm4507_vm1, %v316_v25, %v5720_v31  ;;  %v4603_v3 = vsel %vm12501_vm14, %v4586_v29, %v5754_v50  ;;  %v4587_v31 = vsel %vm4575_vm0, %v4570_v44, %v5745_v7  ;;  %s5057_s10 = sshll.u32 %s11483_s6, 4  ;;  %s11506_s10 = int_to_ptr.vmem [resolvable:$true] %s5057_s10 }
 0x37d   : > { %v4637_v22 = vsel %vm4626_vm15, %v11116_v42, %v4480_v61  ;;  %v4550_v38 = vsel %vm4541_vm7, %v4533_v57, %v5704_v54  ;;  %v4534_v5 = vsel %vm4524_vm5, %v4517_v26, %v5730_v56  ;;  %v5926_v28 = vpop.eup %5925  ;;  %v4620_v1 = vsel %vm4609_vm2, %v4603_v3, %v11116_v42  ;;  %s5976_s16 = scalar_lea.vmem %s11506_s10, 2048  ;;  %p5983_p0 = scmp.lt.s32.totalorder %s11506_s10, %s5981_s26 }
 0x37e   : > { %5474 = vmatprep.mubr.msk.f32.mxu1 %vm4684_vm3, %v4637_v22  ;;  %4842 = vmatmul.mubr.f32.gmra.mrb[16].mxu0 %v4550_v38  ;;  %v4551_v54 = vsel %vm4541_vm7, %v4534_v5, %v5705_v14  ;;  %v271_v59 = vadd.f32 1.0, %v5926_v28  ;;  %v5759_v14 = vunpack.i.l.bf16 %v11067_v37  ;;  %v5769_v41 = vunpack.i.l.bf16 %v11165_v53  ;;  %p5977_p11 = scmp.ne.s32.totalorder %s11506_s10, %s5976_s16  ;;  %p5984_p1 = scmp.lt.s32.totalorder %s5982_s28, %s5976_s16 }
 0x37f   : > { %4846 = vmatprep.mubr.f32.mxu0 %v4619_v13  ;;  %v5928_v46 = vpop.eup %5927  ;;  %v5760_v32 = vunpack.i.h.bf16 %v11067_v37  ;;  %v4604_v35 = vsel %vm12503_vm13, %v4587_v31, %v5755_v10  ;;  %v5774_v21 = vunpack.i.l.bf16 %v11198_v58  ;;  %v5784_v23 = vunpack.i.l.bf16 %v11209_v12 }
 0x380   : > { %v5930_v39 = vpop.eup %5929  ;;  %v317_v17 = vmul.f32 %v5975_v40, %v5928_v46  ;;  %5933 = vrcp.f32 %v271_v59  ;;  %v255_v56 = vmul.f32 1.442695, %v225_v51  ;;  %v4621_v27 = vsel %vm4609_vm2, %v4604_v35, %v11138_v43  ;;  %p5978_p12 = pnand %p5977_p11, %p6110_p5  ;;  %p5985_p2 = por %p5984_p1, %p5983_p0 }
 0x381   : > { %v5932_v42 = vpop.eup %5931  ;;  %v318_v24 = vmul.f32 %v10844_v49, %v5930_v39  ;;  %v4571_v18 = vsel %vm4558_vm6, %v5764_v16, %v5769_v41  ;;  %v5765_v50 = vunpack.i.h.bf16 %v11167_v62  ;;  %v5770_v61 = vunpack.i.h.bf16 %v11165_v53  ;;  %v11429_v62 = vpop.permute.xlu0 %5792 }
 0x382   : > { %4847 = vmatmul.mubr.f32.gmra.mrb[18].mxu0 %v4551_v54  ;;  %v4518_v34 = vsel %vm4507_vm1, %v317_v17, %v5749_v19  ;;  %v272_v30 = vadd.f32 1.0, %v5932_v42  ;;  %v4588_v25 = vsel %vm4575_vm0, %v4571_v18, %v5774_v21  ;;  %v5775_v13 = vunpack.i.h.bf16 %v11198_v58  ;;  %p5979_p13 = pneg %p5978_p12 }
 0x383   : > { %4851 = vmatprep.mubr.f32.mxu0 %v4620_v1  ;;  %v4535_v20 = vsel %vm4524_vm5, %v4518_v34, %v5759_v14  ;;  %v4519_v4 = vsel %vm4507_vm1, %v318_v24, %v5750_v63  ;;  %v4605_v11 = vsel %vm12504_vm4, %v4588_v25, %v5784_v23  ;;  %v5779_v22 = vunpack.i.l.bf16 %v11217_v48 }
 0x384   : > { %v4552_v37 = vsel %vm4541_vm7, %v4535_v20, %v5734_v52  ;;  %5935 = vrcp.f32 %v272_v30  ;;  %v4536_v49 = vsel %vm4524_vm5, %v4519_v4, %v5760_v32  ;;  %v4622_v52 = vsel %vm4609_vm2, %v4605_v11, %v11282_v0  ;;  %p5986_p3 = pnand %p5985_p2, %p5979_p13 }
 0x385   : > { %5937 = vpow2.f32 %v255_v56  ;;  %v4553_v57 = vsel %vm4541_vm7, %v4536_v49, %v5735_v36  ;;  %v5785_v38 = vunpack.i.h.bf16 %v11209_v12  ;;  %v5789_v55 = vunpack.i.l.bf16 %v11234_v9 }
 0x386   : > { %4852 = vmatmul.mubr.f32.gmra.mrb[20].mxu0 %v4552_v37  ;;  %v4572_v53 = vsel %vm4558_vm6, %v5765_v50, %v5770_v61  ;;  %v5780_v36 = vunpack.i.h.bf16 %v11217_v48  ;;  %v5790_v12 = vunpack.i.h.bf16 %v11234_v9  ;;  %v226_v44 = vsub.f32 0.0, %v11018_v60  ;;  %v5803_v48 = vpop.permute.xlu0 %5802 }
 0x387   : > { %4856 = vmatprep.mubr.f32.mxu0 %v4621_v27  ;;  %v4589_v33 = vsel %vm4575_vm0, %v4572_v53, %v5775_v13  ;;  %v5794_v17 = vunpack.i.l.bf16 %v11429_v62  ;;  %v5804_v32 = vunpack.i.l.bf16 %v5803_v48  ;;  %v5795_v18 = vunpack.i.h.bf16 %v11429_v62 }
 0x388   : > { %v4606_v5 = vsel %vm12505_vm8, %v4589_v33, %v5785_v38  ;;  %v257_v9 = vmul.f32 1.442695, %v226_v44  ;;  %v5800_v49 = vunpack.i.h.bf16 %v11344_v45 }
 0x389   : > { %v4623_v54 = vsel %vm4609_vm2, %v4606_v5, %v11308_v2 }
 0x38a   : > { %4857 = vmatmul.mubr.f32.gmra.mrb[22].mxu0 %v4553_v57  ;;  %v5934_v26 = vpop.eup %5933  ;;  %5939 = vpow2.f32 %v257_v9 }
 0x38b   : > { %4861 = vmatprep.mubr.f32.mxu0 %v4622_v52  ;;  %v319_v7 = vmul.f32 %v12490_v15, %v5934_v26 }
 0x38d   : > { %v4520_v58 = vsel %vm4507_vm1, %v319_v7, %v5779_v22  ;;  %v4574_v22 = vsel %vm4558_vm6, %v5795_v18, %v5800_v49 }
 0x38e   : > { %v5936_v29 = vpop.eup %5935  ;;  %v4537_v28 = vsel %vm4524_vm5, %v4520_v58, %v5789_v55  ;;  %v5808_v51 = vpop.permute.xlu0 %5807 }
 0x38f   : > { %v4554_v15 = vsel %vm4541_vm7, %v4537_v28, %v5764_v16  ;;  %v320_v10 = vmul.f32 %v12492_v8, %v5936_v29  ;;  %v5938_v3 = vpop.eup %5937  ;;  %v5799_v16 = vunpack.i.l.bf16 %v11344_v45  ;;  %v5809_v41 = vunpack.i.l.bf16 %v5808_v51 }
 0x390   : > { %4862 = vmatmul.mubr.f32.gmra.mrb[24].mxu0 %v4554_v15  ;;  %v273_v59 = vadd.f32 1.0, %v5938_v3  ;;  %v5810_v25 = vunpack.i.h.bf16 %v5808_v51 }
 0x391   : > { %4866 = vmatprep.mubr.f32.mxu0 %v4623_v54  ;;  %v4521_v47 = vsel %vm4507_vm1, %v320_v10, %v5780_v36  ;;  %v4573_v21 = vsel %vm4558_vm6, %v5794_v17, %v5799_v16 }
 0x392   : > { %v4538_v19 = vsel %vm4524_vm5, %v4521_v47, %v5790_v12  ;;  %5941 = vrcp.f32 %v273_v59  ;;  %v4590_v34 = vsel %vm4575_vm0, %v4573_v21, %v5804_v32 }
 0x393   : > { %v4555_v1 = vsel %vm4541_vm7, %v4538_v19, %v5765_v50  ;;  %v5805_v50 = vunpack.i.h.bf16 %v5803_v48 }
 0x394   : > { %4867 = vmatmul.mubr.f32.gmra.mrb[26].mxu0 %v4555_v1  ;;  %v5940_v14 = vpop.eup %5939 }
 0x395   : > { %v274_v40 = vadd.f32 1.0, %v5940_v14  ;;  %v4591_v45 = vsel %vm4575_vm0, %v4574_v22, %v5805_v50 }
 0x397   : > { %5943 = vrcp.f32 %v274_v40 }
 0x39b   : > { %v5813_v46 = vpop.permute.xlu1 %5812 }
 0x39c   : > { %v5942_v31 = vpop.eup %5941  ;;  %v5814_v24 = vunpack.i.l.bf16 %v5813_v46  ;;  %v5815_v57 = vunpack.i.h.bf16 %v5813_v46 }
 0x39d   : > { %v321_v42 = vmul.f32 %v11063_v6, %v5942_v31 }
 0x39e   : > { %v4607_v56 = vsel %vm12506_vm9, %v4590_v34, %v5814_v24  ;;  %v4608_v53 = vsel %vm12507_vm10, %v4591_v45, %v5815_v57 }
 0x39f   : > { %v4482_v63 = vpop.permute.xlu0 %4481  ;;  %v5818_v39 = vpop.permute.xlu1 %5817 }
 0x3a0   : > { %v4638_v8 = vsel %vm4626_vm15, %v11138_v43, %v4482_v63  ;;  %v5819_v35 = vunpack.i.l.bf16 %v5818_v39  ;;  %v4522_v43 = vsel %vm4507_vm1, %v321_v42, %v5809_v41  ;;  %v5820_v61 = vunpack.i.h.bf16 %v5818_v39 }
 0x3a1   : > { %5475 = vmatmul.mubr.msk.f32.gmra.mrb[10].mxu1 %vm4684_vm3, %v4638_v8  ;;  %v5944_v4 = vpop.eup %5943 }
 0x3a2   : > { %v4539_v23 = vsel %vm4524_vm5, %v4522_v43, %v5819_v35  ;;  %v322_v11 = vmul.f32 %v11018_v60, %v5944_v4 }
 0x3a3   : > { %v4556_v6 = vsel %vm4541_vm7, %v4539_v23, %v5794_v17 }
 0x3a4   : > { %v4523_v38 = vsel %vm4507_vm1, %v322_v11, %v5810_v25 }
 0x3a5   : > { %v4540_v55 = vsel %vm4524_vm5, %v4523_v38, %v5820_v61 }
 0x3ac   : > { %v4424_v30 = vpop.permute.xlu0 %4423 }
 0x3ad   : > { %v4624_v20 = vsel %vm4609_vm2, %v4607_v56, %v4424_v30 }
 0x3ae   : > { %4871 = vmatprep.mubr.f32.mxu0 %v4624_v20 }
 0x3af   : > { %4872 = vmatmul.mubr.f32.gmra.mrb[28].mxu0 %v4556_v6 }
 0x3b0   : > { %v4484_v27 = vpop.permute.xlu1 %4483 }
 0x3b1   : > { %v4639_v37 = vsel %vm4626_vm15, %v11282_v0, %v4484_v27 }
 0x3b2   : > { %5477 = vmatprep.mubr.msk.f32.mxu1 %vm4684_vm3, %v4639_v37 }
 0x3b7   : > { %v4486_v52 = vpop.permute.xlu0 %4485 }
 0x3b8   : > { %v4640_v13 = vsel %vm4626_vm15, %v11308_v2, %v4486_v52  ;;  %v4557_v2 = vsel %vm4541_vm7, %v4540_v55, %v5795_v18 }
 0x3b9   : > { %5478 = vmatmul.mubr.msk.f32.gmra.mrb[12].mxu1 %vm4684_vm3, %v4640_v13 }
 0x3bc   : > { %v5368_v0 = vpop.f32.mrb[0].mxu0  ;;  %v4426_v62 = vpop.permute.xlu1 %4425 }
 0x3bd   : > { %v5369_v26 = vpop.f32.mrb[1].mxu0  ;;  %v4625_v7 = vsel %vm4609_vm2, %v4608_v53, %v4426_v62 }
 0x3be   : > { %v5370_v60 = vadd.f32 %v5369_v26, %v5368_v0  ;;  %4876 = vmatprep.mubr.f32.mxu0 %v4625_v7 }
 0x3bf   : > { %4877 = vmatmul.mubr.f32.gmra.mrb[30].mxu0 %v4557_v2 }
 0x3c4   : > { %v4488_v33 = vpop.permute.xlu0 %4487 }
 0x3c5   : > { %v4641_v36 = vsel %vm4626_vm15, %v4424_v30, %v4488_v33 }
 0x3c6   : > { %5480 = vmatprep.mubr.msk.f32.mxu1 %vm4684_vm3, %v4641_v36 }
 0x3ca   : > { %v4490_v58 = vpop.permute.xlu1 %4489 }
 0x3cb   : > { %v4642_v5 = vsel %vm4626_vm15, %v4426_v62, %v4490_v58 }
 0x3cc   : > { %5481 = vmatmul.mubr.msk.f32.gmra.mrb[14].mxu1 %vm4684_vm3, %v4642_v5 }
 0x3e1   : > { %v5371_v29 = vpop.f32.mrb[2].mxu0 }
 0x3e2   : > { %v5372_v12 = vpop.f32.mrb[3].mxu0 }
 0x3e3   : > { %v5373_v28 = vadd.f32 %v5372_v12, %v5371_v29 }
 0x41a   : > { %v5374_v54 = vpop.f32.mrb[4].mxu0 }
 0x41b   : > { %v5375_v44 = vpop.f32.mrb[5].mxu0 }
 0x41c   : > { %v5376_v15 = vadd.f32 %v5375_v44, %v5374_v54 }
 0x424   : > { %v5377_v10 = vpop.f32.mrb[6].mxu0 }
 0x425   : > { %v5378_v3 = vpop.f32.mrb[7].mxu0 }
 0x426   : > { %v5379_v48 = vadd.f32 %v5378_v3, %v5377_v10 }
 0x438   : > { %v5461_v47 = vpop.f32.mrb[0].mxu1 }
 0x439   : > { %v4954_v19 = vadd.f32 %v5461_v47, %v5373_v28  ;;  %v4948_v9 = vpop.f32.mrb[1].mxu1 }
 0x43a   : > { %v4949_v1 = vadd.f32 %v5370_v60, %v4948_v9 }
 0x43b   : > { %5028 = vst [vmem:[%s11483_s6 + $0x8] sm:$0xff] %v4954_v19 }
 0x43c   : > { %5027 = vst [vmem:[%s11483_s6] sm:$0xff] %v4949_v1  ;;  %v5464_v46 = vpop.f32.mrb[2].mxu1 }
 0x43d   : > { %v4964_v8 = vadd.f32 %v5464_v46, %v5379_v48  ;;  %v4958_v14 = vpop.f32.mrb[3].mxu1 }
 0x43e   : > { %v4959_v31 = vadd.f32 %v5376_v15, %v4958_v14 }
 0x43f   : > { %v5380_v59 = vpop.f32.mrb[8].mxu0  ;;  %5030 = vst [vmem:[%s11483_s6 + $0x18] sm:$0xff] %v4964_v8 }
 0x440   : > { %v5381_v51 = vpop.f32.mrb[9].mxu0  ;;  %5029 = vst [vmem:[%s11483_s6 + $0x10] sm:$0xff] %v4959_v31 }
 0x441   : > { %v5382_v63 = vadd.f32 %v5381_v51, %v5380_v59  ;;  %v5467_v40 = vpop.f32.mrb[4].mxu1 }
 0x442   : > { %v4968_v16 = vpop.f32.mrb[5].mxu1 }
 0x443   : > { %v5383_v39 = vpop.f32.mrb[10].mxu0  ;;  %v4969_v42 = vadd.f32 %v5382_v63, %v4968_v16 }
 0x444   : > { %v5384_v17 = vpop.f32.mrb[11].mxu0 }
 0x445   : > { %v5385_v41 = vadd.f32 %v5384_v17, %v5383_v39  ;;  %5031 = vst [vmem:[%s11483_s6 + $0x20] sm:$0xff] %v4969_v42  ;;  %v5470_v35 = vpop.f32.mrb[6].mxu1 }
 0x446   : > { %v4978_v21 = vpop.f32.mrb[7].mxu1 }
 0x447   : > { %v4974_v32 = vadd.f32 %v5467_v40, %v5385_v41  ;;  %v5386_v24 = vpop.f32.mrb[12].mxu0 }
 0x448   : > { %v5387_v43 = vpop.f32.mrb[13].mxu0 }
 0x449   : > { %5032 = vst [vmem:[%s11483_s6 + $0x28] sm:$0xff] %v4974_v32  ;;  %v5388_v34 = vadd.f32 %v5387_v43, %v5386_v24  ;;  %v5473_v23 = vpop.f32.mrb[8].mxu1 }
 0x44a   : > { %v4988_v20 = vpop.f32.mrb[9].mxu1 }
 0x44b   : > { %v5389_v30 = vpop.f32.mrb[14].mxu0  ;;  %v4979_v56 = vadd.f32 %v5388_v34, %v4978_v21 }
 0x44c   : > { %v5390_v6 = vpop.f32.mrb[15].mxu0 }
 0x44d   : > { %v5391_v27 = vadd.f32 %v5390_v6, %v5389_v30  ;;  %5033 = vst [vmem:[%s11483_s6 + $0x30] sm:$0xff] %v4979_v56 }
 0x44f   : > { %v4984_v37 = vadd.f32 %v5470_v35, %v5391_v27 }
 0x451   : > { %v5392_v4 = vpop.f32.mrb[16].mxu0  ;;  %5034 = vst [vmem:[%s11483_s6 + $0x38] sm:$0xff] %v4984_v37 }
 0x452   : > { %v5393_v18 = vpop.f32.mrb[17].mxu0 }
 0x453   : > { %v5394_v49 = vadd.f32 %v5393_v18, %v5392_v4 }
 0x455   : > { %v5395_v25 = vpop.f32.mrb[18].mxu0  ;;  %v4989_v11 = vadd.f32 %v5394_v49, %v4988_v20 }
 0x456   : > { %v5396_v50 = vpop.f32.mrb[19].mxu0 }
 0x457   : > { %v5397_v61 = vadd.f32 %v5396_v50, %v5395_v25  ;;  %5035 = vst [vmem:[%s11483_s6 + $0x40] sm:$0xff] %v4989_v11 }
 0x459   : > { %v4994_v52 = vadd.f32 %v5473_v23, %v5397_v61  ;;  %v5398_v57 = vpop.f32.mrb[20].mxu0 }
 0x45a   : > { %v5399_v13 = vpop.f32.mrb[21].mxu0 }
 0x45b   : > { %5036 = vst [vmem:[%s11483_s6 + $0x48] sm:$0xff] %v4994_v52  ;;  %v5400_v0 = vadd.f32 %v5399_v13, %v5398_v57 }
 0x45d   : > { %v5401_v22 = vpop.f32.mrb[22].mxu0 }
 0x45e   : > { %v5402_v38 = vpop.f32.mrb[23].mxu0 }
 0x45f   : > { %v5403_v26 = vadd.f32 %v5402_v38, %v5401_v22 }
 0x463   : > { %v5404_v45 = vpop.f32.mrb[24].mxu0 }
 0x464   : > { %v5405_v55 = vpop.f32.mrb[25].mxu0 }
 0x465   : > { %v5406_v60 = vadd.f32 %v5405_v55, %v5404_v45 }
 0x467   : > { %v5407_v62 = vpop.f32.mrb[26].mxu0 }
 0x468   : > { %v5408_v53 = vpop.f32.mrb[27].mxu0 }
 0x469   : > { %v5409_v7 = vadd.f32 %v5408_v53, %v5407_v62 }
 0x474   : > { %v5476_v2 = vpop.f32.mrb[10].mxu1 }
 0x475   : > { %v5004_v33 = vadd.f32 %v5476_v2, %v5403_v26  ;;  %v4998_v36 = vpop.f32.mrb[11].mxu1 }
 0x476   : > { %v4999_v58 = vadd.f32 %v5400_v0, %v4998_v36 }
 0x477   : > { %5038 = vst [vmem:[%s11483_s6 + $0x58] sm:$0xff] %v5004_v33 }
 0x478   : > { %5037 = vst [vmem:[%s11483_s6 + $0x50] sm:$0xff] %v4999_v58 }
 0x482   : > { %v5410_v5 = vpop.f32.mrb[28].mxu0 }
 0x483   : > { %v5411_v29 = vpop.f32.mrb[29].mxu0 }
 0x484   : > { %v5412_v12 = vadd.f32 %v5411_v29, %v5410_v5 }
 0x48c   : > { %v5479_v28 = vpop.f32.mrb[12].mxu1 }
 0x48d   : > { %v5014_v54 = vadd.f32 %v5479_v28, %v5409_v7  ;;  %v5008_v44 = vpop.f32.mrb[13].mxu1 }
 0x48e   : > { %v5009_v15 = vadd.f32 %v5406_v60, %v5008_v44 }
 0x48f   : > { %5040 = vst [vmem:[%s11483_s6 + $0x68] sm:$0xff] %v5014_v54 }
 0x490   : > { %5039 = vst [vmem:[%s11483_s6 + $0x60] sm:$0xff] %v5009_v15 }
 0x492   : > { %v5413_v10 = vpop.f32.mrb[30].mxu0 }
 0x493   : > { %v5414_v3 = vpop.f32.mrb[31].mxu0 }
 0x494   : > { %v5415_v48 = vadd.f32 %v5414_v3, %v5413_v10 }
 0x49f   : > { %v5482_v47 = vpop.f32.mrb[14].mxu1 }
 0x4a0   : > { %v5024_v19 = vadd.f32 %v5482_v47, %v5415_v48  ;;  %v5018_v9 = vpop.f32.mrb[15].mxu1 }
 0x4a1   : > { %v5019_v1 = vadd.f32 %v5412_v12, %v5018_v9 }
 0x4a2   : > { %5042 = vst [vmem:[%s11483_s6 + $0x78] sm:$0xff] %v5024_v19 }
 0x4a3   : > { %5041 = vst [vmem:[%s11483_s6 + $0x70] sm:$0xff] %v5019_v1 }
 0x4a4   : > { %5989 = shalt.err (!%p5986_p3)
}
 0x4a5   : > { %s5990_s29 = scalar_lea.hbm %s11504_s19, 2048  ;;  %s5994_s4 = scalar_lea.hbm %s11556_s3, 8192 }
 0x4a6   : > { %p5991_p4 = scmp.ne.s32.totalorder %s11504_s19, %s5990_s29  ;;  %p5995_p9 = scmp.lt.u32.totalorder %s11504_s19, %s11556_s3 }
 0x4a7   : > { %p5996_p10 = scmp.lt.u32.totalorder %s5994_s4, %s5990_s29  ;;  %p5998_p12 = scmp.lt.u32.totalorder %s5990_s29, %s11504_s19 }
 0x4a8   : > { %p5992_p7 = pnand %p5991_p4, %p6110_p5 }
 0x4a9   : > { %p5997_p11 = por %p5996_p10, %p5995_p9 }
 0x4aa   : > { %p5993_p8 = pneg %p5992_p7 }
 0x4ab   : > { %p5999_p13 = por %p5998_p12, %p5997_p11 }
 0x4ad   : > { %p6000_p0 = pnand %p5999_p13, %p5993_p8 }
 0x4af   : > { %6003 = shalt.err (!%p6000_p0)
}
 0x4b0   : > { %s6050_s25 = smov 128   ;;  %s6051_s5 = smov 8  }
 0x4b1   : > { %5531 = dma.vmem_to_hbm [thread:$0]  (%p6110_p5), %s11506_s10, 2048, %s11504_s19, %s11512_s20, %s6050_s25, %s6050_s25, %s6051_s5  }
 0x4b2 PF: > { %p5537_p1 = scmp.ge.s32.totalorder %s6038_s15, 2  ;;  %s5072_s6 = sand.u32 1, %s6026_s12  }
 0x4b3   : > { %s5073_s9 = scalar_lea.sflag [#allocation3], %s5072_s6 }
 0x4b4   : > { %p5534_p2 = pnand %p5537_p1, %p6114_p6 }
 0x4b6   : > { %6021 = dma.done.wait (!%p5534_p2), %s5073_s9, 2048  }
 0x4b7   : > { %6023 = vsyncadd (!%p5534_p2), %s5073_s9, 4294965248  ;;  %p13_p3 = scmp.ge.s32.totalorder %s6097_s18, 6   ;;  %s12508_s12 = smov %s6030_s13 }
 0x4b8   : > { %s12509_s13 = smov %s6034_s14  ;;  %s12510_s14 = smov %s6108_s21 }
 0x4b9   : > { %s12511_s15 = smov %s6097_s18  ;;  %15 = sbr.rel (!%p13_p3) target bundleno = 3 (0x3), region = 78 }
 0x4c0   :  { %5078 = vsyncpa [#allocation3], 1 }
 0x4c1   :  { %5080 = vsyncpa [#allocation3 + $0x1], 1 }

</bundles_post_ra>
